<compile_context>
chip_gen: v7x
topology: tpu7x:2x2x1
jax: 0.10.0
libtpu: 0.0.40
codegen_flags: <defaults>
</compile_context>

<pallas_src>
import functools

import jax
import jax.numpy as jnp
from jax.experimental import pallas as pl
from jax.experimental.pallas import tpu as pltpu

_BN_EPS = 1e-5


# ----------------------------------------------------------------------------
# Pallas kernels
# ----------------------------------------------------------------------------
def _apply_act(x, act):
    if act == "relu":
        return jnp.maximum(x, 0.0)
    if act == "sig":
        return jax.nn.sigmoid(x)
    return x


def _mm_kernel(p_ref, w_ref, t_ref, o_ref, *, act):
    # out = act(patches @ W_folded + shift_folded)
    acc = jnp.dot(p_ref[...], w_ref[...], preferred_element_type=jnp.float32)
    acc = acc + t_ref[...]
    o_ref[...] = _apply_act(acc, act).astype(o_ref.dtype)


def _mm2_kernel(p1_ref, p2_ref, w1_ref, w2_ref, t_ref, o_ref, *, act):
    # concat-free skip conv: two accumulating dots into one f32 accumulator.
    acc = jnp.dot(p1_ref[...], w1_ref[...], preferred_element_type=jnp.float32)
    acc = acc + jnp.dot(p2_ref[...], w2_ref[...],
                        preferred_element_type=jnp.float32)
    acc = acc + t_ref[...]
    o_ref[...] = _apply_act(acc, act).astype(o_ref.dtype)


def _patch_head_kernel(x_ref, w1_ref, t1_ref, w2_ref, t2_ref, o_ref):
    # fused conv_patch (relu) + conv_patch2 (sigmoid) at 1x1 spatial:
    # both 3x3 convs reduce to their centre tap, so this is two chained matmuls.
    h = jnp.dot(x_ref[...], w1_ref[...],
                preferred_element_type=jnp.float32) + t1_ref[...]
    h = jnp.maximum(h, 0.0)
    o = jnp.dot(h.astype(w2_ref.dtype), w2_ref[...],
                preferred_element_type=jnp.float32) + t2_ref[...]
    o_ref[...] = jax.nn.sigmoid(o).astype(o_ref.dtype)


# ----------------------------------------------------------------------------
# pallas_call wrappers
# ----------------------------------------------------------------------------
def _pad_rows(x, mult=8):
    m = x.shape[0]
    pad = (-m) % mult
    if pad:
        x = jnp.pad(x, ((0, pad), (0, 0)))
    return x, m


def _row_tile(mp):
    # tile M so a second TensorCore (v7x megacore) can take half the big layers.
    if mp > 256 and mp % 256 == 0:
        return 256
    return mp


_PARALLEL = pltpu.CompilerParams(dimension_semantics=("parallel",))


def fused_matmul(pm, wm, shift, act):
    """pm: (M, K) f32 patches, wm: (K, Cout) bf16 folded weight. -> (M, Cout)."""
    pm, m = _pad_rows(pm.astype(jnp.bfloat16))
    mp, k = pm.shape
    cout = wm.shape[1]
    tm = _row_tile(mp)
    kern = functools.partial(_mm_kernel, act=act)
    out = pl.pallas_call(
        kern,
        out_shape=jax.ShapeDtypeStruct((mp, cout), jnp.float32),
        grid=(mp // tm,),
        in_specs=[
            pl.BlockSpec((tm, k), lambda i: (i, 0)),
            pl.BlockSpec((k, cout), lambda i: (0, 0)),
            pl.BlockSpec((1, cout), lambda i: (0, 0)),
        ],
        out_specs=pl.BlockSpec((tm, cout), lambda i: (i, 0)),
        compiler_params=_PARALLEL,
    )(pm, wm, shift)
    return out[:m]


def fused_matmul2(pm1, pm2, wm1, wm2, shift, act):
    """Two patch matrices sharing M, weight split along K (skip concat)."""
    pm1, m = _pad_rows(pm1.astype(jnp.bfloat16))
    pm2, _ = _pad_rows(pm2.astype(jnp.bfloat16))
    mp, k1 = pm1.shape
    k2 = pm2.shape[1]
    cout = wm1.shape[1]
    tm = _row_tile(mp)
    kern = functools.partial(_mm2_kernel, act=act)
    out = pl.pallas_call(
        kern,
        out_shape=jax.ShapeDtypeStruct((mp, cout), jnp.float32),
        grid=(mp // tm,),
        in_specs=[
            pl.BlockSpec((tm, k1), lambda i: (i, 0)),
            pl.BlockSpec((tm, k2), lambda i: (i, 0)),
            pl.BlockSpec((k1, cout), lambda i: (0, 0)),
            pl.BlockSpec((k2, cout), lambda i: (0, 0)),
            pl.BlockSpec((1, cout), lambda i: (0, 0)),
        ],
        out_specs=pl.BlockSpec((tm, cout), lambda i: (i, 0)),
        compiler_params=_PARALLEL,
    )(pm1, pm2, wm1, wm2, shift)
    return out[:m]


def patch_head(x_nhwc, p):
    """Fused conv_patch + conv_patch2 head (input must be 1x1 spatial)."""
    N, H, W, C = x_nhwc.shape
    assert H == 1 and W == 1, "patch head specialization assumes 1x1 spatial"
    x2, m = _pad_rows(x_nhwc.reshape(N, C).astype(jnp.bfloat16))
    mp = x2.shape[0]
    c1 = p["w1"].shape[1]
    c2 = p["w2"].shape[1]
    out = pl.pallas_call(
        _patch_head_kernel,
        out_shape=jax.ShapeDtypeStruct((mp, c2), jnp.float32),
        grid=(1,),
        in_specs=[
            pl.BlockSpec((mp, C), lambda i: (0, 0)),
            pl.BlockSpec((C, c1), lambda i: (0, 0)),
            pl.BlockSpec((1, c1), lambda i: (0, 0)),
            pl.BlockSpec((c1, c2), lambda i: (0, 0)),
            pl.BlockSpec((1, c2), lambda i: (0, 0)),
        ],
        out_specs=pl.BlockSpec((mp, c2), lambda i: (0, 0)),
    )(x2, p["w1"], p["t1"], p["w2"], p["t2"])
    # true output channels == 1 (lanes were padded to 128 for dense stores)
    return out[:m, :1].reshape(N, 1, 1, 1)


# ----------------------------------------------------------------------------
# Conv blocks (im2col glue + fused Pallas matmul)
# ----------------------------------------------------------------------------
def _im2col(x_nhwc, k, stride, pad):
    N, H, W, C = x_nhwc.shape
    xp = jnp.pad(x_nhwc, ((0, 0), (pad, pad), (pad, pad), (0, 0)))
    Ho = (H + 2 * pad - k) // stride + 1
    Wo = (W + 2 * pad - k) // stride + 1
    cols = []
    for i in range(k):
        for j in range(k):
            cols.append(xp[:, i:i + stride * Ho:stride, j:j + stride * Wo:stride, :])
    patches = jnp.concatenate(cols, axis=-1)           # (N, Ho, Wo, k*k*C)
    return patches.reshape(N * Ho * Wo, k * k * C), (N, Ho, Wo)


def conv_block(x_nhwc, p, k, stride, pad, act, cout=None):
    """BlockConv2d: ZeroPad2d(pad) -> Conv2d(k, stride) -> BN -> act.

    `cout` is a static Python int (real channel count); defaults to the
    weight's (possibly lane-padded) output width.
    """
    pm, (N, Ho, Wo) = _im2col(x_nhwc, k, stride, pad)
    out = fused_matmul(pm, p["wm"], p["shift"], act)
    c = int(p["wm"].shape[1]) if cout is None else cout
    return out[:, :c].reshape(N, Ho, Wo, c)


def convT_subpixel(x_nhwc, p, act):
    """BlockConvTranspose2d(4,2,1) via 4-phase sub-pixel decomposition."""
    pm, (N, H, W) = _im2col(x_nhwc, 3, 1, 1)
    out = fused_matmul(pm, p["wm"], p["shift"], act)    # (N*H*W, 4*Cout)
    cout = int(p["wm"].shape[1]) // 4                   # static
    out = out.reshape(N, H, W, 2, 2, cout)
    out = jnp.transpose(out, (0, 1, 3, 2, 4, 5))        # (N, H, 2, W, 2, C)
    return out.reshape(N, 2 * H, 2 * W, cout)


def skip_conv_block(y_nhwc, skip_nhwc, p, act):
    """3x3 conv on channel-concat [y, skip] without materializing the concat."""
    pm1, (N, Ho, Wo) = _im2col(y_nhwc, 3, 1, 1)
    pm2, _ = _im2col(skip_nhwc, 3, 1, 1)
    out = fused_matmul2(pm1, pm2, p["wm1"], p["wm2"], p["shift"], act)
    cout = int(p["wm1"].shape[1])                       # static
    return out[:, :cout].reshape(N, Ho, Wo, cout)


# ----------------------------------------------------------------------------
# Deterministic parameter initialization (bias + BN folded into weights)
# ----------------------------------------------------------------------------
def _raw_conv(key, k, cin, cout, norm):
    k1, k2, k3, k4 = jax.random.split(key, 4)
    fan_in = cin * k * k
    w = jax.random.normal(k1, (k, k, cin, cout), jnp.float32) / jnp.sqrt(fan_in)
    b = 0.01 * jax.random.normal(k2, (cout,), jnp.float32)
    if norm == "bn":
        gamma = 1.0 + 0.1 * jax.random.normal(k3, (cout,), jnp.float32)
        beta = 0.1 * jax.random.normal(k4, (cout,), jnp.float32)
        scale = gamma / jnp.sqrt(1.0 + _BN_EPS)   # eval BN, running stats (0,1)
        shift_bn = beta
    else:
        scale = jnp.ones((cout,), jnp.float32)
        shift_bn = jnp.zeros((cout,), jnp.float32)
    # fold: act((xW + b)*scale + beta) == act(x(W*scale) + (b*scale + beta))
    return w * scale, b * scale + shift_bn


def _make_conv(key, k, cin, cout, norm, pad_cout_to=None):
    w_f, t_f = _raw_conv(key, k, cin, cout, norm)
    wm = w_f.reshape(k * k * cin, cout)
    if pad_cout_to is not None and pad_cout_to > cout:
        wm = jnp.pad(wm, ((0, 0), (0, pad_cout_to - cout)))
        t_f = jnp.pad(t_f, (0, pad_cout_to - cout))
    return {"wm": wm.astype(jnp.bfloat16),
            "shift": t_f.reshape(1, -1).astype(jnp.float32)}


def _make_convT(key, cin, cout, norm):
    # Synthetic ConvTranspose2d(4,2,1) weights in equivalent stride-1 conv
    # layout; packed into a 3x3 stride-1 conv with 4*Cout phase channels:
    #   out[2q+0] = W[0] x[q-1] + W[2] x[q];  out[2q+1] = W[1] x[q] + W[3] x[q+1]
    w_f, t_f = _raw_conv(key, 4, cin, cout, norm)
    w_sub = jnp.zeros((3, 3, cin, 4 * cout), jnp.float32)
    tap = {0: {0: 0, 2: 1}, 1: {1: 1, 3: 2}}   # phase -> {tap_idx: window_idx}
    for rh in (0, 1):
        for rw in (0, 1):
            ph = rh * 2 + rw
            for ki, wi in tap[rh].items():
                for kj, wj in tap[rw].items():
                    w_sub = w_sub.at[wi, wj, :, ph * cout:(ph + 1) * cout].set(
                        w_f[ki, kj])
    return {"wm": w_sub.reshape(9 * cin, 4 * cout).astype(jnp.bfloat16),
            "shift": jnp.tile(t_f, 4).reshape(1, -1).astype(jnp.float32)}


def _make_skip_conv(key, c1, c2, cout, norm):
    w_f, t_f = _raw_conv(key, 3, c1 + c2, cout, norm)
    wm1 = w_f[:, :, :c1, :].reshape(9 * c1, cout)     # decoder-activation half
    wm2 = w_f[:, :, c1:, :].reshape(9 * c2, cout)     # skip-connection half
    return {"wm1": wm1.astype(jnp.bfloat16),
            "wm2": wm2.astype(jnp.bfloat16),
            "shift": t_f.reshape(1, -1).astype(jnp.float32)}


def _make_patch_head(key, cin, chid):
    k1, k2 = jax.random.split(key)
    w1_f, t1_f = _raw_conv(k1, 3, cin, chid, "bn")    # conv_patch
    w2_f, t2_f = _raw_conv(k2, 3, chid, 1, "none")    # conv_patch2
    # at 1x1 spatial (pad=1) a 3x3 conv reduces to its centre tap.
    w1c = w1_f[1, 1]                                  # (cin, chid)
    w2c = jnp.pad(w2_f[1, 1], ((0, 0), (0, 127)))     # pad Cout 1 -> 128 lanes
    t2 = jnp.pad(t2_f, (0, 127))
    return {"w1": w1c.astype(jnp.bfloat16),
            "t1": t1_f.reshape(1, -1).astype(jnp.float32),
            "w2": w2c.astype(jnp.bfloat16),
            "t2": t2.reshape(1, -1).astype(jnp.float32)}


def init_unet_params(seed=0):
    key = jax.random.PRNGKey(seed)
    keys = iter(jax.random.split(key, 32))
    params = {}
    params["conv0"] = _make_conv(next(keys), 3, 3, 16, "bn")
    enc_ch = [16, 32, 64, 128, 256]
    params["enc"] = [
        _make_conv(next(keys), 4, enc_ch[i], enc_ch[i + 1], "bn") for i in range(4)
    ]
    params["patch_head"] = _make_patch_head(next(keys), 256, 64)
    dec_io = [(256, 128), (128, 64), (64, 32), (32, 16)]
    params["dec"] = [_make_convT(next(keys), ci, co, "bn") for ci, co in dec_io]
    params["dec4"] = _make_conv(next(keys), 3, 16, 16, "bn")
    convs_ch = [(128, 128, 128), (64, 64, 64), (32, 32, 32), (16, 16, 16)]
    params["convs"] = [
        _make_skip_conv(next(keys), c1, c2, co, "bn") for c1, c2, co in convs_ch
    ]
    params["conv"] = _make_conv(next(keys), 3, 16, 1, "none", pad_cout_to=128)
    return params


# ----------------------------------------------------------------------------
# Forward pass (mode_patch=True, eval mode)
# ----------------------------------------------------------------------------
def unet_forward(x_nchw, params):
    x = jnp.transpose(x_nchw, (0, 2, 3, 1)).astype(jnp.float32)   # -> NHWC

    x = conv_block(x, params["conv0"], 3, 1, 1, "relu")           # drop == id
    x_enc = [x]
    for i in range(4):
        x_enc.append(conv_block(x_enc[-1], params["enc"][i], 4, 2, 1, "relu"))

    # patch head: fused conv_patch (relu) + conv_patch2 (sigmoid), one launch
    y_patch = patch_head(x_enc[-1], params["patch_head"])

    # decoder with concat-free skip connections
    y = x_enc[-1]
    for i in range(4):
        y = convT_subpixel(y, params["dec"][i], "relu")
        y = skip_conv_block(y, x_enc[-(i + 2)], params["convs"][i], "relu")
    # TODO(synk): dec4 + final conv could be fused with in-kernel im2col.
    y = conv_block(y, params["dec4"], 3, 1, 1, "relu")
    y = conv_block(y, params["conv"], 3, 1, 1, "sig", cout=1)     # lanes padded

    y = jnp.transpose(y, (0, 3, 1, 2))            # back to NCHW
    y_patch = jnp.transpose(y_patch, (0, 3, 1, 2))
    return y, y_patch


if __name__ == "__main__":
    key = jax.random.PRNGKey(0)
    # Spatial 16 survives the 4 stride-2 encoders (16 -> 8 -> 4 -> 2 -> 1).
    x = jax.random.normal(key, (2, 3, 16, 16), jnp.float32)

    params = init_unet_params(seed=0)
    fwd = jax.jit(unet_forward)
    y, y_patch = fwd(x, params)
    jax.block_until_ready((y, y_patch))

    assert y.shape == (2, 1, 16, 16), y.shape
    assert y_patch.shape == (2, 1, 1, 1), y_patch.shape
    assert bool(jnp.all(jnp.isfinite(y))) and bool(jnp.all(jnp.isfinite(y_patch)))
    print("KERNEL_OK")
</pallas_src>

<mosaic_0001>
module attributes {stable_mosaic.version = 11 : i64} {
  func.func @_mm_kernel(%arg0: i32, %arg1: memref<256x27xbf16, #tpu.memory_space<vmem>>, %arg2: memref<27x16xbf16, #tpu.memory_space<vmem>>, %arg3: memref<1x16xf32, #tpu.memory_space<vmem>>, %arg4: memref<256x16xf32, #tpu.memory_space<vmem>>) attributes {dimension_semantics = [#tpu.dimension_semantics<parallel>], iteration_bounds = array<i64: 2>, scalar_prefetch = 0 : i64, scratch_operands = 0 : i64, tpu.core_type = #tpu.core_type<tc>, window_params = [{transform_indices = @transform_0, window_bounds = array<i64: 256, 27>}, {pipeline_mode = #tpu.pipeline_mode<synchronous>, transform_indices = @transform_1, window_bounds = array<i64: 27, 16>}, {pipeline_mode = #tpu.pipeline_mode<synchronous>, transform_indices = @transform_2, window_bounds = array<i64: 1, 16>}, {transform_indices = @transform_3, window_bounds = array<i64: 256, 16>}]} {
    %c0 = arith.constant 0 : index
    %c0_0 = arith.constant 0 : index
    %0 = vector.load %arg1[%c0, %c0_0] : memref<256x27xbf16, #tpu.memory_space<vmem>>, vector<256x27xbf16>
    %c0_1 = arith.constant 0 : index
    %c0_2 = arith.constant 0 : index
    %1 = vector.load %arg2[%c0_1, %c0_2] : memref<27x16xbf16, #tpu.memory_space<vmem>>, vector<27x16xbf16>
    %cst = arith.constant dense<0.000000e+00> : vector<256x16xf32>
    %2 = tpu.matmul %0, %1, %cst {dimension_numbers = #tpu.dot_dimension_numbers<[1], [0], [0], [1], [0, 0, 1, 1], [], []>} : vector<256x27xbf16>, vector<27x16xbf16>, vector<256x16xf32> -> vector<256x16xf32>
    %c0_3 = arith.constant 0 : index
    %c0_4 = arith.constant 0 : index
    %3 = vector.load %arg3[%c0_3, %c0_4] : memref<1x16xf32, #tpu.memory_space<vmem>>, vector<1x16xf32>
    %4 = vector.broadcast %3 : vector<1x16xf32> to vector<256x16xf32>
    %5 = arith.addf %2, %4 : vector<256x16xf32>
    %cst_5 = arith.constant 0.000000e+00 : f32
    %6 = vector.broadcast %cst_5 : f32 to vector<256x16xf32>
    %7 = arith.maximumf %5, %6 : vector<256x16xf32>
    %c0_6 = arith.constant 0 : index
    %c0_7 = arith.constant 0 : index
    %8 = vector.load %arg4[%c0_6, %c0_7] : memref<256x16xf32, #tpu.memory_space<vmem>>, vector<256x16xf32>
    tpu.vector_store %arg4[%c0_6, %c0_7], %7 {strides = array<i32>} : memref<256x16xf32, #tpu.memory_space<vmem>>, vector<256x16xf32>,
    return
  }
  func.func @transform_0(%arg0: i32) -> (i32, i32) {
    %c0_i32 = arith.constant 0 : i32
    %c0_i32_0 = arith.constant 0 : i32
    return %arg0, %c0_i32 : i32, i32
  }
  func.func @transform_1(%arg0: i32) -> (i32, i32) {
    %c0_i32 = arith.constant 0 : i32
    %c0_i32_0 = arith.constant 0 : i32
    %c0_i32_1 = arith.constant 0 : i32
    return %c0_i32, %c0_i32_0 : i32, i32
  }
  func.func @transform_2(%arg0: i32) -> (i32, i32) {
    %c0_i32 = arith.constant 0 : i32
    %c0_i32_0 = arith.constant 0 : i32
    %c0_i32_1 = arith.constant 0 : i32
    return %c0_i32, %c0_i32_0 : i32, i32
  }
  func.func @transform_3(%arg0: i32) -> (i32, i32) {
    %c0_i32 = arith.constant 0 : i32
    %c0_i32_0 = arith.constant 0 : i32
    return %arg0, %c0_i32 : i32, i32
  }
}

module attributes {stable_mosaic.version = 11 : i64} {
  func.func @_mm_kernel(%arg0: i32, %arg1: memref<128x256xbf16, #tpu.memory_space<vmem>>, %arg2: memref<256x32xbf16, #tpu.memory_space<vmem>>, %arg3: memref<1x32xf32, #tpu.memory_space<vmem>>, %arg4: memref<128x32xf32, #tpu.memory_space<vmem>>) attributes {dimension_semantics = [#tpu.dimension_semantics<parallel>], iteration_bounds = array<i64: 1>, scalar_prefetch = 0 : i64, scratch_operands = 0 : i64, tpu.core_type = #tpu.core_type<tc>, window_params = [{transform_indices = @transform_0, window_bounds = array<i64: 128, 256>}, {pipeline_mode = #tpu.pipeline_mode<synchronous>, transform_indices = @transform_1, window_bounds = array<i64: 256, 32>}, {pipeline_mode = #tpu.pipeline_mode<synchronous>, transform_indices = @transform_2, window_bounds = array<i64: 1, 32>}, {transform_indices = @transform_3, window_bounds = array<i64: 128, 32>}]} {
    %c0 = arith.constant 0 : index
    %c0_0 = arith.constant 0 : index
    %0 = vector.load %arg1[%c0, %c0_0] : memref<128x256xbf16, #tpu.memory_space<vmem>>, vector<128x256xbf16>
    %c0_1 = arith.constant 0 : index
    %c0_2 = arith.constant 0 : index
    %1 = vector.load %arg2[%c0_1, %c0_2] : memref<256x32xbf16, #tpu.memory_space<vmem>>, vector<256x32xbf16>
    %cst = arith.constant dense<0.000000e+00> : vector<128x32xf32>
    %2 = tpu.matmul %0, %1, %cst {dimension_numbers = #tpu.dot_dimension_numbers<[1], [0], [0], [1], [0, 0, 1, 1], [], []>} : vector<128x256xbf16>, vector<256x32xbf16>, vector<128x32xf32> -> vector<128x32xf32>
    %c0_3 = arith.constant 0 : index
    %c0_4 = arith.constant 0 : index
    %3 = vector.load %arg3[%c0_3, %c0_4] : memref<1x32xf32, #tpu.memory_space<vmem>>, vector<1x32xf32>
    %4 = vector.broadcast %3 : vector<1x32xf32> to vector<128x32xf32>
    %5 = arith.addf %2, %4 : vector<128x32xf32>
    %cst_5 = arith.constant 0.000000e+00 : f32
    %6 = vector.broadcast %cst_5 : f32 to vector<128x32xf32>
    %7 = arith.maximumf %5, %6 : vector<128x32xf32>
    %c0_6 = arith.constant 0 : index
    %c0_7 = arith.constant 0 : index
    %8 = vector.load %arg4[%c0_6, %c0_7] : memref<128x32xf32, #tpu.memory_space<vmem>>, vector<128x32xf32>
    tpu.vector_store %arg4[%c0_6, %c0_7], %7 {strides = array<i32>} : memref<128x32xf32, #tpu.memory_space<vmem>>, vector<128x32xf32>,
    return
  }
  func.func @transform_0(%arg0: i32) -> (i32, i32) {
    %c0_i32 = arith.constant 0 : i32
    %c0_i32_0 = arith.constant 0 : i32
    return %arg0, %c0_i32 : i32, i32
  }
  func.func @transform_1(%arg0: i32) -> (i32, i32) {
    %c0_i32 = arith.constant 0 : i32
    %c0_i32_0 = arith.constant 0 : i32
    %c0_i32_1 = arith.constant 0 : i32
    return %c0_i32, %c0_i32_0 : i32, i32
  }
  func.func @transform_2(%arg0: i32) -> (i32, i32) {
    %c0_i32 = arith.constant 0 : i32
    %c0_i32_0 = arith.constant 0 : i32
    %c0_i32_1 = arith.constant 0 : i32
    return %c0_i32, %c0_i32_0 : i32, i32
  }
  func.func @transform_3(%arg0: i32) -> (i32, i32) {
    %c0_i32 = arith.constant 0 : i32
    %c0_i32_0 = arith.constant 0 : i32
    return %arg0, %c0_i32 : i32, i32
  }
}

module attributes {stable_mosaic.version = 11 : i64} {
  func.func @_mm_kernel(%arg0: i32, %arg1: memref<32x512xbf16, #tpu.memory_space<vmem>>, %arg2: memref<512x64xbf16, #tpu.memory_space<vmem>>, %arg3: memref<1x64xf32, #tpu.memory_space<vmem>>, %arg4: memref<32x64xf32, #tpu.memory_space<vmem>>) attributes {dimension_semantics = [#tpu.dimension_semantics<parallel>], iteration_bounds = array<i64: 1>, scalar_prefetch = 0 : i64, scratch_operands = 0 : i64, tpu.core_type = #tpu.core_type<tc>, window_params = [{transform_indices = @transform_0, window_bounds = array<i64: 32, 512>}, {pipeline_mode = #tpu.pipeline_mode<synchronous>, transform_indices = @transform_1, window_bounds = array<i64: 512, 64>}, {pipeline_mode = #tpu.pipeline_mode<synchronous>, transform_indices = @transform_2, window_bounds = array<i64: 1, 64>}, {transform_indices = @transform_3, window_bounds = array<i64: 32, 64>}]} {
    %c0 = arith.constant 0 : index
    %c0_0 = arith.constant 0 : index
    %0 = vector.load %arg1[%c0, %c0_0] : memref<32x512xbf16, #tpu.memory_space<vmem>>, vector<32x512xbf16>
    %c0_1 = arith.constant 0 : index
    %c0_2 = arith.constant 0 : index
    %1 = vector.load %arg2[%c0_1, %c0_2] : memref<512x64xbf16, #tpu.memory_space<vmem>>, vector<512x64xbf16>
    %cst = arith.constant dense<0.000000e+00> : vector<32x64xf32>
    %2 = tpu.matmul %0, %1, %cst {dimension_numbers = #tpu.dot_dimension_numbers<[1], [0], [0], [1], [0, 0, 1, 1], [], []>} : vector<32x512xbf16>, vector<512x64xbf16>, vector<32x64xf32> -> vector<32x64xf32>
    %c0_3 = arith.constant 0 : index
    %c0_4 = arith.constant 0 : index
    %3 = vector.load %arg3[%c0_3, %c0_4] : memref<1x64xf32, #tpu.memory_space<vmem>>, vector<1x64xf32>
    %4 = vector.broadcast %3 : vector<1x64xf32> to vector<32x64xf32>
    %5 = arith.addf %2, %4 : vector<32x64xf32>
    %cst_5 = arith.constant 0.000000e+00 : f32
    %6 = vector.broadcast %cst_5 : f32 to vector<32x64xf32>
    %7 = arith.maximumf %5, %6 : vector<32x64xf32>
    %c0_6 = arith.constant 0 : index
    %c0_7 = arith.constant 0 : index
    %8 = vector.load %arg4[%c0_6, %c0_7] : memref<32x64xf32, #tpu.memory_space<vmem>>, vector<32x64xf32>
    tpu.vector_store %arg4[%c0_6, %c0_7], %7 {strides = array<i32>} : memref<32x64xf32, #tpu.memory_space<vmem>>, vector<32x64xf32>,
    return
  }
  func.func @transform_0(%arg0: i32) -> (i32, i32) {
    %c0_i32 = arith.constant 0 : i32
    %c0_i32_0 = arith.constant 0 : i32
    return %arg0, %c0_i32 : i32, i32
  }
  func.func @transform_1(%arg0: i32) -> (i32, i32) {
    %c0_i32 = arith.constant 0 : i32
    %c0_i32_0 = arith.constant 0 : i32
    %c0_i32_1 = arith.constant 0 : i32
    return %c0_i32, %c0_i32_0 : i32, i32
  }
  func.func @transform_2(%arg0: i32) -> (i32, i32) {
    %c0_i32 = arith.constant 0 : i32
    %c0_i32_0 = arith.constant 0 : i32
    %c0_i32_1 = arith.constant 0 : i32
    return %c0_i32, %c0_i32_0 : i32, i32
  }
  func.func @transform_3(%arg0: i32) -> (i32, i32) {
    %c0_i32 = arith.constant 0 : i32
    %c0_i32_0 = arith.constant 0 : i32
    return %arg0, %c0_i32 : i32, i32
  }
}

module attributes {stable_mosaic.version = 11 : i64} {
  func.func @_mm_kernel(%arg0: i32, %arg1: memref<8x1024xbf16, #tpu.memory_space<vmem>>, %arg2: memref<1024x128xbf16, #tpu.memory_space<vmem>>, %arg3: memref<1x128xf32, #tpu.memory_space<vmem>>, %arg4: memref<8x128xf32, #tpu.memory_space<vmem>>) attributes {dimension_semantics = [#tpu.dimension_semantics<parallel>], iteration_bounds = array<i64: 1>, scalar_prefetch = 0 : i64, scratch_operands = 0 : i64, tpu.core_type = #tpu.core_type<tc>, window_params = [{transform_indices = @transform_0, window_bounds = array<i64: 8, 1024>}, {pipeline_mode = #tpu.pipeline_mode<synchronous>, transform_indices = @transform_1, window_bounds = array<i64: 1024, 128>}, {pipeline_mode = #tpu.pipeline_mode<synchronous>, transform_indices = @transform_2, window_bounds = array<i64: 1, 128>}, {transform_indices = @transform_3, window_bounds = array<i64: 8, 128>}]} {
    %c0 = arith.constant 0 : index
    %c0_0 = arith.constant 0 : index
    %0 = vector.load %arg1[%c0, %c0_0] : memref<8x1024xbf16, #tpu.memory_space<vmem>>, vector<8x1024xbf16>
    %c0_1 = arith.constant 0 : index
    %c0_2 = arith.constant 0 : index
    %1 = vector.load %arg2[%c0_1, %c0_2] : memref<1024x128xbf16, #tpu.memory_space<vmem>>, vector<1024x128xbf16>
    %cst = arith.constant dense<0.000000e+00> : vector<8x128xf32>
    %2 = tpu.matmul %0, %1, %cst {dimension_numbers = #tpu.dot_dimension_numbers<[1], [0], [0], [1], [0, 0, 1, 1], [], []>} : vector<8x1024xbf16>, vector<1024x128xbf16>, vector<8x128xf32> -> vector<8x128xf32>
    %c0_3 = arith.constant 0 : index
    %c0_4 = arith.constant 0 : index
    %3 = vector.load %arg3[%c0_3, %c0_4] : memref<1x128xf32, #tpu.memory_space<vmem>>, vector<1x128xf32>
    %4 = vector.broadcast %3 : vector<1x128xf32> to vector<8x128xf32>
    %5 = arith.addf %2, %4 : vector<8x128xf32>
    %cst_5 = arith.constant 0.000000e+00 : f32
    %6 = vector.broadcast %cst_5 : f32 to vector<8x128xf32>
    %7 = arith.maximumf %5, %6 : vector<8x128xf32>
    %c0_6 = arith.constant 0 : index
    %c0_7 = arith.constant 0 : index
    %8 = vector.load %arg4[%c0_6, %c0_7] : memref<8x128xf32, #tpu.memory_space<vmem>>, vector<8x128xf32>
    tpu.vector_store %arg4[%c0_6, %c0_7], %7 {strides = array<i32>} : memref<8x128xf32, #tpu.memory_space<vmem>>, vector<8x128xf32>,
    return
  }
  func.func @transform_0(%arg0: i32) -> (i32, i32) {
    %c0_i32 = arith.constant 0 : i32
    %c0_i32_0 = arith.constant 0 : i32
    return %arg0, %c0_i32 : i32, i32
  }
  func.func @transform_1(%arg0: i32) -> (i32, i32) {
    %c0_i32 = arith.constant 0 : i32
    %c0_i32_0 = arith.constant 0 : i32
    %c0_i32_1 = arith.constant 0 : i32
    return %c0_i32, %c0_i32_0 : i32, i32
  }
  func.func @transform_2(%arg0: i32) -> (i32, i32) {
    %c0_i32 = arith.constant 0 : i32
    %c0_i32_0 = arith.constant 0 : i32
    %c0_i32_1 = arith.constant 0 : i32
    return %c0_i32, %c0_i32_0 : i32, i32
  }
  func.func @transform_3(%arg0: i32) -> (i32, i32) {
    %c0_i32 = arith.constant 0 : i32
    %c0_i32_0 = arith.constant 0 : i32
    return %arg0, %c0_i32 : i32, i32
  }
}

module attributes {stable_mosaic.version = 11 : i64} {
  func.func @_mm_kernel(%arg0: i32, %arg1: memref<8x2048xbf16, #tpu.memory_space<vmem>>, %arg2: memref<2048x256xbf16, #tpu.memory_space<vmem>>, %arg3: memref<1x256xf32, #tpu.memory_space<vmem>>, %arg4: memref<8x256xf32, #tpu.memory_space<vmem>>) attributes {dimension_semantics = [#tpu.dimension_semantics<parallel>], iteration_bounds = array<i64: 1>, scalar_prefetch = 0 : i64, scratch_operands = 0 : i64, tpu.core_type = #tpu.core_type<tc>, window_params = [{transform_indices = @transform_0, window_bounds = array<i64: 8, 2048>}, {pipeline_mode = #tpu.pipeline_mode<synchronous>, transform_indices = @transform_1, window_bounds = array<i64: 2048, 256>}, {pipeline_mode = #tpu.pipeline_mode<synchronous>, transform_indices = @transform_2, window_bounds = array<i64: 1, 256>}, {transform_indices = @transform_3, window_bounds = array<i64: 8, 256>}]} {
    %c0 = arith.constant 0 : index
    %c0_0 = arith.constant 0 : index
    %0 = vector.load %arg1[%c0, %c0_0] : memref<8x2048xbf16, #tpu.memory_space<vmem>>, vector<8x2048xbf16>
    %c0_1 = arith.constant 0 : index
    %c0_2 = arith.constant 0 : index
    %1 = vector.load %arg2[%c0_1, %c0_2] : memref<2048x256xbf16, #tpu.memory_space<vmem>>, vector<2048x256xbf16>
    %cst = arith.constant dense<0.000000e+00> : vector<8x256xf32>
    %2 = tpu.matmul %0, %1, %cst {dimension_numbers = #tpu.dot_dimension_numbers<[1], [0], [0], [1], [0, 0, 1, 1], [], []>} : vector<8x2048xbf16>, vector<2048x256xbf16>, vector<8x256xf32> -> vector<8x256xf32>
    %c0_3 = arith.constant 0 : index
    %c0_4 = arith.constant 0 : index
    %3 = vector.load %arg3[%c0_3, %c0_4] : memref<1x256xf32, #tpu.memory_space<vmem>>, vector<1x256xf32>
    %4 = vector.broadcast %3 : vector<1x256xf32> to vector<8x256xf32>
    %5 = arith.addf %2, %4 : vector<8x256xf32>
    %cst_5 = arith.constant 0.000000e+00 : f32
    %6 = vector.broadcast %cst_5 : f32 to vector<8x256xf32>
    %7 = arith.maximumf %5, %6 : vector<8x256xf32>
    %c0_6 = arith.constant 0 : index
    %c0_7 = arith.constant 0 : index
    %8 = vector.load %arg4[%c0_6, %c0_7] : memref<8x256xf32, #tpu.memory_space<vmem>>, vector<8x256xf32>
    tpu.vector_store %arg4[%c0_6, %c0_7], %7 {strides = array<i32>} : memref<8x256xf32, #tpu.memory_space<vmem>>, vector<8x256xf32>,
    return
  }
  func.func @transform_0(%arg0: i32) -> (i32, i32) {
    %c0_i32 = arith.constant 0 : i32
    %c0_i32_0 = arith.constant 0 : i32
    return %arg0, %c0_i32 : i32, i32
  }
  func.func @transform_1(%arg0: i32) -> (i32, i32) {
    %c0_i32 = arith.constant 0 : i32
    %c0_i32_0 = arith.constant 0 : i32
    %c0_i32_1 = arith.constant 0 : i32
    return %c0_i32, %c0_i32_0 : i32, i32
  }
  func.func @transform_2(%arg0: i32) -> (i32, i32) {
    %c0_i32 = arith.constant 0 : i32
    %c0_i32_0 = arith.constant 0 : i32
    %c0_i32_1 = arith.constant 0 : i32
    return %c0_i32, %c0_i32_0 : i32, i32
  }
  func.func @transform_3(%arg0: i32) -> (i32, i32) {
    %c0_i32 = arith.constant 0 : i32
    %c0_i32_0 = arith.constant 0 : i32
    return %arg0, %c0_i32 : i32, i32
  }
}

module attributes {stable_mosaic.version = 11 : i64} {
  func.func @_mm_kernel(%arg0: i32, %arg1: memref<8x2304xbf16, #tpu.memory_space<vmem>>, %arg2: memref<2304x512xbf16, #tpu.memory_space<vmem>>, %arg3: memref<1x512xf32, #tpu.memory_space<vmem>>, %arg4: memref<8x512xf32, #tpu.memory_space<vmem>>) attributes {dimension_semantics = [#tpu.dimension_semantics<parallel>], iteration_bounds = array<i64: 1>, scalar_prefetch = 0 : i64, scratch_operands = 0 : i64, tpu.core_type = #tpu.core_type<tc>, window_params = [{transform_indices = @transform_0, window_bounds = array<i64: 8, 2304>}, {pipeline_mode = #tpu.pipeline_mode<synchronous>, transform_indices = @transform_1, window_bounds = array<i64: 2304, 512>}, {pipeline_mode = #tpu.pipeline_mode<synchronous>, transform_indices = @transform_2, window_bounds = array<i64: 1, 512>}, {transform_indices = @transform_3, window_bounds = array<i64: 8, 512>}]} {
    %c0 = arith.constant 0 : index
    %c0_0 = arith.constant 0 : index
    %0 = vector.load %arg1[%c0, %c0_0] : memref<8x2304xbf16, #tpu.memory_space<vmem>>, vector<8x2304xbf16>
    %c0_1 = arith.constant 0 : index
    %c0_2 = arith.constant 0 : index
    %1 = vector.load %arg2[%c0_1, %c0_2] : memref<2304x512xbf16, #tpu.memory_space<vmem>>, vector<2304x512xbf16>
    %cst = arith.constant dense<0.000000e+00> : vector<8x512xf32>
    %2 = tpu.matmul %0, %1, %cst {dimension_numbers = #tpu.dot_dimension_numbers<[1], [0], [0], [1], [0, 0, 1, 1], [], []>} : vector<8x2304xbf16>, vector<2304x512xbf16>, vector<8x512xf32> -> vector<8x512xf32>
    %c0_3 = arith.constant 0 : index
    %c0_4 = arith.constant 0 : index
    %3 = vector.load %arg3[%c0_3, %c0_4] : memref<1x512xf32, #tpu.memory_space<vmem>>, vector<1x512xf32>
    %4 = vector.broadcast %3 : vector<1x512xf32> to vector<8x512xf32>
    %5 = arith.addf %2, %4 : vector<8x512xf32>
    %cst_5 = arith.constant 0.000000e+00 : f32
    %6 = vector.broadcast %cst_5 : f32 to vector<8x512xf32>
    %7 = arith.maximumf %5, %6 : vector<8x512xf32>
    %c0_6 = arith.constant 0 : index
    %c0_7 = arith.constant 0 : index
    %8 = vector.load %arg4[%c0_6, %c0_7] : memref<8x512xf32, #tpu.memory_space<vmem>>, vector<8x512xf32>
    tpu.vector_store %arg4[%c0_6, %c0_7], %7 {strides = array<i32>} : memref<8x512xf32, #tpu.memory_space<vmem>>, vector<8x512xf32>,
    return
  }
  func.func @transform_0(%arg0: i32) -> (i32, i32) {
    %c0_i32 = arith.constant 0 : i32
    %c0_i32_0 = arith.constant 0 : i32
    return %arg0, %c0_i32 : i32, i32
  }
  func.func @transform_1(%arg0: i32) -> (i32, i32) {
    %c0_i32 = arith.constant 0 : i32
    %c0_i32_0 = arith.constant 0 : i32
    %c0_i32_1 = arith.constant 0 : i32
    return %c0_i32, %c0_i32_0 : i32, i32
  }
  func.func @transform_2(%arg0: i32) -> (i32, i32) {
    %c0_i32 = arith.constant 0 : i32
    %c0_i32_0 = arith.constant 0 : i32
    %c0_i32_1 = arith.constant 0 : i32
    return %c0_i32, %c0_i32_0 : i32, i32
  }
  func.func @transform_3(%arg0: i32) -> (i32, i32) {
    %c0_i32 = arith.constant 0 : i32
    %c0_i32_0 = arith.constant 0 : i32
    return %arg0, %c0_i32 : i32, i32
  }
}

module attributes {stable_mosaic.version = 11 : i64} {
  func.func @_mm_kernel(%arg0: i32, %arg1: memref<8x1152xbf16, #tpu.memory_space<vmem>>, %arg2: memref<1152x256xbf16, #tpu.memory_space<vmem>>, %arg3: memref<1x256xf32, #tpu.memory_space<vmem>>, %arg4: memref<8x256xf32, #tpu.memory_space<vmem>>) attributes {dimension_semantics = [#tpu.dimension_semantics<parallel>], iteration_bounds = array<i64: 1>, scalar_prefetch = 0 : i64, scratch_operands = 0 : i64, tpu.core_type = #tpu.core_type<tc>, window_params = [{transform_indices = @transform_0, window_bounds = array<i64: 8, 1152>}, {pipeline_mode = #tpu.pipeline_mode<synchronous>, transform_indices = @transform_1, window_bounds = array<i64: 1152, 256>}, {pipeline_mode = #tpu.pipeline_mode<synchronous>, transform_indices = @transform_2, window_bounds = array<i64: 1, 256>}, {transform_indices = @transform_3, window_bounds = array<i64: 8, 256>}]} {
    %c0 = arith.constant 0 : index
    %c0_0 = arith.constant 0 : index
    %0 = vector.load %arg1[%c0, %c0_0] : memref<8x1152xbf16, #tpu.memory_space<vmem>>, vector<8x1152xbf16>
    %c0_1 = arith.constant 0 : index
    %c0_2 = arith.constant 0 : index
    %1 = vector.load %arg2[%c0_1, %c0_2] : memref<1152x256xbf16, #tpu.memory_space<vmem>>, vector<1152x256xbf16>
    %cst = arith.constant dense<0.000000e+00> : vector<8x256xf32>
    %2 = tpu.matmul %0, %1, %cst {dimension_numbers = #tpu.dot_dimension_numbers<[1], [0], [0], [1], [0, 0, 1, 1], [], []>} : vector<8x1152xbf16>, vector<1152x256xbf16>, vector<8x256xf32> -> vector<8x256xf32>
    %c0_3 = arith.constant 0 : index
    %c0_4 = arith.constant 0 : index
    %3 = vector.load %arg3[%c0_3, %c0_4] : memref<1x256xf32, #tpu.memory_space<vmem>>, vector<1x256xf32>
    %4 = vector.broadcast %3 : vector<1x256xf32> to vector<8x256xf32>
    %5 = arith.addf %2, %4 : vector<8x256xf32>
    %cst_5 = arith.constant 0.000000e+00 : f32
    %6 = vector.broadcast %cst_5 : f32 to vector<8x256xf32>
    %7 = arith.maximumf %5, %6 : vector<8x256xf32>
    %c0_6 = arith.constant 0 : index
    %c0_7 = arith.constant 0 : index
    %8 = vector.load %arg4[%c0_6, %c0_7] : memref<8x256xf32, #tpu.memory_space<vmem>>, vector<8x256xf32>
    tpu.vector_store %arg4[%c0_6, %c0_7], %7 {strides = array<i32>} : memref<8x256xf32, #tpu.memory_space<vmem>>, vector<8x256xf32>,
    return
  }
  func.func @transform_0(%arg0: i32) -> (i32, i32) {
    %c0_i32 = arith.constant 0 : i32
    %c0_i32_0 = arith.constant 0 : i32
    return %arg0, %c0_i32 : i32, i32
  }
  func.func @transform_1(%arg0: i32) -> (i32, i32) {
    %c0_i32 = arith.constant 0 : i32
    %c0_i32_0 = arith.constant 0 : i32
    %c0_i32_1 = arith.constant 0 : i32
    return %c0_i32, %c0_i32_0 : i32, i32
  }
  func.func @transform_2(%arg0: i32) -> (i32, i32) {
    %c0_i32 = arith.constant 0 : i32
    %c0_i32_0 = arith.constant 0 : i32
    %c0_i32_1 = arith.constant 0 : i32
    return %c0_i32, %c0_i32_0 : i32, i32
  }
  func.func @transform_3(%arg0: i32) -> (i32, i32) {
    %c0_i32 = arith.constant 0 : i32
    %c0_i32_0 = arith.constant 0 : i32
    return %arg0, %c0_i32 : i32, i32
  }
}

module attributes {stable_mosaic.version = 11 : i64} {
  func.func @_mm2_kernel(%arg0: i32, %arg1: memref<8x1152xbf16, #tpu.memory_space<vmem>>, %arg2: memref<8x1152xbf16, #tpu.memory_space<vmem>>, %arg3: memref<1152x128xbf16, #tpu.memory_space<vmem>>, %arg4: memref<1152x128xbf16, #tpu.memory_space<vmem>>, %arg5: memref<1x128xf32, #tpu.memory_space<vmem>>, %arg6: memref<8x128xf32, #tpu.memory_space<vmem>>) attributes {dimension_semantics = [#tpu.dimension_semantics<parallel>], iteration_bounds = array<i64: 1>, scalar_prefetch = 0 : i64, scratch_operands = 0 : i64, tpu.core_type = #tpu.core_type<tc>, window_params = [{transform_indices = @transform_0, window_bounds = array<i64: 8, 1152>}, {transform_indices = @transform_1, window_bounds = array<i64: 8, 1152>}, {pipeline_mode = #tpu.pipeline_mode<synchronous>, transform_indices = @transform_2, window_bounds = array<i64: 1152, 128>}, {pipeline_mode = #tpu.pipeline_mode<synchronous>, transform_indices = @transform_3, window_bounds = array<i64: 1152, 128>}, {pipeline_mode = #tpu.pipeline_mode<synchronous>, transform_indices = @transform_4, window_bounds = array<i64: 1, 128>}, {transform_indices = @transform_5, window_bounds = array<i64: 8, 128>}]} {
    %c0 = arith.constant 0 : index
    %c0_0 = arith.constant 0 : index
    %0 = vector.load %arg1[%c0, %c0_0] : memref<8x1152xbf16, #tpu.memory_space<vmem>>, vector<8x1152xbf16>
    %c0_1 = arith.constant 0 : index
    %c0_2 = arith.constant 0 : index
    %1 = vector.load %arg3[%c0_1, %c0_2] : memref<1152x128xbf16, #tpu.memory_space<vmem>>, vector<1152x128xbf16>
    %cst = arith.constant dense<0.000000e+00> : vector<8x128xf32>
    %2 = tpu.matmul %0, %1, %cst {dimension_numbers = #tpu.dot_dimension_numbers<[1], [0], [0], [1], [0, 0, 1, 1], [], []>} : vector<8x1152xbf16>, vector<1152x128xbf16>, vector<8x128xf32> -> vector<8x128xf32>
    %c0_3 = arith.constant 0 : index
    %c0_4 = arith.constant 0 : index
    %3 = vector.load %arg2[%c0_3, %c0_4] : memref<8x1152xbf16, #tpu.memory_space<vmem>>, vector<8x1152xbf16>
    %c0_5 = arith.constant 0 : index
    %c0_6 = arith.constant 0 : index
    %4 = vector.load %arg4[%c0_5, %c0_6] : memref<1152x128xbf16, #tpu.memory_space<vmem>>, vector<1152x128xbf16>
    %cst_7 = arith.constant dense<0.000000e+00> : vector<8x128xf32>
    %5 = tpu.matmul %3, %4, %cst_7 {dimension_numbers = #tpu.dot_dimension_numbers<[1], [0], [0], [1], [0, 0, 1, 1], [], []>} : vector<8x1152xbf16>, vector<1152x128xbf16>, vector<8x128xf32> -> vector<8x128xf32>
    %6 = arith.addf %2, %5 : vector<8x128xf32>
    %c0_8 = arith.constant 0 : index
    %c0_9 = arith.constant 0 : index
    %7 = vector.load %arg5[%c0_8, %c0_9] : memref<1x128xf32, #tpu.memory_space<vmem>>, vector<1x128xf32>
    %8 = vector.broadcast %7 : vector<1x128xf32> to vector<8x128xf32>
    %9 = arith.addf %6, %8 : vector<8x128xf32>
    %cst_10 = arith.constant 0.000000e+00 : f32
    %10 = vector.broadcast %cst_10 : f32 to vector<8x128xf32>
    %11 = arith.maximumf %9, %10 : vector<8x128xf32>
    %c0_11 = arith.constant 0 : index
    %c0_12 = arith.constant 0 : index
    %12 = vector.load %arg6[%c0_11, %c0_12] : memref<8x128xf32, #tpu.memory_space<vmem>>, vector<8x128xf32>
    tpu.vector_store %arg6[%c0_11, %c0_12], %11 {strides = array<i32>} : memref<8x128xf32, #tpu.memory_space<vmem>>, vector<8x128xf32>,
    return
  }
  func.func @transform_0(%arg0: i32) -> (i32, i32) {
    %c0_i32 = arith.constant 0 : i32
    %c0_i32_0 = arith.constant 0 : i32
    return %arg0, %c0_i32 : i32, i32
  }
  func.func @transform_1(%arg0: i32) -> (i32, i32) {
    %c0_i32 = arith.constant 0 : i32
    %c0_i32_0 = arith.constant 0 : i32
    return %arg0, %c0_i32 : i32, i32
  }
  func.func @transform_2(%arg0: i32) -> (i32, i32) {
    %c0_i32 = arith.constant 0 : i32
    %c0_i32_0 = arith.constant 0 : i32
    %c0_i32_1 = arith.constant 0 : i32
    return %c0_i32, %c0_i32_0 : i32, i32
  }
  func.func @transform_3(%arg0: i32) -> (i32, i32) {
    %c0_i32 = arith.constant 0 : i32
    %c0_i32_0 = arith.constant 0 : i32
    %c0_i32_1 = arith.constant 0 : i32
    return %c0_i32, %c0_i32_0 : i32, i32
  }
  func.func @transform_4(%arg0: i32) -> (i32, i32) {
    %c0_i32 = arith.constant 0 : i32
    %c0_i32_0 = arith.constant 0 : i32
    %c0_i32_1 = arith.constant 0 : i32
    return %c0_i32, %c0_i32_0 : i32, i32
  }
  func.func @transform_5(%arg0: i32) -> (i32, i32) {
    %c0_i32 = arith.constant 0 : i32
    %c0_i32_0 = arith.constant 0 : i32
    return %arg0, %c0_i32 : i32, i32
  }
}

module attributes {stable_mosaic.version = 11 : i64} {
  func.func @_mm_kernel(%arg0: i32, %arg1: memref<32x576xbf16, #tpu.memory_space<vmem>>, %arg2: memref<576x128xbf16, #tpu.memory_space<vmem>>, %arg3: memref<1x128xf32, #tpu.memory_space<vmem>>, %arg4: memref<32x128xf32, #tpu.memory_space<vmem>>) attributes {dimension_semantics = [#tpu.dimension_semantics<parallel>], iteration_bounds = array<i64: 1>, scalar_prefetch = 0 : i64, scratch_operands = 0 : i64, tpu.core_type = #tpu.core_type<tc>, window_params = [{transform_indices = @transform_0, window_bounds = array<i64: 32, 576>}, {pipeline_mode = #tpu.pipeline_mode<synchronous>, transform_indices = @transform_1, window_bounds = array<i64: 576, 128>}, {pipeline_mode = #tpu.pipeline_mode<synchronous>, transform_indices = @transform_2, window_bounds = array<i64: 1, 128>}, {transform_indices = @transform_3, window_bounds = array<i64: 32, 128>}]} {
    %c0 = arith.constant 0 : index
    %c0_0 = arith.constant 0 : index
    %0 = vector.load %arg1[%c0, %c0_0] : memref<32x576xbf16, #tpu.memory_space<vmem>>, vector<32x576xbf16>
    %c0_1 = arith.constant 0 : index
    %c0_2 = arith.constant 0 : index
    %1 = vector.load %arg2[%c0_1, %c0_2] : memref<576x128xbf16, #tpu.memory_space<vmem>>, vector<576x128xbf16>
    %cst = arith.constant dense<0.000000e+00> : vector<32x128xf32>
    %2 = tpu.matmul %0, %1, %cst {dimension_numbers = #tpu.dot_dimension_numbers<[1], [0], [0], [1], [0, 0, 1, 1], [], []>} : vector<32x576xbf16>, vector<576x128xbf16>, vector<32x128xf32> -> vector<32x128xf32>
    %c0_3 = arith.constant 0 : index
    %c0_4 = arith.constant 0 : index
    %3 = vector.load %arg3[%c0_3, %c0_4] : memref<1x128xf32, #tpu.memory_space<vmem>>, vector<1x128xf32>
    %4 = vector.broadcast %3 : vector<1x128xf32> to vector<32x128xf32>
    %5 = arith.addf %2, %4 : vector<32x128xf32>
    %cst_5 = arith.constant 0.000000e+00 : f32
    %6 = vector.broadcast %cst_5 : f32 to vector<32x128xf32>
    %7 = arith.maximumf %5, %6 : vector<32x128xf32>
    %c0_6 = arith.constant 0 : index
    %c0_7 = arith.constant 0 : index
    %8 = vector.load %arg4[%c0_6, %c0_7] : memref<32x128xf32, #tpu.memory_space<vmem>>, vector<32x128xf32>
    tpu.vector_store %arg4[%c0_6, %c0_7], %7 {strides = array<i32>} : memref<32x128xf32, #tpu.memory_space<vmem>>, vector<32x128xf32>,
    return
  }
  func.func @transform_0(%arg0: i32) -> (i32, i32) {
    %c0_i32 = arith.constant 0 : i32
    %c0_i32_0 = arith.constant 0 : i32
    return %arg0, %c0_i32 : i32, i32
  }
  func.func @transform_1(%arg0: i32) -> (i32, i32) {
    %c0_i32 = arith.constant 0 : i32
    %c0_i32_0 = arith.constant 0 : i32
    %c0_i32_1 = arith.constant 0 : i32
    return %c0_i32, %c0_i32_0 : i32, i32
  }
  func.func @transform_2(%arg0: i32) -> (i32, i32) {
    %c0_i32 = arith.constant 0 : i32
    %c0_i32_0 = arith.constant 0 : i32
    %c0_i32_1 = arith.constant 0 : i32
    return %c0_i32, %c0_i32_0 : i32, i32
  }
  func.func @transform_3(%arg0: i32) -> (i32, i32) {
    %c0_i32 = arith.constant 0 : i32
    %c0_i32_0 = arith.constant 0 : i32
    return %arg0, %c0_i32 : i32, i32
  }
}

module attributes {stable_mosaic.version = 11 : i64} {
  func.func @_mm2_kernel(%arg0: i32, %arg1: memref<32x576xbf16, #tpu.memory_space<vmem>>, %arg2: memref<32x576xbf16, #tpu.memory_space<vmem>>, %arg3: memref<576x64xbf16, #tpu.memory_space<vmem>>, %arg4: memref<576x64xbf16, #tpu.memory_space<vmem>>, %arg5: memref<1x64xf32, #tpu.memory_space<vmem>>, %arg6: memref<32x64xf32, #tpu.memory_space<vmem>>) attributes {dimension_semantics = [#tpu.dimension_semantics<parallel>], iteration_bounds = array<i64: 1>, scalar_prefetch = 0 : i64, scratch_operands = 0 : i64, tpu.core_type = #tpu.core_type<tc>, window_params = [{transform_indices = @transform_0, window_bounds = array<i64: 32, 576>}, {transform_indices = @transform_1, window_bounds = array<i64: 32, 576>}, {pipeline_mode = #tpu.pipeline_mode<synchronous>, transform_indices = @transform_2, window_bounds = array<i64: 576, 64>}, {pipeline_mode = #tpu.pipeline_mode<synchronous>, transform_indices = @transform_3, window_bounds = array<i64: 576, 64>}, {pipeline_mode = #tpu.pipeline_mode<synchronous>, transform_indices = @transform_4, window_bounds = array<i64: 1, 64>}, {transform_indices = @transform_5, window_bounds = array<i64: 32, 64>}]} {
    %c0 = arith.constant 0 : index
    %c0_0 = arith.constant 0 : index
    %0 = vector.load %arg1[%c0, %c0_0] : memref<32x576xbf16, #tpu.memory_space<vmem>>, vector<32x576xbf16>
    %c0_1 = arith.constant 0 : index
    %c0_2 = arith.constant 0 : index
    %1 = vector.load %arg3[%c0_1, %c0_2] : memref<576x64xbf16, #tpu.memory_space<vmem>>, vector<576x64xbf16>
    %cst = arith.constant dense<0.000000e+00> : vector<32x64xf32>
    %2 = tpu.matmul %0, %1, %cst {dimension_numbers = #tpu.dot_dimension_numbers<[1], [0], [0], [1], [0, 0, 1, 1], [], []>} : vector<32x576xbf16>, vector<576x64xbf16>, vector<32x64xf32> -> vector<32x64xf32>
    %c0_3 = arith.constant 0 : index
    %c0_4 = arith.constant 0 : index
    %3 = vector.load %arg2[%c0_3, %c0_4] : memref<32x576xbf16, #tpu.memory_space<vmem>>, vector<32x576xbf16>
    %c0_5 = arith.constant 0 : index
    %c0_6 = arith.constant 0 : index
    %4 = vector.load %arg4[%c0_5, %c0_6] : memref<576x64xbf16, #tpu.memory_space<vmem>>, vector<576x64xbf16>
    %cst_7 = arith.constant dense<0.000000e+00> : vector<32x64xf32>
    %5 = tpu.matmul %3, %4, %cst_7 {dimension_numbers = #tpu.dot_dimension_numbers<[1], [0], [0], [1], [0, 0, 1, 1], [], []>} : vector<32x576xbf16>, vector<576x64xbf16>, vector<32x64xf32> -> vector<32x64xf32>
    %6 = arith.addf %2, %5 : vector<32x64xf32>
    %c0_8 = arith.constant 0 : index
    %c0_9 = arith.constant 0 : index
    %7 = vector.load %arg5[%c0_8, %c0_9] : memref<1x64xf32, #tpu.memory_space<vmem>>, vector<1x64xf32>
    %8 = vector.broadcast %7 : vector<1x64xf32> to vector<32x64xf32>
    %9 = arith.addf %6, %8 : vector<32x64xf32>
    %cst_10 = arith.constant 0.000000e+00 : f32
    %10 = vector.broadcast %cst_10 : f32 to vector<32x64xf32>
    %11 = arith.maximumf %9, %10 : vector<32x64xf32>
    %c0_11 = arith.constant 0 : index
    %c0_12 = arith.constant 0 : index
    %12 = vector.load %arg6[%c0_11, %c0_12] : memref<32x64xf32, #tpu.memory_space<vmem>>, vector<32x64xf32>
    tpu.vector_store %arg6[%c0_11, %c0_12], %11 {strides = array<i32>} : memref<32x64xf32, #tpu.memory_space<vmem>>, vector<32x64xf32>,
    return
  }
  func.func @transform_0(%arg0: i32) -> (i32, i32) {
    %c0_i32 = arith.constant 0 : i32
    %c0_i32_0 = arith.constant 0 : i32
    return %arg0, %c0_i32 : i32, i32
  }
  func.func @transform_1(%arg0: i32) -> (i32, i32) {
    %c0_i32 = arith.constant 0 : i32
    %c0_i32_0 = arith.constant 0 : i32
    return %arg0, %c0_i32 : i32, i32
  }
  func.func @transform_2(%arg0: i32) -> (i32, i32) {
    %c0_i32 = arith.constant 0 : i32
    %c0_i32_0 = arith.constant 0 : i32
    %c0_i32_1 = arith.constant 0 : i32
    return %c0_i32, %c0_i32_0 : i32, i32
  }
  func.func @transform_3(%arg0: i32) -> (i32, i32) {
    %c0_i32 = arith.constant 0 : i32
    %c0_i32_0 = arith.constant 0 : i32
    %c0_i32_1 = arith.constant 0 : i32
    return %c0_i32, %c0_i32_0 : i32, i32
  }
  func.func @transform_4(%arg0: i32) -> (i32, i32) {
    %c0_i32 = arith.constant 0 : i32
    %c0_i32_0 = arith.constant 0 : i32
    %c0_i32_1 = arith.constant 0 : i32
    return %c0_i32, %c0_i32_0 : i32, i32
  }
  func.func @transform_5(%arg0: i32) -> (i32, i32) {
    %c0_i32 = arith.constant 0 : i32
    %c0_i32_0 = arith.constant 0 : i32
    return %arg0, %c0_i32 : i32, i32
  }
}

module attributes {stable_mosaic.version = 11 : i64} {
  func.func @_mm2_kernel(%arg0: i32, %arg1: memref<128x288xbf16, #tpu.memory_space<vmem>>, %arg2: memref<128x288xbf16, #tpu.memory_space<vmem>>, %arg3: memref<288x32xbf16, #tpu.memory_space<vmem>>, %arg4: memref<288x32xbf16, #tpu.memory_space<vmem>>, %arg5: memref<1x32xf32, #tpu.memory_space<vmem>>, %arg6: memref<128x32xf32, #tpu.memory_space<vmem>>) attributes {dimension_semantics = [#tpu.dimension_semantics<parallel>], iteration_bounds = array<i64: 1>, scalar_prefetch = 0 : i64, scratch_operands = 0 : i64, tpu.core_type = #tpu.core_type<tc>, window_params = [{transform_indices = @transform_0, window_bounds = array<i64: 128, 288>}, {transform_indices = @transform_1, window_bounds = array<i64: 128, 288>}, {pipeline_mode = #tpu.pipeline_mode<synchronous>, transform_indices = @transform_2, window_bounds = array<i64: 288, 32>}, {pipeline_mode = #tpu.pipeline_mode<synchronous>, transform_indices = @transform_3, window_bounds = array<i64: 288, 32>}, {pipeline_mode = #tpu.pipeline_mode<synchronous>, transform_indices = @transform_4, window_bounds = array<i64: 1, 32>}, {transform_indices = @transform_5, window_bounds = array<i64: 128, 32>}]} {
    %c0 = arith.constant 0 : index
    %c0_0 = arith.constant 0 : index
    %0 = vector.load %arg1[%c0, %c0_0] : memref<128x288xbf16, #tpu.memory_space<vmem>>, vector<128x288xbf16>
    %c0_1 = arith.constant 0 : index
    %c0_2 = arith.constant 0 : index
    %1 = vector.load %arg3[%c0_1, %c0_2] : memref<288x32xbf16, #tpu.memory_space<vmem>>, vector<288x32xbf16>
    %cst = arith.constant dense<0.000000e+00> : vector<128x32xf32>
    %2 = tpu.matmul %0, %1, %cst {dimension_numbers = #tpu.dot_dimension_numbers<[1], [0], [0], [1], [0, 0, 1, 1], [], []>} : vector<128x288xbf16>, vector<288x32xbf16>, vector<128x32xf32> -> vector<128x32xf32>
    %c0_3 = arith.constant 0 : index
    %c0_4 = arith.constant 0 : index
    %3 = vector.load %arg2[%c0_3, %c0_4] : memref<128x288xbf16, #tpu.memory_space<vmem>>, vector<128x288xbf16>
    %c0_5 = arith.constant 0 : index
    %c0_6 = arith.constant 0 : index
    %4 = vector.load %arg4[%c0_5, %c0_6] : memref<288x32xbf16, #tpu.memory_space<vmem>>, vector<288x32xbf16>
    %cst_7 = arith.constant dense<0.000000e+00> : vector<128x32xf32>
    %5 = tpu.matmul %3, %4, %cst_7 {dimension_numbers = #tpu.dot_dimension_numbers<[1], [0], [0], [1], [0, 0, 1, 1], [], []>} : vector<128x288xbf16>, vector<288x32xbf16>, vector<128x32xf32> -> vector<128x32xf32>
    %6 = arith.addf %2, %5 : vector<128x32xf32>
    %c0_8 = arith.constant 0 : index
    %c0_9 = arith.constant 0 : index
    %7 = vector.load %arg5[%c0_8, %c0_9] : memref<1x32xf32, #tpu.memory_space<vmem>>, vector<1x32xf32>
    %8 = vector.broadcast %7 : vector<1x32xf32> to vector<128x32xf32>
    %9 = arith.addf %6, %8 : vector<128x32xf32>
    %cst_10 = arith.constant 0.000000e+00 : f32
    %10 = vector.broadcast %cst_10 : f32 to vector<128x32xf32>
    %11 = arith.maximumf %9, %10 : vector<128x32xf32>
    %c0_11 = arith.constant 0 : index
    %c0_12 = arith.constant 0 : index
    %12 = vector.load %arg6[%c0_11, %c0_12] : memref<128x32xf32, #tpu.memory_space<vmem>>, vector<128x32xf32>
    tpu.vector_store %arg6[%c0_11, %c0_12], %11 {strides = array<i32>} : memref<128x32xf32, #tpu.memory_space<vmem>>, vector<128x32xf32>,
    return
  }
  func.func @transform_0(%arg0: i32) -> (i32, i32) {
    %c0_i32 = arith.constant 0 : i32
    %c0_i32_0 = arith.constant 0 : i32
    return %arg0, %c0_i32 : i32, i32
  }
  func.func @transform_1(%arg0: i32) -> (i32, i32) {
    %c0_i32 = arith.constant 0 : i32
    %c0_i32_0 = arith.constant 0 : i32
    return %arg0, %c0_i32 : i32, i32
  }
  func.func @transform_2(%arg0: i32) -> (i32, i32) {
    %c0_i32 = arith.constant 0 : i32
    %c0_i32_0 = arith.constant 0 : i32
    %c0_i32_1 = arith.constant 0 : i32
    return %c0_i32, %c0_i32_0 : i32, i32
  }
  func.func @transform_3(%arg0: i32) -> (i32, i32) {
    %c0_i32 = arith.constant 0 : i32
    %c0_i32_0 = arith.constant 0 : i32
    %c0_i32_1 = arith.constant 0 : i32
    return %c0_i32, %c0_i32_0 : i32, i32
  }
  func.func @transform_4(%arg0: i32) -> (i32, i32) {
    %c0_i32 = arith.constant 0 : i32
    %c0_i32_0 = arith.constant 0 : i32
    %c0_i32_1 = arith.constant 0 : i32
    return %c0_i32, %c0_i32_0 : i32, i32
  }
  func.func @transform_5(%arg0: i32) -> (i32, i32) {
    %c0_i32 = arith.constant 0 : i32
    %c0_i32_0 = arith.constant 0 : i32
    return %arg0, %c0_i32 : i32, i32
  }
}

module attributes {stable_mosaic.version = 11 : i64} {
  func.func @_mm_kernel(%arg0: i32, %arg1: memref<128x288xbf16, #tpu.memory_space<vmem>>, %arg2: memref<288x64xbf16, #tpu.memory_space<vmem>>, %arg3: memref<1x64xf32, #tpu.memory_space<vmem>>, %arg4: memref<128x64xf32, #tpu.memory_space<vmem>>) attributes {dimension_semantics = [#tpu.dimension_semantics<parallel>], iteration_bounds = array<i64: 1>, scalar_prefetch = 0 : i64, scratch_operands = 0 : i64, tpu.core_type = #tpu.core_type<tc>, window_params = [{transform_indices = @transform_0, window_bounds = array<i64: 128, 288>}, {pipeline_mode = #tpu.pipeline_mode<synchronous>, transform_indices = @transform_1, window_bounds = array<i64: 288, 64>}, {pipeline_mode = #tpu.pipeline_mode<synchronous>, transform_indices = @transform_2, window_bounds = array<i64: 1, 64>}, {transform_indices = @transform_3, window_bounds = array<i64: 128, 64>}]} {
    %c0 = arith.constant 0 : index
    %c0_0 = arith.constant 0 : index
    %0 = vector.load %arg1[%c0, %c0_0] : memref<128x288xbf16, #tpu.memory_space<vmem>>, vector<128x288xbf16>
    %c0_1 = arith.constant 0 : index
    %c0_2 = arith.constant 0 : index
    %1 = vector.load %arg2[%c0_1, %c0_2] : memref<288x64xbf16, #tpu.memory_space<vmem>>, vector<288x64xbf16>
    %cst = arith.constant dense<0.000000e+00> : vector<128x64xf32>
    %2 = tpu.matmul %0, %1, %cst {dimension_numbers = #tpu.dot_dimension_numbers<[1], [0], [0], [1], [0, 0, 1, 1], [], []>} : vector<128x288xbf16>, vector<288x64xbf16>, vector<128x64xf32> -> vector<128x64xf32>
    %c0_3 = arith.constant 0 : index
    %c0_4 = arith.constant 0 : index
    %3 = vector.load %arg3[%c0_3, %c0_4] : memref<1x64xf32, #tpu.memory_space<vmem>>, vector<1x64xf32>
    %4 = vector.broadcast %3 : vector<1x64xf32> to vector<128x64xf32>
    %5 = arith.addf %2, %4 : vector<128x64xf32>
    %cst_5 = arith.constant 0.000000e+00 : f32
    %6 = vector.broadcast %cst_5 : f32 to vector<128x64xf32>
    %7 = arith.maximumf %5, %6 : vector<128x64xf32>
    %c0_6 = arith.constant 0 : index
    %c0_7 = arith.constant 0 : index
    %8 = vector.load %arg4[%c0_6, %c0_7] : memref<128x64xf32, #tpu.memory_space<vmem>>, vector<128x64xf32>
    tpu.vector_store %arg4[%c0_6, %c0_7], %7 {strides = array<i32>} : memref<128x64xf32, #tpu.memory_space<vmem>>, vector<128x64xf32>,
    return
  }
  func.func @transform_0(%arg0: i32) -> (i32, i32) {
    %c0_i32 = arith.constant 0 : i32
    %c0_i32_0 = arith.constant 0 : i32
    return %arg0, %c0_i32 : i32, i32
  }
  func.func @transform_1(%arg0: i32) -> (i32, i32) {
    %c0_i32 = arith.constant 0 : i32
    %c0_i32_0 = arith.constant 0 : i32
    %c0_i32_1 = arith.constant 0 : i32
    return %c0_i32, %c0_i32_0 : i32, i32
  }
  func.func @transform_2(%arg0: i32) -> (i32, i32) {
    %c0_i32 = arith.constant 0 : i32
    %c0_i32_0 = arith.constant 0 : i32
    %c0_i32_1 = arith.constant 0 : i32
    return %c0_i32, %c0_i32_0 : i32, i32
  }
  func.func @transform_3(%arg0: i32) -> (i32, i32) {
    %c0_i32 = arith.constant 0 : i32
    %c0_i32_0 = arith.constant 0 : i32
    return %arg0, %c0_i32 : i32, i32
  }
}

module attributes {stable_mosaic.version = 11 : i64} {
  func.func @_mm2_kernel(%arg0: i32, %arg1: memref<256x144xbf16, #tpu.memory_space<vmem>>, %arg2: memref<256x144xbf16, #tpu.memory_space<vmem>>, %arg3: memref<144x16xbf16, #tpu.memory_space<vmem>>, %arg4: memref<144x16xbf16, #tpu.memory_space<vmem>>, %arg5: memref<1x16xf32, #tpu.memory_space<vmem>>, %arg6: memref<256x16xf32, #tpu.memory_space<vmem>>) attributes {dimension_semantics = [#tpu.dimension_semantics<parallel>], iteration_bounds = array<i64: 2>, scalar_prefetch = 0 : i64, scratch_operands = 0 : i64, tpu.core_type = #tpu.core_type<tc>, window_params = [{transform_indices = @transform_0, window_bounds = array<i64: 256, 144>}, {transform_indices = @transform_1, window_bounds = array<i64: 256, 144>}, {pipeline_mode = #tpu.pipeline_mode<synchronous>, transform_indices = @transform_2, window_bounds = array<i64: 144, 16>}, {pipeline_mode = #tpu.pipeline_mode<synchronous>, transform_indices = @transform_3, window_bounds = array<i64: 144, 16>}, {pipeline_mode = #tpu.pipeline_mode<synchronous>, transform_indices = @transform_4, window_bounds = array<i64: 1, 16>}, {transform_indices = @transform_5, window_bounds = array<i64: 256, 16>}]} {
    %c0 = arith.constant 0 : index
    %c0_0 = arith.constant 0 : index
    %0 = vector.load %arg1[%c0, %c0_0] : memref<256x144xbf16, #tpu.memory_space<vmem>>, vector<256x144xbf16>
    %c0_1 = arith.constant 0 : index
    %c0_2 = arith.constant 0 : index
    %1 = vector.load %arg3[%c0_1, %c0_2] : memref<144x16xbf16, #tpu.memory_space<vmem>>, vector<144x16xbf16>
    %cst = arith.constant dense<0.000000e+00> : vector<256x16xf32>
    %2 = tpu.matmul %0, %1, %cst {dimension_numbers = #tpu.dot_dimension_numbers<[1], [0], [0], [1], [0, 0, 1, 1], [], []>} : vector<256x144xbf16>, vector<144x16xbf16>, vector<256x16xf32> -> vector<256x16xf32>
    %c0_3 = arith.constant 0 : index
    %c0_4 = arith.constant 0 : index
    %3 = vector.load %arg2[%c0_3, %c0_4] : memref<256x144xbf16, #tpu.memory_space<vmem>>, vector<256x144xbf16>
    %c0_5 = arith.constant 0 : index
    %c0_6 = arith.constant 0 : index
    %4 = vector.load %arg4[%c0_5, %c0_6] : memref<144x16xbf16, #tpu.memory_space<vmem>>, vector<144x16xbf16>
    %cst_7 = arith.constant dense<0.000000e+00> : vector<256x16xf32>
    %5 = tpu.matmul %3, %4, %cst_7 {dimension_numbers = #tpu.dot_dimension_numbers<[1], [0], [0], [1], [0, 0, 1, 1], [], []>} : vector<256x144xbf16>, vector<144x16xbf16>, vector<256x16xf32> -> vector<256x16xf32>
    %6 = arith.addf %2, %5 : vector<256x16xf32>
    %c0_8 = arith.constant 0 : index
    %c0_9 = arith.constant 0 : index
    %7 = vector.load %arg5[%c0_8, %c0_9] : memref<1x16xf32, #tpu.memory_space<vmem>>, vector<1x16xf32>
    %8 = vector.broadcast %7 : vector<1x16xf32> to vector<256x16xf32>
    %9 = arith.addf %6, %8 : vector<256x16xf32>
    %cst_10 = arith.constant 0.000000e+00 : f32
    %10 = vector.broadcast %cst_10 : f32 to vector<256x16xf32>
    %11 = arith.maximumf %9, %10 : vector<256x16xf32>
    %c0_11 = arith.constant 0 : index
    %c0_12 = arith.constant 0 : index
    %12 = vector.load %arg6[%c0_11, %c0_12] : memref<256x16xf32, #tpu.memory_space<vmem>>, vector<256x16xf32>
    tpu.vector_store %arg6[%c0_11, %c0_12], %11 {strides = array<i32>} : memref<256x16xf32, #tpu.memory_space<vmem>>, vector<256x16xf32>,
    return
  }
  func.func @transform_0(%arg0: i32) -> (i32, i32) {
    %c0_i32 = arith.constant 0 : i32
    %c0_i32_0 = arith.constant 0 : i32
    return %arg0, %c0_i32 : i32, i32
  }
  func.func @transform_1(%arg0: i32) -> (i32, i32) {
    %c0_i32 = arith.constant 0 : i32
    %c0_i32_0 = arith.constant 0 : i32
    return %arg0, %c0_i32 : i32, i32
  }
  func.func @transform_2(%arg0: i32) -> (i32, i32) {
    %c0_i32 = arith.constant 0 : i32
    %c0_i32_0 = arith.constant 0 : i32
    %c0_i32_1 = arith.constant 0 : i32
    return %c0_i32, %c0_i32_0 : i32, i32
  }
  func.func @transform_3(%arg0: i32) -> (i32, i32) {
    %c0_i32 = arith.constant 0 : i32
    %c0_i32_0 = arith.constant 0 : i32
    %c0_i32_1 = arith.constant 0 : i32
    return %c0_i32, %c0_i32_0 : i32, i32
  }
  func.func @transform_4(%arg0: i32) -> (i32, i32) {
    %c0_i32 = arith.constant 0 : i32
    %c0_i32_0 = arith.constant 0 : i32
    %c0_i32_1 = arith.constant 0 : i32
    return %c0_i32, %c0_i32_0 : i32, i32
  }
  func.func @transform_5(%arg0: i32) -> (i32, i32) {
    %c0_i32 = arith.constant 0 : i32
    %c0_i32_0 = arith.constant 0 : i32
    return %arg0, %c0_i32 : i32, i32
  }
}

module attributes {stable_mosaic.version = 11 : i64} {
  func.func @_mm_kernel(%arg0: i32, %arg1: memref<256x144xbf16, #tpu.memory_space<vmem>>, %arg2: memref<144x16xbf16, #tpu.memory_space<vmem>>, %arg3: memref<1x16xf32, #tpu.memory_space<vmem>>, %arg4: memref<256x16xf32, #tpu.memory_space<vmem>>) attributes {dimension_semantics = [#tpu.dimension_semantics<parallel>], iteration_bounds = array<i64: 2>, scalar_prefetch = 0 : i64, scratch_operands = 0 : i64, tpu.core_type = #tpu.core_type<tc>, window_params = [{transform_indices = @transform_0, window_bounds = array<i64: 256, 144>}, {pipeline_mode = #tpu.pipeline_mode<synchronous>, transform_indices = @transform_1, window_bounds = array<i64: 144, 16>}, {pipeline_mode = #tpu.pipeline_mode<synchronous>, transform_indices = @transform_2, window_bounds = array<i64: 1, 16>}, {transform_indices = @transform_3, window_bounds = array<i64: 256, 16>}]} {
    %c0 = arith.constant 0 : index
    %c0_0 = arith.constant 0 : index
    %0 = vector.load %arg1[%c0, %c0_0] : memref<256x144xbf16, #tpu.memory_space<vmem>>, vector<256x144xbf16>
    %c0_1 = arith.constant 0 : index
    %c0_2 = arith.constant 0 : index
    %1 = vector.load %arg2[%c0_1, %c0_2] : memref<144x16xbf16, #tpu.memory_space<vmem>>, vector<144x16xbf16>
    %cst = arith.constant dense<0.000000e+00> : vector<256x16xf32>
    %2 = tpu.matmul %0, %1, %cst {dimension_numbers = #tpu.dot_dimension_numbers<[1], [0], [0], [1], [0, 0, 1, 1], [], []>} : vector<256x144xbf16>, vector<144x16xbf16>, vector<256x16xf32> -> vector<256x16xf32>
    %c0_3 = arith.constant 0 : index
    %c0_4 = arith.constant 0 : index
    %3 = vector.load %arg3[%c0_3, %c0_4] : memref<1x16xf32, #tpu.memory_space<vmem>>, vector<1x16xf32>
    %4 = vector.broadcast %3 : vector<1x16xf32> to vector<256x16xf32>
    %5 = arith.addf %2, %4 : vector<256x16xf32>
    %cst_5 = arith.constant 0.000000e+00 : f32
    %6 = vector.broadcast %cst_5 : f32 to vector<256x16xf32>
    %7 = arith.maximumf %5, %6 : vector<256x16xf32>
    %c0_6 = arith.constant 0 : index
    %c0_7 = arith.constant 0 : index
    %8 = vector.load %arg4[%c0_6, %c0_7] : memref<256x16xf32, #tpu.memory_space<vmem>>, vector<256x16xf32>
    tpu.vector_store %arg4[%c0_6, %c0_7], %7 {strides = array<i32>} : memref<256x16xf32, #tpu.memory_space<vmem>>, vector<256x16xf32>,
    return
  }
  func.func @transform_0(%arg0: i32) -> (i32, i32) {
    %c0_i32 = arith.constant 0 : i32
    %c0_i32_0 = arith.constant 0 : i32
    return %arg0, %c0_i32 : i32, i32
  }
  func.func @transform_1(%arg0: i32) -> (i32, i32) {
    %c0_i32 = arith.constant 0 : i32
    %c0_i32_0 = arith.constant 0 : i32
    %c0_i32_1 = arith.constant 0 : i32
    return %c0_i32, %c0_i32_0 : i32, i32
  }
  func.func @transform_2(%arg0: i32) -> (i32, i32) {
    %c0_i32 = arith.constant 0 : i32
    %c0_i32_0 = arith.constant 0 : i32
    %c0_i32_1 = arith.constant 0 : i32
    return %c0_i32, %c0_i32_0 : i32, i32
  }
  func.func @transform_3(%arg0: i32) -> (i32, i32) {
    %c0_i32 = arith.constant 0 : i32
    %c0_i32_0 = arith.constant 0 : i32
    return %arg0, %c0_i32 : i32, i32
  }
}

module attributes {stable_mosaic.version = 11 : i64} {
  func.func @_mm_kernel(%arg0: i32, %arg1: memref<256x144xbf16, #tpu.memory_space<vmem>>, %arg2: memref<144x128xbf16, #tpu.memory_space<vmem>>, %arg3: memref<1x128xf32, #tpu.memory_space<vmem>>, %arg4: memref<256x128xf32, #tpu.memory_space<vmem>>) attributes {dimension_semantics = [#tpu.dimension_semantics<parallel>], iteration_bounds = array<i64: 2>, scalar_prefetch = 0 : i64, scratch_operands = 0 : i64, tpu.core_type = #tpu.core_type<tc>, window_params = [{transform_indices = @transform_0, window_bounds = array<i64: 256, 144>}, {pipeline_mode = #tpu.pipeline_mode<synchronous>, transform_indices = @transform_1, window_bounds = array<i64: 144, 128>}, {pipeline_mode = #tpu.pipeline_mode<synchronous>, transform_indices = @transform_2, window_bounds = array<i64: 1, 128>}, {transform_indices = @transform_3, window_bounds = array<i64: 256, 128>}]} {
    %c0 = arith.constant 0 : index
    %c0_0 = arith.constant 0 : index
    %0 = vector.load %arg1[%c0, %c0_0] : memref<256x144xbf16, #tpu.memory_space<vmem>>, vector<256x144xbf16>
    %c0_1 = arith.constant 0 : index
    %c0_2 = arith.constant 0 : index
    %1 = vector.load %arg2[%c0_1, %c0_2] : memref<144x128xbf16, #tpu.memory_space<vmem>>, vector<144x128xbf16>
    %cst = arith.constant dense<0.000000e+00> : vector<256x128xf32>
    %2 = tpu.matmul %0, %1, %cst {dimension_numbers = #tpu.dot_dimension_numbers<[1], [0], [0], [1], [0, 0, 1, 1], [], []>} : vector<256x144xbf16>, vector<144x128xbf16>, vector<256x128xf32> -> vector<256x128xf32>
    %c0_3 = arith.constant 0 : index
    %c0_4 = arith.constant 0 : index
    %3 = vector.load %arg3[%c0_3, %c0_4] : memref<1x128xf32, #tpu.memory_space<vmem>>, vector<1x128xf32>
    %4 = vector.broadcast %3 : vector<1x128xf32> to vector<256x128xf32>
    %5 = arith.addf %2, %4 : vector<256x128xf32>
    %6 = arith.negf %5 : vector<256x128xf32>
    %7 = math.exp %6 : vector<256x128xf32>
    %cst_5 = arith.constant 1.000000e+00 : f32
    %8 = vector.broadcast %cst_5 : f32 to vector<256x128xf32>
    %9 = arith.addf %8, %7 : vector<256x128xf32>
    %10 = arith.divf %8, %9 : vector<256x128xf32>
    %c0_6 = arith.constant 0 : index
    %c0_7 = arith.constant 0 : index
    %11 = vector.load %arg4[%c0_6, %c0_7] : memref<256x128xf32, #tpu.memory_space<vmem>>, vector<256x128xf32>
    tpu.vector_store %arg4[%c0_6, %c0_7], %10 {strides = array<i32>} : memref<256x128xf32, #tpu.memory_space<vmem>>, vector<256x128xf32>,
    return
  }
  func.func @transform_0(%arg0: i32) -> (i32, i32) {
    %c0_i32 = arith.constant 0 : i32
    %c0_i32_0 = arith.constant 0 : i32
    return %arg0, %c0_i32 : i32, i32
  }
  func.func @transform_1(%arg0: i32) -> (i32, i32) {
    %c0_i32 = arith.constant 0 : i32
    %c0_i32_0 = arith.constant 0 : i32
    %c0_i32_1 = arith.constant 0 : i32
    return %c0_i32, %c0_i32_0 : i32, i32
  }
  func.func @transform_2(%arg0: i32) -> (i32, i32) {
    %c0_i32 = arith.constant 0 : i32
    %c0_i32_0 = arith.constant 0 : i32
    %c0_i32_1 = arith.constant 0 : i32
    return %c0_i32, %c0_i32_0 : i32, i32
  }
  func.func @transform_3(%arg0: i32) -> (i32, i32) {
    %c0_i32 = arith.constant 0 : i32
    %c0_i32_0 = arith.constant 0 : i32
    return %arg0, %c0_i32 : i32, i32
  }
}

module attributes {stable_mosaic.version = 11 : i64} {
  func.func @_patch_head_kernel(%arg0: i32, %arg1: memref<8x256xbf16, #tpu.memory_space<vmem>>, %arg2: memref<256x64xbf16, #tpu.memory_space<vmem>>, %arg3: memref<1x64xf32, #tpu.memory_space<vmem>>, %arg4: memref<64x128xbf16, #tpu.memory_space<vmem>>, %arg5: memref<1x128xf32, #tpu.memory_space<vmem>>, %arg6: memref<8x128xf32, #tpu.memory_space<vmem>>) attributes {dimension_semantics = [#tpu.dimension_semantics<arbitrary>], iteration_bounds = array<i64: 1>, scalar_prefetch = 0 : i64, scratch_operands = 0 : i64, tpu.core_type = #tpu.core_type<tc>, window_params = [{pipeline_mode = #tpu.pipeline_mode<synchronous>, transform_indices = @transform_0, window_bounds = array<i64: 8, 256>}, {pipeline_mode = #tpu.pipeline_mode<synchronous>, transform_indices = @transform_1, window_bounds = array<i64: 256, 64>}, {pipeline_mode = #tpu.pipeline_mode<synchronous>, transform_indices = @transform_2, window_bounds = array<i64: 1, 64>}, {pipeline_mode = #tpu.pipeline_mode<synchronous>, transform_indices = @transform_3, window_bounds = array<i64: 64, 128>}, {pipeline_mode = #tpu.pipeline_mode<synchronous>, transform_indices = @transform_4, window_bounds = array<i64: 1, 128>}, {pipeline_mode = #tpu.pipeline_mode<synchronous>, transform_indices = @transform_5, window_bounds = array<i64: 8, 128>}]} {
    %c0 = arith.constant 0 : index
    %c0_0 = arith.constant 0 : index
    %0 = vector.load %arg1[%c0, %c0_0] : memref<8x256xbf16, #tpu.memory_space<vmem>>, vector<8x256xbf16>
    %c0_1 = arith.constant 0 : index
    %c0_2 = arith.constant 0 : index
    %1 = vector.load %arg2[%c0_1, %c0_2] : memref<256x64xbf16, #tpu.memory_space<vmem>>, vector<256x64xbf16>
    %cst = arith.constant dense<0.000000e+00> : vector<8x64xf32>
    %2 = tpu.matmul %0, %1, %cst {dimension_numbers = #tpu.dot_dimension_numbers<[1], [0], [0], [1], [0, 0, 1, 1], [], []>} : vector<8x256xbf16>, vector<256x64xbf16>, vector<8x64xf32> -> vector<8x64xf32>
    %c0_3 = arith.constant 0 : index
    %c0_4 = arith.constant 0 : index
    %3 = vector.load %arg3[%c0_3, %c0_4] : memref<1x64xf32, #tpu.memory_space<vmem>>, vector<1x64xf32>
    %4 = vector.broadcast %3 : vector<1x64xf32> to vector<8x64xf32>
    %5 = arith.addf %2, %4 : vector<8x64xf32>
    %cst_5 = arith.constant 0.000000e+00 : f32
    %6 = vector.broadcast %cst_5 : f32 to vector<8x64xf32>
    %7 = arith.maximumf %5, %6 : vector<8x64xf32>
    %8 = arith.truncf %7 : vector<8x64xf32> to vector<8x64xbf16>
    %c0_6 = arith.constant 0 : index
    %c0_7 = arith.constant 0 : index
    %9 = vector.load %arg4[%c0_6, %c0_7] : memref<64x128xbf16, #tpu.memory_space<vmem>>, vector<64x128xbf16>
    %cst_8 = arith.constant dense<0.000000e+00> : vector<8x128xf32>
    %10 = tpu.matmul %8, %9, %cst_8 {dimension_numbers = #tpu.dot_dimension_numbers<[1], [0], [0], [1], [0, 0, 1, 1], [], []>} : vector<8x64xbf16>, vector<64x128xbf16>, vector<8x128xf32> -> vector<8x128xf32>
    %c0_9 = arith.constant 0 : index
    %c0_10 = arith.constant 0 : index
    %11 = vector.load %arg5[%c0_9, %c0_10] : memref<1x128xf32, #tpu.memory_space<vmem>>, vector<1x128xf32>
    %12 = vector.broadcast %11 : vector<1x128xf32> to vector<8x128xf32>
    %13 = arith.addf %10, %12 : vector<8x128xf32>
    %14 = arith.negf %13 : vector<8x128xf32>
    %15 = math.exp %14 : vector<8x128xf32>
    %cst_11 = arith.constant 1.000000e+00 : f32
    %16 = vector.broadcast %cst_11 : f32 to vector<8x128xf32>
    %17 = arith.addf %16, %15 : vector<8x128xf32>
    %18 = arith.divf %16, %17 : vector<8x128xf32>
    %c0_12 = arith.constant 0 : index
    %c0_13 = arith.constant 0 : index
    %19 = vector.load %arg6[%c0_12, %c0_13] : memref<8x128xf32, #tpu.memory_space<vmem>>, vector<8x128xf32>
    tpu.vector_store %arg6[%c0_12, %c0_13], %18 {strides = array<i32>} : memref<8x128xf32, #tpu.memory_space<vmem>>, vector<8x128xf32>,
    return
  }
  func.func @transform_0(%arg0: i32) -> (i32, i32) {
    %c0_i32 = arith.constant 0 : i32
    %c0_i32_0 = arith.constant 0 : i32
    %c0_i32_1 = arith.constant 0 : i32
    return %c0_i32, %c0_i32_0 : i32, i32
  }
  func.func @transform_1(%arg0: i32) -> (i32, i32) {
    %c0_i32 = arith.constant 0 : i32
    %c0_i32_0 = arith.constant 0 : i32
    %c0_i32_1 = arith.constant 0 : i32
    return %c0_i32, %c0_i32_0 : i32, i32
  }
  func.func @transform_2(%arg0: i32) -> (i32, i32) {
    %c0_i32 = arith.constant 0 : i32
    %c0_i32_0 = arith.constant 0 : i32
    %c0_i32_1 = arith.constant 0 : i32
    return %c0_i32, %c0_i32_0 : i32, i32
  }
  func.func @transform_3(%arg0: i32) -> (i32, i32) {
    %c0_i32 = arith.constant 0 : i32
    %c0_i32_0 = arith.constant 0 : i32
    %c0_i32_1 = arith.constant 0 : i32
    return %c0_i32, %c0_i32_0 : i32, i32
  }
  func.func @transform_4(%arg0: i32) -> (i32, i32) {
    %c0_i32 = arith.constant 0 : i32
    %c0_i32_0 = arith.constant 0 : i32
    %c0_i32_1 = arith.constant 0 : i32
    return %c0_i32, %c0_i32_0 : i32, i32
  }
  func.func @transform_5(%arg0: i32) -> (i32, i32) {
    %c0_i32 = arith.constant 0 : i32
    %c0_i32_0 = arith.constant 0 : i32
    %c0_i32_1 = arith.constant 0 : i32
    return %c0_i32, %c0_i32_0 : i32, i32
  }
}

</mosaic_0001>

<bundles_post_ra>
// kernel: unet_forward.16
= control target key start
LH: loop header
LB: loop body
LE: loop exit
PB: predicated region body
PF: predicated region fallthrough
CT: control target
= control target key end

     0   :  { %8 = vsyncpa [#allocation3], 0  ;;  %s878_s12 = smov 0   ;;  %s1081_s0 = inlined_call_operand.vmem [shape: bf16[512,27], index: 0, kind: input, shape index: {}]   ;;  %s1082_s1 = inlined_call_operand.vmem [shape: bf16[27,16], index: 1, kind: input, shape index: {}]   ;;  %s1083_s2 = inlined_call_operand.hbm [shape: f32[1,16], index: 2, kind: input, shape index: {}]   ;;  %s1084_s3 = inlined_call_operand.vmem [shape: f32[512,16], index: 3, kind: output, shape index: {}]  }
   0x1 LB: > { %s672_s13 = sadd.s32 4294967295, %s854_s12   ;;  %p674_p0 = scmp.ge.s32.totalorder %s854_s12, 1  ;;  %s854_s12 = sphi %s878_s12, %s14_s12  }
   0x2   : > { %p113_p1 = scmp.lt.s32.totalorder %s854_s12, 3  ;;  %p892_p3 = scmp.eq.s32.totalorder %s672_s13, 0 }
   0x3   : > { %s856_s16 = smov [#allocation2]   ;;  %s816_s21 = scalar_lea.hbm %s1083_s2, 16 }
   0x4   : > { %p886_p2 = pnand %p674_p0, %p113_p1  ;;  %s129_s17 = sshll.u32 %s856_s16, 4  ;;  %s130_s17 = int_to_ptr.vmem [resolvable:$true] %s129_s17 }
   0x5   : > { %s1089_s15 = scalar_select %p892_p3, 1, 0 }
   0x6   : > { %s1088_s14 = scalar_select %p886_p2, 1, 0 }
   0x7   : > { %p782_p4 = pneg %p886_p2  ;;  %p817_p6 = scmp.ne.s32.totalorder %s1083_s2, %s816_s21 }
   0x8   : > { %p823_p10 = scmp.lt.u32.totalorder %s816_s21, %s1083_s2 }
   0x9   : > { %p900_p5 = pnand %p892_p3, %p782_p4 }
   0xb   : > { %p818_p7 = pneg %p900_p5 }
   0xd   : > { %p819_p8 = pnand %p818_p7, %p817_p6 }
   0xf   : > { %p820_p9 = pneg %p819_p8 }
  0x11   : > { %p825_p11 = pnand %p823_p10, %p820_p9 }
  0x13   : > { %828 = shalt.err (!%p825_p11)
}
  0x14   : > { %s829_s26 = scalar_lea.vmem %s130_s17, 16  ;;  %s836_s27 = scalar_lea.vmem %s130_s17, 32 }
  0x15   : > { %p830_p12 = scmp.ne.s32.totalorder %s130_s17, %s829_s26  ;;  %p837_p1 = scmp.lt.s32.totalorder %s130_s17, %s130_s17 }
  0x16   : > { %p838_p4 = scmp.lt.s32.totalorder %s836_s27, %s829_s26 }
  0x17   : > { %p832_p13 = pnand %p830_p12, %p818_p7 }
  0x18   : > { %p839_p3 = por %p838_p4, %p837_p1 }
  0x19   : > { %p833_p0 = pneg %p832_p13 }
  0x1b   : > { %p840_p2 = pnand %p839_p3, %p833_p0 }
  0x1d   : > { %843 = shalt.err (!%p840_p2)
}
  0x1e   : > { %785 = dma.hbm_to_vmem [thread:$0]  (!%p900_p5), %s1083_s2, 16, %s130_s17, [#allocation3]  }
  0x1f   : > { %p1091_p6 = scmp.ne.s32.totalorder %s1088_s14, 0 }
  0x20   : > { %p1092_p8 = scmp.ne.s32.totalorder (!%p1091_p6), %s1089_s15, 0 }
  0x21   : > { %151 = sbr.rel (%p1091_p6) target bundleno = 296 (0x128), region = 32 }
  0x28   : > { %849 = dma.done.wait (%p1092_p8), [#allocation3], 16  }
  0x29   : > { %851 = vsyncadd (%p1092_p8), [#allocation3], 4294967280  ;;  %s679_s30 = sshll.u32 %s672_s13, 5  ;;  %vm371_vm0 = vcmask 1044480   ;;  %vm372_vm1 = vcmask 1045504   ;;  %v857_v0 = vmov 65535  }
  0x2a   : > { %p176_p2 = scmp.lt.s32.totalorder %s679_s30, 63  ;;  %v373_v1 = vsel %vm371_vm0, 4294967295, %v857_v0  ;;  %vm322_vm2 = vcmask 220160   ;;  %v798_v2 = vld [vmem:[%s1082_s1] sm:$0xff]   ;;  %v799_v4 = vld [vmem:[%s1082_s1 + $0x8] sm:$0x3f]  }
  0x2b   : > { %v374_v3 = vsel %vm372_vm1, %v373_v1, 0  ;;  %738 = vmatprep.subr.bf16.mxu0 %v798_v2  ;;  %774 = vmatprep.subr.bf16.mxu1 %v798_v2  ;;  %v974_v22 = vld [vmem:[#allocation2] ss:$0 sm:$0xff]  ;;  %vm571_vm3 = vcmask 130048  }
  0x2c   : > { %s1094_s30 = smov (!%p176_p2, %s679_s30), 63  ;;  %739 = vmatpush3.bf16.msra.mxu0 %v798_v2  ;;  %776 = vmatpush3.bf16.msra.mxu1 %v798_v2  ;;  %v376_v6 = vand.u32 %v799_v4, %v374_v3 }
  0x2d   : > { %s680_s4 = sshll.u32 %s1094_s30, 2  ;;  %s682_s13 = sshll.u32 %s1094_s30, 3 }
  0x2e   : > { %s934_s7 = scalar_lea.vmem %s1081_s0, %s680_s4  ;;  %740 = vmatprep.subr.bf16.mxu0 %v376_v6  ;;  %775 = vmatprep.subr.bf16.mxu1 %v376_v6  ;;  %s982_s16 = scalar_lea.vmem %s1084_s3, %s682_s13 }
  0x2f   : > { %v800_v5 = vld [vmem:[%s934_s7] sm:$0xff]   ;;  %v802_v8 = vld [vmem:[%s934_s7 + $0x8] sm:$0xff]   ;;  %v804_v10 = vld [vmem:[%s934_s7 + $0x10] sm:$0xff]  }
  0x30   : > { %v801_v7 = vld [vmem:[%s934_s7 + $0x40] sm:$0xff]   ;;  %742 = vmatprep.mubr.msk.bf16.mxu0 %vm322_vm2, %v800_v5  ;;  %v803_v9 = vld [vmem:[%s934_s7 + $0x48] sm:$0xff]   ;;  %741 = vmatpush3.bf16.msra.mxu0 %v376_v6  ;;  %v805_v11 = vld [vmem:[%s934_s7 + $0x50] sm:$0xff]  }
  0x31   : > { %758 = vmatprep.mubr.msk.bf16.mxu1 %vm322_vm2, %v801_v7  ;;  %777 = vmatpush3.bf16.msra.mxu1 %v376_v6  ;;  %v806_v12 = vld [vmem:[%s934_s7 + $0x18] sm:$0xff]   ;;  %v808_v14 = vld [vmem:[%s934_s7 + $0x20] sm:$0xff]   ;;  %v810_v16 = vld [vmem:[%s934_s7 + $0x28] sm:$0xff]  }
  0x32   : > { %v807_v13 = vld [vmem:[%s934_s7 + $0x58] sm:$0xff]   ;;  %v809_v15 = vld [vmem:[%s934_s7 + $0x60] sm:$0xff]   ;;  %v811_v17 = vld [vmem:[%s934_s7 + $0x68] sm:$0xff]  }
  0x33   : > { %743 = vmatmul.mubr.msk.bf16.vlgmr.msra.gmra.mrb[0].mxu0 %vm322_vm2, %v802_v8  ;;  %v812_v18 = vld [vmem:[%s934_s7 + $0x30] sm:$0xff]   ;;  %v814_v20 = vld [vmem:[%s934_s7 + $0x38] sm:$0xff]  }
  0x34   : > { %759 = vmatmul.mubr.msk.bf16.vlgmr.msra.gmra.mrb[0].mxu1 %vm322_vm2, %v803_v9  ;;  %746 = vmatprep.mubr.msk.bf16.mxu0 %vm322_vm2, %v804_v10  ;;  %v813_v19 = vld [vmem:[%s934_s7 + $0x70] sm:$0xff]   ;;  %v815_v21 = vld [vmem:[%s934_s7 + $0x78] sm:$0xff]  }
  0x35   : > { %762 = vmatprep.mubr.msk.bf16.mxu1 %vm322_vm2, %v805_v11 }
  0x3b   : > { %747 = vmatmul.mubr.msk.bf16.gmra.mrb[4].mxu0 %vm322_vm2, %v806_v12 }
  0x3c   : > { %763 = vmatmul.mubr.msk.bf16.gmra.mrb[4].mxu1 %vm322_vm2, %v807_v13  ;;  %750 = vmatprep.mubr.msk.bf16.mxu0 %vm322_vm2, %v808_v14 }
  0x3d   : > { %766 = vmatprep.mubr.msk.bf16.mxu1 %vm322_vm2, %v809_v15 }
  0x43   : > { %751 = vmatmul.mubr.msk.bf16.gmra.mrb[8].mxu0 %vm322_vm2, %v810_v16 }
  0x44   : > { %767 = vmatmul.mubr.msk.bf16.gmra.mrb[8].mxu1 %vm322_vm2, %v811_v17  ;;  %754 = vmatprep.mubr.msk.bf16.mxu0 %vm322_vm2, %v812_v18 }
  0x45   : > { %770 = vmatprep.mubr.msk.bf16.mxu1 %vm322_vm2, %v813_v19 }
  0x4b   : > { %755 = vmatmul.mubr.msk.bf16.gmra.mrb[12].mxu0 %vm322_vm2, %v814_v20 }
  0x4c   : > { %771 = vmatmul.mubr.msk.bf16.gmra.mrb[12].mxu1 %vm322_vm2, %v815_v21 }
 0x106   : > { %v744_v23 = vpop.f32.mrb[0].mxu0 }
 0x107   : > { %v760_v24 = vpop.f32.mrb[0].mxu1  ;;  %v421_v25 = vadd.f32 %v744_v23, %v974_v22  ;;  %v412_v27 = vpop.f32.mrb[1].mxu0 }
 0x108   : > { %v485_v26 = vadd.f32 %v760_v24, %v974_v22  ;;  %v476_v28 = vpop.f32.mrb[1].mxu1  ;;  %v413_v29 = vadd.f32 %v974_v22, %v412_v27  ;;  %v745_v31 = vpop.f32.mrb[2].mxu0 }
 0x109   : > { %v477_v30 = vadd.f32 %v974_v22, %v476_v28  ;;  %v761_v32 = vpop.f32.mrb[2].mxu1  ;;  %v541_v33 = vmax.f32 %v421_v25, 0.0  ;;  %v424_v35 = vadd.f32 %v745_v31, %v974_v22  ;;  %v415_v37 = vpop.f32.mrb[3].mxu0 }
 0x10a   : > { %v557_v34 = vmax.f32 %v485_v26, 0.0  ;;  %v488_v36 = vadd.f32 %v761_v32, %v974_v22  ;;  %v479_v38 = vpop.f32.mrb[3].mxu1  ;;  %v539_v39 = vmax.f32 %v413_v29, 0.0  ;;  %v416_v41 = vadd.f32 %v974_v22, %v415_v37 }
 0x10b   : > { %v555_v40 = vmax.f32 %v477_v30, 0.0  ;;  %v480_v42 = vadd.f32 %v974_v22, %v479_v38  ;;  %574 = vst.msk [vmem:[%s982_s16 + $0x10] sm:$0xff] %vm571_vm3, %v541_v33  ;;  %v542_v43 = vmax.f32 %v424_v35, 0.0 }
 0x10c   : > { %590 = vst.msk [vmem:[%s982_s16 + $0x90] sm:$0xff] %vm571_vm3, %v557_v34  ;;  %v558_v44 = vmax.f32 %v488_v36, 0.0  ;;  %572 = vst.msk [vmem:[%s982_s16] sm:$0xff] %vm571_vm3, %v539_v39  ;;  %v540_v45 = vmax.f32 %v416_v41, 0.0 }
 0x10d   : > { %588 = vst.msk [vmem:[%s982_s16 + $0x80] sm:$0xff] %vm571_vm3, %v555_v40  ;;  %v556_v46 = vmax.f32 %v480_v42, 0.0  ;;  %575 = vst.msk [vmem:[%s982_s16 + $0x18] sm:$0xff] %vm571_vm3, %v542_v43 }
 0x10e   : > { %591 = vst.msk [vmem:[%s982_s16 + $0x98] sm:$0xff] %vm571_vm3, %v558_v44  ;;  %573 = vst.msk [vmem:[%s982_s16 + $0x8] sm:$0xff] %vm571_vm3, %v540_v45  ;;  %v748_v47 = vpop.f32.mrb[4].mxu0 }
 0x10f   : > { %589 = vst.msk [vmem:[%s982_s16 + $0x88] sm:$0xff] %vm571_vm3, %v556_v46  ;;  %v764_v48 = vpop.f32.mrb[4].mxu1  ;;  %v437_v49 = vadd.f32 %v748_v47, %v974_v22  ;;  %v428_v51 = vpop.f32.mrb[5].mxu0 }
 0x110   : > { %v501_v50 = vadd.f32 %v764_v48, %v974_v22  ;;  %v492_v52 = vpop.f32.mrb[5].mxu1  ;;  %v429_v53 = vadd.f32 %v974_v22, %v428_v51  ;;  %v749_v55 = vpop.f32.mrb[6].mxu0 }
 0x111   : > { %v493_v54 = vadd.f32 %v974_v22, %v492_v52  ;;  %v765_v56 = vpop.f32.mrb[6].mxu1  ;;  %v545_v57 = vmax.f32 %v437_v49, 0.0  ;;  %v440_v59 = vadd.f32 %v749_v55, %v974_v22  ;;  %v431_v61 = vpop.f32.mrb[7].mxu0 }
 0x112   : > { %v561_v58 = vmax.f32 %v501_v50, 0.0  ;;  %v504_v60 = vadd.f32 %v765_v56, %v974_v22  ;;  %v495_v62 = vpop.f32.mrb[7].mxu1  ;;  %v543_v63 = vmax.f32 %v429_v53, 0.0  ;;  %v432_v1 = vadd.f32 %v974_v22, %v431_v61 }
 0x113   : > { %v559_v0 = vmax.f32 %v493_v54, 0.0  ;;  %v496_v2 = vadd.f32 %v974_v22, %v495_v62  ;;  %578 = vst.msk [vmem:[%s982_s16 + $0x30] sm:$0xff] %vm571_vm3, %v545_v57  ;;  %v546_v3 = vmax.f32 %v440_v59, 0.0 }
 0x114   : > { %594 = vst.msk [vmem:[%s982_s16 + $0xb0] sm:$0xff] %vm571_vm3, %v561_v58  ;;  %v562_v4 = vmax.f32 %v504_v60, 0.0  ;;  %576 = vst.msk [vmem:[%s982_s16 + $0x20] sm:$0xff] %vm571_vm3, %v543_v63  ;;  %v544_v5 = vmax.f32 %v432_v1, 0.0 }
 0x115   : > { %592 = vst.msk [vmem:[%s982_s16 + $0xa0] sm:$0xff] %vm571_vm3, %v559_v0  ;;  %v560_v6 = vmax.f32 %v496_v2, 0.0  ;;  %579 = vst.msk [vmem:[%s982_s16 + $0x38] sm:$0xff] %vm571_vm3, %v546_v3 }
 0x116   : > { %595 = vst.msk [vmem:[%s982_s16 + $0xb8] sm:$0xff] %vm571_vm3, %v562_v4  ;;  %577 = vst.msk [vmem:[%s982_s16 + $0x28] sm:$0xff] %vm571_vm3, %v544_v5  ;;  %v752_v7 = vpop.f32.mrb[8].mxu0 }
 0x117   : > { %593 = vst.msk [vmem:[%s982_s16 + $0xa8] sm:$0xff] %vm571_vm3, %v560_v6  ;;  %v768_v8 = vpop.f32.mrb[8].mxu1  ;;  %v453_v9 = vadd.f32 %v752_v7, %v974_v22  ;;  %v444_v11 = vpop.f32.mrb[9].mxu0 }
 0x118   : > { %v517_v10 = vadd.f32 %v768_v8, %v974_v22  ;;  %v508_v12 = vpop.f32.mrb[9].mxu1  ;;  %v445_v13 = vadd.f32 %v974_v22, %v444_v11  ;;  %v753_v15 = vpop.f32.mrb[10].mxu0 }
 0x119   : > { %v509_v14 = vadd.f32 %v974_v22, %v508_v12  ;;  %v769_v16 = vpop.f32.mrb[10].mxu1  ;;  %v549_v17 = vmax.f32 %v453_v9, 0.0  ;;  %v456_v19 = vadd.f32 %v753_v15, %v974_v22  ;;  %v447_v21 = vpop.f32.mrb[11].mxu0 }
 0x11a   : > { %v565_v18 = vmax.f32 %v517_v10, 0.0  ;;  %v520_v20 = vadd.f32 %v769_v16, %v974_v22  ;;  %v511_v23 = vpop.f32.mrb[11].mxu1  ;;  %v547_v24 = vmax.f32 %v445_v13, 0.0  ;;  %v448_v26 = vadd.f32 %v974_v22, %v447_v21 }
 0x11b   : > { %v563_v25 = vmax.f32 %v509_v14, 0.0  ;;  %v512_v27 = vadd.f32 %v974_v22, %v511_v23  ;;  %582 = vst.msk [vmem:[%s982_s16 + $0x50] sm:$0xff] %vm571_vm3, %v549_v17  ;;  %v550_v28 = vmax.f32 %v456_v19, 0.0 }
 0x11c   : > { %598 = vst.msk [vmem:[%s982_s16 + $0xd0] sm:$0xff] %vm571_vm3, %v565_v18  ;;  %v566_v29 = vmax.f32 %v520_v20, 0.0  ;;  %580 = vst.msk [vmem:[%s982_s16 + $0x40] sm:$0xff] %vm571_vm3, %v547_v24  ;;  %v548_v30 = vmax.f32 %v448_v26, 0.0 }
 0x11d   : > { %596 = vst.msk [vmem:[%s982_s16 + $0xc0] sm:$0xff] %vm571_vm3, %v563_v25  ;;  %v564_v31 = vmax.f32 %v512_v27, 0.0  ;;  %583 = vst.msk [vmem:[%s982_s16 + $0x58] sm:$0xff] %vm571_vm3, %v550_v28 }
 0x11e   : > { %599 = vst.msk [vmem:[%s982_s16 + $0xd8] sm:$0xff] %vm571_vm3, %v566_v29  ;;  %581 = vst.msk [vmem:[%s982_s16 + $0x48] sm:$0xff] %vm571_vm3, %v548_v30  ;;  %v756_v32 = vpop.f32.mrb[12].mxu0 }
 0x11f   : > { %597 = vst.msk [vmem:[%s982_s16 + $0xc8] sm:$0xff] %vm571_vm3, %v564_v31  ;;  %v772_v33 = vpop.f32.mrb[12].mxu1  ;;  %v469_v34 = vadd.f32 %v756_v32, %v974_v22  ;;  %v460_v36 = vpop.f32.mrb[13].mxu0 }
 0x120   : > { %v533_v35 = vadd.f32 %v772_v33, %v974_v22  ;;  %v524_v37 = vpop.f32.mrb[13].mxu1  ;;  %v461_v38 = vadd.f32 %v974_v22, %v460_v36  ;;  %v757_v40 = vpop.f32.mrb[14].mxu0 }
 0x121   : > { %v525_v39 = vadd.f32 %v974_v22, %v524_v37  ;;  %v773_v41 = vpop.f32.mrb[14].mxu1  ;;  %v553_v42 = vmax.f32 %v469_v34, 0.0  ;;  %v472_v44 = vadd.f32 %v757_v40, %v974_v22  ;;  %v463_v46 = vpop.f32.mrb[15].mxu0 }
 0x122   : > { %v569_v43 = vmax.f32 %v533_v35, 0.0  ;;  %v536_v45 = vadd.f32 %v773_v41, %v974_v22  ;;  %v527_v47 = vpop.f32.mrb[15].mxu1  ;;  %v551_v48 = vmax.f32 %v461_v38, 0.0  ;;  %v464_v50 = vadd.f32 %v974_v22, %v463_v46 }
 0x123   : > { %v567_v49 = vmax.f32 %v525_v39, 0.0  ;;  %v528_v51 = vadd.f32 %v974_v22, %v527_v47  ;;  %586 = vst.msk [vmem:[%s982_s16 + $0x70] sm:$0xff] %vm571_vm3, %v553_v42  ;;  %v554_v52 = vmax.f32 %v472_v44, 0.0 }
 0x124   : > { %602 = vst.msk [vmem:[%s982_s16 + $0xf0] sm:$0xff] %vm571_vm3, %v569_v43  ;;  %v570_v53 = vmax.f32 %v536_v45, 0.0  ;;  %584 = vst.msk [vmem:[%s982_s16 + $0x60] sm:$0xff] %vm571_vm3, %v551_v48  ;;  %v552_v54 = vmax.f32 %v464_v50, 0.0 }
 0x125   : > { %600 = vst.msk [vmem:[%s982_s16 + $0xe0] sm:$0xff] %vm571_vm3, %v567_v49  ;;  %v568_v55 = vmax.f32 %v528_v51, 0.0  ;;  %587 = vst.msk [vmem:[%s982_s16 + $0x78] sm:$0xff] %vm571_vm3, %v554_v52 }
 0x126   : > { %603 = vst.msk [vmem:[%s982_s16 + $0xf8] sm:$0xff] %vm571_vm3, %v570_v53  ;;  %585 = vst.msk [vmem:[%s982_s16 + $0x68] sm:$0xff] %vm571_vm3, %v552_v54 }
 0x127   : > { %601 = vst.msk [vmem:[%s982_s16 + $0xe8] sm:$0xff] %vm571_vm3, %v568_v55 }
 0x128 PF: > { %s14_s12 = sadd.s32 1, %s854_s12  }
 0x129   : > { %p11_p3 = scmp.ge.s32.totalorder %s14_s12, 4  }
 0x12b   :  { %13 = sbr.rel (!%p11_p3) target bundleno = 1 (0x1), region = 67 }
 0x132   :  { %626 = vsyncpa [#allocation3], 1 }
 0x133   :  { %628 = vsyncpa [#allocation3 + $0x1], 1 }

// kernel: unet_forward.17
= control target key start
LH: loop header
LB: loop body
LE: loop exit
PB: predicated region body
PF: predicated region fallthrough
CT: control target
= control target key end

     0   :  { %vm359_vm0 = vcmask 261120   ;;  %s734_s1 = inlined_call_operand.vmem [shape: bf16[256,32], index: 1, kind: input, shape index: {}]   ;;  %s735_s0 = inlined_call_operand.vmem [shape: bf16[128,256], index: 0, kind: input, shape index: {}]   ;;  %s736_s2 = inlined_call_operand.vmem [shape: f32[1,32], index: 2, kind: input, shape index: {}]   ;;  %s737_s3 = inlined_call_operand.vmem [shape: f32[128,32], index: 3, kind: output, shape index: {}]  }
   0x1   :  { %v493_v0 = vld [vmem:[%s734_s1 + $0x40] sm:$0xff]   ;;  %v495_v2 = vld [vmem:[%s734_s1 + $0x48] sm:$0xff]   ;;  %v497_v4 = vld [vmem:[%s734_s1 + $0x50] sm:$0xff]  }
   0x2   :  { %v494_v1 = vld [vmem:[%s734_s1] sm:$0xff]   ;;  %413 = vmatprep.subr.bf16.mxu0 %v493_v0  ;;  %477 = vmatprep.subr.bf16.mxu1 %v493_v0  ;;  %v496_v3 = vld [vmem:[%s734_s1 + $0x8] sm:$0xff]   ;;  %v498_v5 = vld [vmem:[%s734_s1 + $0x10] sm:$0xff]  }
   0x3   :  { %414 = vmatpush3.bf16.msra.mxu0 %v494_v1  ;;  %485 = vmatpush3.bf16.msra.mxu1 %v494_v1  ;;  %v499_v6 = vld [vmem:[%s734_s1 + $0x58] sm:$0xff]   ;;  %v501_v8 = vld [vmem:[%s734_s1 + $0x60] sm:$0xff]   ;;  %v503_v10 = vld [vmem:[%s734_s1 + $0x68] sm:$0xff]  }
   0x4   :  { %415 = vmatprep.subr.bf16.mxu0 %v495_v2  ;;  %478 = vmatprep.subr.bf16.mxu1 %v495_v2  ;;  %v500_v7 = vld [vmem:[%s734_s1 + $0x18] sm:$0xff]   ;;  %v502_v9 = vld [vmem:[%s734_s1 + $0x20] sm:$0xff]   ;;  %v504_v13 = vld [vmem:[%s734_s1 + $0x28] sm:$0xff]  }
   0x5   :  { %v511_v11 = vld [vmem:[%s735_s0 + $0x4] ss:$8 sps:$4 sm:$0xff]   ;;  %v505_v14 = vld [vmem:[%s734_s1 + $0x70] sm:$0xff]   ;;  %v507_v16 = vld [vmem:[%s734_s1 + $0x78] sm:$0xff]  }
   0x6   :  { %v514_v12 = vld [vmem:[%s735_s0 + $0x44] ss:$8 sps:$4 sm:$0xff]   ;;  %278 = vmatprep.mubr.bf16.mxu0 %v511_v11  ;;  %v506_v15 = vld [vmem:[%s734_s1 + $0x30] sm:$0xff]   ;;  %v508_v17 = vld [vmem:[%s734_s1 + $0x38] sm:$0xff]  }
   0x7   :  { %416 = vmatpush3.bf16.msra.mxu0 %v496_v3  ;;  %486 = vmatpush3.bf16.msra.mxu1 %v496_v3  ;;  %v509_v18 = vld [vmem:[%s735_s0] ss:$8 sps:$4 sm:$0xff]   ;;  %v515_v20 = vld [vmem:[%s735_s0 + $0x14] ss:$8 sps:$4 sm:$0xff]   ;;  %v519_v22 = vld [vmem:[%s735_s0 + $0x10] ss:$8 sps:$4 sm:$0xff]  }
   0x8   :  { %417 = vmatprep.subr.bf16.mxu0 %v497_v4  ;;  %479 = vmatprep.subr.bf16.mxu1 %v497_v4  ;;  %v512_v19 = vld [vmem:[%s735_s0 + $0x40] ss:$8 sps:$4 sm:$0xff]   ;;  %v517_v21 = vld [vmem:[%s735_s0 + $0x54] ss:$8 sps:$4 sm:$0xff]   ;;  %v520_v23 = vld [vmem:[%s735_s0 + $0x50] ss:$8 sps:$4 sm:$0xff]  }
   0x9   :  { %310 = vmatprep.mubr.bf16.mxu1 %v514_v12  ;;  %v521_v24 = vld [vmem:[%s735_s0 + $0x24] ss:$8 sps:$4 sm:$0xff]   ;;  %v525_v26 = vld [vmem:[%s735_s0 + $0x20] ss:$8 sps:$4 sm:$0xff]   ;;  %v527_v28 = vld [vmem:[%s735_s0 + $0x34] ss:$8 sps:$4 sm:$0xff]  }
   0xa   :  { %v523_v25 = vld [vmem:[%s735_s0 + $0x64] ss:$8 sps:$4 sm:$0xff]   ;;  %v526_v27 = vld [vmem:[%s735_s0 + $0x60] ss:$8 sps:$4 sm:$0xff]   ;;  %v529_v29 = vld [vmem:[%s735_s0 + $0x74] ss:$8 sps:$4 sm:$0xff]  }
   0xb   :  { %418 = vmatpush3.bf16.msra.mxu0 %v498_v5  ;;  %487 = vmatpush3.bf16.msra.mxu1 %v498_v5  ;;  %v531_v30 = vld [vmem:[%s735_s0 + $0x30] ss:$8 sps:$4 sm:$0xff]   ;;  %v652_v34 = vld [vmem:[%s736_s2] ss:$0 sm:$0xff] }
   0xc   :  { %419 = vmatprep.subr.bf16.mxu0 %v499_v6  ;;  %480 = vmatprep.subr.bf16.mxu1 %v499_v6  ;;  %v532_v31 = vld [vmem:[%s735_s0 + $0x70] ss:$8 sps:$4 sm:$0xff]  }
   0xf   :  { %420 = vmatpush3.bf16.msra.mxu0 %v500_v7  ;;  %488 = vmatpush3.bf16.msra.mxu1 %v500_v7 }
  0x10   :  { %421 = vmatprep.subr.bf16.mxu0 %v501_v8  ;;  %481 = vmatprep.subr.bf16.mxu1 %v501_v8 }
  0x13   :  { %422 = vmatpush3.bf16.msra.mxu0 %v502_v9  ;;  %489 = vmatpush3.bf16.msra.mxu1 %v502_v9 }
  0x14   :  { %423 = vmatprep.subr.bf16.mxu0 %v503_v10  ;;  %482 = vmatprep.subr.bf16.mxu1 %v503_v10 }
  0x17   :  { %424 = vmatpush3.bf16.msra.mxu0 %v504_v13  ;;  %490 = vmatpush3.bf16.msra.mxu1 %v504_v13 }
  0x18   :  { %425 = vmatprep.subr.bf16.mxu0 %v505_v14  ;;  %483 = vmatprep.subr.bf16.mxu1 %v505_v14 }
  0x1b   :  { %426 = vmatpush3.bf16.msra.mxu0 %v506_v15  ;;  %491 = vmatpush3.bf16.msra.mxu1 %v506_v15 }
  0x1c   :  { %427 = vmatprep.subr.bf16.mxu0 %v507_v16  ;;  %484 = vmatprep.subr.bf16.mxu1 %v507_v16 }
  0x1f   :  { %428 = vmatpush3.bf16.msra.mxu0 %v508_v17  ;;  %492 = vmatpush3.bf16.msra.mxu1 %v508_v17 }
  0x22   :  { %279 = vmatmul.mubr.bf16.vlgmr.msra.gmra.mrb[0].mxu0 %v509_v18  ;;  %311 = vmatmul.mubr.bf16.vlgmr.msra.gmra.mrb[0].mxu1 %v512_v19 }
  0x23   :  { %286 = vmatprep.mubr.bf16.mxu0 %v515_v20  ;;  %318 = vmatprep.mubr.bf16.mxu1 %v517_v21 }
  0x2a   :  { %287 = vmatmul.mubr.bf16.gmra.mrb[4].mxu0 %v519_v22  ;;  %319 = vmatmul.mubr.bf16.gmra.mrb[4].mxu1 %v520_v23 }
  0x2b   :  { %294 = vmatprep.mubr.bf16.mxu0 %v521_v24  ;;  %326 = vmatprep.mubr.bf16.mxu1 %v523_v25 }
  0x32   :  { %295 = vmatmul.mubr.bf16.gmra.mrb[8].mxu0 %v525_v26  ;;  %327 = vmatmul.mubr.bf16.gmra.mrb[8].mxu1 %v526_v27 }
  0x33   :  { %302 = vmatprep.mubr.bf16.mxu0 %v527_v28  ;;  %334 = vmatprep.mubr.bf16.mxu1 %v529_v29 }
  0x3a   :  { %303 = vmatmul.mubr.bf16.gmra.mrb[12].mxu0 %v531_v30  ;;  %335 = vmatmul.mubr.bf16.gmra.mrb[12].mxu1 %v532_v31 }
  0xf5   :  { %v429_v32 = vpop.f32.mrb[0].mxu0  ;;  %v453_v33 = vpop.f32.mrb[0].mxu1 }
  0xf6   :  { %v430_v35 = vpop.f32.mrb[1].mxu0  ;;  %v454_v36 = vpop.f32.mrb[1].mxu1 }
  0xf7   :  { %v431_v37 = vadd.f32 %v430_v35, %v429_v32  ;;  %v455_v38 = vadd.f32 %v454_v36, %v453_v33  ;;  %v432_v39 = vpop.f32.mrb[2].mxu0  ;;  %v456_v40 = vpop.f32.mrb[2].mxu1 }
  0xf8   :  { %v433_v41 = vpop.f32.mrb[3].mxu0  ;;  %v457_v42 = vpop.f32.mrb[3].mxu1 }
  0xf9   :  { %v281_v43 = vadd.f32 %v431_v37, %v652_v34  ;;  %v313_v44 = vadd.f32 %v455_v38, %v652_v34  ;;  %v434_v45 = vadd.f32 %v433_v41, %v432_v39  ;;  %v458_v46 = vadd.f32 %v457_v42, %v456_v40 }
  0xfb   :  { %v343_v47 = vmax.f32 %v281_v43, 0.0  ;;  %v351_v48 = vmax.f32 %v313_v44, 0.0  ;;  %v284_v49 = vadd.f32 %v434_v45, %v652_v34  ;;  %v316_v50 = vadd.f32 %v458_v46, %v652_v34 }
  0xfd   :  { %360 = vst.msk [vmem:[%s737_s3] sm:$0xff] %vm359_vm0, %v343_v47  ;;  %368 = vst.msk [vmem:[%s737_s3 + $0x40] sm:$0xff] %vm359_vm0, %v351_v48  ;;  %v344_v51 = vmax.f32 %v284_v49, 0.0  ;;  %v352_v52 = vmax.f32 %v316_v50, 0.0  ;;  %v435_v53 = vpop.f32.mrb[4].mxu0  ;;  %v459_v54 = vpop.f32.mrb[4].mxu1 }
  0xfe   :  { %v436_v55 = vpop.f32.mrb[5].mxu0  ;;  %v460_v56 = vpop.f32.mrb[5].mxu1 }
  0xff   :  { %361 = vst.msk [vmem:[%s737_s3 + $0x8] sm:$0xff] %vm359_vm0, %v344_v51  ;;  %369 = vst.msk [vmem:[%s737_s3 + $0x48] sm:$0xff] %vm359_vm0, %v352_v52  ;;  %v437_v57 = vadd.f32 %v436_v55, %v435_v53  ;;  %v461_v58 = vadd.f32 %v460_v56, %v459_v54  ;;  %v438_v59 = vpop.f32.mrb[6].mxu0  ;;  %v462_v60 = vpop.f32.mrb[6].mxu1 }
 0x100   :  { %v439_v61 = vpop.f32.mrb[7].mxu0  ;;  %v463_v62 = vpop.f32.mrb[7].mxu1 }
 0x101   :  { %v289_v63 = vadd.f32 %v437_v57, %v652_v34  ;;  %v321_v0 = vadd.f32 %v461_v58, %v652_v34  ;;  %v440_v1 = vadd.f32 %v439_v61, %v438_v59  ;;  %v464_v2 = vadd.f32 %v463_v62, %v462_v60 }
 0x103   :  { %v345_v3 = vmax.f32 %v289_v63, 0.0  ;;  %v353_v4 = vmax.f32 %v321_v0, 0.0  ;;  %v292_v5 = vadd.f32 %v440_v1, %v652_v34  ;;  %v324_v6 = vadd.f32 %v464_v2, %v652_v34 }
 0x105   :  { %362 = vst.msk [vmem:[%s737_s3 + $0x10] sm:$0xff] %vm359_vm0, %v345_v3  ;;  %370 = vst.msk [vmem:[%s737_s3 + $0x50] sm:$0xff] %vm359_vm0, %v353_v4  ;;  %v346_v7 = vmax.f32 %v292_v5, 0.0  ;;  %v354_v8 = vmax.f32 %v324_v6, 0.0  ;;  %v441_v9 = vpop.f32.mrb[8].mxu0  ;;  %v465_v10 = vpop.f32.mrb[8].mxu1 }
 0x106   :  { %v442_v11 = vpop.f32.mrb[9].mxu0  ;;  %v466_v12 = vpop.f32.mrb[9].mxu1 }
 0x107   :  { %363 = vst.msk [vmem:[%s737_s3 + $0x18] sm:$0xff] %vm359_vm0, %v346_v7  ;;  %371 = vst.msk [vmem:[%s737_s3 + $0x58] sm:$0xff] %vm359_vm0, %v354_v8  ;;  %v443_v13 = vadd.f32 %v442_v11, %v441_v9  ;;  %v467_v14 = vadd.f32 %v466_v12, %v465_v10  ;;  %v444_v15 = vpop.f32.mrb[10].mxu0  ;;  %v468_v16 = vpop.f32.mrb[10].mxu1 }
 0x108   :  { %v445_v17 = vpop.f32.mrb[11].mxu0  ;;  %v469_v18 = vpop.f32.mrb[11].mxu1 }
 0x109   :  { %v297_v19 = vadd.f32 %v443_v13, %v652_v34  ;;  %v329_v20 = vadd.f32 %v467_v14, %v652_v34  ;;  %v446_v21 = vadd.f32 %v445_v17, %v444_v15  ;;  %v470_v22 = vadd.f32 %v469_v18, %v468_v16 }
 0x10b   :  { %v347_v23 = vmax.f32 %v297_v19, 0.0  ;;  %v355_v24 = vmax.f32 %v329_v20, 0.0  ;;  %v300_v25 = vadd.f32 %v446_v21, %v652_v34  ;;  %v332_v26 = vadd.f32 %v470_v22, %v652_v34 }
 0x10d   :  { %364 = vst.msk [vmem:[%s737_s3 + $0x20] sm:$0xff] %vm359_vm0, %v347_v23  ;;  %372 = vst.msk [vmem:[%s737_s3 + $0x60] sm:$0xff] %vm359_vm0, %v355_v24  ;;  %v348_v27 = vmax.f32 %v300_v25, 0.0  ;;  %v356_v28 = vmax.f32 %v332_v26, 0.0  ;;  %v447_v29 = vpop.f32.mrb[12].mxu0  ;;  %v471_v30 = vpop.f32.mrb[12].mxu1 }
 0x10e   :  { %v448_v31 = vpop.f32.mrb[13].mxu0  ;;  %v472_v32 = vpop.f32.mrb[13].mxu1 }
 0x10f   :  { %365 = vst.msk [vmem:[%s737_s3 + $0x28] sm:$0xff] %vm359_vm0, %v348_v27  ;;  %373 = vst.msk [vmem:[%s737_s3 + $0x68] sm:$0xff] %vm359_vm0, %v356_v28  ;;  %v449_v33 = vadd.f32 %v448_v31, %v447_v29  ;;  %v473_v35 = vadd.f32 %v472_v32, %v471_v30  ;;  %v450_v36 = vpop.f32.mrb[14].mxu0  ;;  %v474_v37 = vpop.f32.mrb[14].mxu1 }
 0x110   :  { %v451_v38 = vpop.f32.mrb[15].mxu0  ;;  %v475_v39 = vpop.f32.mrb[15].mxu1 }
 0x111   :  { %v305_v40 = vadd.f32 %v449_v33, %v652_v34  ;;  %v337_v41 = vadd.f32 %v473_v35, %v652_v34  ;;  %v452_v42 = vadd.f32 %v451_v38, %v450_v36  ;;  %v476_v43 = vadd.f32 %v475_v39, %v474_v37 }
 0x113   :  { %v349_v44 = vmax.f32 %v305_v40, 0.0  ;;  %v357_v45 = vmax.f32 %v337_v41, 0.0  ;;  %v308_v46 = vadd.f32 %v452_v42, %v652_v34  ;;  %v340_v47 = vadd.f32 %v476_v43, %v652_v34 }
 0x115   :  { %366 = vst.msk [vmem:[%s737_s3 + $0x30] sm:$0xff] %vm359_vm0, %v349_v44  ;;  %374 = vst.msk [vmem:[%s737_s3 + $0x70] sm:$0xff] %vm359_vm0, %v357_v45  ;;  %v350_v48 = vmax.f32 %v308_v46, 0.0  ;;  %v358_v49 = vmax.f32 %v340_v47, 0.0 }
 0x117   :  { %367 = vst.msk [vmem:[%s737_s3 + $0x38] sm:$0xff] %vm359_vm0, %v350_v48  ;;  %375 = vst.msk [vmem:[%s737_s3 + $0x78] sm:$0xff] %vm359_vm0, %v358_v49 }

// kernel: unet_forward.18
= control target key start
LH: loop header
LB: loop body
LE: loop exit
PB: predicated region body
PF: predicated region fallthrough
CT: control target
= control target key end

     0   :  { %vm428_vm0 = vcmask 523264   ;;  %s737_s1 = inlined_call_operand.vmem [shape: bf16[512,64], index: 1, kind: input, shape index: {}]   ;;  %s738_s0 = inlined_call_operand.vmem [shape: bf16[32,512], index: 0, kind: input, shape index: {}]   ;;  %s739_s2 = inlined_call_operand.vmem [shape: f32[1,64], index: 2, kind: input, shape index: {}]   ;;  %s740_s3 = inlined_call_operand.vmem [shape: f32[32,64], index: 3, kind: output, shape index: {}]  }
   0x1   :  { %v534_v0 = vld [vmem:[%s737_s1 + $0x40] sm:$0xff]   ;;  %v538_v4 = vld [vmem:[%s737_s1 + $0x48] sm:$0xff]   ;;  %v542_v8 = vld [vmem:[%s737_s1 + $0x50] sm:$0xff]  }
   0x2   :  { %v535_v1 = vld [vmem:[%s737_s1 + $0xc0] sm:$0xff]   ;;  %478 = vmatprep.subr.bf16.mxu0 %v534_v0  ;;  %v539_v5 = vld [vmem:[%s737_s1 + $0xc8] sm:$0xff]   ;;  %v543_v9 = vld [vmem:[%s737_s1 + $0xd0] sm:$0xff]  }
   0x3   :  { %v536_v2 = vld [vmem:[%s737_s1] sm:$0xff]   ;;  %506 = vmatprep.subr.bf16.mxu1 %v535_v1  ;;  %v540_v6 = vld [vmem:[%s737_s1 + $0x8] sm:$0xff]   ;;  %v544_v10 = vld [vmem:[%s737_s1 + $0x10] sm:$0xff]  }
   0x4   :  { %v537_v3 = vld [vmem:[%s737_s1 + $0x80] sm:$0xff]   ;;  %479 = vmatpush3.bf16.msra.mxu0 %v536_v2  ;;  %v541_v7 = vld [vmem:[%s737_s1 + $0x88] sm:$0xff]   ;;  %v545_v11 = vld [vmem:[%s737_s1 + $0x90] sm:$0xff]  }
   0x5   :  { %507 = vmatpush3.bf16.msra.mxu1 %v537_v3  ;;  %480 = vmatprep.subr.bf16.mxu0 %v538_v4  ;;  %v546_v12 = vld [vmem:[%s737_s1 + $0x58] sm:$0xff]   ;;  %v550_v16 = vld [vmem:[%s737_s1 + $0x60] sm:$0xff]   ;;  %v554_v20 = vld [vmem:[%s737_s1 + $0x68] sm:$0xff]  }
   0x6   :  { %508 = vmatprep.subr.bf16.mxu1 %v539_v5  ;;  %v547_v13 = vld [vmem:[%s737_s1 + $0xd8] sm:$0xff]   ;;  %v551_v17 = vld [vmem:[%s737_s1 + $0xe0] sm:$0xff]   ;;  %v555_v21 = vld [vmem:[%s737_s1 + $0xe8] sm:$0xff]  }
   0x7   :  { %v548_v14 = vld [vmem:[%s737_s1 + $0x18] sm:$0xff]   ;;  %v552_v18 = vld [vmem:[%s737_s1 + $0x20] sm:$0xff]   ;;  %v556_v22 = vld [vmem:[%s737_s1 + $0x28] sm:$0xff]  }
   0x8   :  { %481 = vmatpush3.bf16.msra.mxu0 %v540_v6  ;;  %v549_v15 = vld [vmem:[%s737_s1 + $0x98] sm:$0xff]   ;;  %v553_v19 = vld [vmem:[%s737_s1 + $0xa0] sm:$0xff]   ;;  %v557_v23 = vld [vmem:[%s737_s1 + $0xa8] sm:$0xff]  }
   0x9   :  { %509 = vmatpush3.bf16.msra.mxu1 %v541_v7  ;;  %482 = vmatprep.subr.bf16.mxu0 %v542_v8  ;;  %v558_v24 = vld [vmem:[%s737_s1 + $0x70] sm:$0xff]   ;;  %v562_v28 = vld [vmem:[%s737_s1 + $0x78] sm:$0xff]   ;;  %v437_v42 = vld [vmem:[%s739_s2] ss:$0 sm:$0xff] }
   0xa   :  { %510 = vmatprep.subr.bf16.mxu1 %v543_v9  ;;  %v559_v25 = vld [vmem:[%s737_s1 + $0xf0] sm:$0xff]   ;;  %v563_v29 = vld [vmem:[%s737_s1 + $0xf8] sm:$0xff]  }
   0xb   :  { %v560_v26 = vld [vmem:[%s737_s1 + $0x30] sm:$0xff]   ;;  %v564_v30 = vld [vmem:[%s737_s1 + $0x38] sm:$0xff]  }
   0xc   :  { %483 = vmatpush3.bf16.msra.mxu0 %v544_v10  ;;  %v561_v27 = vld [vmem:[%s737_s1 + $0xb0] sm:$0xff]   ;;  %v565_v31 = vld [vmem:[%s737_s1 + $0xb8] sm:$0xff]  }
   0xd   :  { %511 = vmatpush3.bf16.msra.mxu1 %v545_v11  ;;  %484 = vmatprep.subr.bf16.mxu0 %v546_v12  ;;  %v566_v32 = vld [vmem:[%s738_s0] ss:$16 sps:$4 sm:$0xff]   ;;  %v568_v33 = vld [vmem:[%s738_s0 + $0x4] ss:$16 sps:$4 sm:$0xff]   ;;  %v569_v34 = vld [vmem:[%s738_s0 + $0x8] ss:$16 sps:$4 sm:$0xff]  }
   0xe   :  { %512 = vmatprep.subr.bf16.mxu1 %v547_v13  ;;  %v571_v35 = vld [vmem:[%s738_s0 + $0xc] ss:$16 sps:$4 sm:$0xff]   ;;  %358 = vmatprep.mubr.bf16.mxu0 %v568_v33  ;;  %v572_v36 = vld [vmem:[%s738_s0 + $0x24] ss:$16 sps:$4 sm:$0xff]   ;;  %v576_v38 = vld [vmem:[%s738_s0 + $0x20] ss:$16 sps:$4 sm:$0xff]  }
   0xf   :  { %407 = vmatprep.mubr.bf16.mxu1 %v571_v35  ;;  %v574_v37 = vld [vmem:[%s738_s0 + $0x2c] ss:$16 sps:$4 sm:$0xff]   ;;  %v577_v39 = vld [vmem:[%s738_s0 + $0x28] ss:$16 sps:$4 sm:$0xff]  }
  0x10   :  { %485 = vmatpush3.bf16.msra.mxu0 %v548_v14 }
  0x11   :  { %513 = vmatpush3.bf16.msra.mxu1 %v549_v15  ;;  %486 = vmatprep.subr.bf16.mxu0 %v550_v16 }
  0x12   :  { %514 = vmatprep.subr.bf16.mxu1 %v551_v17 }
  0x14   :  { %487 = vmatpush3.bf16.msra.mxu0 %v552_v18 }
  0x15   :  { %515 = vmatpush3.bf16.msra.mxu1 %v553_v19  ;;  %488 = vmatprep.subr.bf16.mxu0 %v554_v20 }
  0x16   :  { %516 = vmatprep.subr.bf16.mxu1 %v555_v21 }
  0x18   :  { %489 = vmatpush3.bf16.msra.mxu0 %v556_v22 }
  0x19   :  { %517 = vmatpush3.bf16.msra.mxu1 %v557_v23  ;;  %490 = vmatprep.subr.bf16.mxu0 %v558_v24 }
  0x1a   :  { %518 = vmatprep.subr.bf16.mxu1 %v559_v25 }
  0x1c   :  { %491 = vmatpush3.bf16.msra.mxu0 %v560_v26 }
  0x1d   :  { %519 = vmatpush3.bf16.msra.mxu1 %v561_v27  ;;  %492 = vmatprep.subr.bf16.mxu0 %v562_v28 }
  0x1e   :  { %520 = vmatprep.subr.bf16.mxu1 %v563_v29 }
  0x20   :  { %493 = vmatpush3.bf16.msra.mxu0 %v564_v30 }
  0x21   :  { %521 = vmatpush3.bf16.msra.mxu1 %v565_v31 }
  0x23   :  { %359 = vmatmul.mubr.bf16.vlgmr.msra.gmra.mrb[0].mxu0 %v566_v32 }
  0x24   :  { %408 = vmatmul.mubr.bf16.vlgmr.msra.gmra.mrb[0].mxu1 %v569_v34  ;;  %366 = vmatprep.mubr.bf16.mxu0 %v572_v36 }
  0x25   :  { %415 = vmatprep.mubr.bf16.mxu1 %v574_v37 }
  0x2b   :  { %367 = vmatmul.mubr.bf16.gmra.mrb[4].mxu0 %v576_v38 }
  0x2c   :  { %416 = vmatmul.mubr.bf16.gmra.mrb[4].mxu1 %v577_v39 }
  0xf6   :  { %v494_v40 = vpop.f32.mrb[0].mxu0 }
  0xf7   :  { %v522_v41 = vpop.f32.mrb[0].mxu1  ;;  %v495_v43 = vpop.f32.mrb[1].mxu0 }
  0xf8   :  { %v496_v44 = vadd.f32 %v495_v43, %v494_v40  ;;  %v523_v45 = vpop.f32.mrb[1].mxu1  ;;  %v497_v46 = vpop.f32.mrb[2].mxu0 }
  0xf9   :  { %v524_v47 = vadd.f32 %v523_v45, %v522_v41  ;;  %v525_v48 = vpop.f32.mrb[2].mxu1  ;;  %v498_v49 = vpop.f32.mrb[3].mxu0 }
  0xfa   :  { %v361_v50 = vadd.f32 %v496_v44, %v437_v42  ;;  %v499_v51 = vadd.f32 %v498_v49, %v497_v46  ;;  %v526_v52 = vpop.f32.mrb[3].mxu1 }
  0xfb   :  { %v527_v53 = vadd.f32 %v526_v52, %v525_v48 }
  0xfc   :  { %v410_v54 = vadd.f32 %v524_v47, %v361_v50  ;;  %v364_v55 = vadd.f32 %v499_v51, %v437_v42 }
  0xfe   :  { %v424_v56 = vmax.f32 %v410_v54, 0.0  ;;  %v413_v57 = vadd.f32 %v527_v53, %v364_v55  ;;  %v500_v58 = vpop.f32.mrb[4].mxu0 }
  0xff   :  { %v528_v59 = vpop.f32.mrb[4].mxu1  ;;  %v501_v60 = vpop.f32.mrb[5].mxu0 }
 0x100   :  { %429 = vst.msk [vmem:[%s740_s3] sm:$0xff] %vm428_vm0, %v424_v56  ;;  %v425_v61 = vmax.f32 %v413_v57, 0.0  ;;  %v502_v62 = vadd.f32 %v501_v60, %v500_v58  ;;  %v529_v63 = vpop.f32.mrb[5].mxu1  ;;  %v503_v0 = vpop.f32.mrb[6].mxu0 }
 0x101   :  { %v530_v1 = vadd.f32 %v529_v63, %v528_v59  ;;  %v531_v2 = vpop.f32.mrb[6].mxu1  ;;  %v504_v3 = vpop.f32.mrb[7].mxu0 }
 0x102   :  { %430 = vst.msk [vmem:[%s740_s3 + $0x8] sm:$0xff] %vm428_vm0, %v425_v61  ;;  %v369_v4 = vadd.f32 %v502_v62, %v437_v42  ;;  %v505_v5 = vadd.f32 %v504_v3, %v503_v0  ;;  %v532_v6 = vpop.f32.mrb[7].mxu1 }
 0x103   :  { %v533_v7 = vadd.f32 %v532_v6, %v531_v2 }
 0x104   :  { %v418_v8 = vadd.f32 %v530_v1, %v369_v4  ;;  %v372_v9 = vadd.f32 %v505_v5, %v437_v42 }
 0x106   :  { %v426_v10 = vmax.f32 %v418_v8, 0.0  ;;  %v421_v11 = vadd.f32 %v533_v7, %v372_v9 }
 0x108   :  { %431 = vst.msk [vmem:[%s740_s3 + $0x10] sm:$0xff] %vm428_vm0, %v426_v10  ;;  %v427_v12 = vmax.f32 %v421_v11, 0.0 }
 0x10a   :  { %432 = vst.msk [vmem:[%s740_s3 + $0x18] sm:$0xff] %vm428_vm0, %v427_v12 }

// kernel: unet_forward.19
= control target key start
LH: loop header
LB: loop body
LE: loop exit
PB: predicated region body
PF: predicated region fallthrough
CT: control target
= control target key end

     0   :  { %s1195_s1 = inlined_call_operand.vmem [shape: bf16[1024,128], index: 1, kind: input, shape index: {}]   ;;  %s1196_s0 = inlined_call_operand.vmem [shape: bf16[8,1024], index: 0, kind: input, shape index: {}]   ;;  %s1197_s2 = inlined_call_operand.vmem [shape: f32[1,128], index: 2, kind: input, shape index: {}]   ;;  %s1198_s3 = inlined_call_operand.vmem [shape: f32[8,128], index: 3, kind: output, shape index: {}]  }
   0x1   :  { %v893_v0 = vld [vmem:[%s1195_s1 + $0x40] sm:$0xff]   ;;  %v897_v4 = vld [vmem:[%s1195_s1 + $0x48] sm:$0xff]   ;;  %v901_v8 = vld [vmem:[%s1195_s1 + $0x50] sm:$0xff]  }
   0x2   :  { %v894_v1 = vld [vmem:[%s1195_s1 + $0xc0] sm:$0xff]   ;;  %805 = vmatprep.subr.bf16.mxu0 %v893_v0  ;;  %v898_v5 = vld [vmem:[%s1195_s1 + $0xc8] sm:$0xff]   ;;  %v902_v9 = vld [vmem:[%s1195_s1 + $0xd0] sm:$0xff]  }
   0x3   :  { %v895_v2 = vld [vmem:[%s1195_s1] sm:$0xff]   ;;  %827 = vmatprep.subr.bf16.mxu1 %v894_v1  ;;  %v899_v6 = vld [vmem:[%s1195_s1 + $0x8] sm:$0xff]   ;;  %v903_v10 = vld [vmem:[%s1195_s1 + $0x10] sm:$0xff]  }
   0x4   :  { %v896_v3 = vld [vmem:[%s1195_s1 + $0x80] sm:$0xff]   ;;  %806 = vmatpush3.bf16.msra.mxu0 %v895_v2  ;;  %v900_v7 = vld [vmem:[%s1195_s1 + $0x88] sm:$0xff]   ;;  %v904_v11 = vld [vmem:[%s1195_s1 + $0x90] sm:$0xff]  }
   0x5   :  { %828 = vmatpush3.bf16.msra.mxu1 %v896_v3  ;;  %807 = vmatprep.subr.bf16.mxu0 %v897_v4  ;;  %v905_v12 = vld [vmem:[%s1195_s1 + $0x58] sm:$0xff]   ;;  %v909_v16 = vld [vmem:[%s1195_s1 + $0x60] sm:$0xff]   ;;  %v913_v20 = vld [vmem:[%s1195_s1 + $0x68] sm:$0xff]  }
   0x6   :  { %829 = vmatprep.subr.bf16.mxu1 %v898_v5  ;;  %v906_v13 = vld [vmem:[%s1195_s1 + $0xd8] sm:$0xff]   ;;  %v910_v17 = vld [vmem:[%s1195_s1 + $0xe0] sm:$0xff]   ;;  %v914_v21 = vld [vmem:[%s1195_s1 + $0xe8] sm:$0xff]  }
   0x7   :  { %v907_v14 = vld [vmem:[%s1195_s1 + $0x18] sm:$0xff]   ;;  %v911_v18 = vld [vmem:[%s1195_s1 + $0x20] sm:$0xff]   ;;  %v915_v22 = vld [vmem:[%s1195_s1 + $0x28] sm:$0xff]  }
   0x8   :  { %808 = vmatpush3.bf16.msra.mxu0 %v899_v6  ;;  %v908_v15 = vld [vmem:[%s1195_s1 + $0x98] sm:$0xff]   ;;  %v912_v19 = vld [vmem:[%s1195_s1 + $0xa0] sm:$0xff]   ;;  %v916_v23 = vld [vmem:[%s1195_s1 + $0xa8] sm:$0xff]  }
   0x9   :  { %830 = vmatpush3.bf16.msra.mxu1 %v900_v7  ;;  %809 = vmatprep.subr.bf16.mxu0 %v901_v8  ;;  %v917_v24 = vld [vmem:[%s1195_s1 + $0x70] sm:$0xff]   ;;  %v921_v28 = vld [vmem:[%s1195_s1 + $0x78] sm:$0xff]   ;;  %v15_v32 = vld [vmem:[%s1196_s0] sm:$0xff] }
   0xa   :  { %831 = vmatprep.subr.bf16.mxu1 %v902_v9  ;;  %v918_v25 = vld [vmem:[%s1195_s1 + $0xf0] sm:$0xff]   ;;  %v922_v29 = vld [vmem:[%s1195_s1 + $0xf8] sm:$0xff]   ;;  %v16_v33 = vld [vmem:[%s1196_s0 + $0x8] sm:$0xff]  ;;  %v733_v34 = vcombine.low %v15_v32, %v15_v32  ;;  %v734_v35 = vcombine.high %v15_v32, %v15_v32 }
   0xb   :  { %v919_v26 = vld [vmem:[%s1195_s1 + $0x30] sm:$0xff]   ;;  %v923_v30 = vld [vmem:[%s1195_s1 + $0x38] sm:$0xff]   ;;  %v735_v36 = vcombine.low %v16_v33, %v16_v33  ;;  %v736_v37 = vcombine.high %v16_v33, %v16_v33  ;;  %v929_v38 = vld [vmem:[%s1195_s1 + $0x140] sm:$0xff]  }
   0xc   :  { %810 = vmatpush3.bf16.msra.mxu0 %v903_v10  ;;  %v920_v27 = vld [vmem:[%s1195_s1 + $0xb0] sm:$0xff]   ;;  %v924_v31 = vld [vmem:[%s1195_s1 + $0xb8] sm:$0xff]   ;;  %v930_v39 = vld [vmem:[%s1195_s1 + $0x1c0] sm:$0xff]   ;;  %598 = vmatprep.mubr.bf16.mxu0 %v734_v35 }
   0xd   :  { %832 = vmatpush3.bf16.msra.mxu1 %v904_v11  ;;  %811 = vmatprep.subr.bf16.mxu0 %v905_v12  ;;  %v931_v40 = vld [vmem:[%s1195_s1 + $0x100] sm:$0xff]   ;;  %v933_v42 = vld [vmem:[%s1195_s1 + $0x148] sm:$0xff]   ;;  %v937_v46 = vld [vmem:[%s1195_s1 + $0x150] sm:$0xff]  }
   0xe   :  { %833 = vmatprep.subr.bf16.mxu1 %v906_v13  ;;  %638 = vmatprep.mubr.bf16.mxu1 %v736_v37  ;;  %v932_v41 = vld [vmem:[%s1195_s1 + $0x180] sm:$0xff]   ;;  %v934_v43 = vld [vmem:[%s1195_s1 + $0x1c8] sm:$0xff]   ;;  %v938_v47 = vld [vmem:[%s1195_s1 + $0x1d0] sm:$0xff]  }
   0xf   :  { %v935_v44 = vld [vmem:[%s1195_s1 + $0x108] sm:$0xff]   ;;  %v939_v48 = vld [vmem:[%s1195_s1 + $0x110] sm:$0xff]   ;;  %v941_v50 = vld [vmem:[%s1195_s1 + $0x158] sm:$0xff]  }
  0x10   :  { %812 = vmatpush3.bf16.msra.mxu0 %v907_v14  ;;  %v936_v45 = vld [vmem:[%s1195_s1 + $0x188] sm:$0xff]   ;;  %v940_v49 = vld [vmem:[%s1195_s1 + $0x190] sm:$0xff]   ;;  %v942_v51 = vld [vmem:[%s1195_s1 + $0x1d8] sm:$0xff]  }
  0x11   :  { %834 = vmatpush3.bf16.msra.mxu1 %v908_v15  ;;  %813 = vmatprep.subr.bf16.mxu0 %v909_v16  ;;  %v943_v52 = vld [vmem:[%s1195_s1 + $0x118] sm:$0xff]   ;;  %v945_v54 = vld [vmem:[%s1195_s1 + $0x160] sm:$0xff]   ;;  %v949_v58 = vld [vmem:[%s1195_s1 + $0x168] sm:$0xff]  }
  0x12   :  { %835 = vmatprep.subr.bf16.mxu1 %v910_v17  ;;  %v944_v53 = vld [vmem:[%s1195_s1 + $0x198] sm:$0xff]   ;;  %v946_v55 = vld [vmem:[%s1195_s1 + $0x1e0] sm:$0xff]   ;;  %v950_v59 = vld [vmem:[%s1195_s1 + $0x1e8] sm:$0xff]  }
  0x13   :  { %v947_v56 = vld [vmem:[%s1195_s1 + $0x120] sm:$0xff]   ;;  %v951_v60 = vld [vmem:[%s1195_s1 + $0x128] sm:$0xff]   ;;  %v953_v62 = vld [vmem:[%s1195_s1 + $0x170] sm:$0xff]  }
  0x14   :  { %814 = vmatpush3.bf16.msra.mxu0 %v911_v18  ;;  %v948_v57 = vld [vmem:[%s1195_s1 + $0x1a0] sm:$0xff]   ;;  %v952_v61 = vld [vmem:[%s1195_s1 + $0x1a8] sm:$0xff]   ;;  %v954_v63 = vld [vmem:[%s1195_s1 + $0x1f0] sm:$0xff]  }
  0x15   :  { %836 = vmatpush3.bf16.msra.mxu1 %v912_v19  ;;  %815 = vmatprep.subr.bf16.mxu0 %v913_v20  ;;  %v955_v0 = vld [vmem:[%s1195_s1 + $0x130] sm:$0xff]   ;;  %v957_v2 = vld [vmem:[%s1195_s1 + $0x178] sm:$0xff]   ;;  %v732_v14 = vld [vmem:[%s1197_s2] ss:$0 sm:$0xff] }
  0x16   :  { %837 = vmatprep.subr.bf16.mxu1 %v914_v21  ;;  %v956_v1 = vld [vmem:[%s1195_s1 + $0x1b0] sm:$0xff]   ;;  %v958_v3 = vld [vmem:[%s1195_s1 + $0x1f8] sm:$0xff]  }
  0x17   :  { %v959_v4 = vld [vmem:[%s1195_s1 + $0x138] sm:$0xff]   ;;  %v17_v6 = vld [vmem:[%s1196_s0 + $0x10] sm:$0xff] }
  0x18   :  { %816 = vmatpush3.bf16.msra.mxu0 %v915_v22  ;;  %v960_v5 = vld [vmem:[%s1195_s1 + $0x1b8] sm:$0xff]   ;;  %v737_v7 = vcombine.low %v17_v6, %v17_v6  ;;  %v738_v8 = vcombine.high %v17_v6, %v17_v6 }
  0x19   :  { %838 = vmatpush3.bf16.msra.mxu1 %v916_v23  ;;  %817 = vmatprep.subr.bf16.mxu0 %v917_v24  ;;  %v18_v9 = vld [vmem:[%s1196_s0 + $0x18] sm:$0xff] }
  0x1a   :  { %839 = vmatprep.subr.bf16.mxu1 %v918_v25  ;;  %v739_v10 = vcombine.low %v18_v9, %v18_v9  ;;  %v740_v11 = vcombine.high %v18_v9, %v18_v9 }
  0x1c   :  { %818 = vmatpush3.bf16.msra.mxu0 %v919_v26 }
  0x1d   :  { %840 = vmatpush3.bf16.msra.mxu1 %v920_v27  ;;  %819 = vmatprep.subr.bf16.mxu0 %v921_v28 }
  0x1e   :  { %841 = vmatprep.subr.bf16.mxu1 %v922_v29 }
  0x20   :  { %820 = vmatpush3.bf16.msra.mxu0 %v923_v30 }
  0x21   :  { %842 = vmatpush3.bf16.msra.mxu1 %v924_v31  ;;  %849 = vmatprep.subr.bf16.mxu0 %v929_v38 }
  0x22   :  { %871 = vmatprep.subr.bf16.mxu1 %v930_v39 }
  0x23   :  { %599 = vmatmul.mubr.bf16.vlgmr.msra.gmra.mrb[0].mxu0 %v733_v34 }
  0x24   :  { %639 = vmatmul.mubr.bf16.vlgmr.msra.gmra.mrb[0].mxu1 %v735_v36  ;;  %850 = vmatpush3.bf16.msra.mxu0 %v931_v40 }
  0x25   :  { %872 = vmatpush3.bf16.msra.mxu1 %v932_v41  ;;  %851 = vmatprep.subr.bf16.mxu0 %v933_v42 }
  0x26   :  { %873 = vmatprep.subr.bf16.mxu1 %v934_v43  ;;  %678 = vmatprep.mubr.bf16.mxu0 %v738_v8 }
  0x27   :  { %718 = vmatprep.mubr.bf16.mxu1 %v740_v11 }
  0x28   :  { %852 = vmatpush3.bf16.msra.mxu0 %v935_v44 }
  0x29   :  { %874 = vmatpush3.bf16.msra.mxu1 %v936_v45  ;;  %853 = vmatprep.subr.bf16.mxu0 %v937_v46 }
  0x2a   :  { %875 = vmatprep.subr.bf16.mxu1 %v938_v47 }
  0x2c   :  { %854 = vmatpush3.bf16.msra.mxu0 %v939_v48 }
  0x2d   :  { %876 = vmatpush3.bf16.msra.mxu1 %v940_v49  ;;  %855 = vmatprep.subr.bf16.mxu0 %v941_v50 }
  0x2e   :  { %877 = vmatprep.subr.bf16.mxu1 %v942_v51 }
  0x30   :  { %856 = vmatpush3.bf16.msra.mxu0 %v943_v52 }
  0x31   :  { %878 = vmatpush3.bf16.msra.mxu1 %v944_v53  ;;  %857 = vmatprep.subr.bf16.mxu0 %v945_v54 }
  0x32   :  { %879 = vmatprep.subr.bf16.mxu1 %v946_v55 }
  0x34   :  { %858 = vmatpush3.bf16.msra.mxu0 %v947_v56 }
  0x35   :  { %880 = vmatpush3.bf16.msra.mxu1 %v948_v57  ;;  %859 = vmatprep.subr.bf16.mxu0 %v949_v58 }
  0x36   :  { %881 = vmatprep.subr.bf16.mxu1 %v950_v59 }
  0x38   :  { %860 = vmatpush3.bf16.msra.mxu0 %v951_v60 }
  0x39   :  { %882 = vmatpush3.bf16.msra.mxu1 %v952_v61  ;;  %861 = vmatprep.subr.bf16.mxu0 %v953_v62 }
  0x3a   :  { %883 = vmatprep.subr.bf16.mxu1 %v954_v63 }
  0x3c   :  { %862 = vmatpush3.bf16.msra.mxu0 %v955_v0 }
  0x3d   :  { %884 = vmatpush3.bf16.msra.mxu1 %v956_v1  ;;  %863 = vmatprep.subr.bf16.mxu0 %v957_v2 }
  0x3e   :  { %885 = vmatprep.subr.bf16.mxu1 %v958_v3 }
  0x40   :  { %864 = vmatpush3.bf16.msra.mxu0 %v959_v4 }
  0x41   :  { %886 = vmatpush3.bf16.msra.mxu1 %v960_v5 }
  0x43   :  { %679 = vmatmul.mubr.bf16.vlgmr.msra.gmra.mrb[4].mxu0 %v737_v7 }
  0x44   :  { %719 = vmatmul.mubr.bf16.vlgmr.msra.gmra.mrb[4].mxu1 %v739_v10 }
  0xf6   :  { %v821_v12 = vpop.f32.mrb[0].mxu0 }
  0xf7   :  { %v843_v13 = vpop.f32.mrb[0].mxu1  ;;  %v822_v15 = vpop.f32.mrb[1].mxu0 }
  0xf8   :  { %v844_v16 = vpop.f32.mrb[1].mxu1  ;;  %v823_v17 = vadd.f32 %v822_v15, %v821_v12  ;;  %v824_v19 = vpop.f32.mrb[2].mxu0 }
  0xf9   :  { %v845_v18 = vadd.f32 %v844_v16, %v843_v13  ;;  %v846_v20 = vpop.f32.mrb[2].mxu1  ;;  %v825_v21 = vpop.f32.mrb[3].mxu0 }
  0xfa   :  { %v847_v22 = vpop.f32.mrb[3].mxu1  ;;  %v601_v23 = vadd.f32 %v823_v17, %v732_v14 }
  0xfc   :  { %v641_v24 = vadd.f32 %v845_v18, %v601_v23 }
 0x116   :  { %v865_v25 = vpop.f32.mrb[4].mxu0 }
 0x117   :  { %v887_v26 = vpop.f32.mrb[4].mxu1  ;;  %v866_v27 = vpop.f32.mrb[5].mxu0 }
 0x118   :  { %v888_v28 = vpop.f32.mrb[5].mxu1  ;;  %v867_v29 = vadd.f32 %v866_v27, %v865_v25  ;;  %v868_v31 = vpop.f32.mrb[6].mxu0 }
 0x119   :  { %v889_v30 = vadd.f32 %v888_v28, %v887_v26  ;;  %v890_v32 = vpop.f32.mrb[6].mxu1  ;;  %v869_v33 = vpop.f32.mrb[7].mxu0 }
 0x11a   :  { %v891_v34 = vpop.f32.mrb[7].mxu1  ;;  %v681_v35 = vadd.f32 %v867_v29, %v641_v24 }
 0x11c   :  { %v721_v36 = vadd.f32 %v889_v30, %v681_v35 }
 0x11e   :  { %v726_v37 = vmax.f32 %v721_v36, 0.0 }
 0x120   :  { %727 = vst [vmem:[%s1198_s3] sm:$0xff] %v726_v37 }

// kernel: unet_forward.24
= control target key start
LH: loop header
LB: loop body
LE: loop exit
PB: predicated region body
PF: predicated region fallthrough
CT: control target
= control target key end

     0   :  { %s2025_s1 = inlined_call_operand.vmem [shape: bf16[1152,256], index: 1, kind: input, shape index: {}]   ;;  %s2026_s0 = inlined_call_operand.vmem [shape: bf16[8,1152], index: 0, kind: input, shape index: {}]   ;;  %s2027_s2 = inlined_call_operand.vmem [shape: f32[1,256], index: 2, kind: input, shape index: {}]   ;;  %s2028_s3 = inlined_call_operand.vmem [shape: f32[8,256], index: 3, kind: output, shape index: {}]  }
   0x1   :  { %v1311_v0 = vld [vmem:[%s2025_s1 + $0x4] ss:$8 sps:$4 sm:$0xff]   ;;  %v1315_v2 = vld [vmem:[%s2025_s1] ss:$8 sps:$4 sm:$0xff]   ;;  %v1317_v4 = vld [vmem:[%s2025_s1 + $0x14] ss:$8 sps:$4 sm:$0xff]  }
   0x2   :  { %v1313_v1 = vld [vmem:[%s2025_s1 + $0x204] ss:$8 sps:$4 sm:$0xff]   ;;  %928 = vmatprep.subr.bf16.mxu1 %v1311_v0  ;;  %v1316_v3 = vld [vmem:[%s2025_s1 + $0x200] ss:$8 sps:$4 sm:$0xff]   ;;  %v1319_v5 = vld [vmem:[%s2025_s1 + $0x214] ss:$8 sps:$4 sm:$0xff]  }
   0x3   :  { %1010 = vmatprep.subr.bf16.mxu0 %v1313_v1  ;;  %929 = vmatpush1.bf16.msra.mxu1 %v1315_v2  ;;  %v1321_v6 = vld [vmem:[%s2025_s1 + $0x10] ss:$8 sps:$4 sm:$0xff]   ;;  %v1323_v8 = vld [vmem:[%s2025_s1 + $0x24] ss:$8 sps:$4 sm:$0xff]   ;;  %v1327_v10 = vld [vmem:[%s2025_s1 + $0x20] ss:$8 sps:$4 sm:$0xff]  }
   0x4   :  { %1011 = vmatpush1.bf16.msra.mxu0 %v1316_v3  ;;  %930 = vmatprep.subr.bf16.mxu1 %v1317_v4  ;;  %v1322_v7 = vld [vmem:[%s2025_s1 + $0x210] ss:$8 sps:$4 sm:$0xff]   ;;  %v1325_v9 = vld [vmem:[%s2025_s1 + $0x224] ss:$8 sps:$4 sm:$0xff]   ;;  %v1328_v11 = vld [vmem:[%s2025_s1 + $0x220] ss:$8 sps:$4 sm:$0xff]  }
   0x5   :  { %1012 = vmatprep.subr.bf16.mxu0 %v1319_v5  ;;  %v1329_v12 = vld [vmem:[%s2025_s1 + $0x34] ss:$8 sps:$4 sm:$0xff]   ;;  %v1333_v14 = vld [vmem:[%s2025_s1 + $0x30] ss:$8 sps:$4 sm:$0xff]   ;;  %v1335_v16 = vld [vmem:[%s2025_s1 + $0x44] ss:$8 sps:$4 sm:$0xff]  }
   0x6   :  { %v1331_v13 = vld [vmem:[%s2025_s1 + $0x234] ss:$8 sps:$4 sm:$0xff]   ;;  %v1334_v15 = vld [vmem:[%s2025_s1 + $0x230] ss:$8 sps:$4 sm:$0xff]   ;;  %v1337_v17 = vld [vmem:[%s2025_s1 + $0x244] ss:$8 sps:$4 sm:$0xff]  }
   0x7   :  { %931 = vmatpush1.bf16.msra.mxu1 %v1321_v6  ;;  %v1339_v18 = vld [vmem:[%s2025_s1 + $0x40] ss:$8 sps:$4 sm:$0xff]   ;;  %v1341_v20 = vld [vmem:[%s2025_s1 + $0x54] ss:$8 sps:$4 sm:$0xff]   ;;  %v1345_v22 = vld [vmem:[%s2025_s1 + $0x50] ss:$8 sps:$4 sm:$0xff]  }
   0x8   :  { %1013 = vmatpush1.bf16.msra.mxu0 %v1322_v7  ;;  %932 = vmatprep.subr.bf16.mxu1 %v1323_v8  ;;  %v1340_v19 = vld [vmem:[%s2025_s1 + $0x240] ss:$8 sps:$4 sm:$0xff]   ;;  %v1343_v21 = vld [vmem:[%s2025_s1 + $0x254] ss:$8 sps:$4 sm:$0xff]   ;;  %v1346_v23 = vld [vmem:[%s2025_s1 + $0x250] ss:$8 sps:$4 sm:$0xff]  }
   0x9   :  { %1014 = vmatprep.subr.bf16.mxu0 %v1325_v9  ;;  %v1347_v24 = vld [vmem:[%s2025_s1 + $0x64] ss:$8 sps:$4 sm:$0xff]   ;;  %v1351_v26 = vld [vmem:[%s2025_s1 + $0x60] ss:$8 sps:$4 sm:$0xff]   ;;  %v1353_v28 = vld [vmem:[%s2025_s1 + $0x74] ss:$8 sps:$4 sm:$0xff]  }
   0xa   :  { %v1349_v25 = vld [vmem:[%s2025_s1 + $0x264] ss:$8 sps:$4 sm:$0xff]   ;;  %v1352_v27 = vld [vmem:[%s2025_s1 + $0x260] ss:$8 sps:$4 sm:$0xff]   ;;  %v1355_v29 = vld [vmem:[%s2025_s1 + $0x274] ss:$8 sps:$4 sm:$0xff]  }
   0xb   :  { %933 = vmatpush1.bf16.msra.mxu1 %v1327_v10  ;;  %v1357_v30 = vld [vmem:[%s2025_s1 + $0x70] ss:$8 sps:$4 sm:$0xff]   ;;  %v1359_v32 = vld [vmem:[%s2025_s1 + $0x84] ss:$8 sps:$4 sm:$0xff]   ;;  %v1363_v34 = vld [vmem:[%s2025_s1 + $0x80] ss:$8 sps:$4 sm:$0xff]  }
   0xc   :  { %1015 = vmatpush1.bf16.msra.mxu0 %v1328_v11  ;;  %934 = vmatprep.subr.bf16.mxu1 %v1329_v12  ;;  %v1358_v31 = vld [vmem:[%s2025_s1 + $0x270] ss:$8 sps:$4 sm:$0xff]   ;;  %v1361_v33 = vld [vmem:[%s2025_s1 + $0x284] ss:$8 sps:$4 sm:$0xff]   ;;  %v1364_v35 = vld [vmem:[%s2025_s1 + $0x280] ss:$8 sps:$4 sm:$0xff]  }
   0xd   :  { %1016 = vmatprep.subr.bf16.mxu0 %v1331_v13  ;;  %v1365_v36 = vld [vmem:[%s2025_s1 + $0x94] ss:$8 sps:$4 sm:$0xff]   ;;  %v1369_v38 = vld [vmem:[%s2025_s1 + $0x90] ss:$8 sps:$4 sm:$0xff]   ;;  %v1371_v40 = vld [vmem:[%s2025_s1 + $0xa4] ss:$8 sps:$4 sm:$0xff]  }
   0xe   :  { %v1367_v37 = vld [vmem:[%s2025_s1 + $0x294] ss:$8 sps:$4 sm:$0xff]   ;;  %v1370_v39 = vld [vmem:[%s2025_s1 + $0x290] ss:$8 sps:$4 sm:$0xff]   ;;  %v1373_v41 = vld [vmem:[%s2025_s1 + $0x2a4] ss:$8 sps:$4 sm:$0xff]  }
   0xf   :  { %935 = vmatpush1.bf16.msra.mxu1 %v1333_v14  ;;  %v1375_v42 = vld [vmem:[%s2025_s1 + $0xa0] ss:$8 sps:$4 sm:$0xff]   ;;  %v1377_v44 = vld [vmem:[%s2025_s1 + $0xb4] ss:$8 sps:$4 sm:$0xff]   ;;  %v1381_v47 = vld [vmem:[%s2025_s1 + $0xb0] ss:$8 sps:$4 sm:$0xff]  }
  0x10   :  { %1017 = vmatpush1.bf16.msra.mxu0 %v1334_v15  ;;  %936 = vmatprep.subr.bf16.mxu1 %v1335_v16  ;;  %v1376_v43 = vld [vmem:[%s2025_s1 + $0x2a0] ss:$8 sps:$4 sm:$0xff]   ;;  %v1379_v45 = vld [vmem:[%s2025_s1 + $0x2b4] ss:$8 sps:$4 sm:$0xff]   ;;  %v1382_v49 = vld [vmem:[%s2025_s1 + $0x2b0] ss:$8 sps:$4 sm:$0xff]  }
  0x11   :  { %1018 = vmatprep.subr.bf16.mxu0 %v1337_v17  ;;  %v15_v46 = vld [vmem:[%s2026_s0] sm:$0xff]  ;;  %v17_v50 = vld [vmem:[%s2026_s0 + $0x10] sm:$0xff] }
  0x12   :  { %v1142_v48 = vcombine.high %v15_v46, %v15_v46  ;;  %v1383_v51 = vld [vmem:[%s2025_s1 + $0xc4] ss:$8 sps:$4 sm:$0xff]   ;;  %v1146_v53 = vcombine.high %v17_v50, %v17_v50  ;;  %v1387_v54 = vld [vmem:[%s2025_s1 + $0xc0] ss:$8 sps:$4 sm:$0xff]   ;;  %v1389_v56 = vld [vmem:[%s2025_s1 + $0xd4] ss:$8 sps:$4 sm:$0xff]   ;;  %v1141_v6 = vcombine.low %v15_v46, %v15_v46  ;;  %v1145_v7 = vcombine.low %v17_v50, %v17_v50 }
  0x13   :  { %937 = vmatpush1.bf16.msra.mxu1 %v1339_v18  ;;  %v1385_v52 = vld [vmem:[%s2025_s1 + $0x2c4] ss:$8 sps:$4 sm:$0xff]   ;;  %v1388_v55 = vld [vmem:[%s2025_s1 + $0x2c0] ss:$8 sps:$4 sm:$0xff]   ;;  %v1391_v57 = vld [vmem:[%s2025_s1 + $0x2d4] ss:$8 sps:$4 sm:$0xff]  }
  0x14   :  { %1019 = vmatpush1.bf16.msra.mxu0 %v1340_v19  ;;  %938 = vmatprep.subr.bf16.mxu1 %v1341_v20  ;;  %v1393_v58 = vld [vmem:[%s2025_s1 + $0xd0] ss:$8 sps:$4 sm:$0xff]   ;;  %v1395_v60 = vld [vmem:[%s2025_s1 + $0xe4] ss:$8 sps:$4 sm:$0xff]   ;;  %v1399_v62 = vld [vmem:[%s2025_s1 + $0xe0] ss:$8 sps:$4 sm:$0xff]  }
  0x15   :  { %1020 = vmatprep.subr.bf16.mxu0 %v1343_v21  ;;  %960 = vmatprep.mubr.bf16.mxu1 %v1142_v48  ;;  %v1394_v59 = vld [vmem:[%s2025_s1 + $0x2d0] ss:$8 sps:$4 sm:$0xff]   ;;  %v1397_v61 = vld [vmem:[%s2025_s1 + $0x2e4] ss:$8 sps:$4 sm:$0xff]   ;;  %v1400_v63 = vld [vmem:[%s2025_s1 + $0x2e0] ss:$8 sps:$4 sm:$0xff]  }
  0x16   :  { %1042 = vmatprep.mubr.bf16.mxu0 %v1146_v53  ;;  %v1401_v0 = vld [vmem:[%s2025_s1 + $0xf4] ss:$8 sps:$4 sm:$0xff]   ;;  %v1405_v2 = vld [vmem:[%s2025_s1 + $0xf0] ss:$8 sps:$4 sm:$0xff]   ;;  %v1411_v4 = vld [vmem:[%s2025_s1 + $0x104] ss:$8 sps:$4 sm:$0xff]  }
  0x17   :  { %939 = vmatpush1.bf16.msra.mxu1 %v1345_v22  ;;  %v1403_v1 = vld [vmem:[%s2025_s1 + $0x2f4] ss:$8 sps:$4 sm:$0xff]   ;;  %v1406_v3 = vld [vmem:[%s2025_s1 + $0x2f0] ss:$8 sps:$4 sm:$0xff]   ;;  %v1416_v5 = vld [vmem:[%s2025_s1 + $0x304] ss:$8 sps:$4 sm:$0xff]  }
  0x18   :  { %1021 = vmatpush1.bf16.msra.mxu0 %v1346_v23  ;;  %940 = vmatprep.subr.bf16.mxu1 %v1347_v24  ;;  %v1409_v8 = vld [vmem:[%s2025_s1 + $0x100] ss:$8 sps:$4 sm:$0xff]   ;;  %v1419_v10 = vld [vmem:[%s2025_s1 + $0x114] ss:$8 sps:$4 sm:$0xff]   ;;  %v1417_v12 = vld [vmem:[%s2025_s1 + $0x110] ss:$8 sps:$4 sm:$0xff]  }
  0x19   :  { %1022 = vmatprep.subr.bf16.mxu0 %v1349_v25  ;;  %v1414_v9 = vld [vmem:[%s2025_s1 + $0x300] ss:$8 sps:$4 sm:$0xff]   ;;  %v1422_v11 = vld [vmem:[%s2025_s1 + $0x314] ss:$8 sps:$4 sm:$0xff]   ;;  %v1420_v13 = vld [vmem:[%s2025_s1 + $0x310] ss:$8 sps:$4 sm:$0xff]  }
  0x1a   :  { %v1425_v14 = vld [vmem:[%s2025_s1 + $0x124] ss:$8 sps:$4 sm:$0xff]   ;;  %v1423_v16 = vld [vmem:[%s2025_s1 + $0x120] ss:$8 sps:$4 sm:$0xff]   ;;  %v1431_v18 = vld [vmem:[%s2025_s1 + $0x134] ss:$8 sps:$4 sm:$0xff]  }
  0x1b   :  { %941 = vmatpush1.bf16.msra.mxu1 %v1351_v26  ;;  %v1428_v15 = vld [vmem:[%s2025_s1 + $0x324] ss:$8 sps:$4 sm:$0xff]   ;;  %v1426_v17 = vld [vmem:[%s2025_s1 + $0x320] ss:$8 sps:$4 sm:$0xff]   ;;  %v1434_v19 = vld [vmem:[%s2025_s1 + $0x334] ss:$8 sps:$4 sm:$0xff]  }
  0x1c   :  { %1023 = vmatpush1.bf16.msra.mxu0 %v1352_v27  ;;  %942 = vmatprep.subr.bf16.mxu1 %v1353_v28  ;;  %v1429_v20 = vld [vmem:[%s2025_s1 + $0x130] ss:$8 sps:$4 sm:$0xff]   ;;  %v1437_v22 = vld [vmem:[%s2025_s1 + $0x144] ss:$8 sps:$4 sm:$0xff]   ;;  %v1435_v24 = vld [vmem:[%s2025_s1 + $0x140] ss:$8 sps:$4 sm:$0xff]  }
  0x1d   :  { %1024 = vmatprep.subr.bf16.mxu0 %v1355_v29  ;;  %v1432_v21 = vld [vmem:[%s2025_s1 + $0x330] ss:$8 sps:$4 sm:$0xff]   ;;  %v1440_v23 = vld [vmem:[%s2025_s1 + $0x344] ss:$8 sps:$4 sm:$0xff]   ;;  %v1438_v25 = vld [vmem:[%s2025_s1 + $0x340] ss:$8 sps:$4 sm:$0xff]  }
  0x1e   :  { %v1443_v26 = vld [vmem:[%s2025_s1 + $0x154] ss:$8 sps:$4 sm:$0xff]   ;;  %v1441_v28 = vld [vmem:[%s2025_s1 + $0x150] ss:$8 sps:$4 sm:$0xff]   ;;  %v1473_v50 = vld [vmem:[%s2025_s1 + $0x1a4] ss:$8 sps:$4 sm:$0xff]  }
  0x1f   :  { %943 = vmatpush1.bf16.msra.mxu1 %v1357_v30  ;;  %v1446_v27 = vld [vmem:[%s2025_s1 + $0x354] ss:$8 sps:$4 sm:$0xff]   ;;  %v1444_v29 = vld [vmem:[%s2025_s1 + $0x350] ss:$8 sps:$4 sm:$0xff]   ;;  %v1449_v30 = vld [vmem:[%s2025_s1 + $0x164] ss:$8 sps:$4 sm:$0xff]  }
  0x20   :  { %1025 = vmatpush1.bf16.msra.mxu0 %v1358_v31  ;;  %944 = vmatprep.subr.bf16.mxu1 %v1359_v32  ;;  %v1452_v31 = vld [vmem:[%s2025_s1 + $0x364] ss:$8 sps:$4 sm:$0xff]   ;;  %v1467_v46 = vld [vmem:[%s2025_s1 + $0x194] ss:$8 sps:$4 sm:$0xff]   ;;  %v1465_v48 = vld [vmem:[%s2025_s1 + $0x190] ss:$8 sps:$4 sm:$0xff]  }
  0x21   :  { %1026 = vmatprep.subr.bf16.mxu0 %v1361_v33  ;;  %v1836_v32 = vld [vmem:[%s2026_s0 + $0x8] sm:$0xff]  ;;  %v1841_v33 = vld [vmem:[%s2026_s0 + $0x18] sm:$0xff] }
  0x22   :  { %v1474_v53 = vld [vmem:[%s2025_s1 + $0x3a0] ss:$8 sps:$4 sm:$0xff]  }
  0x23   :  { %945 = vmatpush1.bf16.msra.mxu1 %v1363_v34  ;;  %v1447_v34 = vld [vmem:[%s2025_s1 + $0x160] ss:$8 sps:$4 sm:$0xff]  }
  0x24   :  { %1027 = vmatpush1.bf16.msra.mxu0 %v1364_v35  ;;  %946 = vmatprep.subr.bf16.mxu1 %v1365_v36  ;;  %v1450_v35 = vld [vmem:[%s2025_s1 + $0x360] ss:$8 sps:$4 sm:$0xff]   ;;  %v1144_v36 = vcombine.high %v1836_v32, %v1836_v32 }
  0x25   :  { %1028 = vmatprep.subr.bf16.mxu0 %v1367_v37  ;;  %v1148_v37 = vcombine.high %v1841_v33, %v1841_v33 }
  0x27   :  { %947 = vmatpush1.bf16.msra.mxu1 %v1369_v38  ;;  %v1455_v38 = vld [vmem:[%s2025_s1 + $0x174] ss:$8 sps:$4 sm:$0xff]  }
  0x28   :  { %1029 = vmatpush1.bf16.msra.mxu0 %v1370_v39  ;;  %948 = vmatprep.subr.bf16.mxu1 %v1371_v40  ;;  %v1458_v39 = vld [vmem:[%s2025_s1 + $0x374] ss:$8 sps:$4 sm:$0xff]   ;;  %v1453_v40 = vld [vmem:[%s2025_s1 + $0x170] ss:$8 sps:$4 sm:$0xff]  }
  0x29   :  { %1030 = vmatprep.subr.bf16.mxu0 %v1373_v41  ;;  %v1456_v41 = vld [vmem:[%s2025_s1 + $0x370] ss:$8 sps:$4 sm:$0xff]  }
  0x2b   :  { %949 = vmatpush1.bf16.msra.mxu1 %v1375_v42  ;;  %v1461_v42 = vld [vmem:[%s2025_s1 + $0x184] ss:$8 sps:$4 sm:$0xff]  }
  0x2c   :  { %1031 = vmatpush1.bf16.msra.mxu0 %v1376_v43  ;;  %950 = vmatprep.subr.bf16.mxu1 %v1377_v44  ;;  %v1464_v43 = vld [vmem:[%s2025_s1 + $0x384] ss:$8 sps:$4 sm:$0xff]   ;;  %v1459_v44 = vld [vmem:[%s2025_s1 + $0x180] ss:$8 sps:$4 sm:$0xff]  }
  0x2d   :  { %1032 = vmatprep.subr.bf16.mxu0 %v1379_v45  ;;  %v1462_v45 = vld [vmem:[%s2025_s1 + $0x380] ss:$8 sps:$4 sm:$0xff]  }
  0x2f   :  { %951 = vmatpush1.bf16.msra.mxu1 %v1381_v47  ;;  %v1470_v47 = vld [vmem:[%s2025_s1 + $0x394] ss:$8 sps:$4 sm:$0xff]  }
  0x30   :  { %1033 = vmatpush1.bf16.msra.mxu0 %v1382_v49  ;;  %952 = vmatprep.subr.bf16.mxu1 %v1383_v51  ;;  %v1468_v49 = vld [vmem:[%s2025_s1 + $0x390] ss:$8 sps:$4 sm:$0xff]   ;;  %v1476_v51 = vld [vmem:[%s2025_s1 + $0x3a4] ss:$8 sps:$4 sm:$0xff]  }
  0x31   :  { %1034 = vmatprep.subr.bf16.mxu0 %v1385_v52  ;;  %v1471_v52 = vld [vmem:[%s2025_s1 + $0x1a0] ss:$8 sps:$4 sm:$0xff]  }
  0x33   :  { %953 = vmatpush1.bf16.msra.mxu1 %v1387_v54  ;;  %v1479_v54 = vld [vmem:[%s2025_s1 + $0x1b4] ss:$8 sps:$4 sm:$0xff]  }
  0x34   :  { %1035 = vmatpush1.bf16.msra.mxu0 %v1388_v55  ;;  %954 = vmatprep.subr.bf16.mxu1 %v1389_v56  ;;  %v1482_v55 = vld [vmem:[%s2025_s1 + $0x3b4] ss:$8 sps:$4 sm:$0xff]   ;;  %v1477_v56 = vld [vmem:[%s2025_s1 + $0x1b0] ss:$8 sps:$4 sm:$0xff]  }
  0x35   :  { %1036 = vmatprep.subr.bf16.mxu0 %v1391_v57  ;;  %v1480_v57 = vld [vmem:[%s2025_s1 + $0x3b0] ss:$8 sps:$4 sm:$0xff]  }
  0x37   :  { %955 = vmatpush1.bf16.msra.mxu1 %v1393_v58  ;;  %v1485_v58 = vld [vmem:[%s2025_s1 + $0x1c4] ss:$8 sps:$4 sm:$0xff]  }
  0x38   :  { %1037 = vmatpush1.bf16.msra.mxu0 %v1394_v59  ;;  %956 = vmatprep.subr.bf16.mxu1 %v1395_v60  ;;  %v1488_v59 = vld [vmem:[%s2025_s1 + $0x3c4] ss:$8 sps:$4 sm:$0xff]   ;;  %v1483_v60 = vld [vmem:[%s2025_s1 + $0x1c0] ss:$8 sps:$4 sm:$0xff]  }
  0x39   :  { %1038 = vmatprep.subr.bf16.mxu0 %v1397_v61  ;;  %v1486_v61 = vld [vmem:[%s2025_s1 + $0x3c0] ss:$8 sps:$4 sm:$0xff]  }
  0x3b   :  { %957 = vmatpush1.bf16.msra.mxu1 %v1399_v62  ;;  %v1491_v62 = vld [vmem:[%s2025_s1 + $0x1d4] ss:$8 sps:$4 sm:$0xff]  }
  0x3c   :  { %1039 = vmatpush1.bf16.msra.mxu0 %v1400_v63  ;;  %958 = vmatprep.subr.bf16.mxu1 %v1401_v0  ;;  %v1494_v63 = vld [vmem:[%s2025_s1 + $0x3d4] ss:$8 sps:$4 sm:$0xff]   ;;  %v1489_v0 = vld [vmem:[%s2025_s1 + $0x1d0] ss:$8 sps:$4 sm:$0xff]  }
  0x3d   :  { %1040 = vmatprep.subr.bf16.mxu0 %v1403_v1  ;;  %v1492_v1 = vld [vmem:[%s2025_s1 + $0x3d0] ss:$8 sps:$4 sm:$0xff]  }
  0x3f   :  { %959 = vmatpush1.bf16.msra.mxu1 %v1405_v2  ;;  %v1497_v2 = vld [vmem:[%s2025_s1 + $0x1e4] ss:$8 sps:$4 sm:$0xff]  }
  0x40   :  { %1041 = vmatpush1.bf16.msra.mxu0 %v1406_v3  ;;  %969 = vmatprep.subr.bf16.mxu1 %v1411_v4  ;;  %v1500_v3 = vld [vmem:[%s2025_s1 + $0x3e4] ss:$8 sps:$4 sm:$0xff]   ;;  %v1495_v4 = vld [vmem:[%s2025_s1 + $0x1e0] ss:$8 sps:$4 sm:$0xff]  }
  0x41   :  { %1051 = vmatprep.subr.bf16.mxu0 %v1416_v5  ;;  %v1498_v5 = vld [vmem:[%s2025_s1 + $0x3e0] ss:$8 sps:$4 sm:$0xff]  }
  0x42   :  { %961 = vmatmul.mubr.bf16.vlgmr.msra.gmra.mrb[0].mxu1 %v1141_v6  ;;  %v1503_v6 = vld [vmem:[%s2025_s1 + $0x1f4] ss:$8 sps:$4 sm:$0xff]  }
  0x43   :  { %1043 = vmatmul.mubr.bf16.vlgmr.msra.gmra.mrb[0].mxu0 %v1145_v7  ;;  %970 = vmatpush1.bf16.msra.mxu1 %v1409_v8  ;;  %v1506_v7 = vld [vmem:[%s2025_s1 + $0x3f4] ss:$8 sps:$4 sm:$0xff]   ;;  %v1501_v8 = vld [vmem:[%s2025_s1 + $0x1f0] ss:$8 sps:$4 sm:$0xff]  }
  0x44   :  { %1052 = vmatpush1.bf16.msra.mxu0 %v1414_v9  ;;  %971 = vmatprep.subr.bf16.mxu1 %v1419_v10  ;;  %v1504_v9 = vld [vmem:[%s2025_s1 + $0x3f0] ss:$8 sps:$4 sm:$0xff]   ;;  %v1513_v10 = vld [vmem:[%s2025_s1 + $0x404] ss:$8 sps:$4 sm:$0xff]  }
  0x45   :  { %1053 = vmatprep.subr.bf16.mxu0 %v1422_v11  ;;  %1001 = vmatprep.mubr.bf16.mxu1 %v1144_v36  ;;  %v1143_v11 = vcombine.low %v1836_v32, %v1836_v32 }
  0x46   :  { %1083 = vmatprep.mubr.bf16.mxu0 %v1148_v37  ;;  %v164_v37 = vld [vmem:[%s2027_s2] sm:$0x3] }
  0x47   :  { %972 = vmatpush1.bf16.msra.mxu1 %v1417_v12  ;;  %v1147_v12 = vcombine.low %v1841_v33, %v1841_v33 }
  0x48   :  { %1054 = vmatpush1.bf16.msra.mxu0 %v1420_v13  ;;  %973 = vmatprep.subr.bf16.mxu1 %v1425_v14  ;;  %v1511_v13 = vld [vmem:[%s2025_s1 + $0x400] ss:$8 sps:$4 sm:$0xff]   ;;  %v1516_v14 = vld [vmem:[%s2025_s1 + $0x414] ss:$8 sps:$4 sm:$0xff]  }
  0x49   :  { %1055 = vmatprep.subr.bf16.mxu0 %v1428_v15  ;;  %v1514_v15 = vld [vmem:[%s2025_s1 + $0x410] ss:$8 sps:$4 sm:$0xff]  }
  0x4b   :  { %974 = vmatpush1.bf16.msra.mxu1 %v1423_v16  ;;  %v1536_v16 = vmov 0  }
  0x4c   :  { %1056 = vmatpush1.bf16.msra.mxu0 %v1426_v17  ;;  %975 = vmatprep.subr.bf16.mxu1 %v1431_v18  ;;  %v1519_v17 = vld [vmem:[%s2025_s1 + $0x424] ss:$8 sps:$4 sm:$0xff]   ;;  %v1517_v18 = vld [vmem:[%s2025_s1 + $0x420] ss:$8 sps:$4 sm:$0xff]  }
  0x4d   :  { %1057 = vmatprep.subr.bf16.mxu0 %v1434_v19  ;;  %v1522_v19 = vld [vmem:[%s2025_s1 + $0x434] ss:$8 sps:$4 sm:$0xff]  }
  0x4f   :  { %976 = vmatpush1.bf16.msra.mxu1 %v1429_v20  ;;  %v1520_v20 = vld [vmem:[%s2025_s1 + $0x430] ss:$8 sps:$4 sm:$0xff]  }
  0x50   :  { %1058 = vmatpush1.bf16.msra.mxu0 %v1432_v21  ;;  %977 = vmatprep.subr.bf16.mxu1 %v1437_v22  ;;  %v1525_v21 = vld [vmem:[%s2025_s1 + $0x444] ss:$8 sps:$4 sm:$0xff]   ;;  %v1523_v22 = vld [vmem:[%s2025_s1 + $0x440] ss:$8 sps:$4 sm:$0xff]  }
  0x51   :  { %1059 = vmatprep.subr.bf16.mxu0 %v1440_v23  ;;  %v1528_v23 = vld [vmem:[%s2025_s1 + $0x454] ss:$8 sps:$4 sm:$0xff]  }
  0x53   :  { %978 = vmatpush1.bf16.msra.mxu1 %v1435_v24  ;;  %v1526_v24 = vld [vmem:[%s2025_s1 + $0x450] ss:$8 sps:$4 sm:$0xff]  }
  0x54   :  { %1060 = vmatpush1.bf16.msra.mxu0 %v1438_v25  ;;  %979 = vmatprep.subr.bf16.mxu1 %v1443_v26  ;;  %v1531_v25 = vld [vmem:[%s2025_s1 + $0x464] ss:$8 sps:$4 sm:$0xff]   ;;  %v1529_v26 = vld [vmem:[%s2025_s1 + $0x460] ss:$8 sps:$4 sm:$0xff]  }
  0x55   :  { %1061 = vmatprep.subr.bf16.mxu0 %v1446_v27  ;;  %v1534_v27 = vld [vmem:[%s2025_s1 + $0x474] ss:$8 sps:$4 sm:$0xff]  }
  0x57   :  { %980 = vmatpush1.bf16.msra.mxu1 %v1441_v28  ;;  %v1532_v28 = vld [vmem:[%s2025_s1 + $0x470] ss:$8 sps:$4 sm:$0xff]  }
  0x58   :  { %1062 = vmatpush1.bf16.msra.mxu0 %v1444_v29  ;;  %981 = vmatprep.subr.bf16.mxu1 %v1449_v30  ;;  %v1535_v29 = vld [vmem:[%s2026_s0 + $0x20] ss:$0 sps:$4 sm:$0xff]  }
  0x59   :  { %1063 = vmatprep.subr.bf16.mxu0 %v1452_v31 }
  0x5b   :  { %982 = vmatpush1.bf16.msra.mxu1 %v1447_v34  ;;  %v166_v34 = vlaneseq }
  0x5c   :  { %1064 = vmatpush1.bf16.msra.mxu0 %v1450_v35  ;;  %983 = vmatprep.subr.bf16.mxu1 %v1455_v38 }
  0x5d   :  { %1065 = vmatprep.subr.bf16.mxu0 %v1458_v39  ;;  %v167_v35 = vshrl.u32 %v166_v34, 7 }
  0x5f   :  { %984 = vmatpush1.bf16.msra.mxu1 %v1453_v40  ;;  %v168_v36 = vsub.s32 0, %v167_v35  ;;  %v172_v38 = vsub.s32 1, %v167_v35 }
  0x60   :  { %1066 = vmatpush1.bf16.msra.mxu0 %v1456_v41  ;;  %985 = vmatprep.subr.bf16.mxu1 %v1461_v42 }
  0x61   :  { %1067 = vmatprep.subr.bf16.mxu0 %v1464_v43  ;;  %v169_v39 = vrot.slane %v164_v37, %v168_v36  ;;  %v173_v40 = vrot.slane %v164_v37, %v172_v38 }
  0x63   :  { %986 = vmatpush1.bf16.msra.mxu1 %v1459_v44 }
  0x64   :  { %1068 = vmatpush1.bf16.msra.mxu0 %v1462_v45  ;;  %987 = vmatprep.subr.bf16.mxu1 %v1467_v46 }
  0x65   :  { %1069 = vmatprep.subr.bf16.mxu0 %v1470_v47 }
  0x67   :  { %988 = vmatpush1.bf16.msra.mxu1 %v1465_v48 }
  0x68   :  { %1070 = vmatpush1.bf16.msra.mxu0 %v1468_v49  ;;  %989 = vmatprep.subr.bf16.mxu1 %v1473_v50 }
  0x69   :  { %1071 = vmatprep.subr.bf16.mxu0 %v1476_v51 }
  0x6b   :  { %990 = vmatpush1.bf16.msra.mxu1 %v1471_v52 }
  0x6c   :  { %1072 = vmatpush1.bf16.msra.mxu0 %v1474_v53  ;;  %991 = vmatprep.subr.bf16.mxu1 %v1479_v54 }
  0x6d   :  { %1073 = vmatprep.subr.bf16.mxu0 %v1482_v55 }
  0x6f   :  { %992 = vmatpush1.bf16.msra.mxu1 %v1477_v56 }
  0x70   :  { %1074 = vmatpush1.bf16.msra.mxu0 %v1480_v57  ;;  %993 = vmatprep.subr.bf16.mxu1 %v1485_v58 }
  0x71   :  { %1075 = vmatprep.subr.bf16.mxu0 %v1488_v59 }
  0x73   :  { %994 = vmatpush1.bf16.msra.mxu1 %v1483_v60 }
  0x74   :  { %1076 = vmatpush1.bf16.msra.mxu0 %v1486_v61  ;;  %995 = vmatprep.subr.bf16.mxu1 %v1491_v62 }
  0x75   :  { %1077 = vmatprep.subr.bf16.mxu0 %v1494_v63 }
  0x77   :  { %996 = vmatpush1.bf16.msra.mxu1 %v1489_v0 }
  0x78   :  { %1078 = vmatpush1.bf16.msra.mxu0 %v1492_v1  ;;  %997 = vmatprep.subr.bf16.mxu1 %v1497_v2 }
  0x79   :  { %1079 = vmatprep.subr.bf16.mxu0 %v1500_v3 }
  0x7b   :  { %998 = vmatpush1.bf16.msra.mxu1 %v1495_v4 }
  0x7c   :  { %1080 = vmatpush1.bf16.msra.mxu0 %v1498_v5  ;;  %999 = vmatprep.subr.bf16.mxu1 %v1503_v6 }
  0x7d   :  { %1081 = vmatprep.subr.bf16.mxu0 %v1506_v7 }
  0x7f   :  { %1000 = vmatpush1.bf16.msra.mxu1 %v1501_v8 }
  0x80   :  { %1082 = vmatpush1.bf16.msra.mxu0 %v1504_v9 }
  0x81   :  { %1092 = vmatprep.subr.bf16.mxu0 %v1513_v10 }
  0x82   :  { %1002 = vmatmul.mubr.bf16.vlgmr.msra.gmra.mrb[0].mxu1 %v1143_v11 }
  0x83   :  { %1084 = vmatmul.mubr.bf16.vlgmr.msra.gmra.mrb[0].mxu0 %v1147_v12 }
  0x84   :  { %1093 = vmatpush1.bf16.msra.mxu0 %v1511_v13  ;;  %1124 = vmatprep.mubr.bf16.mxu0 %v1536_v16 }
  0x85   :  { %1094 = vmatprep.subr.bf16.mxu0 %v1516_v14 }
  0x88   :  { %1095 = vmatpush1.bf16.msra.mxu0 %v1514_v15 }
  0x89   :  { %1096 = vmatprep.subr.bf16.mxu0 %v1519_v17 }
  0x8c   :  { %1097 = vmatpush1.bf16.msra.mxu0 %v1517_v18 }
  0x8d   :  { %1098 = vmatprep.subr.bf16.mxu0 %v1522_v19 }
  0x90   :  { %1099 = vmatpush1.bf16.msra.mxu0 %v1520_v20 }
  0x91   :  { %1100 = vmatprep.subr.bf16.mxu0 %v1525_v21 }
  0x94   :  { %1101 = vmatpush1.bf16.msra.mxu0 %v1523_v22 }
  0x95   :  { %1102 = vmatprep.subr.bf16.mxu0 %v1528_v23 }
  0x98   :  { %1103 = vmatpush1.bf16.msra.mxu0 %v1526_v24 }
  0x99   :  { %1104 = vmatprep.subr.bf16.mxu0 %v1531_v25 }
  0x9c   :  { %1105 = vmatpush1.bf16.msra.mxu0 %v1529_v26 }
  0x9d   :  { %1106 = vmatprep.subr.bf16.mxu0 %v1534_v27 }
  0xa0   :  { %1107 = vmatpush1.bf16.msra.mxu0 %v1532_v28 }
  0xa3   :  { %1125 = vmatmul.mubr.bf16.vlgmr.msra.gmra.mrb[0].mxu0 %v1535_v29 }
 0x155   :  { %v1003_v30 = vpop.f32.mrb[0].mxu1 }
 0x156   :  { %v1005_v31 = vpop.f32.mrb[1].mxu1  ;;  %v1294_v41 = vadd.f32 %v1003_v30, %v169_v39 }
 0x157   :  { %v1007_v32 = vpop.f32.mrb[2].mxu1  ;;  %v1296_v42 = vadd.f32 %v1005_v31, %v173_v40 }
 0x158   :  { %v1008_v33 = vpop.f32.mrb[3].mxu1 }
 0x176   :  { %v1126_v43 = vpop.f32.mrb[0].mxu0 }
 0x177   :  { %v1295_v44 = vadd.f32 %v1294_v41, %v1126_v43  ;;  %v1128_v45 = vpop.f32.mrb[1].mxu0 }
 0x178   :  { %v1297_v46 = vadd.f32 %v1296_v42, %v1128_v45  ;;  %v1130_v47 = vpop.f32.mrb[2].mxu0 }
 0x179   :  { %v1133_v48 = vmax.f32 %v1295_v44, 0.0  ;;  %v1131_v49 = vpop.f32.mrb[3].mxu0 }
 0x17a   :  { %v1134_v50 = vmax.f32 %v1297_v46, 0.0 }
 0x17b   :  { %1135 = vst [vmem:[%s2028_s3] sm:$0xff] %v1133_v48 }
 0x17c   :  { %1136 = vst [vmem:[%s2028_s3 + $0x8] sm:$0xff] %v1134_v50 }

// kernel: unet_forward.20
= control target key start
LH: loop header
LB: loop body
LE: loop exit
PB: predicated region body
PF: predicated region fallthrough
CT: control target
= control target key end

     0   :  { %s3519_s1 = inlined_call_operand.vmem [shape: bf16[2048,256], index: 1, kind: input, shape index: {}]   ;;  %s3520_s0 = inlined_call_operand.vmem [shape: bf16[8,2048], index: 0, kind: input, shape index: {}]   ;;  %s3521_s2 = inlined_call_operand.vmem [shape: f32[1,256], index: 2, kind: input, shape index: {}]   ;;  %s3522_s3 = inlined_call_operand.vmem [shape: f32[8,256], index: 3, kind: output, shape index: {}]  }
   0x1   :  { %v2262_v0 = vld [vmem:[%s3519_s1 + $0x4] ss:$8 sps:$4 sm:$0xff]   ;;  %v2266_v2 = vld [vmem:[%s3519_s1] ss:$8 sps:$4 sm:$0xff]   ;;  %v2268_v4 = vld [vmem:[%s3519_s1 + $0x14] ss:$8 sps:$4 sm:$0xff]  }
   0x2   :  { %v2264_v1 = vld [vmem:[%s3519_s1 + $0x404] ss:$8 sps:$4 sm:$0xff]   ;;  %1626 = vmatprep.subr.bf16.mxu1 %v2262_v0  ;;  %v2267_v3 = vld [vmem:[%s3519_s1 + $0x400] ss:$8 sps:$4 sm:$0xff]   ;;  %v2270_v5 = vld [vmem:[%s3519_s1 + $0x414] ss:$8 sps:$4 sm:$0xff]  }
   0x3   :  { %1790 = vmatprep.subr.bf16.mxu0 %v2264_v1  ;;  %1627 = vmatpush1.bf16.msra.mxu1 %v2266_v2  ;;  %v2272_v6 = vld [vmem:[%s3519_s1 + $0x10] ss:$8 sps:$4 sm:$0xff]   ;;  %v2274_v8 = vld [vmem:[%s3519_s1 + $0x24] ss:$8 sps:$4 sm:$0xff]   ;;  %v2278_v10 = vld [vmem:[%s3519_s1 + $0x20] ss:$8 sps:$4 sm:$0xff]  }
   0x4   :  { %1791 = vmatpush1.bf16.msra.mxu0 %v2267_v3  ;;  %1628 = vmatprep.subr.bf16.mxu1 %v2268_v4  ;;  %v2273_v7 = vld [vmem:[%s3519_s1 + $0x410] ss:$8 sps:$4 sm:$0xff]   ;;  %v2276_v9 = vld [vmem:[%s3519_s1 + $0x424] ss:$8 sps:$4 sm:$0xff]   ;;  %v2279_v11 = vld [vmem:[%s3519_s1 + $0x420] ss:$8 sps:$4 sm:$0xff]  }
   0x5   :  { %1792 = vmatprep.subr.bf16.mxu0 %v2270_v5  ;;  %v2280_v12 = vld [vmem:[%s3519_s1 + $0x34] ss:$8 sps:$4 sm:$0xff]   ;;  %v2284_v14 = vld [vmem:[%s3519_s1 + $0x30] ss:$8 sps:$4 sm:$0xff]   ;;  %v2286_v16 = vld [vmem:[%s3519_s1 + $0x44] ss:$8 sps:$4 sm:$0xff]  }
   0x6   :  { %v2282_v13 = vld [vmem:[%s3519_s1 + $0x434] ss:$8 sps:$4 sm:$0xff]   ;;  %v2285_v15 = vld [vmem:[%s3519_s1 + $0x430] ss:$8 sps:$4 sm:$0xff]   ;;  %v2288_v17 = vld [vmem:[%s3519_s1 + $0x444] ss:$8 sps:$4 sm:$0xff]  }
   0x7   :  { %1629 = vmatpush1.bf16.msra.mxu1 %v2272_v6  ;;  %v2290_v18 = vld [vmem:[%s3519_s1 + $0x40] ss:$8 sps:$4 sm:$0xff]   ;;  %v2292_v20 = vld [vmem:[%s3519_s1 + $0x54] ss:$8 sps:$4 sm:$0xff]   ;;  %v2296_v22 = vld [vmem:[%s3519_s1 + $0x50] ss:$8 sps:$4 sm:$0xff]  }
   0x8   :  { %1793 = vmatpush1.bf16.msra.mxu0 %v2273_v7  ;;  %1630 = vmatprep.subr.bf16.mxu1 %v2274_v8  ;;  %v2291_v19 = vld [vmem:[%s3519_s1 + $0x440] ss:$8 sps:$4 sm:$0xff]   ;;  %v2294_v21 = vld [vmem:[%s3519_s1 + $0x454] ss:$8 sps:$4 sm:$0xff]   ;;  %v2297_v23 = vld [vmem:[%s3519_s1 + $0x450] ss:$8 sps:$4 sm:$0xff]  }
   0x9   :  { %1794 = vmatprep.subr.bf16.mxu0 %v2276_v9  ;;  %v2298_v24 = vld [vmem:[%s3519_s1 + $0x64] ss:$8 sps:$4 sm:$0xff]   ;;  %v2302_v26 = vld [vmem:[%s3519_s1 + $0x60] ss:$8 sps:$4 sm:$0xff]   ;;  %v2304_v28 = vld [vmem:[%s3519_s1 + $0x74] ss:$8 sps:$4 sm:$0xff]  }
   0xa   :  { %v2300_v25 = vld [vmem:[%s3519_s1 + $0x464] ss:$8 sps:$4 sm:$0xff]   ;;  %v2303_v27 = vld [vmem:[%s3519_s1 + $0x460] ss:$8 sps:$4 sm:$0xff]   ;;  %v2306_v29 = vld [vmem:[%s3519_s1 + $0x474] ss:$8 sps:$4 sm:$0xff]  }
   0xb   :  { %1631 = vmatpush1.bf16.msra.mxu1 %v2278_v10  ;;  %v2308_v30 = vld [vmem:[%s3519_s1 + $0x70] ss:$8 sps:$4 sm:$0xff]   ;;  %v2310_v32 = vld [vmem:[%s3519_s1 + $0x84] ss:$8 sps:$4 sm:$0xff]   ;;  %v2314_v34 = vld [vmem:[%s3519_s1 + $0x80] ss:$8 sps:$4 sm:$0xff]  }
   0xc   :  { %1795 = vmatpush1.bf16.msra.mxu0 %v2279_v11  ;;  %1632 = vmatprep.subr.bf16.mxu1 %v2280_v12  ;;  %v2309_v31 = vld [vmem:[%s3519_s1 + $0x470] ss:$8 sps:$4 sm:$0xff]   ;;  %v2312_v33 = vld [vmem:[%s3519_s1 + $0x484] ss:$8 sps:$4 sm:$0xff]   ;;  %v2315_v35 = vld [vmem:[%s3519_s1 + $0x480] ss:$8 sps:$4 sm:$0xff]  }
   0xd   :  { %1796 = vmatprep.subr.bf16.mxu0 %v2282_v13  ;;  %v2316_v36 = vld [vmem:[%s3519_s1 + $0x94] ss:$8 sps:$4 sm:$0xff]   ;;  %v2320_v38 = vld [vmem:[%s3519_s1 + $0x90] ss:$8 sps:$4 sm:$0xff]   ;;  %v2322_v40 = vld [vmem:[%s3519_s1 + $0xa4] ss:$8 sps:$4 sm:$0xff]  }
   0xe   :  { %v2318_v37 = vld [vmem:[%s3519_s1 + $0x494] ss:$8 sps:$4 sm:$0xff]   ;;  %v2321_v39 = vld [vmem:[%s3519_s1 + $0x490] ss:$8 sps:$4 sm:$0xff]   ;;  %v2324_v41 = vld [vmem:[%s3519_s1 + $0x4a4] ss:$8 sps:$4 sm:$0xff]  }
   0xf   :  { %1633 = vmatpush1.bf16.msra.mxu1 %v2284_v14  ;;  %v2326_v42 = vld [vmem:[%s3519_s1 + $0xa0] ss:$8 sps:$4 sm:$0xff]   ;;  %v2328_v44 = vld [vmem:[%s3519_s1 + $0xb4] ss:$8 sps:$4 sm:$0xff]   ;;  %v2332_v47 = vld [vmem:[%s3519_s1 + $0xb0] ss:$8 sps:$4 sm:$0xff]  }
  0x10   :  { %1797 = vmatpush1.bf16.msra.mxu0 %v2285_v15  ;;  %1634 = vmatprep.subr.bf16.mxu1 %v2286_v16  ;;  %v2327_v43 = vld [vmem:[%s3519_s1 + $0x4a0] ss:$8 sps:$4 sm:$0xff]   ;;  %v2330_v45 = vld [vmem:[%s3519_s1 + $0x4b4] ss:$8 sps:$4 sm:$0xff]   ;;  %v2333_v49 = vld [vmem:[%s3519_s1 + $0x4b0] ss:$8 sps:$4 sm:$0xff]  }
  0x11   :  { %1798 = vmatprep.subr.bf16.mxu0 %v2288_v17  ;;  %v14_v46 = vld [vmem:[%s3520_s0] sm:$0xff]  ;;  %v2340_v56 = vld [vmem:[%s3519_s1 + $0xd4] ss:$8 sps:$4 sm:$0xff]   ;;  %v2344_v58 = vld [vmem:[%s3519_s1 + $0xd0] ss:$8 sps:$4 sm:$0xff]  }
  0x12   :  { %v1963_v48 = vcombine.high %v14_v46, %v14_v46  ;;  %v18_v50 = vld [vmem:[%s3520_s0 + $0x20] sm:$0xff]  ;;  %v2342_v57 = vld [vmem:[%s3519_s1 + $0x4d4] ss:$8 sps:$4 sm:$0xff]   ;;  %v2345_v59 = vld [vmem:[%s3519_s1 + $0x4d0] ss:$8 sps:$4 sm:$0xff]   ;;  %v1962_v6 = vcombine.low %v14_v46, %v14_v46 }
  0x13   :  { %1635 = vmatpush1.bf16.msra.mxu1 %v2290_v18  ;;  %v2334_v51 = vld [vmem:[%s3519_s1 + $0xc4] ss:$8 sps:$4 sm:$0xff]   ;;  %v1971_v53 = vcombine.high %v18_v50, %v18_v50  ;;  %v2338_v54 = vld [vmem:[%s3519_s1 + $0xc0] ss:$8 sps:$4 sm:$0xff]   ;;  %v2352_v0 = vld [vmem:[%s3519_s1 + $0xf4] ss:$8 sps:$4 sm:$0xff]   ;;  %v1970_v7 = vcombine.low %v18_v50, %v18_v50 }
  0x14   :  { %1799 = vmatpush1.bf16.msra.mxu0 %v2291_v19  ;;  %1636 = vmatprep.subr.bf16.mxu1 %v2292_v20  ;;  %v2336_v52 = vld [vmem:[%s3519_s1 + $0x4c4] ss:$8 sps:$4 sm:$0xff]   ;;  %v2339_v55 = vld [vmem:[%s3519_s1 + $0x4c0] ss:$8 sps:$4 sm:$0xff]   ;;  %v2354_v1 = vld [vmem:[%s3519_s1 + $0x4f4] ss:$8 sps:$4 sm:$0xff]  }
  0x15   :  { %1800 = vmatprep.subr.bf16.mxu0 %v2294_v21  ;;  %1658 = vmatprep.mubr.bf16.mxu1 %v1963_v48  ;;  %v2346_v60 = vld [vmem:[%s3519_s1 + $0xe4] ss:$8 sps:$4 sm:$0xff]   ;;  %v2350_v62 = vld [vmem:[%s3519_s1 + $0xe0] ss:$8 sps:$4 sm:$0xff]   ;;  %v2356_v2 = vld [vmem:[%s3519_s1 + $0xf0] ss:$8 sps:$4 sm:$0xff]  }
  0x16   :  { %1822 = vmatprep.mubr.bf16.mxu0 %v1971_v53  ;;  %v2348_v61 = vld [vmem:[%s3519_s1 + $0x4e4] ss:$8 sps:$4 sm:$0xff]   ;;  %v2351_v63 = vld [vmem:[%s3519_s1 + $0x4e0] ss:$8 sps:$4 sm:$0xff]   ;;  %v2357_v3 = vld [vmem:[%s3519_s1 + $0x4f0] ss:$8 sps:$4 sm:$0xff]  }
  0x17   :  { %1637 = vmatpush1.bf16.msra.mxu1 %v2296_v22  ;;  %v2362_v4 = vld [vmem:[%s3519_s1 + $0x104] ss:$8 sps:$4 sm:$0xff]   ;;  %v2360_v8 = vld [vmem:[%s3519_s1 + $0x100] ss:$8 sps:$4 sm:$0xff]   ;;  %v2370_v10 = vld [vmem:[%s3519_s1 + $0x114] ss:$8 sps:$4 sm:$0xff]  }
  0x18   :  { %1801 = vmatpush1.bf16.msra.mxu0 %v2297_v23  ;;  %1638 = vmatprep.subr.bf16.mxu1 %v2298_v24  ;;  %v2367_v5 = vld [vmem:[%s3519_s1 + $0x504] ss:$8 sps:$4 sm:$0xff]   ;;  %v2365_v9 = vld [vmem:[%s3519_s1 + $0x500] ss:$8 sps:$4 sm:$0xff]   ;;  %v2373_v11 = vld [vmem:[%s3519_s1 + $0x514] ss:$8 sps:$4 sm:$0xff]  }
  0x19   :  { %1802 = vmatprep.subr.bf16.mxu0 %v2300_v25  ;;  %v2368_v12 = vld [vmem:[%s3519_s1 + $0x110] ss:$8 sps:$4 sm:$0xff]   ;;  %v2376_v14 = vld [vmem:[%s3519_s1 + $0x124] ss:$8 sps:$4 sm:$0xff]   ;;  %v2374_v16 = vld [vmem:[%s3519_s1 + $0x120] ss:$8 sps:$4 sm:$0xff]  }
  0x1a   :  { %v2371_v13 = vld [vmem:[%s3519_s1 + $0x510] ss:$8 sps:$4 sm:$0xff]   ;;  %v2379_v15 = vld [vmem:[%s3519_s1 + $0x524] ss:$8 sps:$4 sm:$0xff]   ;;  %v2377_v17 = vld [vmem:[%s3519_s1 + $0x520] ss:$8 sps:$4 sm:$0xff]  }
  0x1b   :  { %1639 = vmatpush1.bf16.msra.mxu1 %v2302_v26  ;;  %v2382_v18 = vld [vmem:[%s3519_s1 + $0x134] ss:$8 sps:$4 sm:$0xff]   ;;  %v2380_v20 = vld [vmem:[%s3519_s1 + $0x130] ss:$8 sps:$4 sm:$0xff]   ;;  %v2388_v22 = vld [vmem:[%s3519_s1 + $0x144] ss:$8 sps:$4 sm:$0xff]  }
  0x1c   :  { %1803 = vmatpush1.bf16.msra.mxu0 %v2303_v27  ;;  %1640 = vmatprep.subr.bf16.mxu1 %v2304_v28  ;;  %v2385_v19 = vld [vmem:[%s3519_s1 + $0x534] ss:$8 sps:$4 sm:$0xff]   ;;  %v2383_v21 = vld [vmem:[%s3519_s1 + $0x530] ss:$8 sps:$4 sm:$0xff]   ;;  %v2391_v23 = vld [vmem:[%s3519_s1 + $0x544] ss:$8 sps:$4 sm:$0xff]  }
  0x1d   :  { %1804 = vmatprep.subr.bf16.mxu0 %v2306_v29  ;;  %v2386_v24 = vld [vmem:[%s3519_s1 + $0x140] ss:$8 sps:$4 sm:$0xff]   ;;  %v2394_v26 = vld [vmem:[%s3519_s1 + $0x154] ss:$8 sps:$4 sm:$0xff]   ;;  %v2392_v28 = vld [vmem:[%s3519_s1 + $0x150] ss:$8 sps:$4 sm:$0xff]  }
  0x1e   :  { %v2389_v25 = vld [vmem:[%s3519_s1 + $0x540] ss:$8 sps:$4 sm:$0xff]   ;;  %v2397_v27 = vld [vmem:[%s3519_s1 + $0x554] ss:$8 sps:$4 sm:$0xff]   ;;  %v2395_v29 = vld [vmem:[%s3519_s1 + $0x550] ss:$8 sps:$4 sm:$0xff]  }
  0x1f   :  { %1641 = vmatpush1.bf16.msra.mxu1 %v2308_v30  ;;  %v2400_v30 = vld [vmem:[%s3519_s1 + $0x164] ss:$8 sps:$4 sm:$0xff]   ;;  %v2418_v46 = vld [vmem:[%s3519_s1 + $0x194] ss:$8 sps:$4 sm:$0xff]   ;;  %v2416_v48 = vld [vmem:[%s3519_s1 + $0x190] ss:$8 sps:$4 sm:$0xff]  }
  0x20   :  { %1805 = vmatpush1.bf16.msra.mxu0 %v2309_v31  ;;  %1642 = vmatprep.subr.bf16.mxu1 %v2310_v32  ;;  %v2403_v31 = vld [vmem:[%s3519_s1 + $0x564] ss:$8 sps:$4 sm:$0xff]   ;;  %v2425_v53 = vld [vmem:[%s3519_s1 + $0x5a0] ss:$8 sps:$4 sm:$0xff]  }
  0x21   :  { %1806 = vmatprep.subr.bf16.mxu0 %v2312_v33  ;;  %v2961_v32 = vld [vmem:[%s3520_s0 + $0x8] sm:$0xff] }
  0x22   :  { %v2398_v33 = vld [vmem:[%s3519_s1 + $0x160] ss:$8 sps:$4 sm:$0xff]   ;;  %v2424_v50 = vld [vmem:[%s3519_s1 + $0x1a4] ss:$8 sps:$4 sm:$0xff]  }
  0x23   :  { %1643 = vmatpush1.bf16.msra.mxu1 %v2314_v34  ;;  %v2401_v34 = vld [vmem:[%s3519_s1 + $0x560] ss:$8 sps:$4 sm:$0xff]  }
  0x24   :  { %1807 = vmatpush1.bf16.msra.mxu0 %v2315_v35  ;;  %1644 = vmatprep.subr.bf16.mxu1 %v2316_v36  ;;  %v1965_v35 = vcombine.high %v2961_v32, %v2961_v32  ;;  %v2974_v36 = vld [vmem:[%s3520_s0 + $0x28] sm:$0xff] }
  0x25   :  { %1808 = vmatprep.subr.bf16.mxu0 %v2318_v37  ;;  %v2406_v37 = vld [vmem:[%s3519_s1 + $0x174] ss:$8 sps:$4 sm:$0xff]  }
  0x27   :  { %1645 = vmatpush1.bf16.msra.mxu1 %v2320_v38  ;;  %v1973_v38 = vcombine.high %v2974_v36, %v2974_v36 }
  0x28   :  { %1809 = vmatpush1.bf16.msra.mxu0 %v2321_v39  ;;  %1646 = vmatprep.subr.bf16.mxu1 %v2322_v40  ;;  %v2409_v39 = vld [vmem:[%s3519_s1 + $0x574] ss:$8 sps:$4 sm:$0xff]   ;;  %v2404_v40 = vld [vmem:[%s3519_s1 + $0x170] ss:$8 sps:$4 sm:$0xff]  }
  0x29   :  { %1810 = vmatprep.subr.bf16.mxu0 %v2324_v41  ;;  %v2407_v41 = vld [vmem:[%s3519_s1 + $0x570] ss:$8 sps:$4 sm:$0xff]  }
  0x2b   :  { %1647 = vmatpush1.bf16.msra.mxu1 %v2326_v42  ;;  %v2412_v42 = vld [vmem:[%s3519_s1 + $0x184] ss:$8 sps:$4 sm:$0xff]  }
  0x2c   :  { %1811 = vmatpush1.bf16.msra.mxu0 %v2327_v43  ;;  %1648 = vmatprep.subr.bf16.mxu1 %v2328_v44  ;;  %v2415_v43 = vld [vmem:[%s3519_s1 + $0x584] ss:$8 sps:$4 sm:$0xff]   ;;  %v2410_v44 = vld [vmem:[%s3519_s1 + $0x180] ss:$8 sps:$4 sm:$0xff]  }
  0x2d   :  { %1812 = vmatprep.subr.bf16.mxu0 %v2330_v45  ;;  %v2413_v45 = vld [vmem:[%s3519_s1 + $0x580] ss:$8 sps:$4 sm:$0xff]  }
  0x2f   :  { %1649 = vmatpush1.bf16.msra.mxu1 %v2332_v47  ;;  %v2421_v47 = vld [vmem:[%s3519_s1 + $0x594] ss:$8 sps:$4 sm:$0xff]  }
  0x30   :  { %1813 = vmatpush1.bf16.msra.mxu0 %v2333_v49  ;;  %1650 = vmatprep.subr.bf16.mxu1 %v2334_v51  ;;  %v2419_v49 = vld [vmem:[%s3519_s1 + $0x590] ss:$8 sps:$4 sm:$0xff]   ;;  %v2427_v51 = vld [vmem:[%s3519_s1 + $0x5a4] ss:$8 sps:$4 sm:$0xff]  }
  0x31   :  { %1814 = vmatprep.subr.bf16.mxu0 %v2336_v52  ;;  %v2422_v52 = vld [vmem:[%s3519_s1 + $0x1a0] ss:$8 sps:$4 sm:$0xff]  }
  0x33   :  { %1651 = vmatpush1.bf16.msra.mxu1 %v2338_v54  ;;  %v2430_v54 = vld [vmem:[%s3519_s1 + $0x1b4] ss:$8 sps:$4 sm:$0xff]  }
  0x34   :  { %1815 = vmatpush1.bf16.msra.mxu0 %v2339_v55  ;;  %1652 = vmatprep.subr.bf16.mxu1 %v2340_v56  ;;  %v2433_v55 = vld [vmem:[%s3519_s1 + $0x5b4] ss:$8 sps:$4 sm:$0xff]   ;;  %v2428_v56 = vld [vmem:[%s3519_s1 + $0x1b0] ss:$8 sps:$4 sm:$0xff]  }
  0x35   :  { %1816 = vmatprep.subr.bf16.mxu0 %v2342_v57  ;;  %v2431_v57 = vld [vmem:[%s3519_s1 + $0x5b0] ss:$8 sps:$4 sm:$0xff]  }
  0x37   :  { %1653 = vmatpush1.bf16.msra.mxu1 %v2344_v58  ;;  %v2436_v58 = vld [vmem:[%s3519_s1 + $0x1c4] ss:$8 sps:$4 sm:$0xff]  }
  0x38   :  { %1817 = vmatpush1.bf16.msra.mxu0 %v2345_v59  ;;  %1654 = vmatprep.subr.bf16.mxu1 %v2346_v60  ;;  %v2439_v59 = vld [vmem:[%s3519_s1 + $0x5c4] ss:$8 sps:$4 sm:$0xff]   ;;  %v2434_v60 = vld [vmem:[%s3519_s1 + $0x1c0] ss:$8 sps:$4 sm:$0xff]  }
  0x39   :  { %1818 = vmatprep.subr.bf16.mxu0 %v2348_v61  ;;  %v2437_v61 = vld [vmem:[%s3519_s1 + $0x5c0] ss:$8 sps:$4 sm:$0xff]  }
  0x3b   :  { %1655 = vmatpush1.bf16.msra.mxu1 %v2350_v62  ;;  %v2442_v62 = vld [vmem:[%s3519_s1 + $0x1d4] ss:$8 sps:$4 sm:$0xff]  }
  0x3c   :  { %1819 = vmatpush1.bf16.msra.mxu0 %v2351_v63  ;;  %1656 = vmatprep.subr.bf16.mxu1 %v2352_v0  ;;  %v2445_v63 = vld [vmem:[%s3519_s1 + $0x5d4] ss:$8 sps:$4 sm:$0xff]   ;;  %v2440_v0 = vld [vmem:[%s3519_s1 + $0x1d0] ss:$8 sps:$4 sm:$0xff]  }
  0x3d   :  { %1820 = vmatprep.subr.bf16.mxu0 %v2354_v1  ;;  %v2443_v1 = vld [vmem:[%s3519_s1 + $0x5d0] ss:$8 sps:$4 sm:$0xff]  }
  0x3f   :  { %1657 = vmatpush1.bf16.msra.mxu1 %v2356_v2  ;;  %v2448_v2 = vld [vmem:[%s3519_s1 + $0x1e4] ss:$8 sps:$4 sm:$0xff]  }
  0x40   :  { %1821 = vmatpush1.bf16.msra.mxu0 %v2357_v3  ;;  %1667 = vmatprep.subr.bf16.mxu1 %v2362_v4  ;;  %v2451_v3 = vld [vmem:[%s3519_s1 + $0x5e4] ss:$8 sps:$4 sm:$0xff]   ;;  %v2446_v4 = vld [vmem:[%s3519_s1 + $0x1e0] ss:$8 sps:$4 sm:$0xff]  }
  0x41   :  { %1831 = vmatprep.subr.bf16.mxu0 %v2367_v5  ;;  %v2449_v5 = vld [vmem:[%s3519_s1 + $0x5e0] ss:$8 sps:$4 sm:$0xff]  }
  0x42   :  { %1659 = vmatmul.mubr.bf16.vlgmr.msra.gmra.mrb[0].mxu1 %v1962_v6  ;;  %v2454_v6 = vld [vmem:[%s3519_s1 + $0x1f4] ss:$8 sps:$4 sm:$0xff]  }
  0x43   :  { %1823 = vmatmul.mubr.bf16.vlgmr.msra.gmra.mrb[0].mxu0 %v1970_v7  ;;  %1668 = vmatpush1.bf16.msra.mxu1 %v2360_v8  ;;  %v2457_v7 = vld [vmem:[%s3519_s1 + $0x5f4] ss:$8 sps:$4 sm:$0xff]   ;;  %v2452_v8 = vld [vmem:[%s3519_s1 + $0x1f0] ss:$8 sps:$4 sm:$0xff]  }
  0x44   :  { %1832 = vmatpush1.bf16.msra.mxu0 %v2365_v9  ;;  %1669 = vmatprep.subr.bf16.mxu1 %v2370_v10  ;;  %v2455_v9 = vld [vmem:[%s3519_s1 + $0x5f0] ss:$8 sps:$4 sm:$0xff]   ;;  %v2462_v10 = vld [vmem:[%s3519_s1 + $0x204] ss:$8 sps:$4 sm:$0xff]  }
  0x45   :  { %1833 = vmatprep.subr.bf16.mxu0 %v2373_v11  ;;  %1699 = vmatprep.mubr.bf16.mxu1 %v1965_v35  ;;  %v2467_v11 = vld [vmem:[%s3519_s1 + $0x604] ss:$8 sps:$4 sm:$0xff]   ;;  %v2489_v35 = vld [vmem:[%s3519_s1 + $0x640] ss:$8 sps:$4 sm:$0xff]  }
  0x46   :  { %1863 = vmatprep.mubr.bf16.mxu0 %v1973_v38  ;;  %v2492_v38 = vld [vmem:[%s3519_s1 + $0x250] ss:$8 sps:$4 sm:$0xff]  }
  0x47   :  { %1670 = vmatpush1.bf16.msra.mxu1 %v2368_v12  ;;  %v1964_v12 = vcombine.low %v2961_v32, %v2961_v32  ;;  %v2488_v32 = vld [vmem:[%s3519_s1 + $0x244] ss:$8 sps:$4 sm:$0xff]  }
  0x48   :  { %1834 = vmatpush1.bf16.msra.mxu0 %v2371_v13  ;;  %1671 = vmatprep.subr.bf16.mxu1 %v2376_v14  ;;  %v2460_v13 = vld [vmem:[%s3519_s1 + $0x200] ss:$8 sps:$4 sm:$0xff]   ;;  %v1972_v14 = vcombine.low %v2974_v36, %v2974_v36  ;;  %v2494_v36 = vld [vmem:[%s3519_s1 + $0x254] ss:$8 sps:$4 sm:$0xff]  }
  0x49   :  { %1835 = vmatprep.subr.bf16.mxu0 %v2379_v15  ;;  %v2465_v15 = vld [vmem:[%s3519_s1 + $0x600] ss:$8 sps:$4 sm:$0xff]  }
  0x4b   :  { %1672 = vmatpush1.bf16.msra.mxu1 %v2374_v16  ;;  %v2470_v16 = vld [vmem:[%s3519_s1 + $0x214] ss:$8 sps:$4 sm:$0xff]  }
  0x4c   :  { %1836 = vmatpush1.bf16.msra.mxu0 %v2377_v17  ;;  %1673 = vmatprep.subr.bf16.mxu1 %v2382_v18  ;;  %v2473_v17 = vld [vmem:[%s3519_s1 + $0x614] ss:$8 sps:$4 sm:$0xff]  }
  0x4d   :  { %1837 = vmatprep.subr.bf16.mxu0 %v2385_v19  ;;  %v3111_v18 = vld [vmem:[%s3520_s0 + $0x10] sm:$0xff] }
  0x4e   :  { %v1967_v19 = vcombine.high %v3111_v18, %v3111_v18 }
  0x4f   :  { %1674 = vmatpush1.bf16.msra.mxu1 %v2380_v20  ;;  %v3118_v20 = vld [vmem:[%s3520_s0 + $0x30] sm:$0xff] }
  0x50   :  { %1838 = vmatpush1.bf16.msra.mxu0 %v2383_v21  ;;  %1675 = vmatprep.subr.bf16.mxu1 %v2388_v22  ;;  %v2468_v21 = vld [vmem:[%s3519_s1 + $0x210] ss:$8 sps:$4 sm:$0xff]  }
  0x51   :  { %1839 = vmatprep.subr.bf16.mxu0 %v2391_v23  ;;  %v2471_v22 = vld [vmem:[%s3519_s1 + $0x610] ss:$8 sps:$4 sm:$0xff]   ;;  %v1975_v23 = vcombine.high %v3118_v20, %v3118_v20 }
  0x53   :  { %1676 = vmatpush1.bf16.msra.mxu1 %v2386_v24  ;;  %v2476_v24 = vld [vmem:[%s3519_s1 + $0x224] ss:$8 sps:$4 sm:$0xff]  }
  0x54   :  { %1840 = vmatpush1.bf16.msra.mxu0 %v2389_v25  ;;  %1677 = vmatprep.subr.bf16.mxu1 %v2394_v26  ;;  %v2479_v25 = vld [vmem:[%s3519_s1 + $0x624] ss:$8 sps:$4 sm:$0xff]   ;;  %v2474_v26 = vld [vmem:[%s3519_s1 + $0x220] ss:$8 sps:$4 sm:$0xff]  }
  0x55   :  { %1841 = vmatprep.subr.bf16.mxu0 %v2397_v27  ;;  %v2477_v27 = vld [vmem:[%s3519_s1 + $0x620] ss:$8 sps:$4 sm:$0xff]  }
  0x57   :  { %1678 = vmatpush1.bf16.msra.mxu1 %v2392_v28  ;;  %v2482_v28 = vld [vmem:[%s3519_s1 + $0x234] ss:$8 sps:$4 sm:$0xff]  }
  0x58   :  { %1842 = vmatpush1.bf16.msra.mxu0 %v2395_v29  ;;  %1679 = vmatprep.subr.bf16.mxu1 %v2400_v30  ;;  %v2485_v29 = vld [vmem:[%s3519_s1 + $0x634] ss:$8 sps:$4 sm:$0xff]   ;;  %v2480_v30 = vld [vmem:[%s3519_s1 + $0x230] ss:$8 sps:$4 sm:$0xff]  }
  0x59   :  { %1843 = vmatprep.subr.bf16.mxu0 %v2403_v31  ;;  %v2483_v31 = vld [vmem:[%s3519_s1 + $0x630] ss:$8 sps:$4 sm:$0xff]  }
  0x5b   :  { %1680 = vmatpush1.bf16.msra.mxu1 %v2398_v33  ;;  %v2491_v33 = vld [vmem:[%s3519_s1 + $0x644] ss:$8 sps:$4 sm:$0xff]  }
  0x5c   :  { %1844 = vmatpush1.bf16.msra.mxu0 %v2401_v34  ;;  %1681 = vmatprep.subr.bf16.mxu1 %v2406_v37  ;;  %v2486_v34 = vld [vmem:[%s3519_s1 + $0x240] ss:$8 sps:$4 sm:$0xff]   ;;  %v2497_v37 = vld [vmem:[%s3519_s1 + $0x654] ss:$8 sps:$4 sm:$0xff]  }
  0x5d   :  { %1845 = vmatprep.subr.bf16.mxu0 %v2409_v39  ;;  %v2495_v39 = vld [vmem:[%s3519_s1 + $0x650] ss:$8 sps:$4 sm:$0xff]  }
  0x5f   :  { %1682 = vmatpush1.bf16.msra.mxu1 %v2404_v40  ;;  %v2500_v40 = vld [vmem:[%s3519_s1 + $0x264] ss:$8 sps:$4 sm:$0xff]  }
  0x60   :  { %1846 = vmatpush1.bf16.msra.mxu0 %v2407_v41  ;;  %1683 = vmatprep.subr.bf16.mxu1 %v2412_v42  ;;  %v2503_v41 = vld [vmem:[%s3519_s1 + $0x664] ss:$8 sps:$4 sm:$0xff]   ;;  %v2498_v42 = vld [vmem:[%s3519_s1 + $0x260] ss:$8 sps:$4 sm:$0xff]  }
  0x61   :  { %1847 = vmatprep.subr.bf16.mxu0 %v2415_v43  ;;  %v2501_v43 = vld [vmem:[%s3519_s1 + $0x660] ss:$8 sps:$4 sm:$0xff]  }
  0x63   :  { %1684 = vmatpush1.bf16.msra.mxu1 %v2410_v44  ;;  %v2506_v44 = vld [vmem:[%s3519_s1 + $0x274] ss:$8 sps:$4 sm:$0xff]  }
  0x64   :  { %1848 = vmatpush1.bf16.msra.mxu0 %v2413_v45  ;;  %1685 = vmatprep.subr.bf16.mxu1 %v2418_v46  ;;  %v2509_v45 = vld [vmem:[%s3519_s1 + $0x674] ss:$8 sps:$4 sm:$0xff]   ;;  %v2504_v46 = vld [vmem:[%s3519_s1 + $0x270] ss:$8 sps:$4 sm:$0xff]  }
  0x65   :  { %1849 = vmatprep.subr.bf16.mxu0 %v2421_v47  ;;  %v2507_v47 = vld [vmem:[%s3519_s1 + $0x670] ss:$8 sps:$4 sm:$0xff]  }
  0x67   :  { %1686 = vmatpush1.bf16.msra.mxu1 %v2416_v48  ;;  %v2512_v48 = vld [vmem:[%s3519_s1 + $0x284] ss:$8 sps:$4 sm:$0xff]  }
  0x68   :  { %1850 = vmatpush1.bf16.msra.mxu0 %v2419_v49  ;;  %1687 = vmatprep.subr.bf16.mxu1 %v2424_v50  ;;  %v2515_v49 = vld [vmem:[%s3519_s1 + $0x684] ss:$8 sps:$4 sm:$0xff]   ;;  %v2510_v50 = vld [vmem:[%s3519_s1 + $0x280] ss:$8 sps:$4 sm:$0xff]  }
  0x69   :  { %1851 = vmatprep.subr.bf16.mxu0 %v2427_v51  ;;  %v2513_v51 = vld [vmem:[%s3519_s1 + $0x680] ss:$8 sps:$4 sm:$0xff]  }
  0x6b   :  { %1688 = vmatpush1.bf16.msra.mxu1 %v2422_v52  ;;  %v2518_v52 = vld [vmem:[%s3519_s1 + $0x294] ss:$8 sps:$4 sm:$0xff]  }
  0x6c   :  { %1852 = vmatpush1.bf16.msra.mxu0 %v2425_v53  ;;  %1689 = vmatprep.subr.bf16.mxu1 %v2430_v54  ;;  %v2521_v53 = vld [vmem:[%s3519_s1 + $0x694] ss:$8 sps:$4 sm:$0xff]   ;;  %v2516_v54 = vld [vmem:[%s3519_s1 + $0x290] ss:$8 sps:$4 sm:$0xff]  }
  0x6d   :  { %1853 = vmatprep.subr.bf16.mxu0 %v2433_v55  ;;  %v2519_v55 = vld [vmem:[%s3519_s1 + $0x690] ss:$8 sps:$4 sm:$0xff]  }
  0x6f   :  { %1690 = vmatpush1.bf16.msra.mxu1 %v2428_v56  ;;  %v2524_v56 = vld [vmem:[%s3519_s1 + $0x2a4] ss:$8 sps:$4 sm:$0xff]  }
  0x70   :  { %1854 = vmatpush1.bf16.msra.mxu0 %v2431_v57  ;;  %1691 = vmatprep.subr.bf16.mxu1 %v2436_v58  ;;  %v2527_v57 = vld [vmem:[%s3519_s1 + $0x6a4] ss:$8 sps:$4 sm:$0xff]   ;;  %v2522_v58 = vld [vmem:[%s3519_s1 + $0x2a0] ss:$8 sps:$4 sm:$0xff]  }
  0x71   :  { %1855 = vmatprep.subr.bf16.mxu0 %v2439_v59  ;;  %v2525_v59 = vld [vmem:[%s3519_s1 + $0x6a0] ss:$8 sps:$4 sm:$0xff]  }
  0x73   :  { %1692 = vmatpush1.bf16.msra.mxu1 %v2434_v60  ;;  %v2530_v60 = vld [vmem:[%s3519_s1 + $0x2b4] ss:$8 sps:$4 sm:$0xff]  }
  0x74   :  { %1856 = vmatpush1.bf16.msra.mxu0 %v2437_v61  ;;  %1693 = vmatprep.subr.bf16.mxu1 %v2442_v62  ;;  %v2533_v61 = vld [vmem:[%s3519_s1 + $0x6b4] ss:$8 sps:$4 sm:$0xff]   ;;  %v2528_v62 = vld [vmem:[%s3519_s1 + $0x2b0] ss:$8 sps:$4 sm:$0xff]  }
  0x75   :  { %1857 = vmatprep.subr.bf16.mxu0 %v2445_v63  ;;  %v2531_v63 = vld [vmem:[%s3519_s1 + $0x6b0] ss:$8 sps:$4 sm:$0xff]  }
  0x77   :  { %1694 = vmatpush1.bf16.msra.mxu1 %v2440_v0  ;;  %v2536_v0 = vld [vmem:[%s3519_s1 + $0x2c4] ss:$8 sps:$4 sm:$0xff]  }
  0x78   :  { %1858 = vmatpush1.bf16.msra.mxu0 %v2443_v1  ;;  %1695 = vmatprep.subr.bf16.mxu1 %v2448_v2  ;;  %v2539_v1 = vld [vmem:[%s3519_s1 + $0x6c4] ss:$8 sps:$4 sm:$0xff]   ;;  %v2534_v2 = vld [vmem:[%s3519_s1 + $0x2c0] ss:$8 sps:$4 sm:$0xff]  }
  0x79   :  { %1859 = vmatprep.subr.bf16.mxu0 %v2451_v3  ;;  %v2537_v3 = vld [vmem:[%s3519_s1 + $0x6c0] ss:$8 sps:$4 sm:$0xff]  }
  0x7b   :  { %1696 = vmatpush1.bf16.msra.mxu1 %v2446_v4  ;;  %v2542_v4 = vld [vmem:[%s3519_s1 + $0x2d4] ss:$8 sps:$4 sm:$0xff]  }
  0x7c   :  { %1860 = vmatpush1.bf16.msra.mxu0 %v2449_v5  ;;  %1697 = vmatprep.subr.bf16.mxu1 %v2454_v6  ;;  %v2545_v5 = vld [vmem:[%s3519_s1 + $0x6d4] ss:$8 sps:$4 sm:$0xff]   ;;  %v2540_v6 = vld [vmem:[%s3519_s1 + $0x2d0] ss:$8 sps:$4 sm:$0xff]  }
  0x7d   :  { %1861 = vmatprep.subr.bf16.mxu0 %v2457_v7  ;;  %v2543_v7 = vld [vmem:[%s3519_s1 + $0x6d0] ss:$8 sps:$4 sm:$0xff]  }
  0x7f   :  { %1698 = vmatpush1.bf16.msra.mxu1 %v2452_v8  ;;  %v2548_v8 = vld [vmem:[%s3519_s1 + $0x2e4] ss:$8 sps:$4 sm:$0xff]  }
  0x80   :  { %1862 = vmatpush1.bf16.msra.mxu0 %v2455_v9  ;;  %1708 = vmatprep.subr.bf16.mxu1 %v2462_v10  ;;  %v2551_v9 = vld [vmem:[%s3519_s1 + $0x6e4] ss:$8 sps:$4 sm:$0xff]   ;;  %v2546_v10 = vld [vmem:[%s3519_s1 + $0x2e0] ss:$8 sps:$4 sm:$0xff]  }
  0x81   :  { %1872 = vmatprep.subr.bf16.mxu0 %v2467_v11  ;;  %v2549_v11 = vld [vmem:[%s3519_s1 + $0x6e0] ss:$8 sps:$4 sm:$0xff]  }
  0x82   :  { %1700 = vmatmul.mubr.bf16.vlgmr.msra.gmra.mrb[0].mxu1 %v1964_v12  ;;  %v2554_v12 = vld [vmem:[%s3519_s1 + $0x2f4] ss:$8 sps:$4 sm:$0xff]  }
  0x83   :  { %1864 = vmatmul.mubr.bf16.vlgmr.msra.gmra.mrb[0].mxu0 %v1972_v14  ;;  %1709 = vmatpush1.bf16.msra.mxu1 %v2460_v13  ;;  %v2557_v13 = vld [vmem:[%s3519_s1 + $0x6f4] ss:$8 sps:$4 sm:$0xff]   ;;  %v2552_v14 = vld [vmem:[%s3519_s1 + $0x2f0] ss:$8 sps:$4 sm:$0xff]  }
  0x84   :  { %1873 = vmatpush1.bf16.msra.mxu0 %v2465_v15  ;;  %1710 = vmatprep.subr.bf16.mxu1 %v2470_v16  ;;  %v2555_v15 = vld [vmem:[%s3519_s1 + $0x6f0] ss:$8 sps:$4 sm:$0xff]   ;;  %v2562_v16 = vld [vmem:[%s3519_s1 + $0x304] ss:$8 sps:$4 sm:$0xff]  }
  0x85   :  { %1874 = vmatprep.subr.bf16.mxu0 %v2473_v17  ;;  %1740 = vmatprep.mubr.bf16.mxu1 %v1967_v19  ;;  %v2567_v17 = vld [vmem:[%s3519_s1 + $0x704] ss:$8 sps:$4 sm:$0xff]   ;;  %v1966_v19 = vcombine.low %v3111_v18, %v3111_v18  ;;  %v2565_v18 = vld [vmem:[%s3519_s1 + $0x700] ss:$8 sps:$4 sm:$0xff]  }
  0x86   :  { %1904 = vmatprep.mubr.bf16.mxu0 %v1975_v23  ;;  %v3314_v23 = vld [vmem:[%s3520_s0 + $0x38] sm:$0xff] }
  0x87   :  { %1711 = vmatpush1.bf16.msra.mxu1 %v2468_v21  ;;  %v1974_v21 = vcombine.low %v3118_v20, %v3118_v20  ;;  %v2570_v20 = vld [vmem:[%s3519_s1 + $0x314] ss:$8 sps:$4 sm:$0xff]  }
  0x88   :  { %1875 = vmatpush1.bf16.msra.mxu0 %v2471_v22  ;;  %1712 = vmatprep.subr.bf16.mxu1 %v2476_v24  ;;  %v3309_v22 = vld [vmem:[%s3520_s0 + $0x18] sm:$0xff]  ;;  %v2560_v24 = vld [vmem:[%s3519_s1 + $0x300] ss:$8 sps:$4 sm:$0xff]  }
  0x89   :  { %1876 = vmatprep.subr.bf16.mxu0 %v2479_v25  ;;  %v2573_v25 = vld [vmem:[%s3519_s1 + $0x714] ss:$8 sps:$4 sm:$0xff]  }
  0x8b   :  { %1713 = vmatpush1.bf16.msra.mxu1 %v2474_v26  ;;  %v1969_v26 = vcombine.high %v3309_v22, %v3309_v22 }
  0x8c   :  { %1877 = vmatpush1.bf16.msra.mxu0 %v2477_v27  ;;  %1714 = vmatprep.subr.bf16.mxu1 %v2482_v28  ;;  %v1977_v27 = vcombine.high %v3314_v23, %v3314_v23  ;;  %v2568_v28 = vld [vmem:[%s3519_s1 + $0x310] ss:$8 sps:$4 sm:$0xff]  }
  0x8d   :  { %1878 = vmatprep.subr.bf16.mxu0 %v2485_v29  ;;  %v2571_v29 = vld [vmem:[%s3519_s1 + $0x710] ss:$8 sps:$4 sm:$0xff]  }
  0x8f   :  { %1715 = vmatpush1.bf16.msra.mxu1 %v2480_v30  ;;  %v2576_v30 = vld [vmem:[%s3519_s1 + $0x324] ss:$8 sps:$4 sm:$0xff]  }
  0x90   :  { %1879 = vmatpush1.bf16.msra.mxu0 %v2483_v31  ;;  %1716 = vmatprep.subr.bf16.mxu1 %v2488_v32  ;;  %v2579_v31 = vld [vmem:[%s3519_s1 + $0x724] ss:$8 sps:$4 sm:$0xff]   ;;  %v2574_v32 = vld [vmem:[%s3519_s1 + $0x320] ss:$8 sps:$4 sm:$0xff]  }
  0x91   :  { %1880 = vmatprep.subr.bf16.mxu0 %v2491_v33  ;;  %v2577_v33 = vld [vmem:[%s3519_s1 + $0x720] ss:$8 sps:$4 sm:$0xff]  }
  0x93   :  { %1717 = vmatpush1.bf16.msra.mxu1 %v2486_v34  ;;  %v2582_v34 = vld [vmem:[%s3519_s1 + $0x334] ss:$8 sps:$4 sm:$0xff]  }
  0x94   :  { %1881 = vmatpush1.bf16.msra.mxu0 %v2489_v35  ;;  %1718 = vmatprep.subr.bf16.mxu1 %v2494_v36  ;;  %v2585_v35 = vld [vmem:[%s3519_s1 + $0x734] ss:$8 sps:$4 sm:$0xff]   ;;  %v2580_v36 = vld [vmem:[%s3519_s1 + $0x330] ss:$8 sps:$4 sm:$0xff]  }
  0x95   :  { %1882 = vmatprep.subr.bf16.mxu0 %v2497_v37  ;;  %v2583_v37 = vld [vmem:[%s3519_s1 + $0x730] ss:$8 sps:$4 sm:$0xff]  }
  0x97   :  { %1719 = vmatpush1.bf16.msra.mxu1 %v2492_v38  ;;  %v2588_v38 = vld [vmem:[%s3519_s1 + $0x344] ss:$8 sps:$4 sm:$0xff]  }
  0x98   :  { %1883 = vmatpush1.bf16.msra.mxu0 %v2495_v39  ;;  %1720 = vmatprep.subr.bf16.mxu1 %v2500_v40  ;;  %v2591_v39 = vld [vmem:[%s3519_s1 + $0x744] ss:$8 sps:$4 sm:$0xff]   ;;  %v2586_v40 = vld [vmem:[%s3519_s1 + $0x340] ss:$8 sps:$4 sm:$0xff]  }
  0x99   :  { %1884 = vmatprep.subr.bf16.mxu0 %v2503_v41  ;;  %v2589_v41 = vld [vmem:[%s3519_s1 + $0x740] ss:$8 sps:$4 sm:$0xff]  }
  0x9b   :  { %1721 = vmatpush1.bf16.msra.mxu1 %v2498_v42  ;;  %v2594_v42 = vld [vmem:[%s3519_s1 + $0x354] ss:$8 sps:$4 sm:$0xff]  }
  0x9c   :  { %1885 = vmatpush1.bf16.msra.mxu0 %v2501_v43  ;;  %1722 = vmatprep.subr.bf16.mxu1 %v2506_v44  ;;  %v2597_v43 = vld [vmem:[%s3519_s1 + $0x754] ss:$8 sps:$4 sm:$0xff]   ;;  %v2592_v44 = vld [vmem:[%s3519_s1 + $0x350] ss:$8 sps:$4 sm:$0xff]  }
  0x9d   :  { %1886 = vmatprep.subr.bf16.mxu0 %v2509_v45  ;;  %v2595_v45 = vld [vmem:[%s3519_s1 + $0x750] ss:$8 sps:$4 sm:$0xff]  }
  0x9f   :  { %1723 = vmatpush1.bf16.msra.mxu1 %v2504_v46  ;;  %v2600_v46 = vld [vmem:[%s3519_s1 + $0x364] ss:$8 sps:$4 sm:$0xff]  }
  0xa0   :  { %1887 = vmatpush1.bf16.msra.mxu0 %v2507_v47  ;;  %1724 = vmatprep.subr.bf16.mxu1 %v2512_v48  ;;  %v2603_v47 = vld [vmem:[%s3519_s1 + $0x764] ss:$8 sps:$4 sm:$0xff]   ;;  %v2598_v48 = vld [vmem:[%s3519_s1 + $0x360] ss:$8 sps:$4 sm:$0xff]  }
  0xa1   :  { %1888 = vmatprep.subr.bf16.mxu0 %v2515_v49  ;;  %v2601_v49 = vld [vmem:[%s3519_s1 + $0x760] ss:$8 sps:$4 sm:$0xff]  }
  0xa3   :  { %1725 = vmatpush1.bf16.msra.mxu1 %v2510_v50  ;;  %v2606_v50 = vld [vmem:[%s3519_s1 + $0x374] ss:$8 sps:$4 sm:$0xff]  }
  0xa4   :  { %1889 = vmatpush1.bf16.msra.mxu0 %v2513_v51  ;;  %1726 = vmatprep.subr.bf16.mxu1 %v2518_v52  ;;  %v2609_v51 = vld [vmem:[%s3519_s1 + $0x774] ss:$8 sps:$4 sm:$0xff]   ;;  %v2604_v52 = vld [vmem:[%s3519_s1 + $0x370] ss:$8 sps:$4 sm:$0xff]  }
  0xa5   :  { %1890 = vmatprep.subr.bf16.mxu0 %v2521_v53  ;;  %v2607_v53 = vld [vmem:[%s3519_s1 + $0x770] ss:$8 sps:$4 sm:$0xff]  }
  0xa7   :  { %1727 = vmatpush1.bf16.msra.mxu1 %v2516_v54  ;;  %v2612_v54 = vld [vmem:[%s3519_s1 + $0x384] ss:$8 sps:$4 sm:$0xff]  }
  0xa8   :  { %1891 = vmatpush1.bf16.msra.mxu0 %v2519_v55  ;;  %1728 = vmatprep.subr.bf16.mxu1 %v2524_v56  ;;  %v2615_v55 = vld [vmem:[%s3519_s1 + $0x784] ss:$8 sps:$4 sm:$0xff]   ;;  %v2610_v56 = vld [vmem:[%s3519_s1 + $0x380] ss:$8 sps:$4 sm:$0xff]  }
  0xa9   :  { %1892 = vmatprep.subr.bf16.mxu0 %v2527_v57  ;;  %v2613_v57 = vld [vmem:[%s3519_s1 + $0x780] ss:$8 sps:$4 sm:$0xff]  }
  0xab   :  { %1729 = vmatpush1.bf16.msra.mxu1 %v2522_v58  ;;  %v2618_v58 = vld [vmem:[%s3519_s1 + $0x394] ss:$8 sps:$4 sm:$0xff]  }
  0xac   :  { %1893 = vmatpush1.bf16.msra.mxu0 %v2525_v59  ;;  %1730 = vmatprep.subr.bf16.mxu1 %v2530_v60  ;;  %v2621_v59 = vld [vmem:[%s3519_s1 + $0x794] ss:$8 sps:$4 sm:$0xff]   ;;  %v2616_v60 = vld [vmem:[%s3519_s1 + $0x390] ss:$8 sps:$4 sm:$0xff]  }
  0xad   :  { %1894 = vmatprep.subr.bf16.mxu0 %v2533_v61  ;;  %v2619_v61 = vld [vmem:[%s3519_s1 + $0x790] ss:$8 sps:$4 sm:$0xff]  }
  0xaf   :  { %1731 = vmatpush1.bf16.msra.mxu1 %v2528_v62  ;;  %v2624_v62 = vld [vmem:[%s3519_s1 + $0x3a4] ss:$8 sps:$4 sm:$0xff]  }
  0xb0   :  { %1895 = vmatpush1.bf16.msra.mxu0 %v2531_v63  ;;  %1732 = vmatprep.subr.bf16.mxu1 %v2536_v0  ;;  %v2627_v63 = vld [vmem:[%s3519_s1 + $0x7a4] ss:$8 sps:$4 sm:$0xff]   ;;  %v2622_v0 = vld [vmem:[%s3519_s1 + $0x3a0] ss:$8 sps:$4 sm:$0xff]  }
  0xb1   :  { %1896 = vmatprep.subr.bf16.mxu0 %v2539_v1  ;;  %v2625_v1 = vld [vmem:[%s3519_s1 + $0x7a0] ss:$8 sps:$4 sm:$0xff]  }
  0xb3   :  { %1733 = vmatpush1.bf16.msra.mxu1 %v2534_v2  ;;  %v2630_v2 = vld [vmem:[%s3519_s1 + $0x3b4] ss:$8 sps:$4 sm:$0xff]  }
  0xb4   :  { %1897 = vmatpush1.bf16.msra.mxu0 %v2537_v3  ;;  %1734 = vmatprep.subr.bf16.mxu1 %v2542_v4  ;;  %v2633_v3 = vld [vmem:[%s3519_s1 + $0x7b4] ss:$8 sps:$4 sm:$0xff]   ;;  %v2628_v4 = vld [vmem:[%s3519_s1 + $0x3b0] ss:$8 sps:$4 sm:$0xff]  }
  0xb5   :  { %1898 = vmatprep.subr.bf16.mxu0 %v2545_v5  ;;  %v2631_v5 = vld [vmem:[%s3519_s1 + $0x7b0] ss:$8 sps:$4 sm:$0xff]  }
  0xb7   :  { %1735 = vmatpush1.bf16.msra.mxu1 %v2540_v6  ;;  %v2636_v6 = vld [vmem:[%s3519_s1 + $0x3c4] ss:$8 sps:$4 sm:$0xff]  }
  0xb8   :  { %1899 = vmatpush1.bf16.msra.mxu0 %v2543_v7  ;;  %1736 = vmatprep.subr.bf16.mxu1 %v2548_v8  ;;  %v2639_v7 = vld [vmem:[%s3519_s1 + $0x7c4] ss:$8 sps:$4 sm:$0xff]   ;;  %v2634_v8 = vld [vmem:[%s3519_s1 + $0x3c0] ss:$8 sps:$4 sm:$0xff]  }
  0xb9   :  { %1900 = vmatprep.subr.bf16.mxu0 %v2551_v9  ;;  %v2637_v9 = vld [vmem:[%s3519_s1 + $0x7c0] ss:$8 sps:$4 sm:$0xff]  }
  0xbb   :  { %1737 = vmatpush1.bf16.msra.mxu1 %v2546_v10  ;;  %v2642_v10 = vld [vmem:[%s3519_s1 + $0x3d4] ss:$8 sps:$4 sm:$0xff]  }
  0xbc   :  { %1901 = vmatpush1.bf16.msra.mxu0 %v2549_v11  ;;  %1738 = vmatprep.subr.bf16.mxu1 %v2554_v12  ;;  %v2645_v11 = vld [vmem:[%s3519_s1 + $0x7d4] ss:$8 sps:$4 sm:$0xff]   ;;  %v2640_v12 = vld [vmem:[%s3519_s1 + $0x3d0] ss:$8 sps:$4 sm:$0xff]  }
  0xbd   :  { %1902 = vmatprep.subr.bf16.mxu0 %v2557_v13  ;;  %v2643_v13 = vld [vmem:[%s3519_s1 + $0x7d0] ss:$8 sps:$4 sm:$0xff]  }
  0xbf   :  { %1739 = vmatpush1.bf16.msra.mxu1 %v2552_v14  ;;  %v2648_v14 = vld [vmem:[%s3519_s1 + $0x3e4] ss:$8 sps:$4 sm:$0xff]  }
  0xc0   :  { %1903 = vmatpush1.bf16.msra.mxu0 %v2555_v15  ;;  %1749 = vmatprep.subr.bf16.mxu1 %v2562_v16  ;;  %v2651_v15 = vld [vmem:[%s3519_s1 + $0x7e4] ss:$8 sps:$4 sm:$0xff]   ;;  %v2646_v16 = vld [vmem:[%s3519_s1 + $0x3e0] ss:$8 sps:$4 sm:$0xff]  }
  0xc1   :  { %1913 = vmatprep.subr.bf16.mxu0 %v2567_v17  ;;  %v2649_v17 = vld [vmem:[%s3519_s1 + $0x7e0] ss:$8 sps:$4 sm:$0xff]  }
  0xc2   :  { %1741 = vmatmul.mubr.bf16.vlgmr.msra.gmra.mrb[0].mxu1 %v1966_v19  ;;  %v2654_v19 = vld [vmem:[%s3519_s1 + $0x3f4] ss:$8 sps:$4 sm:$0xff]  }
  0xc3   :  { %1905 = vmatmul.mubr.bf16.vlgmr.msra.gmra.mrb[0].mxu0 %v1974_v21  ;;  %1750 = vmatpush1.bf16.msra.mxu1 %v2560_v24  ;;  %v2657_v21 = vld [vmem:[%s3519_s1 + $0x7f4] ss:$8 sps:$4 sm:$0xff]   ;;  %v2652_v24 = vld [vmem:[%s3519_s1 + $0x3f0] ss:$8 sps:$4 sm:$0xff]  }
  0xc4   :  { %1914 = vmatpush1.bf16.msra.mxu0 %v2565_v18  ;;  %1751 = vmatprep.subr.bf16.mxu1 %v2570_v20  ;;  %v2655_v18 = vld [vmem:[%s3519_s1 + $0x7f0] ss:$8 sps:$4 sm:$0xff]   ;;  %v1968_v20 = vcombine.low %v3309_v22, %v3309_v22 }
  0xc5   :  { %1915 = vmatprep.subr.bf16.mxu0 %v2573_v25  ;;  %1781 = vmatprep.mubr.bf16.mxu1 %v1969_v26  ;;  %v1976_v25 = vcombine.low %v3314_v23, %v3314_v23  ;;  %v280_v26 = vlaneseq }
  0xc6   :  { %1945 = vmatprep.mubr.bf16.mxu0 %v1977_v27 }
  0xc7   :  { %1752 = vmatpush1.bf16.msra.mxu1 %v2568_v28  ;;  %v281_v27 = vshrl.u32 %v280_v26, 7 }
  0xc8   :  { %1916 = vmatpush1.bf16.msra.mxu0 %v2571_v29  ;;  %1753 = vmatprep.subr.bf16.mxu1 %v2576_v30  ;;  %v278_v29 = vld [vmem:[%s3521_s2] sm:$0x3] }
  0xc9   :  { %1917 = vmatprep.subr.bf16.mxu0 %v2579_v31  ;;  %v282_v28 = vsub.s32 0, %v281_v27  ;;  %v286_v30 = vsub.s32 1, %v281_v27 }
  0xcb   :  { %1754 = vmatpush1.bf16.msra.mxu1 %v2574_v32  ;;  %v283_v31 = vrot.slane %v278_v29, %v282_v28  ;;  %v287_v32 = vrot.slane %v278_v29, %v286_v30 }
  0xcc   :  { %1918 = vmatpush1.bf16.msra.mxu0 %v2577_v33  ;;  %1755 = vmatprep.subr.bf16.mxu1 %v2582_v34 }
  0xcd   :  { %1919 = vmatprep.subr.bf16.mxu0 %v2585_v35 }
  0xcf   :  { %1756 = vmatpush1.bf16.msra.mxu1 %v2580_v36 }
  0xd0   :  { %1920 = vmatpush1.bf16.msra.mxu0 %v2583_v37  ;;  %1757 = vmatprep.subr.bf16.mxu1 %v2588_v38 }
  0xd1   :  { %1921 = vmatprep.subr.bf16.mxu0 %v2591_v39 }
  0xd3   :  { %1758 = vmatpush1.bf16.msra.mxu1 %v2586_v40 }
  0xd4   :  { %1922 = vmatpush1.bf16.msra.mxu0 %v2589_v41  ;;  %1759 = vmatprep.subr.bf16.mxu1 %v2594_v42 }
  0xd5   :  { %1923 = vmatprep.subr.bf16.mxu0 %v2597_v43 }
  0xd7   :  { %1760 = vmatpush1.bf16.msra.mxu1 %v2592_v44 }
  0xd8   :  { %1924 = vmatpush1.bf16.msra.mxu0 %v2595_v45  ;;  %1761 = vmatprep.subr.bf16.mxu1 %v2600_v46 }
  0xd9   :  { %1925 = vmatprep.subr.bf16.mxu0 %v2603_v47 }
  0xdb   :  { %1762 = vmatpush1.bf16.msra.mxu1 %v2598_v48 }
  0xdc   :  { %1926 = vmatpush1.bf16.msra.mxu0 %v2601_v49  ;;  %1763 = vmatprep.subr.bf16.mxu1 %v2606_v50 }
  0xdd   :  { %1927 = vmatprep.subr.bf16.mxu0 %v2609_v51 }
  0xdf   :  { %1764 = vmatpush1.bf16.msra.mxu1 %v2604_v52 }
  0xe0   :  { %1928 = vmatpush1.bf16.msra.mxu0 %v2607_v53  ;;  %1765 = vmatprep.subr.bf16.mxu1 %v2612_v54 }
  0xe1   :  { %1929 = vmatprep.subr.bf16.mxu0 %v2615_v55 }
  0xe3   :  { %1766 = vmatpush1.bf16.msra.mxu1 %v2610_v56 }
  0xe4   :  { %1930 = vmatpush1.bf16.msra.mxu0 %v2613_v57  ;;  %1767 = vmatprep.subr.bf16.mxu1 %v2618_v58 }
  0xe5   :  { %1931 = vmatprep.subr.bf16.mxu0 %v2621_v59 }
  0xe7   :  { %1768 = vmatpush1.bf16.msra.mxu1 %v2616_v60 }
  0xe8   :  { %1932 = vmatpush1.bf16.msra.mxu0 %v2619_v61  ;;  %1769 = vmatprep.subr.bf16.mxu1 %v2624_v62 }
  0xe9   :  { %1933 = vmatprep.subr.bf16.mxu0 %v2627_v63 }
  0xeb   :  { %1770 = vmatpush1.bf16.msra.mxu1 %v2622_v0 }
  0xec   :  { %1934 = vmatpush1.bf16.msra.mxu0 %v2625_v1  ;;  %1771 = vmatprep.subr.bf16.mxu1 %v2630_v2 }
  0xed   :  { %1935 = vmatprep.subr.bf16.mxu0 %v2633_v3 }
  0xef   :  { %1772 = vmatpush1.bf16.msra.mxu1 %v2628_v4 }
  0xf0   :  { %1936 = vmatpush1.bf16.msra.mxu0 %v2631_v5  ;;  %1773 = vmatprep.subr.bf16.mxu1 %v2636_v6 }
  0xf1   :  { %1937 = vmatprep.subr.bf16.mxu0 %v2639_v7 }
  0xf3   :  { %1774 = vmatpush1.bf16.msra.mxu1 %v2634_v8 }
  0xf4   :  { %1938 = vmatpush1.bf16.msra.mxu0 %v2637_v9  ;;  %1775 = vmatprep.subr.bf16.mxu1 %v2642_v10 }
  0xf5   :  { %1939 = vmatprep.subr.bf16.mxu0 %v2645_v11 }
  0xf7   :  { %1776 = vmatpush1.bf16.msra.mxu1 %v2640_v12 }
  0xf8   :  { %1940 = vmatpush1.bf16.msra.mxu0 %v2643_v13  ;;  %1777 = vmatprep.subr.bf16.mxu1 %v2648_v14 }
  0xf9   :  { %1941 = vmatprep.subr.bf16.mxu0 %v2651_v15 }
  0xfb   :  { %1778 = vmatpush1.bf16.msra.mxu1 %v2646_v16 }
  0xfc   :  { %1942 = vmatpush1.bf16.msra.mxu0 %v2649_v17  ;;  %1779 = vmatprep.subr.bf16.mxu1 %v2654_v19 }
  0xfd   :  { %1943 = vmatprep.subr.bf16.mxu0 %v2657_v21 }
  0xff   :  { %1780 = vmatpush1.bf16.msra.mxu1 %v2652_v24 }
 0x100   :  { %1944 = vmatpush1.bf16.msra.mxu0 %v2655_v18 }
 0x102   :  { %1782 = vmatmul.mubr.bf16.vlgmr.msra.gmra.mrb[0].mxu1 %v1968_v20 }
 0x103   :  { %1946 = vmatmul.mubr.bf16.vlgmr.msra.gmra.mrb[0].mxu0 %v1976_v25 }
 0x1d5   :  { %v1783_v33 = vpop.f32.mrb[0].mxu1 }
 0x1d6   :  { %v1947_v34 = vpop.f32.mrb[0].mxu0  ;;  %v2234_v22 = vadd.f32 %v1783_v33, %v283_v31  ;;  %v1785_v35 = vpop.f32.mrb[1].mxu1 }
 0x1d7   :  { %v1949_v36 = vpop.f32.mrb[1].mxu0  ;;  %v2236_v23 = vadd.f32 %v1785_v35, %v287_v32  ;;  %v1787_v37 = vpop.f32.mrb[2].mxu1 }
 0x1d8   :  { %v1951_v38 = vpop.f32.mrb[2].mxu0  ;;  %v2235_v39 = vadd.f32 %v2234_v22, %v1947_v34  ;;  %v1788_v40 = vpop.f32.mrb[3].mxu1 }
 0x1d9   :  { %v1952_v41 = vpop.f32.mrb[3].mxu0  ;;  %v2237_v42 = vadd.f32 %v2236_v23, %v1949_v36 }
 0x1da   :  { %v1954_v43 = vmax.f32 %v2235_v39, 0.0 }
 0x1db   :  { %v1955_v44 = vmax.f32 %v2237_v42, 0.0 }
 0x1dc   :  { %1956 = vst [vmem:[%s3522_s3] sm:$0xff] %v1954_v43 }
 0x1dd   :  { %1957 = vst [vmem:[%s3522_s3 + $0x8] sm:$0xff] %v1955_v44 }

// kernel: unet_forward.23
= control target key start
LH: loop header
LB: loop body
LE: loop exit
PB: predicated region body
PF: predicated region fallthrough
CT: control target
= control target key end

     0   :  { %vm2223_vm0 = vmmov 0   ;;  %s2742_s3 = inlined_call_operand.vmem [shape: bf16[1152,128], index: 3, kind: input, shape index: {}]   ;;  %s2743_s1 = inlined_call_operand.vmem [shape: bf16[8,1152], index: 1, kind: input, shape index: {}]   ;;  %s2744_s2 = inlined_call_operand.vmem [shape: bf16[1152,128], index: 2, kind: input, shape index: {}]   ;;  %s2745_s0 = inlined_call_operand.vmem [shape: bf16[8,1152], index: 0, kind: input, shape index: {}]   ;;  %s2746_s4 = inlined_call_operand.vmem [shape: f32[1,128], index: 4, kind: input, shape index: {}]   ;;  %s2747_s5 = inlined_call_operand.vmem [shape: f32[8,128], index: 5, kind: output, shape index: {}]  }
   0x1   :  { %v2060_v0 = vld [vmem:[%s2742_s3 + $0x40] sm:$0xff]   ;;  %v2064_v4 = vld [vmem:[%s2742_s3 + $0x48] sm:$0xff]   ;;  %v2068_v8 = vld [vmem:[%s2742_s3 + $0x50] sm:$0xff]  }
   0x2   :  { %v2061_v1 = vld [vmem:[%s2742_s3 + $0xc0] sm:$0xff]   ;;  %1824 = vmatprep.subr.bf16.mxu0 %v2060_v0  ;;  %v2065_v5 = vld [vmem:[%s2742_s3 + $0xc8] sm:$0xff]   ;;  %v2069_v9 = vld [vmem:[%s2742_s3 + $0xd0] sm:$0xff]  }
   0x3   :  { %v2062_v2 = vld [vmem:[%s2742_s3] sm:$0xff]   ;;  %1846 = vmatprep.subr.bf16.mxu1 %v2061_v1  ;;  %v2066_v6 = vld [vmem:[%s2742_s3 + $0x8] sm:$0xff]   ;;  %v2070_v10 = vld [vmem:[%s2742_s3 + $0x10] sm:$0xff]  }
   0x4   :  { %v2063_v3 = vld [vmem:[%s2742_s3 + $0x80] sm:$0xff]   ;;  %1825 = vmatpush3.bf16.msra.mxu0 %v2062_v2  ;;  %v2067_v7 = vld [vmem:[%s2742_s3 + $0x88] sm:$0xff]   ;;  %v2071_v11 = vld [vmem:[%s2742_s3 + $0x90] sm:$0xff]  }
   0x5   :  { %1847 = vmatpush3.bf16.msra.mxu1 %v2063_v3  ;;  %1826 = vmatprep.subr.bf16.mxu0 %v2064_v4  ;;  %v2072_v12 = vld [vmem:[%s2742_s3 + $0x58] sm:$0xff]   ;;  %v2076_v16 = vld [vmem:[%s2742_s3 + $0x60] sm:$0xff]   ;;  %v2080_v20 = vld [vmem:[%s2742_s3 + $0x68] sm:$0xff]  }
   0x6   :  { %1848 = vmatprep.subr.bf16.mxu1 %v2065_v5  ;;  %v2073_v13 = vld [vmem:[%s2742_s3 + $0xd8] sm:$0xff]   ;;  %v2077_v17 = vld [vmem:[%s2742_s3 + $0xe0] sm:$0xff]   ;;  %v2081_v21 = vld [vmem:[%s2742_s3 + $0xe8] sm:$0xff]  }
   0x7   :  { %v2074_v14 = vld [vmem:[%s2742_s3 + $0x18] sm:$0xff]   ;;  %v2078_v18 = vld [vmem:[%s2742_s3 + $0x20] sm:$0xff]   ;;  %v2082_v22 = vld [vmem:[%s2742_s3 + $0x28] sm:$0xff]  }
   0x8   :  { %1827 = vmatpush3.bf16.msra.mxu0 %v2066_v6  ;;  %v2075_v15 = vld [vmem:[%s2742_s3 + $0x98] sm:$0xff]   ;;  %v2079_v19 = vld [vmem:[%s2742_s3 + $0xa0] sm:$0xff]   ;;  %v2083_v23 = vld [vmem:[%s2742_s3 + $0xa8] sm:$0xff]  }
   0x9   :  { %1849 = vmatpush3.bf16.msra.mxu1 %v2067_v7  ;;  %1828 = vmatprep.subr.bf16.mxu0 %v2068_v8  ;;  %v2084_v24 = vld [vmem:[%s2742_s3 + $0x70] sm:$0xff]   ;;  %v2088_v28 = vld [vmem:[%s2742_s3 + $0x78] sm:$0xff]   ;;  %v170_v32 = vld [vmem:[%s2743_s1] sm:$0xff] }
   0xa   :  { %1850 = vmatprep.subr.bf16.mxu1 %v2069_v9  ;;  %v2085_v25 = vld [vmem:[%s2742_s3 + $0xf0] sm:$0xff]   ;;  %v2089_v29 = vld [vmem:[%s2742_s3 + $0xf8] sm:$0xff]   ;;  %v171_v33 = vld [vmem:[%s2743_s1 + $0x8] sm:$0xff]  ;;  %v1661_v34 = vcombine.low %v170_v32, %v170_v32  ;;  %v1662_v35 = vcombine.high %v170_v32, %v170_v32 }
   0xb   :  { %v2086_v26 = vld [vmem:[%s2742_s3 + $0x30] sm:$0xff]   ;;  %v2090_v30 = vld [vmem:[%s2742_s3 + $0x38] sm:$0xff]   ;;  %v1663_v36 = vcombine.low %v171_v33, %v171_v33  ;;  %v1664_v37 = vcombine.high %v171_v33, %v171_v33  ;;  %v2096_v38 = vld [vmem:[%s2742_s3 + $0x140] sm:$0xff]  }
   0xc   :  { %1829 = vmatpush3.bf16.msra.mxu0 %v2070_v10  ;;  %v2087_v27 = vld [vmem:[%s2742_s3 + $0xb0] sm:$0xff]   ;;  %v2091_v31 = vld [vmem:[%s2742_s3 + $0xb8] sm:$0xff]   ;;  %v2097_v39 = vld [vmem:[%s2742_s3 + $0x1c0] sm:$0xff]   ;;  %815 = vmatprep.mubr.bf16.mxu0 %v1662_v35 }
   0xd   :  { %1851 = vmatpush3.bf16.msra.mxu1 %v2071_v11  ;;  %1830 = vmatprep.subr.bf16.mxu0 %v2072_v12  ;;  %v2098_v40 = vld [vmem:[%s2742_s3 + $0x100] sm:$0xff]   ;;  %v2100_v42 = vld [vmem:[%s2742_s3 + $0x148] sm:$0xff]   ;;  %v2104_v46 = vld [vmem:[%s2742_s3 + $0x150] sm:$0xff]  }
   0xe   :  { %1852 = vmatprep.subr.bf16.mxu1 %v2073_v13  ;;  %855 = vmatprep.mubr.bf16.mxu1 %v1664_v37  ;;  %v2099_v41 = vld [vmem:[%s2742_s3 + $0x180] sm:$0xff]   ;;  %v2101_v43 = vld [vmem:[%s2742_s3 + $0x1c8] sm:$0xff]   ;;  %v2105_v47 = vld [vmem:[%s2742_s3 + $0x1d0] sm:$0xff]   ;;  %v2222_v13 = vmov 0.0  }
   0xf   :  { %v2102_v44 = vld [vmem:[%s2742_s3 + $0x108] sm:$0xff]   ;;  %v2106_v48 = vld [vmem:[%s2742_s3 + $0x110] sm:$0xff]   ;;  %v2108_v50 = vld [vmem:[%s2742_s3 + $0x158] sm:$0xff]  }
  0x10   :  { %1831 = vmatpush3.bf16.msra.mxu0 %v2074_v14  ;;  %v2103_v45 = vld [vmem:[%s2742_s3 + $0x188] sm:$0xff]   ;;  %v2107_v49 = vld [vmem:[%s2742_s3 + $0x190] sm:$0xff]   ;;  %v2109_v51 = vld [vmem:[%s2742_s3 + $0x1d8] sm:$0xff]  }
  0x11   :  { %1853 = vmatpush3.bf16.msra.mxu1 %v2075_v15  ;;  %1832 = vmatprep.subr.bf16.mxu0 %v2076_v16  ;;  %v2110_v52 = vld [vmem:[%s2742_s3 + $0x118] sm:$0xff]   ;;  %v2112_v54 = vld [vmem:[%s2742_s3 + $0x160] sm:$0xff]   ;;  %v2116_v58 = vld [vmem:[%s2742_s3 + $0x168] sm:$0xff]  }
  0x12   :  { %1854 = vmatprep.subr.bf16.mxu1 %v2077_v17  ;;  %v2111_v53 = vld [vmem:[%s2742_s3 + $0x198] sm:$0xff]   ;;  %v2113_v55 = vld [vmem:[%s2742_s3 + $0x1e0] sm:$0xff]   ;;  %v2117_v59 = vld [vmem:[%s2742_s3 + $0x1e8] sm:$0xff]  }
  0x13   :  { %v2114_v56 = vld [vmem:[%s2742_s3 + $0x120] sm:$0xff]   ;;  %v2118_v60 = vld [vmem:[%s2742_s3 + $0x128] sm:$0xff]   ;;  %v2120_v62 = vld [vmem:[%s2742_s3 + $0x170] sm:$0xff]  }
  0x14   :  { %1833 = vmatpush3.bf16.msra.mxu0 %v2078_v18  ;;  %v2115_v57 = vld [vmem:[%s2742_s3 + $0x1a0] sm:$0xff]   ;;  %v2119_v61 = vld [vmem:[%s2742_s3 + $0x1a8] sm:$0xff]   ;;  %v2121_v63 = vld [vmem:[%s2742_s3 + $0x1f0] sm:$0xff]  }
  0x15   :  { %1855 = vmatpush3.bf16.msra.mxu1 %v2079_v19  ;;  %1834 = vmatprep.subr.bf16.mxu0 %v2080_v20  ;;  %v2122_v0 = vld [vmem:[%s2742_s3 + $0x130] sm:$0xff]   ;;  %v2124_v2 = vld [vmem:[%s2742_s3 + $0x178] sm:$0xff]   ;;  %v2132_v12 = vld [vmem:[%s2744_s2 + $0x40] sm:$0xff]  }
  0x16   :  { %1856 = vmatprep.subr.bf16.mxu1 %v2081_v21  ;;  %v2123_v1 = vld [vmem:[%s2742_s3 + $0x1b0] sm:$0xff]   ;;  %v2125_v3 = vld [vmem:[%s2742_s3 + $0x1f8] sm:$0xff]   ;;  %v2133_v14 = vld [vmem:[%s2742_s3 + $0x200] sm:$0xff]  }
  0x17   :  { %v2126_v4 = vld [vmem:[%s2742_s3 + $0x138] sm:$0xff]   ;;  %v172_v6 = vld [vmem:[%s2743_s1 + $0x10] sm:$0xff]  ;;  %v2134_v15 = vld [vmem:[%s2744_s2] sm:$0xff]  }
  0x18   :  { %1835 = vmatpush3.bf16.msra.mxu0 %v2082_v22  ;;  %v2127_v5 = vld [vmem:[%s2742_s3 + $0x1b8] sm:$0xff]   ;;  %v1665_v7 = vcombine.low %v172_v6, %v172_v6  ;;  %v1666_v8 = vcombine.high %v172_v6, %v172_v6  ;;  %v2135_v16 = vld [vmem:[%s2744_s2 + $0x48] sm:$0xff]   ;;  %v2138_v19 = vld [vmem:[%s2744_s2 + $0x50] sm:$0xff]  }
  0x19   :  { %1857 = vmatpush3.bf16.msra.mxu1 %v2083_v23  ;;  %1836 = vmatprep.subr.bf16.mxu0 %v2084_v24  ;;  %v173_v9 = vld [vmem:[%s2743_s1 + $0x18] sm:$0xff]  ;;  %v2136_v17 = vld [vmem:[%s2742_s3 + $0x208] sm:$0xff]   ;;  %v2139_v20 = vld [vmem:[%s2742_s3 + $0x210] sm:$0xff]  }
  0x1a   :  { %1858 = vmatprep.subr.bf16.mxu1 %v2085_v25  ;;  %v1667_v10 = vcombine.low %v173_v9, %v173_v9  ;;  %v1668_v11 = vcombine.high %v173_v9, %v173_v9  ;;  %v2137_v18 = vld [vmem:[%s2744_s2 + $0x8] sm:$0xff]   ;;  %v2140_v21 = vld [vmem:[%s2744_s2 + $0x10] sm:$0xff]   ;;  %v2141_v22 = vld [vmem:[%s2744_s2 + $0x58] sm:$0xff]  }
  0x1b   :  { %v2142_v23 = vld [vmem:[%s2742_s3 + $0x218] sm:$0xff]   ;;  %v2144_v25 = vld [vmem:[%s2744_s2 + $0x60] sm:$0xff]   ;;  %v2151_v32 = vld [vmem:[%s2742_s3 + $0x230] sm:$0xff]  }
  0x1c   :  { %1837 = vmatpush3.bf16.msra.mxu0 %v2086_v26  ;;  %v2143_v24 = vld [vmem:[%s2744_s2 + $0x18] sm:$0xff]   ;;  %v2145_v26 = vld [vmem:[%s2742_s3 + $0x220] sm:$0xff]   ;;  %v23_v9 = vld [vmem:[%s2745_s0 + $0x10] sm:$0xff] }
  0x1d   :  { %1859 = vmatpush3.bf16.msra.mxu1 %v2087_v27  ;;  %1838 = vmatprep.subr.bf16.mxu0 %v2088_v28  ;;  %v2146_v27 = vld [vmem:[%s2744_s2 + $0x20] sm:$0xff]   ;;  %v2147_v28 = vld [vmem:[%s2744_s2 + $0x68] sm:$0xff]   ;;  %v2154_v37 = vld [vmem:[%s2742_s3 + $0x238] sm:$0xff]  }
  0x1e   :  { %1860 = vmatprep.subr.bf16.mxu1 %v2089_v29  ;;  %v2148_v29 = vld [vmem:[%s2742_s3 + $0x228] sm:$0xff]   ;;  %v21_v33 = vld [vmem:[%s2745_s0] sm:$0xff]  ;;  %v2187_v6 = vld [vmem:[%s2744_s2 + $0xf8] sm:$0xff]  }
  0x1f   :  { %v1743_v35 = vcombine.high %v21_v33, %v21_v33 }
  0x20   :  { %1839 = vmatpush3.bf16.msra.mxu0 %v2090_v30  ;;  %v2149_v30 = vld [vmem:[%s2744_s2 + $0x28] sm:$0xff]  }
  0x21   :  { %1861 = vmatpush3.bf16.msra.mxu1 %v2091_v31  ;;  %1868 = vmatprep.subr.bf16.mxu0 %v2096_v38  ;;  %v2150_v31 = vld [vmem:[%s2744_s2 + $0x70] sm:$0xff]   ;;  %v2155_v38 = vld [vmem:[%s2744_s2 + $0x38] sm:$0xff]  }
  0x22   :  { %1890 = vmatprep.subr.bf16.mxu1 %v2097_v39  ;;  %v2159_v39 = vld [vmem:[%s2744_s2 + $0xc0] sm:$0xff]  }
  0x23   :  { %816 = vmatmul.mubr.bf16.vlgmr.msra.gmra.mrb[0].mxu0 %v1661_v34  ;;  %v2152_v34 = vld [vmem:[%s2744_s2 + $0x30] sm:$0xff]  }
  0x24   :  { %856 = vmatmul.mubr.bf16.vlgmr.msra.gmra.mrb[0].mxu1 %v1663_v36  ;;  %1869 = vmatpush3.bf16.msra.mxu0 %v2098_v40  ;;  %v2153_v36 = vld [vmem:[%s2744_s2 + $0x78] sm:$0xff]   ;;  %v2158_v40 = vld [vmem:[%s2743_s1 + $0x20] ss:$0 sps:$4 sm:$0xff]  }
  0x25   :  { %1891 = vmatpush3.bf16.msra.mxu1 %v2099_v41  ;;  %1870 = vmatprep.subr.bf16.mxu0 %v2100_v42  ;;  %v2161_v41 = vld [vmem:[%s2744_s2 + $0x140] sm:$0xff]  }
  0x26   :  { %1892 = vmatprep.subr.bf16.mxu1 %v2101_v43  ;;  %895 = vmatprep.mubr.bf16.mxu0 %v1666_v8  ;;  %v2160_v42 = vld [vmem:[%s2744_s2 + $0x80] sm:$0xff]   ;;  %v1742_v43 = vcombine.low %v21_v33, %v21_v33  ;;  %v2189_v8 = vld [vmem:[%s2744_s2 + $0x178] sm:$0xff]  }
  0x27   :  { %935 = vmatprep.mubr.bf16.mxu1 %v1668_v11  ;;  %v2188_v11 = vld [vmem:[%s2744_s2 + $0xb8] sm:$0xff]  }
  0x28   :  { %1871 = vmatpush3.bf16.msra.mxu0 %v2102_v44  ;;  %v2162_v44 = vld [vmem:[%s2744_s2 + $0x100] sm:$0xff]  }
  0x29   :  { %1893 = vmatpush3.bf16.msra.mxu1 %v2103_v45  ;;  %1872 = vmatprep.subr.bf16.mxu0 %v2104_v46  ;;  %v2163_v45 = vld [vmem:[%s2744_s2 + $0xc8] sm:$0xff]  }
  0x2a   :  { %1894 = vmatprep.subr.bf16.mxu1 %v2105_v47  ;;  %v2165_v46 = vld [vmem:[%s2744_s2 + $0x148] sm:$0xff]  }
  0x2b   :  { %v2164_v47 = vld [vmem:[%s2744_s2 + $0x88] sm:$0xff]  }
  0x2c   :  { %1873 = vmatpush3.bf16.msra.mxu0 %v2106_v48  ;;  %v2166_v48 = vld [vmem:[%s2744_s2 + $0x108] sm:$0xff]  }
  0x2d   :  { %1895 = vmatpush3.bf16.msra.mxu1 %v2107_v49  ;;  %1874 = vmatprep.subr.bf16.mxu0 %v2108_v50  ;;  %v2167_v49 = vld [vmem:[%s2744_s2 + $0xd0] sm:$0xff]  }
  0x2e   :  { %1896 = vmatprep.subr.bf16.mxu1 %v2109_v51  ;;  %v2169_v50 = vld [vmem:[%s2744_s2 + $0x150] sm:$0xff]  }
  0x2f   :  { %v2168_v51 = vld [vmem:[%s2744_s2 + $0x90] sm:$0xff]  }
  0x30   :  { %1875 = vmatpush3.bf16.msra.mxu0 %v2110_v52  ;;  %v2170_v52 = vld [vmem:[%s2744_s2 + $0x110] sm:$0xff]  }
  0x31   :  { %1897 = vmatpush3.bf16.msra.mxu1 %v2111_v53  ;;  %1876 = vmatprep.subr.bf16.mxu0 %v2112_v54  ;;  %v2171_v53 = vld [vmem:[%s2744_s2 + $0xd8] sm:$0xff]  }
  0x32   :  { %1898 = vmatprep.subr.bf16.mxu1 %v2113_v55  ;;  %v2173_v54 = vld [vmem:[%s2744_s2 + $0x158] sm:$0xff]  }
  0x33   :  { %v2172_v55 = vld [vmem:[%s2744_s2 + $0x98] sm:$0xff]  }
  0x34   :  { %1877 = vmatpush3.bf16.msra.mxu0 %v2114_v56  ;;  %v2174_v56 = vld [vmem:[%s2744_s2 + $0x118] sm:$0xff]  }
  0x35   :  { %1899 = vmatpush3.bf16.msra.mxu1 %v2115_v57  ;;  %1878 = vmatprep.subr.bf16.mxu0 %v2116_v58  ;;  %v2175_v57 = vld [vmem:[%s2744_s2 + $0xe0] sm:$0xff]  }
  0x36   :  { %1900 = vmatprep.subr.bf16.mxu1 %v2117_v59  ;;  %v2177_v58 = vld [vmem:[%s2744_s2 + $0x160] sm:$0xff]  }
  0x37   :  { %v2176_v59 = vld [vmem:[%s2744_s2 + $0xa0] sm:$0xff]  }
  0x38   :  { %1879 = vmatpush3.bf16.msra.mxu0 %v2118_v60  ;;  %v2178_v60 = vld [vmem:[%s2744_s2 + $0x120] sm:$0xff]  }
  0x39   :  { %1901 = vmatpush3.bf16.msra.mxu1 %v2119_v61  ;;  %1880 = vmatprep.subr.bf16.mxu0 %v2120_v62  ;;  %v2179_v61 = vld [vmem:[%s2744_s2 + $0xe8] sm:$0xff]  }
  0x3a   :  { %1902 = vmatprep.subr.bf16.mxu1 %v2121_v63  ;;  %v2181_v62 = vld [vmem:[%s2744_s2 + $0x168] sm:$0xff]  }
  0x3b   :  { %v2180_v63 = vld [vmem:[%s2744_s2 + $0xa8] sm:$0xff]  }
  0x3c   :  { %1881 = vmatpush3.bf16.msra.mxu0 %v2122_v0  ;;  %v2182_v0 = vld [vmem:[%s2744_s2 + $0x128] sm:$0xff]  }
  0x3d   :  { %1903 = vmatpush3.bf16.msra.mxu1 %v2123_v1  ;;  %1882 = vmatprep.subr.bf16.mxu0 %v2124_v2  ;;  %v2183_v1 = vld [vmem:[%s2744_s2 + $0xf0] sm:$0xff]  }
  0x3e   :  { %1904 = vmatprep.subr.bf16.mxu1 %v2125_v3  ;;  %v2185_v2 = vld [vmem:[%s2744_s2 + $0x170] sm:$0xff]  }
  0x3f   :  { %v2184_v3 = vld [vmem:[%s2744_s2 + $0xb0] sm:$0xff]  }
  0x40   :  { %1883 = vmatpush3.bf16.msra.mxu0 %v2126_v4  ;;  %v2186_v4 = vld [vmem:[%s2744_s2 + $0x130] sm:$0xff]  }
  0x41   :  { %1905 = vmatpush3.bf16.msra.mxu1 %v2127_v5  ;;  %2018 = vmatprep.subr.bf16.mxu0 %v2222_v13  ;;  %v22_v5 = vld [vmem:[%s2745_s0 + $0x8] sm:$0xff] }
  0x42   :  { %1921 = vmatprep.subr.bf16.mxu1 %v2132_v12  ;;  %v2192_v12 = vld [vmem:[%s2744_s2 + $0x138] sm:$0xff]  }
  0x43   :  { %896 = vmatmul.mubr.bf16.vlgmr.msra.gmra.mrb[4].mxu0 %v1665_v7  ;;  %v1745_v7 = vcombine.high %v22_v5, %v22_v5 }
  0x44   :  { %936 = vmatmul.mubr.bf16.vlgmr.msra.gmra.mrb[4].mxu1 %v1667_v10  ;;  %2019 = vmatpush3.bf16.msra.mxu0 %v2133_v14  ;;  %v1747_v10 = vcombine.high %v23_v9, %v23_v9  ;;  %v2193_v14 = vld [vmem:[%s2744_s2 + $0x1c0] sm:$0xff]  }
  0x45   :  { %1922 = vmatpush3.bf16.msra.mxu1 %v2134_v15  ;;  %2020 = vmatprep.subr.bf16.mxu0 %v2222_v13  ;;  %v1744_v15 = vcombine.low %v22_v5, %v22_v5 }
  0x46   :  { %1923 = vmatprep.subr.bf16.mxu1 %v2135_v16  ;;  %2034 = vmatprep.mubr.msk.bf16.mxu0 %vm2223_vm0, %v2222_v13  ;;  %v1746_v16 = vcombine.low %v23_v9, %v23_v9 }
  0x47   :  { %1479 = vmatprep.mubr.bf16.mxu1 %v1743_v35  ;;  %v2212_v35 = vld [vmem:[%s2744_s2 + $0x228] sm:$0xff]  }
  0x48   :  { %2021 = vmatpush3.bf16.msra.mxu0 %v2136_v17  ;;  %v2196_v17 = vld [vmem:[%s2744_s2 + $0x180] sm:$0xff]  }
  0x49   :  { %1924 = vmatpush3.bf16.msra.mxu1 %v2137_v18  ;;  %2022 = vmatprep.subr.bf16.mxu0 %v2222_v13  ;;  %v2197_v18 = vld [vmem:[%s2744_s2 + $0x200] sm:$0xff]  }
  0x4a   :  { %1925 = vmatprep.subr.bf16.mxu1 %v2138_v19  ;;  %v2198_v19 = vld [vmem:[%s2744_s2 + $0x1c8] sm:$0xff]  }
  0x4c   :  { %2023 = vmatpush3.bf16.msra.mxu0 %v2139_v20  ;;  %v2199_v20 = vld [vmem:[%s2744_s2 + $0x188] sm:$0xff]  }
  0x4d   :  { %1926 = vmatpush3.bf16.msra.mxu1 %v2140_v21  ;;  %2024 = vmatprep.subr.bf16.mxu0 %v2222_v13  ;;  %v2200_v21 = vld [vmem:[%s2744_s2 + $0x208] sm:$0xff]  }
  0x4e   :  { %1927 = vmatprep.subr.bf16.mxu1 %v2141_v22  ;;  %v2201_v22 = vld [vmem:[%s2744_s2 + $0x1d0] sm:$0xff]  }
  0x50   :  { %2025 = vmatpush3.bf16.msra.mxu0 %v2142_v23  ;;  %v2202_v23 = vld [vmem:[%s2744_s2 + $0x190] sm:$0xff]  }
  0x51   :  { %1928 = vmatpush3.bf16.msra.mxu1 %v2143_v24  ;;  %2026 = vmatprep.subr.bf16.mxu0 %v2222_v13  ;;  %v2203_v24 = vld [vmem:[%s2744_s2 + $0x210] sm:$0xff]  }
  0x52   :  { %1929 = vmatprep.subr.bf16.mxu1 %v2144_v25  ;;  %v2204_v25 = vld [vmem:[%s2744_s2 + $0x1d8] sm:$0xff]  }
  0x54   :  { %2027 = vmatpush3.bf16.msra.mxu0 %v2145_v26  ;;  %v2205_v26 = vld [vmem:[%s2744_s2 + $0x198] sm:$0xff]  }
  0x55   :  { %1930 = vmatpush3.bf16.msra.mxu1 %v2146_v27  ;;  %2028 = vmatprep.subr.bf16.mxu0 %v2222_v13  ;;  %v2206_v27 = vld [vmem:[%s2744_s2 + $0x218] sm:$0xff]  }
  0x56   :  { %1931 = vmatprep.subr.bf16.mxu1 %v2147_v28  ;;  %v2207_v28 = vld [vmem:[%s2744_s2 + $0x1e0] sm:$0xff]  }
  0x58   :  { %2029 = vmatpush3.bf16.msra.mxu0 %v2148_v29  ;;  %v2208_v29 = vld [vmem:[%s2744_s2 + $0x1a0] sm:$0xff]  }
  0x59   :  { %1932 = vmatpush3.bf16.msra.mxu1 %v2149_v30  ;;  %2030 = vmatprep.subr.bf16.mxu0 %v2222_v13  ;;  %v2209_v30 = vld [vmem:[%s2744_s2 + $0x220] sm:$0xff]  }
  0x5a   :  { %1933 = vmatprep.subr.bf16.mxu1 %v2150_v31  ;;  %v24_v31 = vld [vmem:[%s2745_s0 + $0x18] sm:$0xff] }
  0x5b   :  { %v1749_v33 = vcombine.high %v24_v31, %v24_v31 }
  0x5c   :  { %2031 = vmatpush3.bf16.msra.mxu0 %v2151_v32  ;;  %v2210_v32 = vld [vmem:[%s2744_s2 + $0x1e8] sm:$0xff]  }
  0x5d   :  { %1934 = vmatpush3.bf16.msra.mxu1 %v2152_v34  ;;  %2032 = vmatprep.subr.bf16.mxu0 %v2222_v13  ;;  %v2211_v34 = vld [vmem:[%s2744_s2 + $0x1a8] sm:$0xff]  }
  0x5e   :  { %1935 = vmatprep.subr.bf16.mxu1 %v2153_v36  ;;  %v2213_v36 = vld [vmem:[%s2744_s2 + $0x1f0] sm:$0xff]  }
  0x60   :  { %2033 = vmatpush3.bf16.msra.mxu0 %v2154_v37  ;;  %v2214_v37 = vld [vmem:[%s2744_s2 + $0x1b0] sm:$0xff]  }
  0x61   :  { %1936 = vmatpush3.bf16.msra.mxu1 %v2155_v38  ;;  %1943 = vmatprep.subr.bf16.mxu0 %v2159_v39  ;;  %v2215_v38 = vld [vmem:[%s2744_s2 + $0x230] sm:$0xff]   ;;  %v2216_v39 = vld [vmem:[%s2744_s2 + $0x1f8] sm:$0xff]  }
  0x62   :  { %1965 = vmatprep.subr.bf16.mxu1 %v2161_v41  ;;  %v2220_v41 = vld [vmem:[%s2744_s2 + $0x238] sm:$0xff]  }
  0x63   :  { %2035 = vmatmul.mubr.bf16.vlgmr.msra.gmra.mrb[8].mxu0 %v2158_v40  ;;  %v2217_v40 = vld [vmem:[%s2744_s2 + $0x1b8] sm:$0xff]  }
  0x64   :  { %1480 = vmatmul.mubr.bf16.vlgmr.msra.gmra.mrb[8].mxu1 %v1742_v43  ;;  %1944 = vmatpush3.bf16.msra.mxu0 %v2160_v42  ;;  %v1748_v42 = vcombine.low %v24_v31, %v24_v31  ;;  %v2221_v43 = vld [vmem:[%s2745_s0 + $0x20] ss:$0 sps:$4 sm:$0xff]  }
  0x65   :  { %1966 = vmatpush3.bf16.msra.mxu1 %v2162_v44  ;;  %1945 = vmatprep.subr.bf16.mxu0 %v2163_v45 }
  0x66   :  { %1967 = vmatprep.subr.bf16.mxu1 %v2165_v46  ;;  %1519 = vmatprep.mubr.bf16.mxu0 %v1745_v7 }
  0x67   :  { %1559 = vmatprep.mubr.bf16.mxu1 %v1747_v10 }
  0x68   :  { %1946 = vmatpush3.bf16.msra.mxu0 %v2164_v47 }
  0x69   :  { %1968 = vmatpush3.bf16.msra.mxu1 %v2166_v48  ;;  %1947 = vmatprep.subr.bf16.mxu0 %v2167_v49 }
  0x6a   :  { %1969 = vmatprep.subr.bf16.mxu1 %v2169_v50 }
  0x6c   :  { %1948 = vmatpush3.bf16.msra.mxu0 %v2168_v51 }
  0x6d   :  { %1970 = vmatpush3.bf16.msra.mxu1 %v2170_v52  ;;  %1949 = vmatprep.subr.bf16.mxu0 %v2171_v53 }
  0x6e   :  { %1971 = vmatprep.subr.bf16.mxu1 %v2173_v54 }
  0x70   :  { %1950 = vmatpush3.bf16.msra.mxu0 %v2172_v55 }
  0x71   :  { %1972 = vmatpush3.bf16.msra.mxu1 %v2174_v56  ;;  %1951 = vmatprep.subr.bf16.mxu0 %v2175_v57 }
  0x72   :  { %1973 = vmatprep.subr.bf16.mxu1 %v2177_v58 }
  0x74   :  { %1952 = vmatpush3.bf16.msra.mxu0 %v2176_v59 }
  0x75   :  { %1974 = vmatpush3.bf16.msra.mxu1 %v2178_v60  ;;  %1953 = vmatprep.subr.bf16.mxu0 %v2179_v61 }
  0x76   :  { %1975 = vmatprep.subr.bf16.mxu1 %v2181_v62 }
  0x78   :  { %1954 = vmatpush3.bf16.msra.mxu0 %v2180_v63 }
  0x79   :  { %1976 = vmatpush3.bf16.msra.mxu1 %v2182_v0  ;;  %1955 = vmatprep.subr.bf16.mxu0 %v2183_v1 }
  0x7a   :  { %1977 = vmatprep.subr.bf16.mxu1 %v2185_v2 }
  0x7c   :  { %1956 = vmatpush3.bf16.msra.mxu0 %v2184_v3 }
  0x7d   :  { %1978 = vmatpush3.bf16.msra.mxu1 %v2186_v4  ;;  %1957 = vmatprep.subr.bf16.mxu0 %v2187_v6 }
  0x7e   :  { %1979 = vmatprep.subr.bf16.mxu1 %v2189_v8 }
  0x80   :  { %1958 = vmatpush3.bf16.msra.mxu0 %v2188_v11 }
  0x81   :  { %1980 = vmatpush3.bf16.msra.mxu1 %v2192_v12  ;;  %1987 = vmatprep.subr.bf16.mxu0 %v2193_v14 }
  0x82   :  { %2038 = vmatprep.subr.bf16.mxu1 %v2222_v13 }
  0x83   :  { %1520 = vmatmul.mubr.bf16.vlgmr.msra.gmra.mrb[12].mxu0 %v1744_v15 }
  0x84   :  { %1560 = vmatmul.mubr.bf16.vlgmr.msra.gmra.mrb[12].mxu1 %v1746_v16  ;;  %1988 = vmatpush3.bf16.msra.mxu0 %v2196_v17 }
  0x85   :  { %2039 = vmatpush3.bf16.msra.mxu1 %v2197_v18  ;;  %1989 = vmatprep.subr.bf16.mxu0 %v2198_v19 }
  0x86   :  { %2040 = vmatprep.subr.bf16.mxu1 %v2222_v13  ;;  %2054 = vmatprep.mubr.msk.bf16.mxu1 %vm2223_vm0, %v2222_v13 }
  0x87   :  { %1599 = vmatprep.mubr.bf16.mxu0 %v1749_v33 }
  0x88   :  { %1990 = vmatpush3.bf16.msra.mxu0 %v2199_v20 }
  0x89   :  { %2041 = vmatpush3.bf16.msra.mxu1 %v2200_v21  ;;  %1991 = vmatprep.subr.bf16.mxu0 %v2201_v22 }
  0x8a   :  { %2042 = vmatprep.subr.bf16.mxu1 %v2222_v13 }
  0x8c   :  { %1992 = vmatpush3.bf16.msra.mxu0 %v2202_v23 }
  0x8d   :  { %2043 = vmatpush3.bf16.msra.mxu1 %v2203_v24  ;;  %1993 = vmatprep.subr.bf16.mxu0 %v2204_v25 }
  0x8e   :  { %2044 = vmatprep.subr.bf16.mxu1 %v2222_v13 }
  0x90   :  { %1994 = vmatpush3.bf16.msra.mxu0 %v2205_v26 }
  0x91   :  { %2045 = vmatpush3.bf16.msra.mxu1 %v2206_v27  ;;  %1995 = vmatprep.subr.bf16.mxu0 %v2207_v28 }
  0x92   :  { %2046 = vmatprep.subr.bf16.mxu1 %v2222_v13 }
  0x94   :  { %1996 = vmatpush3.bf16.msra.mxu0 %v2208_v29 }
  0x95   :  { %2047 = vmatpush3.bf16.msra.mxu1 %v2209_v30  ;;  %1997 = vmatprep.subr.bf16.mxu0 %v2210_v32 }
  0x96   :  { %2048 = vmatprep.subr.bf16.mxu1 %v2222_v13 }
  0x98   :  { %1998 = vmatpush3.bf16.msra.mxu0 %v2211_v34 }
  0x99   :  { %2049 = vmatpush3.bf16.msra.mxu1 %v2212_v35  ;;  %1999 = vmatprep.subr.bf16.mxu0 %v2213_v36  ;;  %v1823_v36 = vld [vmem:[%s2746_s4] ss:$0 sm:$0xff] }
  0x9a   :  { %2050 = vmatprep.subr.bf16.mxu1 %v2222_v13 }
  0x9c   :  { %2000 = vmatpush3.bf16.msra.mxu0 %v2214_v37 }
  0x9d   :  { %2051 = vmatpush3.bf16.msra.mxu1 %v2215_v38  ;;  %2001 = vmatprep.subr.bf16.mxu0 %v2216_v39 }
  0x9e   :  { %2052 = vmatprep.subr.bf16.mxu1 %v2222_v13 }
  0xa0   :  { %2002 = vmatpush3.bf16.msra.mxu0 %v2217_v40 }
  0xa1   :  { %2053 = vmatpush3.bf16.msra.mxu1 %v2220_v41 }
  0xa3   :  { %1600 = vmatmul.mubr.bf16.vlgmr.msra.gmra.mrb[16].mxu0 %v1748_v42 }
  0xa4   :  { %2055 = vmatmul.mubr.bf16.vlgmr.msra.gmra.mrb[16].mxu1 %v2221_v43 }
  0xf6   :  { %v1840_v44 = vpop.f32.mrb[0].mxu0 }
  0xf7   :  { %v1862_v45 = vpop.f32.mrb[0].mxu1  ;;  %v1841_v46 = vpop.f32.mrb[1].mxu0 }
  0xf8   :  { %v1863_v47 = vpop.f32.mrb[1].mxu1  ;;  %v1842_v48 = vadd.f32 %v1841_v46, %v1840_v44  ;;  %v1843_v50 = vpop.f32.mrb[2].mxu0 }
  0xf9   :  { %v1864_v49 = vadd.f32 %v1863_v47, %v1862_v45  ;;  %v1865_v51 = vpop.f32.mrb[2].mxu1  ;;  %v1844_v52 = vpop.f32.mrb[3].mxu0 }
  0xfa   :  { %v1866_v53 = vpop.f32.mrb[3].mxu1 }
  0xfb   :  { %v858_v13 = vadd.f32 %v1864_v49, %v1842_v48 }
 0x116   :  { %v1884_v54 = vpop.f32.mrb[4].mxu0 }
 0x117   :  { %v1906_v55 = vpop.f32.mrb[4].mxu1  ;;  %v1885_v56 = vpop.f32.mrb[5].mxu0 }
 0x118   :  { %v1907_v57 = vpop.f32.mrb[5].mxu1  ;;  %v1886_v58 = vadd.f32 %v1885_v56, %v1884_v54  ;;  %v1887_v59 = vpop.f32.mrb[6].mxu0 }
 0x119   :  { %v1908_v60 = vadd.f32 %v1907_v57, %v1906_v55  ;;  %v1909_v61 = vpop.f32.mrb[6].mxu1  ;;  %v1888_v62 = vpop.f32.mrb[7].mxu0 }
 0x11a   :  { %v1910_v63 = vpop.f32.mrb[7].mxu1  ;;  %v898_v0 = vadd.f32 %v1886_v58, %v858_v13 }
 0x11c   :  { %v938_v1 = vadd.f32 %v1908_v60, %v898_v0 }
 0x136   :  { %v977_v2 = vpop.f32.mrb[8].mxu0 }
 0x137   :  { %v1937_v3 = vpop.f32.mrb[8].mxu1  ;;  %v978_v4 = vadd.f32 %v977_v2, %v938_v1  ;;  %v2036_v5 = vpop.f32.mrb[9].mxu0 }
 0x138   :  { %v1938_v6 = vpop.f32.mrb[9].mxu1  ;;  %v980_v8 = vpop.f32.mrb[10].mxu0 }
 0x139   :  { %v1939_v7 = vadd.f32 %v1938_v6, %v1937_v3  ;;  %v1940_v9 = vpop.f32.mrb[10].mxu1  ;;  %v2037_v10 = vpop.f32.mrb[11].mxu0 }
 0x13a   :  { %v1941_v11 = vpop.f32.mrb[11].mxu1 }
 0x13b   :  { %v1482_v12 = vadd.f32 %v1939_v7, %v978_v4 }
 0x156   :  { %v1959_v14 = vpop.f32.mrb[12].mxu0 }
 0x157   :  { %v1981_v15 = vpop.f32.mrb[12].mxu1  ;;  %v1960_v16 = vpop.f32.mrb[13].mxu0 }
 0x158   :  { %v1982_v17 = vpop.f32.mrb[13].mxu1  ;;  %v1961_v18 = vadd.f32 %v1960_v16, %v1959_v14  ;;  %v1962_v19 = vpop.f32.mrb[14].mxu0 }
 0x159   :  { %v1983_v20 = vadd.f32 %v1982_v17, %v1981_v15  ;;  %v1984_v21 = vpop.f32.mrb[14].mxu1  ;;  %v1963_v22 = vpop.f32.mrb[15].mxu0 }
 0x15a   :  { %v1985_v23 = vpop.f32.mrb[15].mxu1  ;;  %v1522_v24 = vadd.f32 %v1961_v18, %v1482_v12 }
 0x15c   :  { %v1562_v25 = vadd.f32 %v1983_v20, %v1522_v24 }
 0x176   :  { %v2003_v26 = vpop.f32.mrb[16].mxu0 }
 0x177   :  { %v1641_v27 = vpop.f32.mrb[16].mxu1  ;;  %v2004_v28 = vpop.f32.mrb[17].mxu0 }
 0x178   :  { %v2056_v29 = vpop.f32.mrb[17].mxu1  ;;  %v2005_v30 = vadd.f32 %v2004_v28, %v2003_v26  ;;  %v2006_v31 = vpop.f32.mrb[18].mxu0 }
 0x179   :  { %v1644_v32 = vpop.f32.mrb[18].mxu1  ;;  %v2007_v33 = vpop.f32.mrb[19].mxu0 }
 0x17a   :  { %v2057_v34 = vpop.f32.mrb[19].mxu1  ;;  %v1602_v35 = vadd.f32 %v2005_v30, %v1562_v25 }
 0x17c   :  { %v1642_v37 = vadd.f32 %v1641_v27, %v1602_v35 }
 0x17e   :  { %v1654_v38 = vadd.f32 %v1823_v36, %v1642_v37 }
 0x180   :  { %v1655_v39 = vmax.f32 %v1654_v38, 0.0 }
 0x182   :  { %1656 = vst [vmem:[%s2747_s5] sm:$0xff] %v1655_v39 }

// kernel: unet_forward.26
= control target key start
LH: loop header
LB: loop body
LE: loop exit
PB: predicated region body
PF: predicated region fallthrough
CT: control target
= control target key end

     0   :  { %vm372_vm0 = vcmask 523264   ;;  %s884_s1 = inlined_call_operand.vmem [shape: bf16[576,128], index: 1, kind: input, shape index: {}]   ;;  %s885_s0 = inlined_call_operand.vmem [shape: bf16[32,576], index: 0, kind: input, shape index: {}]   ;;  %s886_s2 = inlined_call_operand.vmem [shape: f32[1,128], index: 2, kind: input, shape index: {}]   ;;  %s887_s3 = inlined_call_operand.vmem [shape: f32[32,128], index: 3, kind: output, shape index: {}]  }
   0x1   :  { %v661_v0 = vld [vmem:[%s884_s1 + $0x40] sm:$0xff]   ;;  %v665_v4 = vld [vmem:[%s884_s1 + $0x48] sm:$0xff]   ;;  %v669_v8 = vld [vmem:[%s884_s1 + $0x50] sm:$0xff]  }
   0x2   :  { %v662_v1 = vld [vmem:[%s884_s1] sm:$0xff]   ;;  %587 = vmatprep.subr.bf16.mxu0 %v661_v0  ;;  %v666_v5 = vld [vmem:[%s884_s1 + $0x8] sm:$0xff]   ;;  %v670_v9 = vld [vmem:[%s884_s1 + $0x10] sm:$0xff]  }
   0x3   :  { %v663_v2 = vld [vmem:[%s884_s1 + $0xc0] sm:$0xff]   ;;  %588 = vmatpush3.bf16.msra.mxu0 %v662_v1  ;;  %v667_v6 = vld [vmem:[%s884_s1 + $0xc8] sm:$0xff]   ;;  %v671_v10 = vld [vmem:[%s884_s1 + $0xd0] sm:$0xff]  }
   0x4   :  { %v664_v3 = vld [vmem:[%s884_s1 + $0x80] sm:$0xff]   ;;  %615 = vmatprep.subr.bf16.mxu1 %v663_v2  ;;  %589 = vmatprep.subr.bf16.mxu0 %v665_v4  ;;  %v668_v7 = vld [vmem:[%s884_s1 + $0x88] sm:$0xff]   ;;  %v672_v11 = vld [vmem:[%s884_s1 + $0x90] sm:$0xff]  }
   0x5   :  { %616 = vmatpush3.bf16.msra.mxu1 %v664_v3  ;;  %v673_v12 = vld [vmem:[%s884_s1 + $0x58] sm:$0xff]   ;;  %v677_v16 = vld [vmem:[%s884_s1 + $0x60] sm:$0xff]   ;;  %v681_v20 = vld [vmem:[%s884_s1 + $0x68] sm:$0xff]  }
   0x6   :  { %617 = vmatprep.subr.bf16.mxu1 %v667_v6  ;;  %v674_v13 = vld [vmem:[%s884_s1 + $0x18] sm:$0xff]   ;;  %v678_v17 = vld [vmem:[%s884_s1 + $0x20] sm:$0xff]   ;;  %v682_v21 = vld [vmem:[%s884_s1 + $0x28] sm:$0xff]  }
   0x7   :  { %590 = vmatpush3.bf16.msra.mxu0 %v666_v5  ;;  %v675_v14 = vld [vmem:[%s884_s1 + $0xd8] sm:$0xff]   ;;  %v679_v18 = vld [vmem:[%s884_s1 + $0xe0] sm:$0xff]   ;;  %v683_v22 = vld [vmem:[%s884_s1 + $0xe8] sm:$0xff]  }
   0x8   :  { %591 = vmatprep.subr.bf16.mxu0 %v669_v8  ;;  %v676_v15 = vld [vmem:[%s884_s1 + $0x98] sm:$0xff]   ;;  %v680_v19 = vld [vmem:[%s884_s1 + $0xa0] sm:$0xff]   ;;  %v684_v23 = vld [vmem:[%s884_s1 + $0xa8] sm:$0xff]  }
   0x9   :  { %618 = vmatpush3.bf16.msra.mxu1 %v668_v7  ;;  %v685_v24 = vld [vmem:[%s884_s1 + $0x70] sm:$0xff]   ;;  %v689_v28 = vld [vmem:[%s884_s1 + $0x78] sm:$0xff]   ;;  %v696_v34 = vld [vmem:[%s884_s1 + $0x100] sm:$0xff]  }
   0xa   :  { %619 = vmatprep.subr.bf16.mxu1 %v671_v10  ;;  %v686_v25 = vld [vmem:[%s884_s1 + $0x30] sm:$0xff]   ;;  %v690_v29 = vld [vmem:[%s884_s1 + $0x38] sm:$0xff]   ;;  %v699_v36 = vld [vmem:[%s885_s0 + $0xc] ss:$20 sps:$4 sm:$0xff]  }
   0xb   :  { %592 = vmatpush3.bf16.msra.mxu0 %v670_v9  ;;  %v687_v26 = vld [vmem:[%s884_s1 + $0xf0] sm:$0xff]   ;;  %v691_v30 = vld [vmem:[%s884_s1 + $0xf8] sm:$0xff]   ;;  %v700_v37 = vld [vmem:[%s884_s1 + $0x108] sm:$0xff]   ;;  %460 = vmatprep.mubr.bf16.mxu1 %v699_v36 }
   0xc   :  { %593 = vmatprep.subr.bf16.mxu0 %v673_v12  ;;  %v688_v27 = vld [vmem:[%s884_s1 + $0xb0] sm:$0xff]   ;;  %v694_v32 = vld [vmem:[%s885_s0 + $0x4] ss:$20 sps:$4 sm:$0xff]   ;;  %v697_v35 = vld [vmem:[%s885_s0 + $0x8] ss:$20 sps:$4 sm:$0xff]  }
   0xd   :  { %620 = vmatpush3.bf16.msra.mxu1 %v672_v11  ;;  %v692_v31 = vld [vmem:[%s885_s0] ss:$20 sps:$4 sm:$0xff]   ;;  %v695_v33 = vld [vmem:[%s884_s1 + $0xb8] sm:$0xff]   ;;  %411 = vmatprep.mubr.bf16.mxu0 %v694_v32  ;;  %v707_v42 = vld [vmem:[%s885_s0 + $0x30] ss:$20 sps:$4 sm:$0xff]  }
   0xe   :  { %621 = vmatprep.subr.bf16.mxu1 %v675_v14  ;;  %v701_v38 = vld [vmem:[%s885_s0 + $0x2c] ss:$20 sps:$4 sm:$0xff]   ;;  %v703_v39 = vld [vmem:[%s885_s0 + $0x28] ss:$20 sps:$4 sm:$0xff]   ;;  %v704_v40 = vld [vmem:[%s884_s1 + $0x110] sm:$0xff]  }
   0xf   :  { %594 = vmatpush3.bf16.msra.mxu0 %v674_v13  ;;  %v705_v41 = vld [vmem:[%s885_s0 + $0x34] ss:$20 sps:$4 sm:$0xff]   ;;  %v708_v43 = vld [vmem:[%s884_s1 + $0x118] sm:$0xff]   ;;  %v709_v44 = vld [vmem:[%s885_s0 + $0x10] ss:$20 sps:$4 sm:$0xff]  }
  0x10   :  { %595 = vmatprep.subr.bf16.mxu0 %v677_v16  ;;  %v710_v45 = vld [vmem:[%s885_s0 + $0x38] ss:$20 sps:$4 sm:$0xff]   ;;  %v538_v47 = vld [vmem:[%s886_s2] ss:$0 sm:$0xff] }
  0x11   :  { %622 = vmatpush3.bf16.msra.mxu1 %v676_v15 }
  0x12   :  { %623 = vmatprep.subr.bf16.mxu1 %v679_v18 }
  0x13   :  { %596 = vmatpush3.bf16.msra.mxu0 %v678_v17 }
  0x14   :  { %597 = vmatprep.subr.bf16.mxu0 %v681_v20 }
  0x15   :  { %624 = vmatpush3.bf16.msra.mxu1 %v680_v19 }
  0x16   :  { %625 = vmatprep.subr.bf16.mxu1 %v683_v22 }
  0x17   :  { %598 = vmatpush3.bf16.msra.mxu0 %v682_v21 }
  0x18   :  { %599 = vmatprep.subr.bf16.mxu0 %v685_v24 }
  0x19   :  { %626 = vmatpush3.bf16.msra.mxu1 %v684_v23 }
  0x1a   :  { %627 = vmatprep.subr.bf16.mxu1 %v687_v26 }
  0x1b   :  { %600 = vmatpush3.bf16.msra.mxu0 %v686_v25 }
  0x1c   :  { %601 = vmatprep.subr.bf16.mxu0 %v689_v28 }
  0x1d   :  { %628 = vmatpush3.bf16.msra.mxu1 %v688_v27 }
  0x1e   :  { %629 = vmatprep.subr.bf16.mxu1 %v691_v30 }
  0x1f   :  { %602 = vmatpush3.bf16.msra.mxu0 %v690_v29 }
  0x20   :  { %649 = vmatprep.subr.bf16.mxu0 %v696_v34 }
  0x21   :  { %630 = vmatpush3.bf16.msra.mxu1 %v695_v33 }
  0x22   :  { %412 = vmatmul.mubr.bf16.vlgmr.msra.gmra.mrb[0].mxu0 %v692_v31 }
  0x23   :  { %650 = vmatpush3.bf16.msra.mxu0 %v696_v34  ;;  %419 = vmatprep.mubr.bf16.mxu0 %v701_v38 }
  0x24   :  { %461 = vmatmul.mubr.bf16.vlgmr.msra.gmra.mrb[0].mxu1 %v697_v35  ;;  %651 = vmatprep.subr.bf16.mxu0 %v700_v37 }
  0x25   :  { %468 = vmatprep.mubr.bf16.mxu1 %v705_v41 }
  0x27   :  { %652 = vmatpush3.bf16.msra.mxu0 %v700_v37 }
  0x28   :  { %653 = vmatprep.subr.bf16.mxu0 %v704_v40 }
  0x2a   :  { %420 = vmatmul.mubr.bf16.gmra.mrb[4].mxu0 %v703_v39 }
  0x2b   :  { %657 = vmatprep.mubr.msk.bf16.mxu0 %vm372_vm0, %v709_v44  ;;  %654 = vmatpush3.bf16.msra.mxu0 %v704_v40 }
  0x2c   :  { %469 = vmatmul.mubr.bf16.gmra.mrb[4].mxu1 %v707_v42  ;;  %655 = vmatprep.subr.bf16.mxu0 %v708_v43 }
  0x2f   :  { %656 = vmatpush3.bf16.msra.mxu0 %v708_v43 }
  0x32   :  { %658 = vmatmul.mubr.msk.bf16.vlgmr.msra.gmra.mrb[8].mxu0 %vm372_vm0, %v710_v45 }
  0xf5   :  { %v603_v46 = vpop.f32.mrb[0].mxu0 }
  0xf6   :  { %v604_v48 = vpop.f32.mrb[1].mxu0 }
  0xf7   :  { %v605_v49 = vadd.f32 %v604_v48, %v603_v46  ;;  %v606_v50 = vpop.f32.mrb[2].mxu0  ;;  %v631_v51 = vpop.f32.mrb[0].mxu1 }
  0xf8   :  { %v607_v52 = vpop.f32.mrb[3].mxu0  ;;  %v632_v55 = vpop.f32.mrb[1].mxu1 }
  0xf9   :  { %v414_v53 = vadd.f32 %v605_v49, %v538_v47  ;;  %v608_v54 = vadd.f32 %v607_v52, %v606_v50  ;;  %v633_v56 = vadd.f32 %v632_v55, %v631_v51  ;;  %v634_v57 = vpop.f32.mrb[2].mxu1 }
  0xfa   :  { %v635_v59 = vpop.f32.mrb[3].mxu1 }
  0xfb   :  { %v417_v58 = vadd.f32 %v608_v54, %v538_v47  ;;  %v636_v60 = vadd.f32 %v635_v59, %v634_v57  ;;  %v463_v61 = vadd.f32 %v633_v56, %v414_v53 }
  0xfd   :  { %v609_v62 = vpop.f32.mrb[4].mxu0  ;;  %v466_v0 = vadd.f32 %v636_v60, %v417_v58 }
  0xfe   :  { %v610_v63 = vpop.f32.mrb[5].mxu0 }
  0xff   :  { %v611_v1 = vadd.f32 %v610_v63, %v609_v62  ;;  %v612_v2 = vpop.f32.mrb[6].mxu0  ;;  %v637_v3 = vpop.f32.mrb[4].mxu1 }
 0x100   :  { %v613_v4 = vpop.f32.mrb[7].mxu0  ;;  %v638_v7 = vpop.f32.mrb[5].mxu1 }
 0x101   :  { %v422_v5 = vadd.f32 %v611_v1, %v538_v47  ;;  %v614_v6 = vadd.f32 %v613_v4, %v612_v2  ;;  %v639_v8 = vadd.f32 %v638_v7, %v637_v3  ;;  %v640_v9 = vpop.f32.mrb[6].mxu1 }
 0x102   :  { %v641_v11 = vpop.f32.mrb[7].mxu1 }
 0x103   :  { %v425_v10 = vadd.f32 %v614_v6, %v538_v47  ;;  %v642_v12 = vadd.f32 %v641_v11, %v640_v9  ;;  %v471_v13 = vadd.f32 %v639_v8, %v422_v5 }
 0x105   :  { %v659_v14 = vpop.f32.mrb[8].mxu0  ;;  %v474_v15 = vadd.f32 %v642_v12, %v425_v10 }
 0x106   :  { %v520_v16 = vadd.f32 %v659_v14, %v471_v13  ;;  %v511_v17 = vpop.f32.mrb[9].mxu0 }
 0x107   :  { %v512_v18 = vadd.f32 %v511_v17, %v463_v61  ;;  %v660_v19 = vpop.f32.mrb[10].mxu0 }
 0x108   :  { %v528_v20 = vmax.f32 %v520_v16, 0.0  ;;  %v523_v21 = vadd.f32 %v660_v19, %v474_v15  ;;  %v514_v22 = vpop.f32.mrb[11].mxu0 }
 0x109   :  { %v526_v23 = vmax.f32 %v512_v18, 0.0  ;;  %v515_v24 = vadd.f32 %v514_v22, %v466_v0 }
 0x10a   :  { %532 = vst [vmem:[%s887_s3 + $0x10] sm:$0xff] %v528_v20  ;;  %v529_v25 = vmax.f32 %v523_v21, 0.0 }
 0x10b   :  { %530 = vst [vmem:[%s887_s3] sm:$0xff] %v526_v23  ;;  %v527_v26 = vmax.f32 %v515_v24, 0.0 }
 0x10c   :  { %533 = vst [vmem:[%s887_s3 + $0x18] sm:$0xff] %v529_v25 }
 0x10d   :  { %531 = vst [vmem:[%s887_s3 + $0x8] sm:$0xff] %v527_v26 }

// kernel: unet_forward.22
= control target key start
LH: loop header
LB: loop body
LE: loop exit
PB: predicated region body
PF: predicated region fallthrough
CT: control target
= control target key end

     0   :  { %s7696_s1 = inlined_call_operand.vmem [shape: bf16[2304,512], index: 1, kind: input, shape index: {}]   ;;  %s7697_s0 = inlined_call_operand.vmem [shape: bf16[8,2304], index: 0, kind: input, shape index: {}]   ;;  %s7698_s2 = inlined_call_operand.vmem [shape: f32[1,512], index: 2, kind: input, shape index: {}]   ;;  %s7699_s3 = inlined_call_operand.vmem [shape: f32[8,512], index: 3, kind: output, shape index: {}]  }
   0x1   :  { %v4976_v0 = vld [vmem:[%s7696_s1 + $0x4] ss:$16 sps:$4 sm:$0xff]   ;;  %v4978_v1 = vld [vmem:[%s7696_s1 + $0xc] ss:$16 sps:$4 sm:$0xff]   ;;  %v4980_v2 = vld [vmem:[%s7696_s1] ss:$16 sps:$4 sm:$0xff]  }
   0x2   :  { %3564 = vmatprep.subr.bf16.mxu0 %v4976_v0  ;;  %v4981_v3 = vld [vmem:[%s7696_s1 + $0x8] ss:$16 sps:$4 sm:$0xff]   ;;  %3933 = vmatprep.subr.bf16.mxu1 %v4978_v1  ;;  %v4982_v4 = vld [vmem:[%s7696_s1 + $0x24] ss:$16 sps:$4 sm:$0xff]   ;;  %v4984_v5 = vld [vmem:[%s7696_s1 + $0x2c] ss:$16 sps:$4 sm:$0xff]  }
   0x3   :  { %3565 = vmatpush1.bf16.msra.mxu0 %v4980_v2  ;;  %3934 = vmatpush1.bf16.msra.mxu1 %v4981_v3  ;;  %v4986_v6 = vld [vmem:[%s7696_s1 + $0x20] ss:$16 sps:$4 sm:$0xff]   ;;  %v4987_v7 = vld [vmem:[%s7696_s1 + $0x28] ss:$16 sps:$4 sm:$0xff]   ;;  %v4988_v8 = vld [vmem:[%s7696_s1 + $0x44] ss:$16 sps:$4 sm:$0xff]  }
   0x4   :  { %3566 = vmatprep.subr.bf16.mxu0 %v4982_v4  ;;  %3935 = vmatprep.subr.bf16.mxu1 %v4984_v5  ;;  %v4990_v9 = vld [vmem:[%s7696_s1 + $0x4c] ss:$16 sps:$4 sm:$0xff]   ;;  %v4992_v10 = vld [vmem:[%s7696_s1 + $0x40] ss:$16 sps:$4 sm:$0xff]   ;;  %v4993_v11 = vld [vmem:[%s7696_s1 + $0x48] ss:$16 sps:$4 sm:$0xff]  }
   0x5   :  { %v4994_v12 = vld [vmem:[%s7696_s1 + $0x64] ss:$16 sps:$4 sm:$0xff]   ;;  %v4996_v13 = vld [vmem:[%s7696_s1 + $0x6c] ss:$16 sps:$4 sm:$0xff]   ;;  %v4998_v14 = vld [vmem:[%s7696_s1 + $0x60] ss:$16 sps:$4 sm:$0xff]  }
   0x6   :  { %v4999_v15 = vld [vmem:[%s7696_s1 + $0x68] ss:$16 sps:$4 sm:$0xff]   ;;  %v5000_v16 = vld [vmem:[%s7696_s1 + $0x84] ss:$16 sps:$4 sm:$0xff]   ;;  %v5002_v17 = vld [vmem:[%s7696_s1 + $0x8c] ss:$16 sps:$4 sm:$0xff]  }
   0x7   :  { %3567 = vmatpush1.bf16.msra.mxu0 %v4986_v6  ;;  %3936 = vmatpush1.bf16.msra.mxu1 %v4987_v7  ;;  %v5004_v18 = vld [vmem:[%s7696_s1 + $0x80] ss:$16 sps:$4 sm:$0xff]   ;;  %v5005_v19 = vld [vmem:[%s7696_s1 + $0x88] ss:$16 sps:$4 sm:$0xff]   ;;  %v5006_v20 = vld [vmem:[%s7696_s1 + $0xa4] ss:$16 sps:$4 sm:$0xff]  }
   0x8   :  { %3568 = vmatprep.subr.bf16.mxu0 %v4988_v8  ;;  %3937 = vmatprep.subr.bf16.mxu1 %v4990_v9  ;;  %v5008_v21 = vld [vmem:[%s7696_s1 + $0xac] ss:$16 sps:$4 sm:$0xff]   ;;  %v5010_v22 = vld [vmem:[%s7696_s1 + $0xa0] ss:$16 sps:$4 sm:$0xff]   ;;  %v5011_v23 = vld [vmem:[%s7696_s1 + $0xa8] ss:$16 sps:$4 sm:$0xff]  }
   0x9   :  { %v5012_v24 = vld [vmem:[%s7696_s1 + $0xc4] ss:$16 sps:$4 sm:$0xff]   ;;  %v5014_v25 = vld [vmem:[%s7696_s1 + $0xcc] ss:$16 sps:$4 sm:$0xff]   ;;  %v5016_v26 = vld [vmem:[%s7696_s1 + $0xc0] ss:$16 sps:$4 sm:$0xff]  }
   0xa   :  { %v5017_v27 = vld [vmem:[%s7696_s1 + $0xc8] ss:$16 sps:$4 sm:$0xff]   ;;  %v5018_v28 = vld [vmem:[%s7696_s1 + $0xe4] ss:$16 sps:$4 sm:$0xff]   ;;  %v5020_v29 = vld [vmem:[%s7696_s1 + $0xec] ss:$16 sps:$4 sm:$0xff]  }
   0xb   :  { %3569 = vmatpush1.bf16.msra.mxu0 %v4992_v10  ;;  %3938 = vmatpush1.bf16.msra.mxu1 %v4993_v11  ;;  %v5022_v30 = vld [vmem:[%s7696_s1 + $0xe0] ss:$16 sps:$4 sm:$0xff]   ;;  %v5023_v31 = vld [vmem:[%s7696_s1 + $0xe8] ss:$16 sps:$4 sm:$0xff]   ;;  %v5024_v32 = vld [vmem:[%s7696_s1 + $0x104] ss:$16 sps:$4 sm:$0xff]  }
   0xc   :  { %3570 = vmatprep.subr.bf16.mxu0 %v4994_v12  ;;  %3939 = vmatprep.subr.bf16.mxu1 %v4996_v13  ;;  %v5026_v33 = vld [vmem:[%s7696_s1 + $0x10c] ss:$16 sps:$4 sm:$0xff]   ;;  %v5028_v34 = vld [vmem:[%s7696_s1 + $0x100] ss:$16 sps:$4 sm:$0xff]   ;;  %v5029_v35 = vld [vmem:[%s7696_s1 + $0x108] ss:$16 sps:$4 sm:$0xff]  }
   0xd   :  { %v5030_v36 = vld [vmem:[%s7696_s1 + $0x124] ss:$16 sps:$4 sm:$0xff]   ;;  %v5032_v37 = vld [vmem:[%s7696_s1 + $0x12c] ss:$16 sps:$4 sm:$0xff]   ;;  %v5034_v38 = vld [vmem:[%s7696_s1 + $0x120] ss:$16 sps:$4 sm:$0xff]  }
   0xe   :  { %v5035_v39 = vld [vmem:[%s7696_s1 + $0x128] ss:$16 sps:$4 sm:$0xff]   ;;  %v5036_v40 = vld [vmem:[%s7696_s1 + $0x144] ss:$16 sps:$4 sm:$0xff]   ;;  %v5038_v41 = vld [vmem:[%s7696_s1 + $0x14c] ss:$16 sps:$4 sm:$0xff]  }
   0xf   :  { %3571 = vmatpush1.bf16.msra.mxu0 %v4998_v14  ;;  %3940 = vmatpush1.bf16.msra.mxu1 %v4999_v15  ;;  %v5040_v42 = vld [vmem:[%s7696_s1 + $0x140] ss:$16 sps:$4 sm:$0xff]   ;;  %v5041_v43 = vld [vmem:[%s7696_s1 + $0x148] ss:$16 sps:$4 sm:$0xff]   ;;  %v5042_v44 = vld [vmem:[%s7696_s1 + $0x164] ss:$16 sps:$4 sm:$0xff]  }
  0x10   :  { %3572 = vmatprep.subr.bf16.mxu0 %v5000_v16  ;;  %3941 = vmatprep.subr.bf16.mxu1 %v5002_v17  ;;  %v5044_v45 = vld [vmem:[%s7696_s1 + $0x16c] ss:$16 sps:$4 sm:$0xff]   ;;  %v14_v46 = vld [vmem:[%s7697_s0] sm:$0xff]  ;;  %v5047_v49 = vld [vmem:[%s7696_s1 + $0x168] ss:$16 sps:$4 sm:$0xff]  }
  0x11   :  { %v5046_v47 = vld [vmem:[%s7696_s1 + $0x160] ss:$16 sps:$4 sm:$0xff]   ;;  %v4315_v48 = vcombine.high %v14_v46, %v14_v46  ;;  %v5048_v50 = vld [vmem:[%s7696_s1 + $0x184] ss:$16 sps:$4 sm:$0xff]   ;;  %v5050_v51 = vld [vmem:[%s7696_s1 + $0x18c] ss:$16 sps:$4 sm:$0xff]   ;;  %v4314_v4 = vcombine.low %v14_v46, %v14_v46 }
  0x12   :  { %v5052_v52 = vld [vmem:[%s7696_s1 + $0x180] ss:$16 sps:$4 sm:$0xff]   ;;  %v5053_v53 = vld [vmem:[%s7696_s1 + $0x188] ss:$16 sps:$4 sm:$0xff]   ;;  %v5054_v54 = vld [vmem:[%s7696_s1 + $0x1a4] ss:$16 sps:$4 sm:$0xff]  }
  0x13   :  { %3573 = vmatpush1.bf16.msra.mxu0 %v5004_v18  ;;  %3942 = vmatpush1.bf16.msra.mxu1 %v5005_v19  ;;  %v5056_v55 = vld [vmem:[%s7696_s1 + $0x1ac] ss:$16 sps:$4 sm:$0xff]   ;;  %v5058_v56 = vld [vmem:[%s7696_s1 + $0x1a0] ss:$16 sps:$4 sm:$0xff]   ;;  %v5059_v57 = vld [vmem:[%s7696_s1 + $0x1a8] ss:$16 sps:$4 sm:$0xff]  }
  0x14   :  { %3574 = vmatprep.subr.bf16.mxu0 %v5006_v20  ;;  %3943 = vmatprep.subr.bf16.mxu1 %v5008_v21  ;;  %v5060_v58 = vld [vmem:[%s7696_s1 + $0x1c4] ss:$16 sps:$4 sm:$0xff]   ;;  %v5062_v59 = vld [vmem:[%s7696_s1 + $0x1cc] ss:$16 sps:$4 sm:$0xff]   ;;  %v5064_v60 = vld [vmem:[%s7696_s1 + $0x1c0] ss:$16 sps:$4 sm:$0xff]  }
  0x15   :  { %3596 = vmatprep.mubr.bf16.mxu0 %v4315_v48  ;;  %3965 = vmatprep.mubr.bf16.mxu1 %v4315_v48  ;;  %v5065_v61 = vld [vmem:[%s7696_s1 + $0x1c8] ss:$16 sps:$4 sm:$0xff]   ;;  %v5066_v62 = vld [vmem:[%s7696_s1 + $0x1e4] ss:$16 sps:$4 sm:$0xff]   ;;  %v5068_v63 = vld [vmem:[%s7696_s1 + $0x1ec] ss:$16 sps:$4 sm:$0xff]  }
  0x16   :  { %v5070_v0 = vld [vmem:[%s7696_s1 + $0x1e0] ss:$16 sps:$4 sm:$0xff]   ;;  %v5071_v1 = vld [vmem:[%s7696_s1 + $0x1e8] ss:$16 sps:$4 sm:$0xff]   ;;  %v5076_v2 = vld [vmem:[%s7696_s1 + $0x204] ss:$16 sps:$4 sm:$0xff]  }
  0x17   :  { %3575 = vmatpush1.bf16.msra.mxu0 %v5010_v22  ;;  %3944 = vmatpush1.bf16.msra.mxu1 %v5011_v23  ;;  %v5079_v3 = vld [vmem:[%s7696_s1 + $0x20c] ss:$16 sps:$4 sm:$0xff]   ;;  %v5074_v5 = vld [vmem:[%s7696_s1 + $0x200] ss:$16 sps:$4 sm:$0xff]   ;;  %v5077_v6 = vld [vmem:[%s7696_s1 + $0x208] ss:$16 sps:$4 sm:$0xff]  }
  0x18   :  { %3576 = vmatprep.subr.bf16.mxu0 %v5012_v24  ;;  %3945 = vmatprep.subr.bf16.mxu1 %v5014_v25  ;;  %v5082_v7 = vld [vmem:[%s7696_s1 + $0x224] ss:$16 sps:$4 sm:$0xff]   ;;  %v5085_v8 = vld [vmem:[%s7696_s1 + $0x22c] ss:$16 sps:$4 sm:$0xff]   ;;  %v5080_v9 = vld [vmem:[%s7696_s1 + $0x220] ss:$16 sps:$4 sm:$0xff]  }
  0x19   :  { %v5083_v10 = vld [vmem:[%s7696_s1 + $0x228] ss:$16 sps:$4 sm:$0xff]   ;;  %v5088_v11 = vld [vmem:[%s7696_s1 + $0x244] ss:$16 sps:$4 sm:$0xff]   ;;  %v5091_v12 = vld [vmem:[%s7696_s1 + $0x24c] ss:$16 sps:$4 sm:$0xff]  }
  0x1a   :  { %v5086_v13 = vld [vmem:[%s7696_s1 + $0x240] ss:$16 sps:$4 sm:$0xff]   ;;  %v5089_v14 = vld [vmem:[%s7696_s1 + $0x248] ss:$16 sps:$4 sm:$0xff]   ;;  %v5094_v15 = vld [vmem:[%s7696_s1 + $0x264] ss:$16 sps:$4 sm:$0xff]  }
  0x1b   :  { %3577 = vmatpush1.bf16.msra.mxu0 %v5016_v26  ;;  %3946 = vmatpush1.bf16.msra.mxu1 %v5017_v27  ;;  %v5097_v16 = vld [vmem:[%s7696_s1 + $0x26c] ss:$16 sps:$4 sm:$0xff]   ;;  %v5092_v17 = vld [vmem:[%s7696_s1 + $0x260] ss:$16 sps:$4 sm:$0xff]   ;;  %v5095_v18 = vld [vmem:[%s7696_s1 + $0x268] ss:$16 sps:$4 sm:$0xff]  }
  0x1c   :  { %3578 = vmatprep.subr.bf16.mxu0 %v5018_v28  ;;  %3947 = vmatprep.subr.bf16.mxu1 %v5020_v29  ;;  %v5100_v19 = vld [vmem:[%s7696_s1 + $0x284] ss:$16 sps:$4 sm:$0xff]   ;;  %v5103_v20 = vld [vmem:[%s7696_s1 + $0x28c] ss:$16 sps:$4 sm:$0xff]   ;;  %v5098_v21 = vld [vmem:[%s7696_s1 + $0x280] ss:$16 sps:$4 sm:$0xff]  }
  0x1d   :  { %v5101_v22 = vld [vmem:[%s7696_s1 + $0x288] ss:$16 sps:$4 sm:$0xff]   ;;  %v5106_v23 = vld [vmem:[%s7696_s1 + $0x2a4] ss:$16 sps:$4 sm:$0xff]   ;;  %v5109_v24 = vld [vmem:[%s7696_s1 + $0x2ac] ss:$16 sps:$4 sm:$0xff]  }
  0x1e   :  { %v5104_v25 = vld [vmem:[%s7696_s1 + $0x2a0] ss:$16 sps:$4 sm:$0xff]   ;;  %v5107_v26 = vld [vmem:[%s7696_s1 + $0x2a8] ss:$16 sps:$4 sm:$0xff]   ;;  %v5112_v27 = vld [vmem:[%s7696_s1 + $0x2c4] ss:$16 sps:$4 sm:$0xff]  }
  0x1f   :  { %3579 = vmatpush1.bf16.msra.mxu0 %v5022_v30  ;;  %3948 = vmatpush1.bf16.msra.mxu1 %v5023_v31  ;;  %v5115_v28 = vld [vmem:[%s7696_s1 + $0x2cc] ss:$16 sps:$4 sm:$0xff]   ;;  %v5110_v31 = vld [vmem:[%s7696_s1 + $0x2c0] ss:$16 sps:$4 sm:$0xff]   ;;  %v5137_v48 = vld [vmem:[%s7696_s1 + $0x348] ss:$16 sps:$4 sm:$0xff]  }
  0x20   :  { %3580 = vmatprep.subr.bf16.mxu0 %v5024_v32  ;;  %3949 = vmatprep.subr.bf16.mxu1 %v5026_v33  ;;  %v6154_v29 = vld [vmem:[%s7697_s0 + $0x8] sm:$0xff]  ;;  %v5118_v33 = vld [vmem:[%s7696_s1 + $0x2e4] ss:$16 sps:$4 sm:$0xff]  }
  0x21   :  { %v4317_v30 = vcombine.high %v6154_v29, %v6154_v29  ;;  %v5113_v32 = vld [vmem:[%s7696_s1 + $0x2c8] ss:$16 sps:$4 sm:$0xff]   ;;  %v5139_v46 = vld [vmem:[%s7696_s1 + $0x34c] ss:$16 sps:$4 sm:$0xff]  }
  0x23   :  { %3581 = vmatpush1.bf16.msra.mxu0 %v5028_v34  ;;  %3950 = vmatpush1.bf16.msra.mxu1 %v5029_v35  ;;  %v5121_v34 = vld [vmem:[%s7696_s1 + $0x2ec] ss:$16 sps:$4 sm:$0xff]   ;;  %v5116_v35 = vld [vmem:[%s7696_s1 + $0x2e0] ss:$16 sps:$4 sm:$0xff]  }
  0x24   :  { %3582 = vmatprep.subr.bf16.mxu0 %v5030_v36  ;;  %3951 = vmatprep.subr.bf16.mxu1 %v5032_v37  ;;  %v5119_v36 = vld [vmem:[%s7696_s1 + $0x2e8] ss:$16 sps:$4 sm:$0xff]   ;;  %v5124_v37 = vld [vmem:[%s7696_s1 + $0x304] ss:$16 sps:$4 sm:$0xff]  }
  0x27   :  { %3583 = vmatpush1.bf16.msra.mxu0 %v5034_v38  ;;  %3952 = vmatpush1.bf16.msra.mxu1 %v5035_v39  ;;  %v5127_v38 = vld [vmem:[%s7696_s1 + $0x30c] ss:$16 sps:$4 sm:$0xff]   ;;  %v5122_v39 = vld [vmem:[%s7696_s1 + $0x300] ss:$16 sps:$4 sm:$0xff]  }
  0x28   :  { %3584 = vmatprep.subr.bf16.mxu0 %v5036_v40  ;;  %3953 = vmatprep.subr.bf16.mxu1 %v5038_v41  ;;  %v5125_v40 = vld [vmem:[%s7696_s1 + $0x308] ss:$16 sps:$4 sm:$0xff]   ;;  %v5130_v41 = vld [vmem:[%s7696_s1 + $0x324] ss:$16 sps:$4 sm:$0xff]  }
  0x2b   :  { %3585 = vmatpush1.bf16.msra.mxu0 %v5040_v42  ;;  %3954 = vmatpush1.bf16.msra.mxu1 %v5041_v43  ;;  %v5133_v42 = vld [vmem:[%s7696_s1 + $0x32c] ss:$16 sps:$4 sm:$0xff]   ;;  %v5128_v43 = vld [vmem:[%s7696_s1 + $0x320] ss:$16 sps:$4 sm:$0xff]  }
  0x2c   :  { %3586 = vmatprep.subr.bf16.mxu0 %v5042_v44  ;;  %3955 = vmatprep.subr.bf16.mxu1 %v5044_v45  ;;  %v5131_v44 = vld [vmem:[%s7696_s1 + $0x328] ss:$16 sps:$4 sm:$0xff]   ;;  %v5136_v45 = vld [vmem:[%s7696_s1 + $0x344] ss:$16 sps:$4 sm:$0xff]  }
  0x2f   :  { %3587 = vmatpush1.bf16.msra.mxu0 %v5046_v47  ;;  %3956 = vmatpush1.bf16.msra.mxu1 %v5047_v49  ;;  %v5134_v47 = vld [vmem:[%s7696_s1 + $0x340] ss:$16 sps:$4 sm:$0xff]   ;;  %v5142_v49 = vld [vmem:[%s7696_s1 + $0x364] ss:$16 sps:$4 sm:$0xff]  }
  0x30   :  { %3588 = vmatprep.subr.bf16.mxu0 %v5048_v50  ;;  %3957 = vmatprep.subr.bf16.mxu1 %v5050_v51  ;;  %v5145_v50 = vld [vmem:[%s7696_s1 + $0x36c] ss:$16 sps:$4 sm:$0xff]   ;;  %v5140_v51 = vld [vmem:[%s7696_s1 + $0x360] ss:$16 sps:$4 sm:$0xff]  }
  0x33   :  { %3589 = vmatpush1.bf16.msra.mxu0 %v5052_v52  ;;  %3958 = vmatpush1.bf16.msra.mxu1 %v5053_v53  ;;  %v5143_v52 = vld [vmem:[%s7696_s1 + $0x368] ss:$16 sps:$4 sm:$0xff]   ;;  %v5148_v53 = vld [vmem:[%s7696_s1 + $0x384] ss:$16 sps:$4 sm:$0xff]  }
  0x34   :  { %3590 = vmatprep.subr.bf16.mxu0 %v5054_v54  ;;  %3959 = vmatprep.subr.bf16.mxu1 %v5056_v55  ;;  %v5151_v54 = vld [vmem:[%s7696_s1 + $0x38c] ss:$16 sps:$4 sm:$0xff]   ;;  %v5146_v55 = vld [vmem:[%s7696_s1 + $0x380] ss:$16 sps:$4 sm:$0xff]  }
  0x37   :  { %3591 = vmatpush1.bf16.msra.mxu0 %v5058_v56  ;;  %3960 = vmatpush1.bf16.msra.mxu1 %v5059_v57  ;;  %v5149_v56 = vld [vmem:[%s7696_s1 + $0x388] ss:$16 sps:$4 sm:$0xff]   ;;  %v5154_v57 = vld [vmem:[%s7696_s1 + $0x3a4] ss:$16 sps:$4 sm:$0xff]  }
  0x38   :  { %3592 = vmatprep.subr.bf16.mxu0 %v5060_v58  ;;  %3961 = vmatprep.subr.bf16.mxu1 %v5062_v59  ;;  %v5157_v58 = vld [vmem:[%s7696_s1 + $0x3ac] ss:$16 sps:$4 sm:$0xff]   ;;  %v5152_v59 = vld [vmem:[%s7696_s1 + $0x3a0] ss:$16 sps:$4 sm:$0xff]  }
  0x3b   :  { %3593 = vmatpush1.bf16.msra.mxu0 %v5064_v60  ;;  %3962 = vmatpush1.bf16.msra.mxu1 %v5065_v61  ;;  %v5155_v60 = vld [vmem:[%s7696_s1 + $0x3a8] ss:$16 sps:$4 sm:$0xff]   ;;  %v5160_v61 = vld [vmem:[%s7696_s1 + $0x3c4] ss:$16 sps:$4 sm:$0xff]  }
  0x3c   :  { %3594 = vmatprep.subr.bf16.mxu0 %v5066_v62  ;;  %3963 = vmatprep.subr.bf16.mxu1 %v5068_v63  ;;  %v5163_v62 = vld [vmem:[%s7696_s1 + $0x3cc] ss:$16 sps:$4 sm:$0xff]   ;;  %v5158_v63 = vld [vmem:[%s7696_s1 + $0x3c0] ss:$16 sps:$4 sm:$0xff]  }
  0x3f   :  { %3595 = vmatpush1.bf16.msra.mxu0 %v5070_v0  ;;  %3964 = vmatpush1.bf16.msra.mxu1 %v5071_v1  ;;  %v5161_v0 = vld [vmem:[%s7696_s1 + $0x3c8] ss:$16 sps:$4 sm:$0xff]   ;;  %v5166_v1 = vld [vmem:[%s7696_s1 + $0x3e4] ss:$16 sps:$4 sm:$0xff]  }
  0x40   :  { %3605 = vmatprep.subr.bf16.mxu0 %v5076_v2  ;;  %3974 = vmatprep.subr.bf16.mxu1 %v5079_v3  ;;  %v5169_v2 = vld [vmem:[%s7696_s1 + $0x3ec] ss:$16 sps:$4 sm:$0xff]   ;;  %v5164_v3 = vld [vmem:[%s7696_s1 + $0x3e0] ss:$16 sps:$4 sm:$0xff]  }
  0x42   :  { %3597 = vmatmul.mubr.bf16.vlgmr.msra.gmra.mrb[0].mxu0 %v4314_v4  ;;  %3966 = vmatmul.mubr.bf16.vlgmr.msra.gmra.mrb[0].mxu1 %v4314_v4  ;;  %v5167_v4 = vld [vmem:[%s7696_s1 + $0x3e8] ss:$16 sps:$4 sm:$0xff]  }
  0x43   :  { %3606 = vmatpush1.bf16.msra.mxu0 %v5074_v5  ;;  %3975 = vmatpush1.bf16.msra.mxu1 %v5077_v6  ;;  %v5174_v5 = vld [vmem:[%s7696_s1 + $0x404] ss:$16 sps:$4 sm:$0xff]   ;;  %v5177_v6 = vld [vmem:[%s7696_s1 + $0x40c] ss:$16 sps:$4 sm:$0xff]  }
  0x44   :  { %3607 = vmatprep.subr.bf16.mxu0 %v5082_v7  ;;  %3976 = vmatprep.subr.bf16.mxu1 %v5085_v8  ;;  %v4316_v7 = vcombine.low %v6154_v29, %v6154_v29  ;;  %v5172_v8 = vld [vmem:[%s7696_s1 + $0x400] ss:$16 sps:$4 sm:$0xff]   ;;  %v5207_v29 = vld [vmem:[%s7696_s1 + $0x4ac] ss:$16 sps:$4 sm:$0xff]  }
  0x45   :  { %3637 = vmatprep.mubr.bf16.mxu0 %v4317_v30  ;;  %4006 = vmatprep.mubr.bf16.mxu1 %v4317_v30  ;;  %v5202_v30 = vld [vmem:[%s7696_s1 + $0x4a0] ss:$16 sps:$4 sm:$0xff]  }
  0x47   :  { %3608 = vmatpush1.bf16.msra.mxu0 %v5080_v9  ;;  %3977 = vmatpush1.bf16.msra.mxu1 %v5083_v10  ;;  %v5175_v9 = vld [vmem:[%s7696_s1 + $0x408] ss:$16 sps:$4 sm:$0xff]   ;;  %v5180_v10 = vld [vmem:[%s7696_s1 + $0x424] ss:$16 sps:$4 sm:$0xff]  }
  0x48   :  { %3609 = vmatprep.subr.bf16.mxu0 %v5088_v11  ;;  %3978 = vmatprep.subr.bf16.mxu1 %v5091_v12  ;;  %v6292_v11 = vld [vmem:[%s7697_s0 + $0x10] sm:$0xff]  ;;  %v5183_v12 = vld [vmem:[%s7696_s1 + $0x42c] ss:$16 sps:$4 sm:$0xff]  }
  0x4b   :  { %3610 = vmatpush1.bf16.msra.mxu0 %v5086_v13  ;;  %3979 = vmatpush1.bf16.msra.mxu1 %v5089_v14  ;;  %v4319_v13 = vcombine.high %v6292_v11, %v6292_v11  ;;  %v5178_v14 = vld [vmem:[%s7696_s1 + $0x420] ss:$16 sps:$4 sm:$0xff]  }
  0x4c   :  { %3611 = vmatprep.subr.bf16.mxu0 %v5094_v15  ;;  %3980 = vmatprep.subr.bf16.mxu1 %v5097_v16  ;;  %v5181_v15 = vld [vmem:[%s7696_s1 + $0x428] ss:$16 sps:$4 sm:$0xff]   ;;  %v5186_v16 = vld [vmem:[%s7696_s1 + $0x444] ss:$16 sps:$4 sm:$0xff]  }
  0x4f   :  { %3612 = vmatpush1.bf16.msra.mxu0 %v5092_v17  ;;  %3981 = vmatpush1.bf16.msra.mxu1 %v5095_v18  ;;  %v5189_v17 = vld [vmem:[%s7696_s1 + $0x44c] ss:$16 sps:$4 sm:$0xff]   ;;  %v5184_v18 = vld [vmem:[%s7696_s1 + $0x440] ss:$16 sps:$4 sm:$0xff]  }
  0x50   :  { %3613 = vmatprep.subr.bf16.mxu0 %v5100_v19  ;;  %3982 = vmatprep.subr.bf16.mxu1 %v5103_v20  ;;  %v5187_v19 = vld [vmem:[%s7696_s1 + $0x448] ss:$16 sps:$4 sm:$0xff]   ;;  %v5192_v20 = vld [vmem:[%s7696_s1 + $0x464] ss:$16 sps:$4 sm:$0xff]  }
  0x53   :  { %3614 = vmatpush1.bf16.msra.mxu0 %v5098_v21  ;;  %3983 = vmatpush1.bf16.msra.mxu1 %v5101_v22  ;;  %v5195_v21 = vld [vmem:[%s7696_s1 + $0x46c] ss:$16 sps:$4 sm:$0xff]   ;;  %v5190_v22 = vld [vmem:[%s7696_s1 + $0x460] ss:$16 sps:$4 sm:$0xff]  }
  0x54   :  { %3615 = vmatprep.subr.bf16.mxu0 %v5106_v23  ;;  %3984 = vmatprep.subr.bf16.mxu1 %v5109_v24  ;;  %v5193_v23 = vld [vmem:[%s7696_s1 + $0x468] ss:$16 sps:$4 sm:$0xff]   ;;  %v5198_v24 = vld [vmem:[%s7696_s1 + $0x484] ss:$16 sps:$4 sm:$0xff]  }
  0x57   :  { %3616 = vmatpush1.bf16.msra.mxu0 %v5104_v25  ;;  %3985 = vmatpush1.bf16.msra.mxu1 %v5107_v26  ;;  %v5201_v25 = vld [vmem:[%s7696_s1 + $0x48c] ss:$16 sps:$4 sm:$0xff]   ;;  %v5196_v26 = vld [vmem:[%s7696_s1 + $0x480] ss:$16 sps:$4 sm:$0xff]  }
  0x58   :  { %3617 = vmatprep.subr.bf16.mxu0 %v5112_v27  ;;  %3986 = vmatprep.subr.bf16.mxu1 %v5115_v28  ;;  %v5199_v27 = vld [vmem:[%s7696_s1 + $0x488] ss:$16 sps:$4 sm:$0xff]   ;;  %v5204_v28 = vld [vmem:[%s7696_s1 + $0x4a4] ss:$16 sps:$4 sm:$0xff]  }
  0x5b   :  { %3618 = vmatpush1.bf16.msra.mxu0 %v5110_v31  ;;  %3987 = vmatpush1.bf16.msra.mxu1 %v5113_v32  ;;  %v5205_v31 = vld [vmem:[%s7696_s1 + $0x4a8] ss:$16 sps:$4 sm:$0xff]   ;;  %v5210_v32 = vld [vmem:[%s7696_s1 + $0x4c4] ss:$16 sps:$4 sm:$0xff]  }
  0x5c   :  { %3619 = vmatprep.subr.bf16.mxu0 %v5118_v33  ;;  %3988 = vmatprep.subr.bf16.mxu1 %v5121_v34  ;;  %v5213_v33 = vld [vmem:[%s7696_s1 + $0x4cc] ss:$16 sps:$4 sm:$0xff]   ;;  %v5208_v34 = vld [vmem:[%s7696_s1 + $0x4c0] ss:$16 sps:$4 sm:$0xff]  }
  0x5f   :  { %3620 = vmatpush1.bf16.msra.mxu0 %v5116_v35  ;;  %3989 = vmatpush1.bf16.msra.mxu1 %v5119_v36  ;;  %v5211_v35 = vld [vmem:[%s7696_s1 + $0x4c8] ss:$16 sps:$4 sm:$0xff]   ;;  %v5216_v36 = vld [vmem:[%s7696_s1 + $0x4e4] ss:$16 sps:$4 sm:$0xff]  }
  0x60   :  { %3621 = vmatprep.subr.bf16.mxu0 %v5124_v37  ;;  %3990 = vmatprep.subr.bf16.mxu1 %v5127_v38  ;;  %v5219_v37 = vld [vmem:[%s7696_s1 + $0x4ec] ss:$16 sps:$4 sm:$0xff]   ;;  %v5214_v38 = vld [vmem:[%s7696_s1 + $0x4e0] ss:$16 sps:$4 sm:$0xff]  }
  0x63   :  { %3622 = vmatpush1.bf16.msra.mxu0 %v5122_v39  ;;  %3991 = vmatpush1.bf16.msra.mxu1 %v5125_v40  ;;  %v5217_v39 = vld [vmem:[%s7696_s1 + $0x4e8] ss:$16 sps:$4 sm:$0xff]   ;;  %v5222_v40 = vld [vmem:[%s7696_s1 + $0x504] ss:$16 sps:$4 sm:$0xff]  }
  0x64   :  { %3623 = vmatprep.subr.bf16.mxu0 %v5130_v41  ;;  %3992 = vmatprep.subr.bf16.mxu1 %v5133_v42  ;;  %v5225_v41 = vld [vmem:[%s7696_s1 + $0x50c] ss:$16 sps:$4 sm:$0xff]   ;;  %v5220_v42 = vld [vmem:[%s7696_s1 + $0x500] ss:$16 sps:$4 sm:$0xff]  }
  0x67   :  { %3624 = vmatpush1.bf16.msra.mxu0 %v5128_v43  ;;  %3993 = vmatpush1.bf16.msra.mxu1 %v5131_v44  ;;  %v5223_v43 = vld [vmem:[%s7696_s1 + $0x508] ss:$16 sps:$4 sm:$0xff]   ;;  %v5228_v44 = vld [vmem:[%s7696_s1 + $0x524] ss:$16 sps:$4 sm:$0xff]  }
  0x68   :  { %3625 = vmatprep.subr.bf16.mxu0 %v5136_v45  ;;  %3994 = vmatprep.subr.bf16.mxu1 %v5139_v46  ;;  %v5231_v45 = vld [vmem:[%s7696_s1 + $0x52c] ss:$16 sps:$4 sm:$0xff]   ;;  %v5226_v46 = vld [vmem:[%s7696_s1 + $0x520] ss:$16 sps:$4 sm:$0xff]  }
  0x6b   :  { %3626 = vmatpush1.bf16.msra.mxu0 %v5134_v47  ;;  %3995 = vmatpush1.bf16.msra.mxu1 %v5137_v48  ;;  %v5229_v47 = vld [vmem:[%s7696_s1 + $0x528] ss:$16 sps:$4 sm:$0xff]   ;;  %v5234_v48 = vld [vmem:[%s7696_s1 + $0x544] ss:$16 sps:$4 sm:$0xff]  }
  0x6c   :  { %3627 = vmatprep.subr.bf16.mxu0 %v5142_v49  ;;  %3996 = vmatprep.subr.bf16.mxu1 %v5145_v50  ;;  %v5237_v49 = vld [vmem:[%s7696_s1 + $0x54c] ss:$16 sps:$4 sm:$0xff]   ;;  %v5232_v50 = vld [vmem:[%s7696_s1 + $0x540] ss:$16 sps:$4 sm:$0xff]  }
  0x6f   :  { %3628 = vmatpush1.bf16.msra.mxu0 %v5140_v51  ;;  %3997 = vmatpush1.bf16.msra.mxu1 %v5143_v52  ;;  %v5235_v51 = vld [vmem:[%s7696_s1 + $0x548] ss:$16 sps:$4 sm:$0xff]   ;;  %v5240_v52 = vld [vmem:[%s7696_s1 + $0x564] ss:$16 sps:$4 sm:$0xff]  }
  0x70   :  { %3629 = vmatprep.subr.bf16.mxu0 %v5148_v53  ;;  %3998 = vmatprep.subr.bf16.mxu1 %v5151_v54  ;;  %v5243_v53 = vld [vmem:[%s7696_s1 + $0x56c] ss:$16 sps:$4 sm:$0xff]   ;;  %v5238_v54 = vld [vmem:[%s7696_s1 + $0x560] ss:$16 sps:$4 sm:$0xff]  }
  0x73   :  { %3630 = vmatpush1.bf16.msra.mxu0 %v5146_v55  ;;  %3999 = vmatpush1.bf16.msra.mxu1 %v5149_v56  ;;  %v5241_v55 = vld [vmem:[%s7696_s1 + $0x568] ss:$16 sps:$4 sm:$0xff]   ;;  %v5246_v56 = vld [vmem:[%s7696_s1 + $0x584] ss:$16 sps:$4 sm:$0xff]  }
  0x74   :  { %3631 = vmatprep.subr.bf16.mxu0 %v5154_v57  ;;  %4000 = vmatprep.subr.bf16.mxu1 %v5157_v58  ;;  %v5249_v57 = vld [vmem:[%s7696_s1 + $0x58c] ss:$16 sps:$4 sm:$0xff]   ;;  %v5244_v58 = vld [vmem:[%s7696_s1 + $0x580] ss:$16 sps:$4 sm:$0xff]  }
  0x77   :  { %3632 = vmatpush1.bf16.msra.mxu0 %v5152_v59  ;;  %4001 = vmatpush1.bf16.msra.mxu1 %v5155_v60  ;;  %v5247_v59 = vld [vmem:[%s7696_s1 + $0x588] ss:$16 sps:$4 sm:$0xff]   ;;  %v5252_v60 = vld [vmem:[%s7696_s1 + $0x5a4] ss:$16 sps:$4 sm:$0xff]  }
  0x78   :  { %3633 = vmatprep.subr.bf16.mxu0 %v5160_v61  ;;  %4002 = vmatprep.subr.bf16.mxu1 %v5163_v62  ;;  %v5255_v61 = vld [vmem:[%s7696_s1 + $0x5ac] ss:$16 sps:$4 sm:$0xff]   ;;  %v5250_v62 = vld [vmem:[%s7696_s1 + $0x5a0] ss:$16 sps:$4 sm:$0xff]  }
  0x7b   :  { %3634 = vmatpush1.bf16.msra.mxu0 %v5158_v63  ;;  %4003 = vmatpush1.bf16.msra.mxu1 %v5161_v0  ;;  %v5253_v63 = vld [vmem:[%s7696_s1 + $0x5a8] ss:$16 sps:$4 sm:$0xff]   ;;  %v5258_v0 = vld [vmem:[%s7696_s1 + $0x5c4] ss:$16 sps:$4 sm:$0xff]  }
  0x7c   :  { %3635 = vmatprep.subr.bf16.mxu0 %v5166_v1  ;;  %4004 = vmatprep.subr.bf16.mxu1 %v5169_v2  ;;  %v5261_v1 = vld [vmem:[%s7696_s1 + $0x5cc] ss:$16 sps:$4 sm:$0xff]   ;;  %v5256_v2 = vld [vmem:[%s7696_s1 + $0x5c0] ss:$16 sps:$4 sm:$0xff]  }
  0x7f   :  { %3636 = vmatpush1.bf16.msra.mxu0 %v5164_v3  ;;  %4005 = vmatpush1.bf16.msra.mxu1 %v5167_v4  ;;  %v5259_v3 = vld [vmem:[%s7696_s1 + $0x5c8] ss:$16 sps:$4 sm:$0xff]   ;;  %v5264_v4 = vld [vmem:[%s7696_s1 + $0x5e4] ss:$16 sps:$4 sm:$0xff]  }
  0x80   :  { %3646 = vmatprep.subr.bf16.mxu0 %v5174_v5  ;;  %4015 = vmatprep.subr.bf16.mxu1 %v5177_v6  ;;  %v5267_v5 = vld [vmem:[%s7696_s1 + $0x5ec] ss:$16 sps:$4 sm:$0xff]   ;;  %v5262_v6 = vld [vmem:[%s7696_s1 + $0x5e0] ss:$16 sps:$4 sm:$0xff]  }
  0x82   :  { %3638 = vmatmul.mubr.bf16.vlgmr.msra.gmra.mrb[0].mxu0 %v4316_v7  ;;  %4007 = vmatmul.mubr.bf16.vlgmr.msra.gmra.mrb[0].mxu1 %v4316_v7  ;;  %v5265_v7 = vld [vmem:[%s7696_s1 + $0x5e8] ss:$16 sps:$4 sm:$0xff]  }
  0x83   :  { %3647 = vmatpush1.bf16.msra.mxu0 %v5172_v8  ;;  %4016 = vmatpush1.bf16.msra.mxu1 %v5175_v9  ;;  %v5272_v8 = vld [vmem:[%s7696_s1 + $0x604] ss:$16 sps:$4 sm:$0xff]   ;;  %v5275_v9 = vld [vmem:[%s7696_s1 + $0x60c] ss:$16 sps:$4 sm:$0xff]  }
  0x84   :  { %3648 = vmatprep.subr.bf16.mxu0 %v5180_v10  ;;  %4017 = vmatprep.subr.bf16.mxu1 %v5183_v12  ;;  %v5270_v10 = vld [vmem:[%s7696_s1 + $0x600] ss:$16 sps:$4 sm:$0xff]   ;;  %v4318_v12 = vcombine.low %v6292_v11, %v6292_v11  ;;  %v5281_v11 = vld [vmem:[%s7696_s1 + $0x62c] ss:$16 sps:$4 sm:$0xff]  }
  0x85   :  { %3678 = vmatprep.mubr.bf16.mxu0 %v4319_v13  ;;  %4047 = vmatprep.mubr.bf16.mxu1 %v4319_v13  ;;  %v5273_v13 = vld [vmem:[%s7696_s1 + $0x608] ss:$16 sps:$4 sm:$0xff]  }
  0x87   :  { %3649 = vmatpush1.bf16.msra.mxu0 %v5178_v14  ;;  %4018 = vmatpush1.bf16.msra.mxu1 %v5181_v15  ;;  %v6490_v14 = vld [vmem:[%s7697_s0 + $0x18] sm:$0xff]  ;;  %v5278_v15 = vld [vmem:[%s7696_s1 + $0x624] ss:$16 sps:$4 sm:$0xff]  }
  0x88   :  { %3650 = vmatprep.subr.bf16.mxu0 %v5186_v16  ;;  %4019 = vmatprep.subr.bf16.mxu1 %v5189_v17  ;;  %v4321_v16 = vcombine.high %v6490_v14, %v6490_v14  ;;  %v5276_v17 = vld [vmem:[%s7696_s1 + $0x620] ss:$16 sps:$4 sm:$0xff]  }
  0x8b   :  { %3651 = vmatpush1.bf16.msra.mxu0 %v5184_v18  ;;  %4020 = vmatpush1.bf16.msra.mxu1 %v5187_v19  ;;  %v5279_v18 = vld [vmem:[%s7696_s1 + $0x628] ss:$16 sps:$4 sm:$0xff]   ;;  %v5284_v19 = vld [vmem:[%s7696_s1 + $0x644] ss:$16 sps:$4 sm:$0xff]  }
  0x8c   :  { %3652 = vmatprep.subr.bf16.mxu0 %v5192_v20  ;;  %4021 = vmatprep.subr.bf16.mxu1 %v5195_v21  ;;  %v5287_v20 = vld [vmem:[%s7696_s1 + $0x64c] ss:$16 sps:$4 sm:$0xff]   ;;  %v5282_v21 = vld [vmem:[%s7696_s1 + $0x640] ss:$16 sps:$4 sm:$0xff]  }
  0x8f   :  { %3653 = vmatpush1.bf16.msra.mxu0 %v5190_v22  ;;  %4022 = vmatpush1.bf16.msra.mxu1 %v5193_v23  ;;  %v5285_v22 = vld [vmem:[%s7696_s1 + $0x648] ss:$16 sps:$4 sm:$0xff]   ;;  %v5290_v23 = vld [vmem:[%s7696_s1 + $0x664] ss:$16 sps:$4 sm:$0xff]  }
  0x90   :  { %3654 = vmatprep.subr.bf16.mxu0 %v5198_v24  ;;  %4023 = vmatprep.subr.bf16.mxu1 %v5201_v25  ;;  %v5293_v24 = vld [vmem:[%s7696_s1 + $0x66c] ss:$16 sps:$4 sm:$0xff]   ;;  %v5288_v25 = vld [vmem:[%s7696_s1 + $0x660] ss:$16 sps:$4 sm:$0xff]  }
  0x93   :  { %3655 = vmatpush1.bf16.msra.mxu0 %v5196_v26  ;;  %4024 = vmatpush1.bf16.msra.mxu1 %v5199_v27  ;;  %v5291_v26 = vld [vmem:[%s7696_s1 + $0x668] ss:$16 sps:$4 sm:$0xff]   ;;  %v5296_v27 = vld [vmem:[%s7696_s1 + $0x684] ss:$16 sps:$4 sm:$0xff]  }
  0x94   :  { %3656 = vmatprep.subr.bf16.mxu0 %v5204_v28  ;;  %4025 = vmatprep.subr.bf16.mxu1 %v5207_v29  ;;  %v5299_v28 = vld [vmem:[%s7696_s1 + $0x68c] ss:$16 sps:$4 sm:$0xff]   ;;  %v5294_v29 = vld [vmem:[%s7696_s1 + $0x680] ss:$16 sps:$4 sm:$0xff]  }
  0x97   :  { %3657 = vmatpush1.bf16.msra.mxu0 %v5202_v30  ;;  %4026 = vmatpush1.bf16.msra.mxu1 %v5205_v31  ;;  %v5297_v30 = vld [vmem:[%s7696_s1 + $0x688] ss:$16 sps:$4 sm:$0xff]   ;;  %v5302_v31 = vld [vmem:[%s7696_s1 + $0x6a4] ss:$16 sps:$4 sm:$0xff]  }
  0x98   :  { %3658 = vmatprep.subr.bf16.mxu0 %v5210_v32  ;;  %4027 = vmatprep.subr.bf16.mxu1 %v5213_v33  ;;  %v5305_v32 = vld [vmem:[%s7696_s1 + $0x6ac] ss:$16 sps:$4 sm:$0xff]   ;;  %v5300_v33 = vld [vmem:[%s7696_s1 + $0x6a0] ss:$16 sps:$4 sm:$0xff]  }
  0x9b   :  { %3659 = vmatpush1.bf16.msra.mxu0 %v5208_v34  ;;  %4028 = vmatpush1.bf16.msra.mxu1 %v5211_v35  ;;  %v5303_v34 = vld [vmem:[%s7696_s1 + $0x6a8] ss:$16 sps:$4 sm:$0xff]   ;;  %v5308_v35 = vld [vmem:[%s7696_s1 + $0x6c4] ss:$16 sps:$4 sm:$0xff]  }
  0x9c   :  { %3660 = vmatprep.subr.bf16.mxu0 %v5216_v36  ;;  %4029 = vmatprep.subr.bf16.mxu1 %v5219_v37  ;;  %v5311_v36 = vld [vmem:[%s7696_s1 + $0x6cc] ss:$16 sps:$4 sm:$0xff]   ;;  %v5306_v37 = vld [vmem:[%s7696_s1 + $0x6c0] ss:$16 sps:$4 sm:$0xff]  }
  0x9f   :  { %3661 = vmatpush1.bf16.msra.mxu0 %v5214_v38  ;;  %4030 = vmatpush1.bf16.msra.mxu1 %v5217_v39  ;;  %v5309_v38 = vld [vmem:[%s7696_s1 + $0x6c8] ss:$16 sps:$4 sm:$0xff]   ;;  %v5314_v39 = vld [vmem:[%s7696_s1 + $0x6e4] ss:$16 sps:$4 sm:$0xff]  }
  0xa0   :  { %3662 = vmatprep.subr.bf16.mxu0 %v5222_v40  ;;  %4031 = vmatprep.subr.bf16.mxu1 %v5225_v41  ;;  %v5317_v40 = vld [vmem:[%s7696_s1 + $0x6ec] ss:$16 sps:$4 sm:$0xff]   ;;  %v5312_v41 = vld [vmem:[%s7696_s1 + $0x6e0] ss:$16 sps:$4 sm:$0xff]  }
  0xa3   :  { %3663 = vmatpush1.bf16.msra.mxu0 %v5220_v42  ;;  %4032 = vmatpush1.bf16.msra.mxu1 %v5223_v43  ;;  %v5315_v42 = vld [vmem:[%s7696_s1 + $0x6e8] ss:$16 sps:$4 sm:$0xff]   ;;  %v5320_v43 = vld [vmem:[%s7696_s1 + $0x704] ss:$16 sps:$4 sm:$0xff]  }
  0xa4   :  { %3664 = vmatprep.subr.bf16.mxu0 %v5228_v44  ;;  %4033 = vmatprep.subr.bf16.mxu1 %v5231_v45  ;;  %v5323_v44 = vld [vmem:[%s7696_s1 + $0x70c] ss:$16 sps:$4 sm:$0xff]   ;;  %v5318_v45 = vld [vmem:[%s7696_s1 + $0x700] ss:$16 sps:$4 sm:$0xff]  }
  0xa7   :  { %3665 = vmatpush1.bf16.msra.mxu0 %v5226_v46  ;;  %4034 = vmatpush1.bf16.msra.mxu1 %v5229_v47  ;;  %v5321_v46 = vld [vmem:[%s7696_s1 + $0x708] ss:$16 sps:$4 sm:$0xff]   ;;  %v5326_v47 = vld [vmem:[%s7696_s1 + $0x724] ss:$16 sps:$4 sm:$0xff]  }
  0xa8   :  { %3666 = vmatprep.subr.bf16.mxu0 %v5234_v48  ;;  %4035 = vmatprep.subr.bf16.mxu1 %v5237_v49  ;;  %v5329_v48 = vld [vmem:[%s7696_s1 + $0x72c] ss:$16 sps:$4 sm:$0xff]   ;;  %v5324_v49 = vld [vmem:[%s7696_s1 + $0x720] ss:$16 sps:$4 sm:$0xff]  }
  0xab   :  { %3667 = vmatpush1.bf16.msra.mxu0 %v5232_v50  ;;  %4036 = vmatpush1.bf16.msra.mxu1 %v5235_v51  ;;  %v5327_v50 = vld [vmem:[%s7696_s1 + $0x728] ss:$16 sps:$4 sm:$0xff]   ;;  %v5332_v51 = vld [vmem:[%s7696_s1 + $0x744] ss:$16 sps:$4 sm:$0xff]  }
  0xac   :  { %3668 = vmatprep.subr.bf16.mxu0 %v5240_v52  ;;  %4037 = vmatprep.subr.bf16.mxu1 %v5243_v53  ;;  %v5335_v52 = vld [vmem:[%s7696_s1 + $0x74c] ss:$16 sps:$4 sm:$0xff]   ;;  %v5330_v53 = vld [vmem:[%s7696_s1 + $0x740] ss:$16 sps:$4 sm:$0xff]  }
  0xaf   :  { %3669 = vmatpush1.bf16.msra.mxu0 %v5238_v54  ;;  %4038 = vmatpush1.bf16.msra.mxu1 %v5241_v55  ;;  %v5333_v54 = vld [vmem:[%s7696_s1 + $0x748] ss:$16 sps:$4 sm:$0xff]   ;;  %v5338_v55 = vld [vmem:[%s7696_s1 + $0x764] ss:$16 sps:$4 sm:$0xff]  }
  0xb0   :  { %3670 = vmatprep.subr.bf16.mxu0 %v5246_v56  ;;  %4039 = vmatprep.subr.bf16.mxu1 %v5249_v57  ;;  %v5341_v56 = vld [vmem:[%s7696_s1 + $0x76c] ss:$16 sps:$4 sm:$0xff]   ;;  %v5336_v57 = vld [vmem:[%s7696_s1 + $0x760] ss:$16 sps:$4 sm:$0xff]  }
  0xb3   :  { %3671 = vmatpush1.bf16.msra.mxu0 %v5244_v58  ;;  %4040 = vmatpush1.bf16.msra.mxu1 %v5247_v59  ;;  %v5339_v58 = vld [vmem:[%s7696_s1 + $0x768] ss:$16 sps:$4 sm:$0xff]   ;;  %v5344_v59 = vld [vmem:[%s7696_s1 + $0x784] ss:$16 sps:$4 sm:$0xff]  }
  0xb4   :  { %3672 = vmatprep.subr.bf16.mxu0 %v5252_v60  ;;  %4041 = vmatprep.subr.bf16.mxu1 %v5255_v61  ;;  %v5347_v60 = vld [vmem:[%s7696_s1 + $0x78c] ss:$16 sps:$4 sm:$0xff]   ;;  %v5342_v61 = vld [vmem:[%s7696_s1 + $0x780] ss:$16 sps:$4 sm:$0xff]  }
  0xb7   :  { %3673 = vmatpush1.bf16.msra.mxu0 %v5250_v62  ;;  %4042 = vmatpush1.bf16.msra.mxu1 %v5253_v63  ;;  %v5345_v62 = vld [vmem:[%s7696_s1 + $0x788] ss:$16 sps:$4 sm:$0xff]   ;;  %v5350_v63 = vld [vmem:[%s7696_s1 + $0x7a4] ss:$16 sps:$4 sm:$0xff]  }
  0xb8   :  { %3674 = vmatprep.subr.bf16.mxu0 %v5258_v0  ;;  %4043 = vmatprep.subr.bf16.mxu1 %v5261_v1  ;;  %v5353_v0 = vld [vmem:[%s7696_s1 + $0x7ac] ss:$16 sps:$4 sm:$0xff]   ;;  %v5348_v1 = vld [vmem:[%s7696_s1 + $0x7a0] ss:$16 sps:$4 sm:$0xff]  }
  0xbb   :  { %3675 = vmatpush1.bf16.msra.mxu0 %v5256_v2  ;;  %4044 = vmatpush1.bf16.msra.mxu1 %v5259_v3  ;;  %v5351_v2 = vld [vmem:[%s7696_s1 + $0x7a8] ss:$16 sps:$4 sm:$0xff]   ;;  %v5356_v3 = vld [vmem:[%s7696_s1 + $0x7c4] ss:$16 sps:$4 sm:$0xff]  }
  0xbc   :  { %3676 = vmatprep.subr.bf16.mxu0 %v5264_v4  ;;  %4045 = vmatprep.subr.bf16.mxu1 %v5267_v5  ;;  %v5359_v4 = vld [vmem:[%s7696_s1 + $0x7cc] ss:$16 sps:$4 sm:$0xff]   ;;  %v5354_v5 = vld [vmem:[%s7696_s1 + $0x7c0] ss:$16 sps:$4 sm:$0xff]  }
  0xbf   :  { %3677 = vmatpush1.bf16.msra.mxu0 %v5262_v6  ;;  %4046 = vmatpush1.bf16.msra.mxu1 %v5265_v7  ;;  %v5357_v6 = vld [vmem:[%s7696_s1 + $0x7c8] ss:$16 sps:$4 sm:$0xff]   ;;  %v5362_v7 = vld [vmem:[%s7696_s1 + $0x7e4] ss:$16 sps:$4 sm:$0xff]  }
  0xc0   :  { %3687 = vmatprep.subr.bf16.mxu0 %v5272_v8  ;;  %4056 = vmatprep.subr.bf16.mxu1 %v5275_v9  ;;  %v5365_v8 = vld [vmem:[%s7696_s1 + $0x7ec] ss:$16 sps:$4 sm:$0xff]   ;;  %v5360_v9 = vld [vmem:[%s7696_s1 + $0x7e0] ss:$16 sps:$4 sm:$0xff]  }
  0xc2   :  { %3679 = vmatmul.mubr.bf16.vlgmr.msra.gmra.mrb[0].mxu0 %v4318_v12  ;;  %4048 = vmatmul.mubr.bf16.vlgmr.msra.gmra.mrb[0].mxu1 %v4318_v12  ;;  %v5370_v12 = vld [vmem:[%s7696_s1 + $0x804] ss:$16 sps:$4 sm:$0xff]  }
  0xc3   :  { %3688 = vmatpush1.bf16.msra.mxu0 %v5270_v10  ;;  %4057 = vmatpush1.bf16.msra.mxu1 %v5273_v13  ;;  %v5363_v10 = vld [vmem:[%s7696_s1 + $0x7e8] ss:$16 sps:$4 sm:$0xff]   ;;  %v5373_v13 = vld [vmem:[%s7696_s1 + $0x80c] ss:$16 sps:$4 sm:$0xff]  }
  0xc4   :  { %3689 = vmatprep.subr.bf16.mxu0 %v5278_v15  ;;  %4058 = vmatprep.subr.bf16.mxu1 %v5281_v11  ;;  %v5368_v15 = vld [vmem:[%s7696_s1 + $0x800] ss:$16 sps:$4 sm:$0xff]   ;;  %v4320_v11 = vcombine.low %v6490_v14, %v6490_v14  ;;  %v5379_v14 = vld [vmem:[%s7696_s1 + $0x82c] ss:$16 sps:$4 sm:$0xff]  }
  0xc5   :  { %3719 = vmatprep.mubr.bf16.mxu0 %v4321_v16  ;;  %4088 = vmatprep.mubr.bf16.mxu1 %v4321_v16  ;;  %v6688_v16 = vld [vmem:[%s7697_s0 + $0x20] sm:$0xff] }
  0xc7   :  { %3690 = vmatpush1.bf16.msra.mxu0 %v5276_v17  ;;  %4059 = vmatpush1.bf16.msra.mxu1 %v5279_v18  ;;  %v5371_v17 = vld [vmem:[%s7696_s1 + $0x808] ss:$16 sps:$4 sm:$0xff]   ;;  %v5376_v18 = vld [vmem:[%s7696_s1 + $0x824] ss:$16 sps:$4 sm:$0xff]  }
  0xc8   :  { %3691 = vmatprep.subr.bf16.mxu0 %v5284_v19  ;;  %4060 = vmatprep.subr.bf16.mxu1 %v5287_v20  ;;  %v4323_v19 = vcombine.high %v6688_v16, %v6688_v16  ;;  %v5374_v20 = vld [vmem:[%s7696_s1 + $0x820] ss:$16 sps:$4 sm:$0xff]  }
  0xcb   :  { %3692 = vmatpush1.bf16.msra.mxu0 %v5282_v21  ;;  %4061 = vmatpush1.bf16.msra.mxu1 %v5285_v22  ;;  %v5377_v21 = vld [vmem:[%s7696_s1 + $0x828] ss:$16 sps:$4 sm:$0xff]   ;;  %v5382_v22 = vld [vmem:[%s7696_s1 + $0x844] ss:$16 sps:$4 sm:$0xff]  }
  0xcc   :  { %3693 = vmatprep.subr.bf16.mxu0 %v5290_v23  ;;  %4062 = vmatprep.subr.bf16.mxu1 %v5293_v24  ;;  %v5385_v23 = vld [vmem:[%s7696_s1 + $0x84c] ss:$16 sps:$4 sm:$0xff]   ;;  %v5380_v24 = vld [vmem:[%s7696_s1 + $0x840] ss:$16 sps:$4 sm:$0xff]  }
  0xcf   :  { %3694 = vmatpush1.bf16.msra.mxu0 %v5288_v25  ;;  %4063 = vmatpush1.bf16.msra.mxu1 %v5291_v26  ;;  %v5383_v25 = vld [vmem:[%s7696_s1 + $0x848] ss:$16 sps:$4 sm:$0xff]   ;;  %v5388_v26 = vld [vmem:[%s7696_s1 + $0x864] ss:$16 sps:$4 sm:$0xff]  }
  0xd0   :  { %3695 = vmatprep.subr.bf16.mxu0 %v5296_v27  ;;  %4064 = vmatprep.subr.bf16.mxu1 %v5299_v28  ;;  %v5391_v27 = vld [vmem:[%s7696_s1 + $0x86c] ss:$16 sps:$4 sm:$0xff]   ;;  %v5386_v28 = vld [vmem:[%s7696_s1 + $0x860] ss:$16 sps:$4 sm:$0xff]  }
  0xd3   :  { %3696 = vmatpush1.bf16.msra.mxu0 %v5294_v29  ;;  %4065 = vmatpush1.bf16.msra.mxu1 %v5297_v30  ;;  %v5389_v29 = vld [vmem:[%s7696_s1 + $0x868] ss:$16 sps:$4 sm:$0xff]   ;;  %v5394_v30 = vld [vmem:[%s7696_s1 + $0x884] ss:$16 sps:$4 sm:$0xff]  }
  0xd4   :  { %3697 = vmatprep.subr.bf16.mxu0 %v5302_v31  ;;  %4066 = vmatprep.subr.bf16.mxu1 %v5305_v32  ;;  %v5397_v31 = vld [vmem:[%s7696_s1 + $0x88c] ss:$16 sps:$4 sm:$0xff]   ;;  %v5392_v32 = vld [vmem:[%s7696_s1 + $0x880] ss:$16 sps:$4 sm:$0xff]  }
  0xd7   :  { %3698 = vmatpush1.bf16.msra.mxu0 %v5300_v33  ;;  %4067 = vmatpush1.bf16.msra.mxu1 %v5303_v34  ;;  %v5395_v33 = vld [vmem:[%s7696_s1 + $0x888] ss:$16 sps:$4 sm:$0xff]   ;;  %v5400_v34 = vld [vmem:[%s7696_s1 + $0x8a4] ss:$16 sps:$4 sm:$0xff]  }
  0xd8   :  { %3699 = vmatprep.subr.bf16.mxu0 %v5308_v35  ;;  %4068 = vmatprep.subr.bf16.mxu1 %v5311_v36  ;;  %v5403_v35 = vld [vmem:[%s7696_s1 + $0x8ac] ss:$16 sps:$4 sm:$0xff]   ;;  %v5398_v36 = vld [vmem:[%s7696_s1 + $0x8a0] ss:$16 sps:$4 sm:$0xff]  }
  0xdb   :  { %3700 = vmatpush1.bf16.msra.mxu0 %v5306_v37  ;;  %4069 = vmatpush1.bf16.msra.mxu1 %v5309_v38  ;;  %v5401_v37 = vld [vmem:[%s7696_s1 + $0x8a8] ss:$16 sps:$4 sm:$0xff]   ;;  %v5406_v38 = vld [vmem:[%s7696_s1 + $0x8c4] ss:$16 sps:$4 sm:$0xff]  }
  0xdc   :  { %3701 = vmatprep.subr.bf16.mxu0 %v5314_v39  ;;  %4070 = vmatprep.subr.bf16.mxu1 %v5317_v40  ;;  %v5409_v39 = vld [vmem:[%s7696_s1 + $0x8cc] ss:$16 sps:$4 sm:$0xff]   ;;  %v5404_v40 = vld [vmem:[%s7696_s1 + $0x8c0] ss:$16 sps:$4 sm:$0xff]  }
  0xdf   :  { %3702 = vmatpush1.bf16.msra.mxu0 %v5312_v41  ;;  %4071 = vmatpush1.bf16.msra.mxu1 %v5315_v42  ;;  %v5407_v41 = vld [vmem:[%s7696_s1 + $0x8c8] ss:$16 sps:$4 sm:$0xff]   ;;  %v5412_v42 = vld [vmem:[%s7696_s1 + $0x8e4] ss:$16 sps:$4 sm:$0xff]  }
  0xe0   :  { %3703 = vmatprep.subr.bf16.mxu0 %v5320_v43  ;;  %4072 = vmatprep.subr.bf16.mxu1 %v5323_v44  ;;  %v5415_v43 = vld [vmem:[%s7696_s1 + $0x8ec] ss:$16 sps:$4 sm:$0xff]   ;;  %v5410_v44 = vld [vmem:[%s7696_s1 + $0x8e0] ss:$16 sps:$4 sm:$0xff]  }
  0xe3   :  { %3704 = vmatpush1.bf16.msra.mxu0 %v5318_v45  ;;  %4073 = vmatpush1.bf16.msra.mxu1 %v5321_v46  ;;  %v5413_v45 = vld [vmem:[%s7696_s1 + $0x8e8] ss:$16 sps:$4 sm:$0xff]   ;;  %v5418_v46 = vld [vmem:[%s7696_s1 + $0x904] ss:$16 sps:$4 sm:$0xff]  }
  0xe4   :  { %3705 = vmatprep.subr.bf16.mxu0 %v5326_v47  ;;  %4074 = vmatprep.subr.bf16.mxu1 %v5329_v48  ;;  %v5421_v47 = vld [vmem:[%s7696_s1 + $0x90c] ss:$16 sps:$4 sm:$0xff]   ;;  %v5416_v48 = vld [vmem:[%s7696_s1 + $0x900] ss:$16 sps:$4 sm:$0xff]  }
  0xe7   :  { %3706 = vmatpush1.bf16.msra.mxu0 %v5324_v49  ;;  %4075 = vmatpush1.bf16.msra.mxu1 %v5327_v50  ;;  %v5419_v49 = vld [vmem:[%s7696_s1 + $0x908] ss:$16 sps:$4 sm:$0xff]   ;;  %v5424_v50 = vld [vmem:[%s7696_s1 + $0x924] ss:$16 sps:$4 sm:$0xff]  }
  0xe8   :  { %3707 = vmatprep.subr.bf16.mxu0 %v5332_v51  ;;  %4076 = vmatprep.subr.bf16.mxu1 %v5335_v52  ;;  %v5427_v51 = vld [vmem:[%s7696_s1 + $0x92c] ss:$16 sps:$4 sm:$0xff]   ;;  %v5422_v52 = vld [vmem:[%s7696_s1 + $0x920] ss:$16 sps:$4 sm:$0xff]  }
  0xeb   :  { %3708 = vmatpush1.bf16.msra.mxu0 %v5330_v53  ;;  %4077 = vmatpush1.bf16.msra.mxu1 %v5333_v54  ;;  %v5425_v53 = vld [vmem:[%s7696_s1 + $0x928] ss:$16 sps:$4 sm:$0xff]   ;;  %v5430_v54 = vld [vmem:[%s7696_s1 + $0x944] ss:$16 sps:$4 sm:$0xff]  }
  0xec   :  { %3709 = vmatprep.subr.bf16.mxu0 %v5338_v55  ;;  %4078 = vmatprep.subr.bf16.mxu1 %v5341_v56  ;;  %v5433_v55 = vld [vmem:[%s7696_s1 + $0x94c] ss:$16 sps:$4 sm:$0xff]   ;;  %v5428_v56 = vld [vmem:[%s7696_s1 + $0x940] ss:$16 sps:$4 sm:$0xff]  }
  0xef   :  { %3710 = vmatpush1.bf16.msra.mxu0 %v5336_v57  ;;  %4079 = vmatpush1.bf16.msra.mxu1 %v5339_v58  ;;  %v5431_v57 = vld [vmem:[%s7696_s1 + $0x948] ss:$16 sps:$4 sm:$0xff]   ;;  %v5436_v58 = vld [vmem:[%s7696_s1 + $0x964] ss:$16 sps:$4 sm:$0xff]  }
  0xf0   :  { %3711 = vmatprep.subr.bf16.mxu0 %v5344_v59  ;;  %4080 = vmatprep.subr.bf16.mxu1 %v5347_v60  ;;  %v5439_v59 = vld [vmem:[%s7696_s1 + $0x96c] ss:$16 sps:$4 sm:$0xff]   ;;  %v5434_v60 = vld [vmem:[%s7696_s1 + $0x960] ss:$16 sps:$4 sm:$0xff]  }
  0xf3   :  { %3712 = vmatpush1.bf16.msra.mxu0 %v5342_v61  ;;  %4081 = vmatpush1.bf16.msra.mxu1 %v5345_v62  ;;  %v5437_v61 = vld [vmem:[%s7696_s1 + $0x968] ss:$16 sps:$4 sm:$0xff]   ;;  %v5442_v62 = vld [vmem:[%s7696_s1 + $0x984] ss:$16 sps:$4 sm:$0xff]  }
  0xf4   :  { %3713 = vmatprep.subr.bf16.mxu0 %v5350_v63  ;;  %4082 = vmatprep.subr.bf16.mxu1 %v5353_v0  ;;  %v5445_v63 = vld [vmem:[%s7696_s1 + $0x98c] ss:$16 sps:$4 sm:$0xff]   ;;  %v5440_v0 = vld [vmem:[%s7696_s1 + $0x980] ss:$16 sps:$4 sm:$0xff]  }
  0xf7   :  { %3714 = vmatpush1.bf16.msra.mxu0 %v5348_v1  ;;  %4083 = vmatpush1.bf16.msra.mxu1 %v5351_v2  ;;  %v5443_v1 = vld [vmem:[%s7696_s1 + $0x988] ss:$16 sps:$4 sm:$0xff]   ;;  %v5448_v2 = vld [vmem:[%s7696_s1 + $0x9a4] ss:$16 sps:$4 sm:$0xff]  }
  0xf8   :  { %3715 = vmatprep.subr.bf16.mxu0 %v5356_v3  ;;  %4084 = vmatprep.subr.bf16.mxu1 %v5359_v4  ;;  %v5451_v3 = vld [vmem:[%s7696_s1 + $0x9ac] ss:$16 sps:$4 sm:$0xff]   ;;  %v5446_v4 = vld [vmem:[%s7696_s1 + $0x9a0] ss:$16 sps:$4 sm:$0xff]  }
  0xfb   :  { %3716 = vmatpush1.bf16.msra.mxu0 %v5354_v5  ;;  %4085 = vmatpush1.bf16.msra.mxu1 %v5357_v6  ;;  %v5449_v5 = vld [vmem:[%s7696_s1 + $0x9a8] ss:$16 sps:$4 sm:$0xff]   ;;  %v5454_v6 = vld [vmem:[%s7696_s1 + $0x9c4] ss:$16 sps:$4 sm:$0xff]  }
  0xfc   :  { %3717 = vmatprep.subr.bf16.mxu0 %v5362_v7  ;;  %4086 = vmatprep.subr.bf16.mxu1 %v5365_v8  ;;  %v5457_v7 = vld [vmem:[%s7696_s1 + $0x9cc] ss:$16 sps:$4 sm:$0xff]   ;;  %v5452_v8 = vld [vmem:[%s7696_s1 + $0x9c0] ss:$16 sps:$4 sm:$0xff]  }
  0xff   :  { %3718 = vmatpush1.bf16.msra.mxu0 %v5360_v9  ;;  %4087 = vmatpush1.bf16.msra.mxu1 %v5363_v10  ;;  %v5455_v9 = vld [vmem:[%s7696_s1 + $0x9c8] ss:$16 sps:$4 sm:$0xff]   ;;  %v5460_v10 = vld [vmem:[%s7696_s1 + $0x9e4] ss:$16 sps:$4 sm:$0xff]  }
 0x100   :  { %3728 = vmatprep.subr.bf16.mxu0 %v5370_v12  ;;  %4097 = vmatprep.subr.bf16.mxu1 %v5373_v13  ;;  %v5463_v12 = vld [vmem:[%s7696_s1 + $0x9ec] ss:$16 sps:$4 sm:$0xff]   ;;  %v5458_v13 = vld [vmem:[%s7696_s1 + $0x9e0] ss:$16 sps:$4 sm:$0xff]  }
 0x102   :  { %3720 = vmatmul.mubr.bf16.vlgmr.msra.gmra.mrb[0].mxu0 %v4320_v11  ;;  %4089 = vmatmul.mubr.bf16.vlgmr.msra.gmra.mrb[0].mxu1 %v4320_v11  ;;  %v5468_v11 = vld [vmem:[%s7696_s1 + $0xa04] ss:$16 sps:$4 sm:$0xff]  }
 0x103   :  { %3729 = vmatpush1.bf16.msra.mxu0 %v5368_v15  ;;  %4098 = vmatpush1.bf16.msra.mxu1 %v5371_v17  ;;  %v5461_v15 = vld [vmem:[%s7696_s1 + $0x9e8] ss:$16 sps:$4 sm:$0xff]   ;;  %v5471_v17 = vld [vmem:[%s7696_s1 + $0xa0c] ss:$16 sps:$4 sm:$0xff]  }
 0x104   :  { %3730 = vmatprep.subr.bf16.mxu0 %v5376_v18  ;;  %4099 = vmatprep.subr.bf16.mxu1 %v5379_v14  ;;  %v6884_v18 = vld [vmem:[%s7697_s0 + $0x28] sm:$0xff]  ;;  %v4322_v14 = vcombine.low %v6688_v16, %v6688_v16 }
 0x105   :  { %3760 = vmatprep.mubr.bf16.mxu0 %v4323_v19  ;;  %4129 = vmatprep.mubr.bf16.mxu1 %v4323_v19  ;;  %v5466_v19 = vld [vmem:[%s7696_s1 + $0xa00] ss:$16 sps:$4 sm:$0xff]   ;;  %v5477_v16 = vld [vmem:[%s7696_s1 + $0xa2c] ss:$16 sps:$4 sm:$0xff]  }
 0x107   :  { %3731 = vmatpush1.bf16.msra.mxu0 %v5374_v20  ;;  %4100 = vmatpush1.bf16.msra.mxu1 %v5377_v21  ;;  %v5469_v20 = vld [vmem:[%s7696_s1 + $0xa08] ss:$16 sps:$4 sm:$0xff]   ;;  %v5474_v21 = vld [vmem:[%s7696_s1 + $0xa24] ss:$16 sps:$4 sm:$0xff]  }
 0x108   :  { %3732 = vmatprep.subr.bf16.mxu0 %v5382_v22  ;;  %4101 = vmatprep.subr.bf16.mxu1 %v5385_v23  ;;  %v4325_v22 = vcombine.high %v6884_v18, %v6884_v18  ;;  %v5472_v23 = vld [vmem:[%s7696_s1 + $0xa20] ss:$16 sps:$4 sm:$0xff]  }
 0x10b   :  { %3733 = vmatpush1.bf16.msra.mxu0 %v5380_v24  ;;  %4102 = vmatpush1.bf16.msra.mxu1 %v5383_v25  ;;  %v5475_v24 = vld [vmem:[%s7696_s1 + $0xa28] ss:$16 sps:$4 sm:$0xff]   ;;  %v5480_v25 = vld [vmem:[%s7696_s1 + $0xa44] ss:$16 sps:$4 sm:$0xff]  }
 0x10c   :  { %3734 = vmatprep.subr.bf16.mxu0 %v5388_v26  ;;  %4103 = vmatprep.subr.bf16.mxu1 %v5391_v27  ;;  %v5483_v26 = vld [vmem:[%s7696_s1 + $0xa4c] ss:$16 sps:$4 sm:$0xff]   ;;  %v5478_v27 = vld [vmem:[%s7696_s1 + $0xa40] ss:$16 sps:$4 sm:$0xff]  }
 0x10f   :  { %3735 = vmatpush1.bf16.msra.mxu0 %v5386_v28  ;;  %4104 = vmatpush1.bf16.msra.mxu1 %v5389_v29  ;;  %v5481_v28 = vld [vmem:[%s7696_s1 + $0xa48] ss:$16 sps:$4 sm:$0xff]   ;;  %v5486_v29 = vld [vmem:[%s7696_s1 + $0xa64] ss:$16 sps:$4 sm:$0xff]  }
 0x110   :  { %3736 = vmatprep.subr.bf16.mxu0 %v5394_v30  ;;  %4105 = vmatprep.subr.bf16.mxu1 %v5397_v31  ;;  %v5489_v30 = vld [vmem:[%s7696_s1 + $0xa6c] ss:$16 sps:$4 sm:$0xff]   ;;  %v5484_v31 = vld [vmem:[%s7696_s1 + $0xa60] ss:$16 sps:$4 sm:$0xff]  }
 0x113   :  { %3737 = vmatpush1.bf16.msra.mxu0 %v5392_v32  ;;  %4106 = vmatpush1.bf16.msra.mxu1 %v5395_v33  ;;  %v5487_v32 = vld [vmem:[%s7696_s1 + $0xa68] ss:$16 sps:$4 sm:$0xff]   ;;  %v5492_v33 = vld [vmem:[%s7696_s1 + $0xa84] ss:$16 sps:$4 sm:$0xff]  }
 0x114   :  { %3738 = vmatprep.subr.bf16.mxu0 %v5400_v34  ;;  %4107 = vmatprep.subr.bf16.mxu1 %v5403_v35  ;;  %v5495_v34 = vld [vmem:[%s7696_s1 + $0xa8c] ss:$16 sps:$4 sm:$0xff]   ;;  %v5490_v35 = vld [vmem:[%s7696_s1 + $0xa80] ss:$16 sps:$4 sm:$0xff]  }
 0x117   :  { %3739 = vmatpush1.bf16.msra.mxu0 %v5398_v36  ;;  %4108 = vmatpush1.bf16.msra.mxu1 %v5401_v37  ;;  %v5493_v36 = vld [vmem:[%s7696_s1 + $0xa88] ss:$16 sps:$4 sm:$0xff]   ;;  %v5498_v37 = vld [vmem:[%s7696_s1 + $0xaa4] ss:$16 sps:$4 sm:$0xff]  }
 0x118   :  { %3740 = vmatprep.subr.bf16.mxu0 %v5406_v38  ;;  %4109 = vmatprep.subr.bf16.mxu1 %v5409_v39  ;;  %v5501_v38 = vld [vmem:[%s7696_s1 + $0xaac] ss:$16 sps:$4 sm:$0xff]   ;;  %v5496_v39 = vld [vmem:[%s7696_s1 + $0xaa0] ss:$16 sps:$4 sm:$0xff]  }
 0x11b   :  { %3741 = vmatpush1.bf16.msra.mxu0 %v5404_v40  ;;  %4110 = vmatpush1.bf16.msra.mxu1 %v5407_v41  ;;  %v5499_v40 = vld [vmem:[%s7696_s1 + $0xaa8] ss:$16 sps:$4 sm:$0xff]   ;;  %v5504_v41 = vld [vmem:[%s7696_s1 + $0xac4] ss:$16 sps:$4 sm:$0xff]  }
 0x11c   :  { %3742 = vmatprep.subr.bf16.mxu0 %v5412_v42  ;;  %4111 = vmatprep.subr.bf16.mxu1 %v5415_v43  ;;  %v5507_v42 = vld [vmem:[%s7696_s1 + $0xacc] ss:$16 sps:$4 sm:$0xff]   ;;  %v5502_v43 = vld [vmem:[%s7696_s1 + $0xac0] ss:$16 sps:$4 sm:$0xff]  }
 0x11f   :  { %3743 = vmatpush1.bf16.msra.mxu0 %v5410_v44  ;;  %4112 = vmatpush1.bf16.msra.mxu1 %v5413_v45  ;;  %v5505_v44 = vld [vmem:[%s7696_s1 + $0xac8] ss:$16 sps:$4 sm:$0xff]   ;;  %v5510_v45 = vld [vmem:[%s7696_s1 + $0xae4] ss:$16 sps:$4 sm:$0xff]  }
 0x120   :  { %3744 = vmatprep.subr.bf16.mxu0 %v5418_v46  ;;  %4113 = vmatprep.subr.bf16.mxu1 %v5421_v47  ;;  %v5513_v46 = vld [vmem:[%s7696_s1 + $0xaec] ss:$16 sps:$4 sm:$0xff]   ;;  %v5508_v47 = vld [vmem:[%s7696_s1 + $0xae0] ss:$16 sps:$4 sm:$0xff]  }
 0x123   :  { %3745 = vmatpush1.bf16.msra.mxu0 %v5416_v48  ;;  %4114 = vmatpush1.bf16.msra.mxu1 %v5419_v49  ;;  %v5511_v48 = vld [vmem:[%s7696_s1 + $0xae8] ss:$16 sps:$4 sm:$0xff]   ;;  %v5516_v49 = vld [vmem:[%s7696_s1 + $0xb04] ss:$16 sps:$4 sm:$0xff]  }
 0x124   :  { %3746 = vmatprep.subr.bf16.mxu0 %v5424_v50  ;;  %4115 = vmatprep.subr.bf16.mxu1 %v5427_v51  ;;  %v5519_v50 = vld [vmem:[%s7696_s1 + $0xb0c] ss:$16 sps:$4 sm:$0xff]   ;;  %v5514_v51 = vld [vmem:[%s7696_s1 + $0xb00] ss:$16 sps:$4 sm:$0xff]  }
 0x127   :  { %3747 = vmatpush1.bf16.msra.mxu0 %v5422_v52  ;;  %4116 = vmatpush1.bf16.msra.mxu1 %v5425_v53  ;;  %v5517_v52 = vld [vmem:[%s7696_s1 + $0xb08] ss:$16 sps:$4 sm:$0xff]   ;;  %v5522_v53 = vld [vmem:[%s7696_s1 + $0xb24] ss:$16 sps:$4 sm:$0xff]  }
 0x128   :  { %3748 = vmatprep.subr.bf16.mxu0 %v5430_v54  ;;  %4117 = vmatprep.subr.bf16.mxu1 %v5433_v55  ;;  %v5525_v54 = vld [vmem:[%s7696_s1 + $0xb2c] ss:$16 sps:$4 sm:$0xff]   ;;  %v5520_v55 = vld [vmem:[%s7696_s1 + $0xb20] ss:$16 sps:$4 sm:$0xff]  }
 0x12b   :  { %3749 = vmatpush1.bf16.msra.mxu0 %v5428_v56  ;;  %4118 = vmatpush1.bf16.msra.mxu1 %v5431_v57  ;;  %v5523_v56 = vld [vmem:[%s7696_s1 + $0xb28] ss:$16 sps:$4 sm:$0xff]   ;;  %v5528_v57 = vld [vmem:[%s7696_s1 + $0xb44] ss:$16 sps:$4 sm:$0xff]  }
 0x12c   :  { %3750 = vmatprep.subr.bf16.mxu0 %v5436_v58  ;;  %4119 = vmatprep.subr.bf16.mxu1 %v5439_v59  ;;  %v5531_v58 = vld [vmem:[%s7696_s1 + $0xb4c] ss:$16 sps:$4 sm:$0xff]   ;;  %v5526_v59 = vld [vmem:[%s7696_s1 + $0xb40] ss:$16 sps:$4 sm:$0xff]  }
 0x12f   :  { %3751 = vmatpush1.bf16.msra.mxu0 %v5434_v60  ;;  %4120 = vmatpush1.bf16.msra.mxu1 %v5437_v61  ;;  %v5529_v60 = vld [vmem:[%s7696_s1 + $0xb48] ss:$16 sps:$4 sm:$0xff]   ;;  %v5534_v61 = vld [vmem:[%s7696_s1 + $0xb64] ss:$16 sps:$4 sm:$0xff]  }
 0x130   :  { %3752 = vmatprep.subr.bf16.mxu0 %v5442_v62  ;;  %4121 = vmatprep.subr.bf16.mxu1 %v5445_v63  ;;  %v5537_v62 = vld [vmem:[%s7696_s1 + $0xb6c] ss:$16 sps:$4 sm:$0xff]   ;;  %v5532_v63 = vld [vmem:[%s7696_s1 + $0xb60] ss:$16 sps:$4 sm:$0xff]  }
 0x133   :  { %3753 = vmatpush1.bf16.msra.mxu0 %v5440_v0  ;;  %4122 = vmatpush1.bf16.msra.mxu1 %v5443_v1  ;;  %v5535_v0 = vld [vmem:[%s7696_s1 + $0xb68] ss:$16 sps:$4 sm:$0xff]   ;;  %v5540_v1 = vld [vmem:[%s7696_s1 + $0xb84] ss:$16 sps:$4 sm:$0xff]  }
 0x134   :  { %3754 = vmatprep.subr.bf16.mxu0 %v5448_v2  ;;  %4123 = vmatprep.subr.bf16.mxu1 %v5451_v3  ;;  %v5543_v2 = vld [vmem:[%s7696_s1 + $0xb8c] ss:$16 sps:$4 sm:$0xff]   ;;  %v5538_v3 = vld [vmem:[%s7696_s1 + $0xb80] ss:$16 sps:$4 sm:$0xff]  }
 0x137   :  { %3755 = vmatpush1.bf16.msra.mxu0 %v5446_v4  ;;  %4124 = vmatpush1.bf16.msra.mxu1 %v5449_v5  ;;  %v5541_v4 = vld [vmem:[%s7696_s1 + $0xb88] ss:$16 sps:$4 sm:$0xff]   ;;  %v5546_v5 = vld [vmem:[%s7696_s1 + $0xba4] ss:$16 sps:$4 sm:$0xff]  }
 0x138   :  { %3756 = vmatprep.subr.bf16.mxu0 %v5454_v6  ;;  %4125 = vmatprep.subr.bf16.mxu1 %v5457_v7  ;;  %v5549_v6 = vld [vmem:[%s7696_s1 + $0xbac] ss:$16 sps:$4 sm:$0xff]   ;;  %v5544_v7 = vld [vmem:[%s7696_s1 + $0xba0] ss:$16 sps:$4 sm:$0xff]  }
 0x13b   :  { %3757 = vmatpush1.bf16.msra.mxu0 %v5452_v8  ;;  %4126 = vmatpush1.bf16.msra.mxu1 %v5455_v9  ;;  %v5547_v8 = vld [vmem:[%s7696_s1 + $0xba8] ss:$16 sps:$4 sm:$0xff]   ;;  %v5552_v9 = vld [vmem:[%s7696_s1 + $0xbc4] ss:$16 sps:$4 sm:$0xff]  }
 0x13c   :  { %3758 = vmatprep.subr.bf16.mxu0 %v5460_v10  ;;  %4127 = vmatprep.subr.bf16.mxu1 %v5463_v12  ;;  %v5555_v10 = vld [vmem:[%s7696_s1 + $0xbcc] ss:$16 sps:$4 sm:$0xff]   ;;  %v5550_v12 = vld [vmem:[%s7696_s1 + $0xbc0] ss:$16 sps:$4 sm:$0xff]  }
 0x13f   :  { %3759 = vmatpush1.bf16.msra.mxu0 %v5458_v13  ;;  %4128 = vmatpush1.bf16.msra.mxu1 %v5461_v15  ;;  %v5553_v13 = vld [vmem:[%s7696_s1 + $0xbc8] ss:$16 sps:$4 sm:$0xff]   ;;  %v5558_v15 = vld [vmem:[%s7696_s1 + $0xbe4] ss:$16 sps:$4 sm:$0xff]  }
 0x140   :  { %3769 = vmatprep.subr.bf16.mxu0 %v5468_v11  ;;  %4138 = vmatprep.subr.bf16.mxu1 %v5471_v17  ;;  %v5561_v11 = vld [vmem:[%s7696_s1 + $0xbec] ss:$16 sps:$4 sm:$0xff]   ;;  %v5556_v17 = vld [vmem:[%s7696_s1 + $0xbe0] ss:$16 sps:$4 sm:$0xff]  }
 0x142   :  { %3761 = vmatmul.mubr.bf16.vlgmr.msra.gmra.mrb[0].mxu0 %v4322_v14  ;;  %4130 = vmatmul.mubr.bf16.vlgmr.msra.gmra.mrb[0].mxu1 %v4322_v14  ;;  %v5559_v14 = vld [vmem:[%s7696_s1 + $0xbe8] ss:$16 sps:$4 sm:$0xff]  }
 0x143   :  { %3770 = vmatpush1.bf16.msra.mxu0 %v5466_v19  ;;  %4139 = vmatpush1.bf16.msra.mxu1 %v5469_v20  ;;  %v5566_v19 = vld [vmem:[%s7696_s1 + $0xc04] ss:$16 sps:$4 sm:$0xff]   ;;  %v5569_v20 = vld [vmem:[%s7696_s1 + $0xc0c] ss:$16 sps:$4 sm:$0xff]  }
 0x144   :  { %3771 = vmatprep.subr.bf16.mxu0 %v5474_v21  ;;  %4140 = vmatprep.subr.bf16.mxu1 %v5477_v16  ;;  %v4324_v21 = vcombine.low %v6884_v18, %v6884_v18  ;;  %v7087_v16 = vld [vmem:[%s7697_s0 + $0x30] sm:$0xff] }
 0x145   :  { %3801 = vmatprep.mubr.bf16.mxu0 %v4325_v22  ;;  %4170 = vmatprep.mubr.bf16.mxu1 %v4325_v22  ;;  %v5564_v22 = vld [vmem:[%s7696_s1 + $0xc00] ss:$16 sps:$4 sm:$0xff]   ;;  %v5572_v18 = vld [vmem:[%s7696_s1 + $0xc24] ss:$16 sps:$4 sm:$0xff]  }
 0x147   :  { %3772 = vmatpush1.bf16.msra.mxu0 %v5472_v23  ;;  %4141 = vmatpush1.bf16.msra.mxu1 %v5475_v24  ;;  %v5567_v23 = vld [vmem:[%s7696_s1 + $0xc08] ss:$16 sps:$4 sm:$0xff]   ;;  %v5575_v24 = vld [vmem:[%s7696_s1 + $0xc2c] ss:$16 sps:$4 sm:$0xff]  }
 0x148   :  { %3773 = vmatprep.subr.bf16.mxu0 %v5480_v25  ;;  %4142 = vmatprep.subr.bf16.mxu1 %v5483_v26  ;;  %v4327_v25 = vcombine.high %v7087_v16, %v7087_v16  ;;  %v5570_v26 = vld [vmem:[%s7696_s1 + $0xc20] ss:$16 sps:$4 sm:$0xff]  }
 0x14b   :  { %3774 = vmatpush1.bf16.msra.mxu0 %v5478_v27  ;;  %4143 = vmatpush1.bf16.msra.mxu1 %v5481_v28  ;;  %v5573_v27 = vld [vmem:[%s7696_s1 + $0xc28] ss:$16 sps:$4 sm:$0xff]   ;;  %v5578_v28 = vld [vmem:[%s7696_s1 + $0xc44] ss:$16 sps:$4 sm:$0xff]  }
 0x14c   :  { %3775 = vmatprep.subr.bf16.mxu0 %v5486_v29  ;;  %4144 = vmatprep.subr.bf16.mxu1 %v5489_v30  ;;  %v5581_v29 = vld [vmem:[%s7696_s1 + $0xc4c] ss:$16 sps:$4 sm:$0xff]   ;;  %v5576_v30 = vld [vmem:[%s7696_s1 + $0xc40] ss:$16 sps:$4 sm:$0xff]  }
 0x14f   :  { %3776 = vmatpush1.bf16.msra.mxu0 %v5484_v31  ;;  %4145 = vmatpush1.bf16.msra.mxu1 %v5487_v32  ;;  %v5579_v31 = vld [vmem:[%s7696_s1 + $0xc48] ss:$16 sps:$4 sm:$0xff]   ;;  %v5584_v32 = vld [vmem:[%s7696_s1 + $0xc64] ss:$16 sps:$4 sm:$0xff]  }
 0x150   :  { %3777 = vmatprep.subr.bf16.mxu0 %v5492_v33  ;;  %4146 = vmatprep.subr.bf16.mxu1 %v5495_v34  ;;  %v5587_v33 = vld [vmem:[%s7696_s1 + $0xc6c] ss:$16 sps:$4 sm:$0xff]   ;;  %v5582_v34 = vld [vmem:[%s7696_s1 + $0xc60] ss:$16 sps:$4 sm:$0xff]  }
 0x153   :  { %3778 = vmatpush1.bf16.msra.mxu0 %v5490_v35  ;;  %4147 = vmatpush1.bf16.msra.mxu1 %v5493_v36  ;;  %v5585_v35 = vld [vmem:[%s7696_s1 + $0xc68] ss:$16 sps:$4 sm:$0xff]   ;;  %v5590_v36 = vld [vmem:[%s7696_s1 + $0xc84] ss:$16 sps:$4 sm:$0xff]  }
 0x154   :  { %3779 = vmatprep.subr.bf16.mxu0 %v5498_v37  ;;  %4148 = vmatprep.subr.bf16.mxu1 %v5501_v38  ;;  %v5593_v37 = vld [vmem:[%s7696_s1 + $0xc8c] ss:$16 sps:$4 sm:$0xff]   ;;  %v5588_v38 = vld [vmem:[%s7696_s1 + $0xc80] ss:$16 sps:$4 sm:$0xff]  }
 0x157   :  { %3780 = vmatpush1.bf16.msra.mxu0 %v5496_v39  ;;  %4149 = vmatpush1.bf16.msra.mxu1 %v5499_v40  ;;  %v5591_v39 = vld [vmem:[%s7696_s1 + $0xc88] ss:$16 sps:$4 sm:$0xff]   ;;  %v5596_v40 = vld [vmem:[%s7696_s1 + $0xca4] ss:$16 sps:$4 sm:$0xff]  }
 0x158   :  { %3781 = vmatprep.subr.bf16.mxu0 %v5504_v41  ;;  %4150 = vmatprep.subr.bf16.mxu1 %v5507_v42  ;;  %v5599_v41 = vld [vmem:[%s7696_s1 + $0xcac] ss:$16 sps:$4 sm:$0xff]   ;;  %v5594_v42 = vld [vmem:[%s7696_s1 + $0xca0] ss:$16 sps:$4 sm:$0xff]  }
 0x15b   :  { %3782 = vmatpush1.bf16.msra.mxu0 %v5502_v43  ;;  %4151 = vmatpush1.bf16.msra.mxu1 %v5505_v44  ;;  %v5597_v43 = vld [vmem:[%s7696_s1 + $0xca8] ss:$16 sps:$4 sm:$0xff]   ;;  %v5602_v44 = vld [vmem:[%s7696_s1 + $0xcc4] ss:$16 sps:$4 sm:$0xff]  }
 0x15c   :  { %3783 = vmatprep.subr.bf16.mxu0 %v5510_v45  ;;  %4152 = vmatprep.subr.bf16.mxu1 %v5513_v46  ;;  %v5605_v45 = vld [vmem:[%s7696_s1 + $0xccc] ss:$16 sps:$4 sm:$0xff]   ;;  %v5600_v46 = vld [vmem:[%s7696_s1 + $0xcc0] ss:$16 sps:$4 sm:$0xff]  }
 0x15f   :  { %3784 = vmatpush1.bf16.msra.mxu0 %v5508_v47  ;;  %4153 = vmatpush1.bf16.msra.mxu1 %v5511_v48  ;;  %v5603_v47 = vld [vmem:[%s7696_s1 + $0xcc8] ss:$16 sps:$4 sm:$0xff]   ;;  %v5608_v48 = vld [vmem:[%s7696_s1 + $0xce4] ss:$16 sps:$4 sm:$0xff]  }
 0x160   :  { %3785 = vmatprep.subr.bf16.mxu0 %v5516_v49  ;;  %4154 = vmatprep.subr.bf16.mxu1 %v5519_v50  ;;  %v5611_v49 = vld [vmem:[%s7696_s1 + $0xcec] ss:$16 sps:$4 sm:$0xff]   ;;  %v5606_v50 = vld [vmem:[%s7696_s1 + $0xce0] ss:$16 sps:$4 sm:$0xff]  }
 0x163   :  { %3786 = vmatpush1.bf16.msra.mxu0 %v5514_v51  ;;  %4155 = vmatpush1.bf16.msra.mxu1 %v5517_v52  ;;  %v5609_v51 = vld [vmem:[%s7696_s1 + $0xce8] ss:$16 sps:$4 sm:$0xff]   ;;  %v5614_v52 = vld [vmem:[%s7696_s1 + $0xd04] ss:$16 sps:$4 sm:$0xff]  }
 0x164   :  { %3787 = vmatprep.subr.bf16.mxu0 %v5522_v53  ;;  %4156 = vmatprep.subr.bf16.mxu1 %v5525_v54  ;;  %v5617_v53 = vld [vmem:[%s7696_s1 + $0xd0c] ss:$16 sps:$4 sm:$0xff]   ;;  %v5612_v54 = vld [vmem:[%s7696_s1 + $0xd00] ss:$16 sps:$4 sm:$0xff]  }
 0x167   :  { %3788 = vmatpush1.bf16.msra.mxu0 %v5520_v55  ;;  %4157 = vmatpush1.bf16.msra.mxu1 %v5523_v56  ;;  %v5615_v55 = vld [vmem:[%s7696_s1 + $0xd08] ss:$16 sps:$4 sm:$0xff]   ;;  %v5620_v56 = vld [vmem:[%s7696_s1 + $0xd24] ss:$16 sps:$4 sm:$0xff]  }
 0x168   :  { %3789 = vmatprep.subr.bf16.mxu0 %v5528_v57  ;;  %4158 = vmatprep.subr.bf16.mxu1 %v5531_v58  ;;  %v5623_v57 = vld [vmem:[%s7696_s1 + $0xd2c] ss:$16 sps:$4 sm:$0xff]   ;;  %v5618_v58 = vld [vmem:[%s7696_s1 + $0xd20] ss:$16 sps:$4 sm:$0xff]  }
 0x16b   :  { %3790 = vmatpush1.bf16.msra.mxu0 %v5526_v59  ;;  %4159 = vmatpush1.bf16.msra.mxu1 %v5529_v60  ;;  %v5621_v59 = vld [vmem:[%s7696_s1 + $0xd28] ss:$16 sps:$4 sm:$0xff]   ;;  %v5626_v60 = vld [vmem:[%s7696_s1 + $0xd44] ss:$16 sps:$4 sm:$0xff]  }
 0x16c   :  { %3791 = vmatprep.subr.bf16.mxu0 %v5534_v61  ;;  %4160 = vmatprep.subr.bf16.mxu1 %v5537_v62  ;;  %v5629_v61 = vld [vmem:[%s7696_s1 + $0xd4c] ss:$16 sps:$4 sm:$0xff]   ;;  %v5624_v62 = vld [vmem:[%s7696_s1 + $0xd40] ss:$16 sps:$4 sm:$0xff]  }
 0x16f   :  { %3792 = vmatpush1.bf16.msra.mxu0 %v5532_v63  ;;  %4161 = vmatpush1.bf16.msra.mxu1 %v5535_v0  ;;  %v5627_v63 = vld [vmem:[%s7696_s1 + $0xd48] ss:$16 sps:$4 sm:$0xff]   ;;  %v5632_v0 = vld [vmem:[%s7696_s1 + $0xd64] ss:$16 sps:$4 sm:$0xff]  }
 0x170   :  { %3793 = vmatprep.subr.bf16.mxu0 %v5540_v1  ;;  %4162 = vmatprep.subr.bf16.mxu1 %v5543_v2  ;;  %v5635_v1 = vld [vmem:[%s7696_s1 + $0xd6c] ss:$16 sps:$4 sm:$0xff]   ;;  %v5630_v2 = vld [vmem:[%s7696_s1 + $0xd60] ss:$16 sps:$4 sm:$0xff]  }
 0x173   :  { %3794 = vmatpush1.bf16.msra.mxu0 %v5538_v3  ;;  %4163 = vmatpush1.bf16.msra.mxu1 %v5541_v4  ;;  %v5633_v3 = vld [vmem:[%s7696_s1 + $0xd68] ss:$16 sps:$4 sm:$0xff]   ;;  %v5638_v4 = vld [vmem:[%s7696_s1 + $0xd84] ss:$16 sps:$4 sm:$0xff]  }
 0x174   :  { %3795 = vmatprep.subr.bf16.mxu0 %v5546_v5  ;;  %4164 = vmatprep.subr.bf16.mxu1 %v5549_v6  ;;  %v5641_v5 = vld [vmem:[%s7696_s1 + $0xd8c] ss:$16 sps:$4 sm:$0xff]   ;;  %v5636_v6 = vld [vmem:[%s7696_s1 + $0xd80] ss:$16 sps:$4 sm:$0xff]  }
 0x177   :  { %3796 = vmatpush1.bf16.msra.mxu0 %v5544_v7  ;;  %4165 = vmatpush1.bf16.msra.mxu1 %v5547_v8  ;;  %v5639_v7 = vld [vmem:[%s7696_s1 + $0xd88] ss:$16 sps:$4 sm:$0xff]   ;;  %v5644_v8 = vld [vmem:[%s7696_s1 + $0xda4] ss:$16 sps:$4 sm:$0xff]  }
 0x178   :  { %3797 = vmatprep.subr.bf16.mxu0 %v5552_v9  ;;  %4166 = vmatprep.subr.bf16.mxu1 %v5555_v10  ;;  %v5647_v9 = vld [vmem:[%s7696_s1 + $0xdac] ss:$16 sps:$4 sm:$0xff]   ;;  %v5642_v10 = vld [vmem:[%s7696_s1 + $0xda0] ss:$16 sps:$4 sm:$0xff]  }
 0x17b   :  { %3798 = vmatpush1.bf16.msra.mxu0 %v5550_v12  ;;  %4167 = vmatpush1.bf16.msra.mxu1 %v5553_v13  ;;  %v5645_v12 = vld [vmem:[%s7696_s1 + $0xda8] ss:$16 sps:$4 sm:$0xff]   ;;  %v5650_v13 = vld [vmem:[%s7696_s1 + $0xdc4] ss:$16 sps:$4 sm:$0xff]  }
 0x17c   :  { %3799 = vmatprep.subr.bf16.mxu0 %v5558_v15  ;;  %4168 = vmatprep.subr.bf16.mxu1 %v5561_v11  ;;  %v5653_v15 = vld [vmem:[%s7696_s1 + $0xdcc] ss:$16 sps:$4 sm:$0xff]   ;;  %v5648_v11 = vld [vmem:[%s7696_s1 + $0xdc0] ss:$16 sps:$4 sm:$0xff]  }
 0x17f   :  { %3800 = vmatpush1.bf16.msra.mxu0 %v5556_v17  ;;  %4169 = vmatpush1.bf16.msra.mxu1 %v5559_v14  ;;  %v5651_v17 = vld [vmem:[%s7696_s1 + $0xdc8] ss:$16 sps:$4 sm:$0xff]   ;;  %v5656_v14 = vld [vmem:[%s7696_s1 + $0xde4] ss:$16 sps:$4 sm:$0xff]  }
 0x180   :  { %3810 = vmatprep.subr.bf16.mxu0 %v5566_v19  ;;  %4179 = vmatprep.subr.bf16.mxu1 %v5569_v20  ;;  %v5659_v19 = vld [vmem:[%s7696_s1 + $0xdec] ss:$16 sps:$4 sm:$0xff]   ;;  %v5654_v20 = vld [vmem:[%s7696_s1 + $0xde0] ss:$16 sps:$4 sm:$0xff]  }
 0x182   :  { %3802 = vmatmul.mubr.bf16.vlgmr.msra.gmra.mrb[0].mxu0 %v4324_v21  ;;  %4171 = vmatmul.mubr.bf16.vlgmr.msra.gmra.mrb[0].mxu1 %v4324_v21  ;;  %v5657_v21 = vld [vmem:[%s7696_s1 + $0xde8] ss:$16 sps:$4 sm:$0xff]  }
 0x183   :  { %3811 = vmatpush1.bf16.msra.mxu0 %v5564_v22  ;;  %4180 = vmatpush1.bf16.msra.mxu1 %v5567_v23  ;;  %v5664_v22 = vld [vmem:[%s7696_s1 + $0xe04] ss:$16 sps:$4 sm:$0xff]   ;;  %v5667_v23 = vld [vmem:[%s7696_s1 + $0xe0c] ss:$16 sps:$4 sm:$0xff]  }
 0x184   :  { %3812 = vmatprep.subr.bf16.mxu0 %v5572_v18  ;;  %4181 = vmatprep.subr.bf16.mxu1 %v5575_v24  ;;  %v4326_v18 = vcombine.low %v7087_v16, %v7087_v16  ;;  %v7288_v24 = vld [vmem:[%s7697_s0 + $0x38] sm:$0xff]  ;;  %v5670_v16 = vld [vmem:[%s7696_s1 + $0xe24] ss:$16 sps:$4 sm:$0xff]  }
 0x185   :  { %3842 = vmatprep.mubr.bf16.mxu0 %v4327_v25  ;;  %4211 = vmatprep.mubr.bf16.mxu1 %v4327_v25  ;;  %v5662_v25 = vld [vmem:[%s7696_s1 + $0xe00] ss:$16 sps:$4 sm:$0xff]  }
 0x187   :  { %3813 = vmatpush1.bf16.msra.mxu0 %v5570_v26  ;;  %4182 = vmatpush1.bf16.msra.mxu1 %v5573_v27  ;;  %v5665_v26 = vld [vmem:[%s7696_s1 + $0xe08] ss:$16 sps:$4 sm:$0xff]   ;;  %v5673_v27 = vld [vmem:[%s7696_s1 + $0xe2c] ss:$16 sps:$4 sm:$0xff]  }
 0x188   :  { %3814 = vmatprep.subr.bf16.mxu0 %v5578_v28  ;;  %4183 = vmatprep.subr.bf16.mxu1 %v5581_v29  ;;  %v4329_v28 = vcombine.high %v7288_v24, %v7288_v24  ;;  %v5668_v29 = vld [vmem:[%s7696_s1 + $0xe20] ss:$16 sps:$4 sm:$0xff]  }
 0x18b   :  { %3815 = vmatpush1.bf16.msra.mxu0 %v5576_v30  ;;  %4184 = vmatpush1.bf16.msra.mxu1 %v5579_v31  ;;  %v5671_v30 = vld [vmem:[%s7696_s1 + $0xe28] ss:$16 sps:$4 sm:$0xff]   ;;  %v5676_v31 = vld [vmem:[%s7696_s1 + $0xe44] ss:$16 sps:$4 sm:$0xff]  }
 0x18c   :  { %3816 = vmatprep.subr.bf16.mxu0 %v5584_v32  ;;  %4185 = vmatprep.subr.bf16.mxu1 %v5587_v33  ;;  %v5679_v32 = vld [vmem:[%s7696_s1 + $0xe4c] ss:$16 sps:$4 sm:$0xff]   ;;  %v5674_v33 = vld [vmem:[%s7696_s1 + $0xe40] ss:$16 sps:$4 sm:$0xff]  }
 0x18f   :  { %3817 = vmatpush1.bf16.msra.mxu0 %v5582_v34  ;;  %4186 = vmatpush1.bf16.msra.mxu1 %v5585_v35  ;;  %v5677_v34 = vld [vmem:[%s7696_s1 + $0xe48] ss:$16 sps:$4 sm:$0xff]   ;;  %v5682_v35 = vld [vmem:[%s7696_s1 + $0xe64] ss:$16 sps:$4 sm:$0xff]  }
 0x190   :  { %3818 = vmatprep.subr.bf16.mxu0 %v5590_v36  ;;  %4187 = vmatprep.subr.bf16.mxu1 %v5593_v37  ;;  %v5685_v36 = vld [vmem:[%s7696_s1 + $0xe6c] ss:$16 sps:$4 sm:$0xff]   ;;  %v5680_v37 = vld [vmem:[%s7696_s1 + $0xe60] ss:$16 sps:$4 sm:$0xff]  }
 0x193   :  { %3819 = vmatpush1.bf16.msra.mxu0 %v5588_v38  ;;  %4188 = vmatpush1.bf16.msra.mxu1 %v5591_v39  ;;  %v5683_v38 = vld [vmem:[%s7696_s1 + $0xe68] ss:$16 sps:$4 sm:$0xff]   ;;  %v5688_v39 = vld [vmem:[%s7696_s1 + $0xe84] ss:$16 sps:$4 sm:$0xff]  }
 0x194   :  { %3820 = vmatprep.subr.bf16.mxu0 %v5596_v40  ;;  %4189 = vmatprep.subr.bf16.mxu1 %v5599_v41  ;;  %v5691_v40 = vld [vmem:[%s7696_s1 + $0xe8c] ss:$16 sps:$4 sm:$0xff]   ;;  %v5686_v41 = vld [vmem:[%s7696_s1 + $0xe80] ss:$16 sps:$4 sm:$0xff]  }
 0x197   :  { %3821 = vmatpush1.bf16.msra.mxu0 %v5594_v42  ;;  %4190 = vmatpush1.bf16.msra.mxu1 %v5597_v43  ;;  %v5689_v42 = vld [vmem:[%s7696_s1 + $0xe88] ss:$16 sps:$4 sm:$0xff]   ;;  %v5694_v43 = vld [vmem:[%s7696_s1 + $0xea4] ss:$16 sps:$4 sm:$0xff]  }
 0x198   :  { %3822 = vmatprep.subr.bf16.mxu0 %v5602_v44  ;;  %4191 = vmatprep.subr.bf16.mxu1 %v5605_v45  ;;  %v5697_v44 = vld [vmem:[%s7696_s1 + $0xeac] ss:$16 sps:$4 sm:$0xff]   ;;  %v5692_v45 = vld [vmem:[%s7696_s1 + $0xea0] ss:$16 sps:$4 sm:$0xff]  }
 0x19b   :  { %3823 = vmatpush1.bf16.msra.mxu0 %v5600_v46  ;;  %4192 = vmatpush1.bf16.msra.mxu1 %v5603_v47  ;;  %v5695_v46 = vld [vmem:[%s7696_s1 + $0xea8] ss:$16 sps:$4 sm:$0xff]   ;;  %v5700_v47 = vld [vmem:[%s7696_s1 + $0xec4] ss:$16 sps:$4 sm:$0xff]  }
 0x19c   :  { %3824 = vmatprep.subr.bf16.mxu0 %v5608_v48  ;;  %4193 = vmatprep.subr.bf16.mxu1 %v5611_v49  ;;  %v5703_v48 = vld [vmem:[%s7696_s1 + $0xecc] ss:$16 sps:$4 sm:$0xff]   ;;  %v5698_v49 = vld [vmem:[%s7696_s1 + $0xec0] ss:$16 sps:$4 sm:$0xff]  }
 0x19f   :  { %3825 = vmatpush1.bf16.msra.mxu0 %v5606_v50  ;;  %4194 = vmatpush1.bf16.msra.mxu1 %v5609_v51  ;;  %v5701_v50 = vld [vmem:[%s7696_s1 + $0xec8] ss:$16 sps:$4 sm:$0xff]   ;;  %v5706_v51 = vld [vmem:[%s7696_s1 + $0xee4] ss:$16 sps:$4 sm:$0xff]  }
 0x1a0   :  { %3826 = vmatprep.subr.bf16.mxu0 %v5614_v52  ;;  %4195 = vmatprep.subr.bf16.mxu1 %v5617_v53  ;;  %v5709_v52 = vld [vmem:[%s7696_s1 + $0xeec] ss:$16 sps:$4 sm:$0xff]   ;;  %v5704_v53 = vld [vmem:[%s7696_s1 + $0xee0] ss:$16 sps:$4 sm:$0xff]  }
 0x1a3   :  { %3827 = vmatpush1.bf16.msra.mxu0 %v5612_v54  ;;  %4196 = vmatpush1.bf16.msra.mxu1 %v5615_v55  ;;  %v5707_v54 = vld [vmem:[%s7696_s1 + $0xee8] ss:$16 sps:$4 sm:$0xff]   ;;  %v5712_v55 = vld [vmem:[%s7696_s1 + $0xf04] ss:$16 sps:$4 sm:$0xff]  }
 0x1a4   :  { %3828 = vmatprep.subr.bf16.mxu0 %v5620_v56  ;;  %4197 = vmatprep.subr.bf16.mxu1 %v5623_v57  ;;  %v5715_v56 = vld [vmem:[%s7696_s1 + $0xf0c] ss:$16 sps:$4 sm:$0xff]   ;;  %v5710_v57 = vld [vmem:[%s7696_s1 + $0xf00] ss:$16 sps:$4 sm:$0xff]  }
 0x1a7   :  { %3829 = vmatpush1.bf16.msra.mxu0 %v5618_v58  ;;  %4198 = vmatpush1.bf16.msra.mxu1 %v5621_v59  ;;  %v5713_v58 = vld [vmem:[%s7696_s1 + $0xf08] ss:$16 sps:$4 sm:$0xff]   ;;  %v5718_v59 = vld [vmem:[%s7696_s1 + $0xf24] ss:$16 sps:$4 sm:$0xff]  }
 0x1a8   :  { %3830 = vmatprep.subr.bf16.mxu0 %v5626_v60  ;;  %4199 = vmatprep.subr.bf16.mxu1 %v5629_v61  ;;  %v5721_v60 = vld [vmem:[%s7696_s1 + $0xf2c] ss:$16 sps:$4 sm:$0xff]   ;;  %v5716_v61 = vld [vmem:[%s7696_s1 + $0xf20] ss:$16 sps:$4 sm:$0xff]  }
 0x1ab   :  { %3831 = vmatpush1.bf16.msra.mxu0 %v5624_v62  ;;  %4200 = vmatpush1.bf16.msra.mxu1 %v5627_v63  ;;  %v5719_v62 = vld [vmem:[%s7696_s1 + $0xf28] ss:$16 sps:$4 sm:$0xff]   ;;  %v5724_v63 = vld [vmem:[%s7696_s1 + $0xf44] ss:$16 sps:$4 sm:$0xff]  }
 0x1ac   :  { %3832 = vmatprep.subr.bf16.mxu0 %v5632_v0  ;;  %4201 = vmatprep.subr.bf16.mxu1 %v5635_v1  ;;  %v5727_v0 = vld [vmem:[%s7696_s1 + $0xf4c] ss:$16 sps:$4 sm:$0xff]   ;;  %v5722_v1 = vld [vmem:[%s7696_s1 + $0xf40] ss:$16 sps:$4 sm:$0xff]  }
 0x1af   :  { %3833 = vmatpush1.bf16.msra.mxu0 %v5630_v2  ;;  %4202 = vmatpush1.bf16.msra.mxu1 %v5633_v3  ;;  %v5725_v2 = vld [vmem:[%s7696_s1 + $0xf48] ss:$16 sps:$4 sm:$0xff]   ;;  %v5730_v3 = vld [vmem:[%s7696_s1 + $0xf64] ss:$16 sps:$4 sm:$0xff]  }
 0x1b0   :  { %3834 = vmatprep.subr.bf16.mxu0 %v5638_v4  ;;  %4203 = vmatprep.subr.bf16.mxu1 %v5641_v5  ;;  %v5733_v4 = vld [vmem:[%s7696_s1 + $0xf6c] ss:$16 sps:$4 sm:$0xff]   ;;  %v5728_v5 = vld [vmem:[%s7696_s1 + $0xf60] ss:$16 sps:$4 sm:$0xff]  }
 0x1b3   :  { %3835 = vmatpush1.bf16.msra.mxu0 %v5636_v6  ;;  %4204 = vmatpush1.bf16.msra.mxu1 %v5639_v7  ;;  %v5731_v6 = vld [vmem:[%s7696_s1 + $0xf68] ss:$16 sps:$4 sm:$0xff]   ;;  %v5736_v7 = vld [vmem:[%s7696_s1 + $0xf84] ss:$16 sps:$4 sm:$0xff]  }
 0x1b4   :  { %3836 = vmatprep.subr.bf16.mxu0 %v5644_v8  ;;  %4205 = vmatprep.subr.bf16.mxu1 %v5647_v9  ;;  %v5739_v8 = vld [vmem:[%s7696_s1 + $0xf8c] ss:$16 sps:$4 sm:$0xff]   ;;  %v5734_v9 = vld [vmem:[%s7696_s1 + $0xf80] ss:$16 sps:$4 sm:$0xff]  }
 0x1b7   :  { %3837 = vmatpush1.bf16.msra.mxu0 %v5642_v10  ;;  %4206 = vmatpush1.bf16.msra.mxu1 %v5645_v12  ;;  %v5737_v10 = vld [vmem:[%s7696_s1 + $0xf88] ss:$16 sps:$4 sm:$0xff]   ;;  %v5742_v12 = vld [vmem:[%s7696_s1 + $0xfa4] ss:$16 sps:$4 sm:$0xff]  }
 0x1b8   :  { %3838 = vmatprep.subr.bf16.mxu0 %v5650_v13  ;;  %4207 = vmatprep.subr.bf16.mxu1 %v5653_v15  ;;  %v5745_v13 = vld [vmem:[%s7696_s1 + $0xfac] ss:$16 sps:$4 sm:$0xff]   ;;  %v5740_v15 = vld [vmem:[%s7696_s1 + $0xfa0] ss:$16 sps:$4 sm:$0xff]  }
 0x1bb   :  { %3839 = vmatpush1.bf16.msra.mxu0 %v5648_v11  ;;  %4208 = vmatpush1.bf16.msra.mxu1 %v5651_v17  ;;  %v5743_v11 = vld [vmem:[%s7696_s1 + $0xfa8] ss:$16 sps:$4 sm:$0xff]   ;;  %v5748_v17 = vld [vmem:[%s7696_s1 + $0xfc4] ss:$16 sps:$4 sm:$0xff]  }
 0x1bc   :  { %3840 = vmatprep.subr.bf16.mxu0 %v5656_v14  ;;  %4209 = vmatprep.subr.bf16.mxu1 %v5659_v19  ;;  %v5751_v14 = vld [vmem:[%s7696_s1 + $0xfcc] ss:$16 sps:$4 sm:$0xff]   ;;  %v5746_v19 = vld [vmem:[%s7696_s1 + $0xfc0] ss:$16 sps:$4 sm:$0xff]  }
 0x1bf   :  { %3841 = vmatpush1.bf16.msra.mxu0 %v5654_v20  ;;  %4210 = vmatpush1.bf16.msra.mxu1 %v5657_v21  ;;  %v5749_v20 = vld [vmem:[%s7696_s1 + $0xfc8] ss:$16 sps:$4 sm:$0xff]   ;;  %v5754_v21 = vld [vmem:[%s7696_s1 + $0xfe4] ss:$16 sps:$4 sm:$0xff]  }
 0x1c0   :  { %3851 = vmatprep.subr.bf16.mxu0 %v5664_v22  ;;  %4220 = vmatprep.subr.bf16.mxu1 %v5667_v23  ;;  %v5757_v22 = vld [vmem:[%s7696_s1 + $0xfec] ss:$16 sps:$4 sm:$0xff]   ;;  %v5752_v23 = vld [vmem:[%s7696_s1 + $0xfe0] ss:$16 sps:$4 sm:$0xff]  }
 0x1c2   :  { %3843 = vmatmul.mubr.bf16.vlgmr.msra.gmra.mrb[0].mxu0 %v4326_v18  ;;  %4212 = vmatmul.mubr.bf16.vlgmr.msra.gmra.mrb[0].mxu1 %v4326_v18  ;;  %v5755_v18 = vld [vmem:[%s7696_s1 + $0xfe8] ss:$16 sps:$4 sm:$0xff]  }
 0x1c3   :  { %3852 = vmatpush1.bf16.msra.mxu0 %v5662_v25  ;;  %4221 = vmatpush1.bf16.msra.mxu1 %v5665_v26  ;;  %v5762_v25 = vld [vmem:[%s7696_s1 + $0x1004] ss:$16 sps:$4 sm:$0xff]   ;;  %v5765_v26 = vld [vmem:[%s7696_s1 + $0x100c] ss:$16 sps:$4 sm:$0xff]  }
 0x1c4   :  { %3853 = vmatprep.subr.bf16.mxu0 %v5670_v16  ;;  %4222 = vmatprep.subr.bf16.mxu1 %v5673_v27  ;;  %v4328_v16 = vcombine.low %v7288_v24, %v7288_v24  ;;  %v7489_v27 = vld [vmem:[%s7697_s0 + $0x40] sm:$0xff] }
 0x1c5   :  { %3883 = vmatprep.mubr.bf16.mxu0 %v4329_v28  ;;  %4252 = vmatprep.mubr.bf16.mxu1 %v4329_v28  ;;  %v5760_v28 = vld [vmem:[%s7696_s1 + $0x1000] ss:$16 sps:$4 sm:$0xff]   ;;  %v5768_v24 = vld [vmem:[%s7696_s1 + $0x1024] ss:$16 sps:$4 sm:$0xff]  }
 0x1c7   :  { %3854 = vmatpush1.bf16.msra.mxu0 %v5668_v29  ;;  %4223 = vmatpush1.bf16.msra.mxu1 %v5671_v30  ;;  %v5763_v29 = vld [vmem:[%s7696_s1 + $0x1008] ss:$16 sps:$4 sm:$0xff]   ;;  %v5771_v30 = vld [vmem:[%s7696_s1 + $0x102c] ss:$16 sps:$4 sm:$0xff]  }
 0x1c8   :  { %3855 = vmatprep.subr.bf16.mxu0 %v5676_v31  ;;  %4224 = vmatprep.subr.bf16.mxu1 %v5679_v32  ;;  %v4331_v31 = vcombine.high %v7489_v27, %v7489_v27  ;;  %v5766_v32 = vld [vmem:[%s7696_s1 + $0x1020] ss:$16 sps:$4 sm:$0xff]  }
 0x1cb   :  { %3856 = vmatpush1.bf16.msra.mxu0 %v5674_v33  ;;  %4225 = vmatpush1.bf16.msra.mxu1 %v5677_v34  ;;  %v5769_v33 = vld [vmem:[%s7696_s1 + $0x1028] ss:$16 sps:$4 sm:$0xff]   ;;  %v5774_v34 = vld [vmem:[%s7696_s1 + $0x1044] ss:$16 sps:$4 sm:$0xff]  }
 0x1cc   :  { %3857 = vmatprep.subr.bf16.mxu0 %v5682_v35  ;;  %4226 = vmatprep.subr.bf16.mxu1 %v5685_v36  ;;  %v5777_v35 = vld [vmem:[%s7696_s1 + $0x104c] ss:$16 sps:$4 sm:$0xff]   ;;  %v5772_v36 = vld [vmem:[%s7696_s1 + $0x1040] ss:$16 sps:$4 sm:$0xff]  }
 0x1cf   :  { %3858 = vmatpush1.bf16.msra.mxu0 %v5680_v37  ;;  %4227 = vmatpush1.bf16.msra.mxu1 %v5683_v38  ;;  %v5775_v37 = vld [vmem:[%s7696_s1 + $0x1048] ss:$16 sps:$4 sm:$0xff]   ;;  %v5780_v38 = vld [vmem:[%s7696_s1 + $0x1064] ss:$16 sps:$4 sm:$0xff]  }
 0x1d0   :  { %3859 = vmatprep.subr.bf16.mxu0 %v5688_v39  ;;  %4228 = vmatprep.subr.bf16.mxu1 %v5691_v40  ;;  %v5783_v39 = vld [vmem:[%s7696_s1 + $0x106c] ss:$16 sps:$4 sm:$0xff]   ;;  %v5778_v40 = vld [vmem:[%s7696_s1 + $0x1060] ss:$16 sps:$4 sm:$0xff]  }
 0x1d3   :  { %3860 = vmatpush1.bf16.msra.mxu0 %v5686_v41  ;;  %4229 = vmatpush1.bf16.msra.mxu1 %v5689_v42  ;;  %v5781_v41 = vld [vmem:[%s7696_s1 + $0x1068] ss:$16 sps:$4 sm:$0xff]   ;;  %v5786_v42 = vld [vmem:[%s7696_s1 + $0x1084] ss:$16 sps:$4 sm:$0xff]  }
 0x1d4   :  { %3861 = vmatprep.subr.bf16.mxu0 %v5694_v43  ;;  %4230 = vmatprep.subr.bf16.mxu1 %v5697_v44  ;;  %v5789_v43 = vld [vmem:[%s7696_s1 + $0x108c] ss:$16 sps:$4 sm:$0xff]   ;;  %v5784_v44 = vld [vmem:[%s7696_s1 + $0x1080] ss:$16 sps:$4 sm:$0xff]  }
 0x1d7   :  { %3862 = vmatpush1.bf16.msra.mxu0 %v5692_v45  ;;  %4231 = vmatpush1.bf16.msra.mxu1 %v5695_v46  ;;  %v5787_v45 = vld [vmem:[%s7696_s1 + $0x1088] ss:$16 sps:$4 sm:$0xff]   ;;  %v5792_v46 = vld [vmem:[%s7696_s1 + $0x10a4] ss:$16 sps:$4 sm:$0xff]  }
 0x1d8   :  { %3863 = vmatprep.subr.bf16.mxu0 %v5700_v47  ;;  %4232 = vmatprep.subr.bf16.mxu1 %v5703_v48  ;;  %v5795_v47 = vld [vmem:[%s7696_s1 + $0x10ac] ss:$16 sps:$4 sm:$0xff]   ;;  %v5790_v48 = vld [vmem:[%s7696_s1 + $0x10a0] ss:$16 sps:$4 sm:$0xff]  }
 0x1db   :  { %3864 = vmatpush1.bf16.msra.mxu0 %v5698_v49  ;;  %4233 = vmatpush1.bf16.msra.mxu1 %v5701_v50  ;;  %v5793_v49 = vld [vmem:[%s7696_s1 + $0x10a8] ss:$16 sps:$4 sm:$0xff]   ;;  %v5798_v50 = vld [vmem:[%s7696_s1 + $0x10c4] ss:$16 sps:$4 sm:$0xff]  }
 0x1dc   :  { %3865 = vmatprep.subr.bf16.mxu0 %v5706_v51  ;;  %4234 = vmatprep.subr.bf16.mxu1 %v5709_v52  ;;  %v5801_v51 = vld [vmem:[%s7696_s1 + $0x10cc] ss:$16 sps:$4 sm:$0xff]   ;;  %v5796_v52 = vld [vmem:[%s7696_s1 + $0x10c0] ss:$16 sps:$4 sm:$0xff]  }
 0x1df   :  { %3866 = vmatpush1.bf16.msra.mxu0 %v5704_v53  ;;  %4235 = vmatpush1.bf16.msra.mxu1 %v5707_v54  ;;  %v5799_v53 = vld [vmem:[%s7696_s1 + $0x10c8] ss:$16 sps:$4 sm:$0xff]   ;;  %v5804_v54 = vld [vmem:[%s7696_s1 + $0x10e4] ss:$16 sps:$4 sm:$0xff]  }
 0x1e0   :  { %3867 = vmatprep.subr.bf16.mxu0 %v5712_v55  ;;  %4236 = vmatprep.subr.bf16.mxu1 %v5715_v56  ;;  %v5807_v55 = vld [vmem:[%s7696_s1 + $0x10ec] ss:$16 sps:$4 sm:$0xff]   ;;  %v5802_v56 = vld [vmem:[%s7696_s1 + $0x10e0] ss:$16 sps:$4 sm:$0xff]  }
 0x1e3   :  { %3868 = vmatpush1.bf16.msra.mxu0 %v5710_v57  ;;  %4237 = vmatpush1.bf16.msra.mxu1 %v5713_v58  ;;  %v5805_v57 = vld [vmem:[%s7696_s1 + $0x10e8] ss:$16 sps:$4 sm:$0xff]   ;;  %v5810_v58 = vld [vmem:[%s7696_s1 + $0x1104] ss:$16 sps:$4 sm:$0xff]  }
 0x1e4   :  { %3869 = vmatprep.subr.bf16.mxu0 %v5718_v59  ;;  %4238 = vmatprep.subr.bf16.mxu1 %v5721_v60  ;;  %v5813_v59 = vld [vmem:[%s7696_s1 + $0x110c] ss:$16 sps:$4 sm:$0xff]   ;;  %v5808_v60 = vld [vmem:[%s7696_s1 + $0x1100] ss:$16 sps:$4 sm:$0xff]  }
 0x1e7   :  { %3870 = vmatpush1.bf16.msra.mxu0 %v5716_v61  ;;  %4239 = vmatpush1.bf16.msra.mxu1 %v5719_v62  ;;  %v5811_v61 = vld [vmem:[%s7696_s1 + $0x1108] ss:$16 sps:$4 sm:$0xff]   ;;  %v5816_v62 = vld [vmem:[%s7696_s1 + $0x1124] ss:$16 sps:$4 sm:$0xff]  }
 0x1e8   :  { %3871 = vmatprep.subr.bf16.mxu0 %v5724_v63  ;;  %4240 = vmatprep.subr.bf16.mxu1 %v5727_v0  ;;  %v5819_v63 = vld [vmem:[%s7696_s1 + $0x112c] ss:$16 sps:$4 sm:$0xff]   ;;  %v5814_v0 = vld [vmem:[%s7696_s1 + $0x1120] ss:$16 sps:$4 sm:$0xff]  }
 0x1eb   :  { %3872 = vmatpush1.bf16.msra.mxu0 %v5722_v1  ;;  %4241 = vmatpush1.bf16.msra.mxu1 %v5725_v2  ;;  %v5817_v1 = vld [vmem:[%s7696_s1 + $0x1128] ss:$16 sps:$4 sm:$0xff]   ;;  %v5822_v2 = vld [vmem:[%s7696_s1 + $0x1144] ss:$16 sps:$4 sm:$0xff]  }
 0x1ec   :  { %3873 = vmatprep.subr.bf16.mxu0 %v5730_v3  ;;  %4242 = vmatprep.subr.bf16.mxu1 %v5733_v4  ;;  %v5825_v3 = vld [vmem:[%s7696_s1 + $0x114c] ss:$16 sps:$4 sm:$0xff]   ;;  %v5820_v4 = vld [vmem:[%s7696_s1 + $0x1140] ss:$16 sps:$4 sm:$0xff]  }
 0x1ef   :  { %3874 = vmatpush1.bf16.msra.mxu0 %v5728_v5  ;;  %4243 = vmatpush1.bf16.msra.mxu1 %v5731_v6  ;;  %v5823_v5 = vld [vmem:[%s7696_s1 + $0x1148] ss:$16 sps:$4 sm:$0xff]   ;;  %v5828_v6 = vld [vmem:[%s7696_s1 + $0x1164] ss:$16 sps:$4 sm:$0xff]  }
 0x1f0   :  { %3875 = vmatprep.subr.bf16.mxu0 %v5736_v7  ;;  %4244 = vmatprep.subr.bf16.mxu1 %v5739_v8  ;;  %v5831_v7 = vld [vmem:[%s7696_s1 + $0x116c] ss:$16 sps:$4 sm:$0xff]   ;;  %v5826_v8 = vld [vmem:[%s7696_s1 + $0x1160] ss:$16 sps:$4 sm:$0xff]  }
 0x1f3   :  { %3876 = vmatpush1.bf16.msra.mxu0 %v5734_v9  ;;  %4245 = vmatpush1.bf16.msra.mxu1 %v5737_v10  ;;  %v5829_v9 = vld [vmem:[%s7696_s1 + $0x1168] ss:$16 sps:$4 sm:$0xff]   ;;  %v5834_v10 = vld [vmem:[%s7696_s1 + $0x1184] ss:$16 sps:$4 sm:$0xff]  }
 0x1f4   :  { %3877 = vmatprep.subr.bf16.mxu0 %v5742_v12  ;;  %4246 = vmatprep.subr.bf16.mxu1 %v5745_v13  ;;  %v5837_v12 = vld [vmem:[%s7696_s1 + $0x118c] ss:$16 sps:$4 sm:$0xff]   ;;  %v5832_v13 = vld [vmem:[%s7696_s1 + $0x1180] ss:$16 sps:$4 sm:$0xff]  }
 0x1f7   :  { %3878 = vmatpush1.bf16.msra.mxu0 %v5740_v15  ;;  %4247 = vmatpush1.bf16.msra.mxu1 %v5743_v11  ;;  %v5835_v15 = vld [vmem:[%s7696_s1 + $0x1188] ss:$16 sps:$4 sm:$0xff]   ;;  %v5840_v11 = vld [vmem:[%s7696_s1 + $0x11a4] ss:$16 sps:$4 sm:$0xff]  }
 0x1f8   :  { %3879 = vmatprep.subr.bf16.mxu0 %v5748_v17  ;;  %4248 = vmatprep.subr.bf16.mxu1 %v5751_v14  ;;  %v5843_v17 = vld [vmem:[%s7696_s1 + $0x11ac] ss:$16 sps:$4 sm:$0xff]   ;;  %v5838_v14 = vld [vmem:[%s7696_s1 + $0x11a0] ss:$16 sps:$4 sm:$0xff]  }
 0x1fb   :  { %3880 = vmatpush1.bf16.msra.mxu0 %v5746_v19  ;;  %4249 = vmatpush1.bf16.msra.mxu1 %v5749_v20  ;;  %v5841_v19 = vld [vmem:[%s7696_s1 + $0x11a8] ss:$16 sps:$4 sm:$0xff]   ;;  %v5846_v20 = vld [vmem:[%s7696_s1 + $0x11c4] ss:$16 sps:$4 sm:$0xff]  }
 0x1fc   :  { %3881 = vmatprep.subr.bf16.mxu0 %v5754_v21  ;;  %4250 = vmatprep.subr.bf16.mxu1 %v5757_v22  ;;  %v5849_v21 = vld [vmem:[%s7696_s1 + $0x11cc] ss:$16 sps:$4 sm:$0xff]   ;;  %v5844_v22 = vld [vmem:[%s7696_s1 + $0x11c0] ss:$16 sps:$4 sm:$0xff]  }
 0x1ff   :  { %3882 = vmatpush1.bf16.msra.mxu0 %v5752_v23  ;;  %4251 = vmatpush1.bf16.msra.mxu1 %v5755_v18  ;;  %v5847_v23 = vld [vmem:[%s7696_s1 + $0x11c8] ss:$16 sps:$4 sm:$0xff]   ;;  %v5852_v18 = vld [vmem:[%s7696_s1 + $0x11e4] ss:$16 sps:$4 sm:$0xff]  }
 0x200   :  { %3892 = vmatprep.subr.bf16.mxu0 %v5762_v25  ;;  %4261 = vmatprep.subr.bf16.mxu1 %v5765_v26  ;;  %v5855_v25 = vld [vmem:[%s7696_s1 + $0x11ec] ss:$16 sps:$4 sm:$0xff]   ;;  %v5850_v26 = vld [vmem:[%s7696_s1 + $0x11e0] ss:$16 sps:$4 sm:$0xff]  }
 0x202   :  { %3884 = vmatmul.mubr.bf16.vlgmr.msra.gmra.mrb[0].mxu0 %v4328_v16  ;;  %4253 = vmatmul.mubr.bf16.vlgmr.msra.gmra.mrb[0].mxu1 %v4328_v16  ;;  %v5853_v16 = vld [vmem:[%s7696_s1 + $0x11e8] ss:$16 sps:$4 sm:$0xff]  }
 0x203   :  { %3893 = vmatpush1.bf16.msra.mxu0 %v5760_v28  ;;  %4262 = vmatpush1.bf16.msra.mxu1 %v5763_v29  ;;  %v4330_v28 = vcombine.low %v7489_v27, %v7489_v27  ;;  %v601_v29 = vlaneseq }
 0x204   :  { %3894 = vmatprep.subr.bf16.mxu0 %v5768_v24  ;;  %4263 = vmatprep.subr.bf16.mxu1 %v5771_v30 }
 0x205   :  { %3924 = vmatprep.mubr.bf16.mxu0 %v4331_v31  ;;  %4293 = vmatprep.mubr.bf16.mxu1 %v4331_v31  ;;  %v602_v24 = vshrl.u32 %v601_v29, 7 }
 0x207   :  { %3895 = vmatpush1.bf16.msra.mxu0 %v5766_v32  ;;  %4264 = vmatpush1.bf16.msra.mxu1 %v5769_v33  ;;  %v603_v30 = vsub.s32 0, %v602_v24  ;;  %v611_v31 = vsub.s32 2, %v602_v24  ;;  %v599_v32 = vld [vmem:[%s7698_s2] sm:$0xf]  ;;  %v607_v33 = vsub.s32 1, %v602_v24 }
 0x208   :  { %3896 = vmatprep.subr.bf16.mxu0 %v5774_v34  ;;  %4265 = vmatprep.subr.bf16.mxu1 %v5777_v35  ;;  %v615_v34 = vsub.s32 3, %v602_v24 }
 0x209   :  { %v604_v35 = vrot.slane %v599_v32, %v603_v30 }
 0x20b   :  { %3897 = vmatpush1.bf16.msra.mxu0 %v5772_v36  ;;  %4266 = vmatpush1.bf16.msra.mxu1 %v5775_v37  ;;  %v612_v36 = vrot.slane %v599_v32, %v611_v31  ;;  %v608_v37 = vrot.slane %v599_v32, %v607_v33 }
 0x20c   :  { %3898 = vmatprep.subr.bf16.mxu0 %v5780_v38  ;;  %4267 = vmatprep.subr.bf16.mxu1 %v5783_v39  ;;  %v616_v38 = vrot.slane %v599_v32, %v615_v34 }
 0x20f   :  { %3899 = vmatpush1.bf16.msra.mxu0 %v5778_v40  ;;  %4268 = vmatpush1.bf16.msra.mxu1 %v5781_v41 }
 0x210   :  { %3900 = vmatprep.subr.bf16.mxu0 %v5786_v42  ;;  %4269 = vmatprep.subr.bf16.mxu1 %v5789_v43 }
 0x213   :  { %3901 = vmatpush1.bf16.msra.mxu0 %v5784_v44  ;;  %4270 = vmatpush1.bf16.msra.mxu1 %v5787_v45 }
 0x214   :  { %3902 = vmatprep.subr.bf16.mxu0 %v5792_v46  ;;  %4271 = vmatprep.subr.bf16.mxu1 %v5795_v47 }
 0x217   :  { %3903 = vmatpush1.bf16.msra.mxu0 %v5790_v48  ;;  %4272 = vmatpush1.bf16.msra.mxu1 %v5793_v49 }
 0x218   :  { %3904 = vmatprep.subr.bf16.mxu0 %v5798_v50  ;;  %4273 = vmatprep.subr.bf16.mxu1 %v5801_v51 }
 0x21b   :  { %3905 = vmatpush1.bf16.msra.mxu0 %v5796_v52  ;;  %4274 = vmatpush1.bf16.msra.mxu1 %v5799_v53 }
 0x21c   :  { %3906 = vmatprep.subr.bf16.mxu0 %v5804_v54  ;;  %4275 = vmatprep.subr.bf16.mxu1 %v5807_v55 }
 0x21f   :  { %3907 = vmatpush1.bf16.msra.mxu0 %v5802_v56  ;;  %4276 = vmatpush1.bf16.msra.mxu1 %v5805_v57 }
 0x220   :  { %3908 = vmatprep.subr.bf16.mxu0 %v5810_v58  ;;  %4277 = vmatprep.subr.bf16.mxu1 %v5813_v59 }
 0x223   :  { %3909 = vmatpush1.bf16.msra.mxu0 %v5808_v60  ;;  %4278 = vmatpush1.bf16.msra.mxu1 %v5811_v61 }
 0x224   :  { %3910 = vmatprep.subr.bf16.mxu0 %v5816_v62  ;;  %4279 = vmatprep.subr.bf16.mxu1 %v5819_v63 }
 0x227   :  { %3911 = vmatpush1.bf16.msra.mxu0 %v5814_v0  ;;  %4280 = vmatpush1.bf16.msra.mxu1 %v5817_v1 }
 0x228   :  { %3912 = vmatprep.subr.bf16.mxu0 %v5822_v2  ;;  %4281 = vmatprep.subr.bf16.mxu1 %v5825_v3 }
 0x22b   :  { %3913 = vmatpush1.bf16.msra.mxu0 %v5820_v4  ;;  %4282 = vmatpush1.bf16.msra.mxu1 %v5823_v5 }
 0x22c   :  { %3914 = vmatprep.subr.bf16.mxu0 %v5828_v6  ;;  %4283 = vmatprep.subr.bf16.mxu1 %v5831_v7 }
 0x22f   :  { %3915 = vmatpush1.bf16.msra.mxu0 %v5826_v8  ;;  %4284 = vmatpush1.bf16.msra.mxu1 %v5829_v9 }
 0x230   :  { %3916 = vmatprep.subr.bf16.mxu0 %v5834_v10  ;;  %4285 = vmatprep.subr.bf16.mxu1 %v5837_v12 }
 0x233   :  { %3917 = vmatpush1.bf16.msra.mxu0 %v5832_v13  ;;  %4286 = vmatpush1.bf16.msra.mxu1 %v5835_v15 }
 0x234   :  { %3918 = vmatprep.subr.bf16.mxu0 %v5840_v11  ;;  %4287 = vmatprep.subr.bf16.mxu1 %v5843_v17 }
 0x237   :  { %3919 = vmatpush1.bf16.msra.mxu0 %v5838_v14  ;;  %4288 = vmatpush1.bf16.msra.mxu1 %v5841_v19 }
 0x238   :  { %3920 = vmatprep.subr.bf16.mxu0 %v5846_v20  ;;  %4289 = vmatprep.subr.bf16.mxu1 %v5849_v21 }
 0x23b   :  { %3921 = vmatpush1.bf16.msra.mxu0 %v5844_v22  ;;  %4290 = vmatpush1.bf16.msra.mxu1 %v5847_v23 }
 0x23c   :  { %3922 = vmatprep.subr.bf16.mxu0 %v5852_v18  ;;  %4291 = vmatprep.subr.bf16.mxu1 %v5855_v25 }
 0x23f   :  { %3923 = vmatpush1.bf16.msra.mxu0 %v5850_v26  ;;  %4292 = vmatpush1.bf16.msra.mxu1 %v5853_v16 }
 0x242   :  { %3925 = vmatmul.mubr.bf16.vlgmr.msra.gmra.mrb[0].mxu0 %v4330_v28  ;;  %4294 = vmatmul.mubr.bf16.vlgmr.msra.gmra.mrb[0].mxu1 %v4330_v28 }
 0x315   :  { %v3926_v39 = vpop.f32.mrb[0].mxu0  ;;  %v4295_v27 = vpop.f32.mrb[0].mxu1 }
 0x316   :  { %v4908_v40 = vadd.f32 %v3926_v39, %v604_v35  ;;  %v4910_v41 = vadd.f32 %v4295_v27, %v612_v36  ;;  %v3928_v42 = vpop.f32.mrb[1].mxu0  ;;  %v4297_v43 = vpop.f32.mrb[1].mxu1 }
 0x317   :  { %v4909_v44 = vadd.f32 %v3928_v42, %v608_v37  ;;  %v4911_v45 = vadd.f32 %v4297_v43, %v616_v38  ;;  %v3930_v46 = vpop.f32.mrb[2].mxu0  ;;  %v4299_v47 = vpop.f32.mrb[2].mxu1 }
 0x318   :  { %v4302_v48 = vmax.f32 %v4908_v40, 0.0  ;;  %v4304_v49 = vmax.f32 %v4910_v41, 0.0  ;;  %v3931_v50 = vpop.f32.mrb[3].mxu0  ;;  %v4300_v51 = vpop.f32.mrb[3].mxu1 }
 0x319   :  { %v4303_v52 = vmax.f32 %v4909_v44, 0.0  ;;  %v4305_v53 = vmax.f32 %v4911_v45, 0.0 }
 0x31a   :  { %4306 = vst [vmem:[%s7699_s3] sm:$0xff] %v4302_v48  ;;  %4308 = vst [vmem:[%s7699_s3 + $0x10] sm:$0xff] %v4304_v49 }
 0x31b   :  { %4307 = vst [vmem:[%s7699_s3 + $0x8] sm:$0xff] %v4303_v52  ;;  %4309 = vst [vmem:[%s7699_s3 + $0x18] sm:$0xff] %v4305_v53 }

// kernel: unet_forward.25
= control target key start
LH: loop header
LB: loop body
LE: loop exit
PB: predicated region body
PF: predicated region fallthrough
CT: control target
= control target key end

     0   :  { %vm455_vm0 = vcmask 523264   ;;  %s1741_s3 = inlined_call_operand.vmem [shape: bf16[576,64], index: 3, kind: input, shape index: {}]   ;;  %s1742_s1 = inlined_call_operand.vmem [shape: bf16[32,576], index: 1, kind: input, shape index: {}]   ;;  %s1743_s2 = inlined_call_operand.vmem [shape: bf16[576,64], index: 2, kind: input, shape index: {}]   ;;  %s1744_s0 = inlined_call_operand.vmem [shape: bf16[32,576], index: 0, kind: input, shape index: {}]   ;;  %s1745_s4 = inlined_call_operand.vmem [shape: f32[1,64], index: 4, kind: input, shape index: {}]   ;;  %s1746_s5 = inlined_call_operand.vmem [shape: f32[32,64], index: 5, kind: output, shape index: {}]  }
   0x1   :  { %v1312_v0 = vld [vmem:[%s1741_s3 + $0x40] sm:$0xff]   ;;  %v1316_v4 = vld [vmem:[%s1741_s3 + $0x48] sm:$0xff]   ;;  %v1320_v8 = vld [vmem:[%s1741_s3 + $0x50] sm:$0xff]  }
   0x2   :  { %v1313_v1 = vld [vmem:[%s1741_s3 + $0xc0] sm:$0xff]   ;;  %1148 = vmatprep.subr.bf16.mxu0 %v1312_v0  ;;  %v1317_v5 = vld [vmem:[%s1741_s3 + $0xc8] sm:$0xff]   ;;  %v1321_v9 = vld [vmem:[%s1741_s3 + $0xd0] sm:$0xff]  }
   0x3   :  { %v1314_v2 = vld [vmem:[%s1741_s3] sm:$0xff]   ;;  %1176 = vmatprep.subr.bf16.mxu1 %v1313_v1  ;;  %v1318_v6 = vld [vmem:[%s1741_s3 + $0x8] sm:$0xff]   ;;  %v1322_v10 = vld [vmem:[%s1741_s3 + $0x10] sm:$0xff]  }
   0x4   :  { %v1315_v3 = vld [vmem:[%s1741_s3 + $0x80] sm:$0xff]   ;;  %1149 = vmatpush3.bf16.msra.mxu0 %v1314_v2  ;;  %v1319_v7 = vld [vmem:[%s1741_s3 + $0x88] sm:$0xff]   ;;  %v1323_v11 = vld [vmem:[%s1741_s3 + $0x90] sm:$0xff]  }
   0x5   :  { %1177 = vmatpush3.bf16.msra.mxu1 %v1315_v3  ;;  %1150 = vmatprep.subr.bf16.mxu0 %v1316_v4  ;;  %v1324_v12 = vld [vmem:[%s1741_s3 + $0x58] sm:$0xff]   ;;  %v1328_v16 = vld [vmem:[%s1741_s3 + $0x60] sm:$0xff]   ;;  %v1332_v20 = vld [vmem:[%s1741_s3 + $0x68] sm:$0xff]  }
   0x6   :  { %1178 = vmatprep.subr.bf16.mxu1 %v1317_v5  ;;  %v1325_v13 = vld [vmem:[%s1741_s3 + $0xd8] sm:$0xff]   ;;  %v1329_v17 = vld [vmem:[%s1741_s3 + $0xe0] sm:$0xff]   ;;  %v1333_v21 = vld [vmem:[%s1741_s3 + $0xe8] sm:$0xff]  }
   0x7   :  { %v1326_v14 = vld [vmem:[%s1741_s3 + $0x18] sm:$0xff]   ;;  %v1330_v18 = vld [vmem:[%s1741_s3 + $0x20] sm:$0xff]   ;;  %v1334_v22 = vld [vmem:[%s1741_s3 + $0x28] sm:$0xff]  }
   0x8   :  { %1151 = vmatpush3.bf16.msra.mxu0 %v1318_v6  ;;  %v1327_v15 = vld [vmem:[%s1741_s3 + $0x98] sm:$0xff]   ;;  %v1331_v19 = vld [vmem:[%s1741_s3 + $0xa0] sm:$0xff]   ;;  %v1335_v23 = vld [vmem:[%s1741_s3 + $0xa8] sm:$0xff]  }
   0x9   :  { %1179 = vmatpush3.bf16.msra.mxu1 %v1319_v7  ;;  %1152 = vmatprep.subr.bf16.mxu0 %v1320_v8  ;;  %v1336_v24 = vld [vmem:[%s1741_s3 + $0x70] sm:$0xff]   ;;  %v1340_v28 = vld [vmem:[%s1741_s3 + $0x78] sm:$0xff]   ;;  %v1349_v35 = vld [vmem:[%s1742_s1 + $0xc] ss:$20 sps:$4 sm:$0xff]  }
   0xa   :  { %1180 = vmatprep.subr.bf16.mxu1 %v1321_v9  ;;  %v1337_v25 = vld [vmem:[%s1741_s3 + $0xf0] sm:$0xff]   ;;  %v1341_v29 = vld [vmem:[%s1741_s3 + $0xf8] sm:$0xff]   ;;  %v1350_v36 = vld [vmem:[%s1741_s3 + $0x100] sm:$0xff]   ;;  %543 = vmatprep.mubr.bf16.mxu1 %v1349_v35 }
   0xb   :  { %v1338_v26 = vld [vmem:[%s1741_s3 + $0x30] sm:$0xff]   ;;  %v1342_v30 = vld [vmem:[%s1741_s3 + $0x38] sm:$0xff]   ;;  %v1351_v37 = vld [vmem:[%s1741_s3 + $0x108] sm:$0xff]  }
   0xc   :  { %1153 = vmatpush3.bf16.msra.mxu0 %v1322_v10  ;;  %v1339_v27 = vld [vmem:[%s1741_s3 + $0xb0] sm:$0xff]   ;;  %v1343_v31 = vld [vmem:[%s1741_s3 + $0xb8] sm:$0xff]   ;;  %v1352_v38 = vld [vmem:[%s1743_s2 + $0xc0] sm:$0xff]  }
   0xd   :  { %1181 = vmatpush3.bf16.msra.mxu1 %v1323_v11  ;;  %1154 = vmatprep.subr.bf16.mxu0 %v1324_v12  ;;  %v1344_v32 = vld [vmem:[%s1742_s1] ss:$20 sps:$4 sm:$0xff]   ;;  %v1346_v33 = vld [vmem:[%s1742_s1 + $0x4] ss:$20 sps:$4 sm:$0xff]   ;;  %v1347_v34 = vld [vmem:[%s1742_s1 + $0x8] ss:$20 sps:$4 sm:$0xff]  }
   0xe   :  { %1182 = vmatprep.subr.bf16.mxu1 %v1325_v13  ;;  %494 = vmatprep.mubr.bf16.mxu0 %v1346_v33  ;;  %v1353_v39 = vld [vmem:[%s1742_s1 + $0x2c] ss:$20 sps:$4 sm:$0xff]   ;;  %v1355_v40 = vld [vmem:[%s1742_s1 + $0x34] ss:$20 sps:$4 sm:$0xff]   ;;  %v1359_v43 = vld [vmem:[%s1742_s1 + $0x30] ss:$20 sps:$4 sm:$0xff]  }
   0xf   :  { %v1357_v41 = vld [vmem:[%s1743_s2 + $0x80] sm:$0xff]   ;;  %v1358_v42 = vld [vmem:[%s1742_s1 + $0x28] ss:$20 sps:$4 sm:$0xff]   ;;  %v1360_v44 = vld [vmem:[%s1741_s3 + $0x110] sm:$0xff]  }
  0x10   :  { %1155 = vmatpush3.bf16.msra.mxu0 %v1326_v14  ;;  %v1361_v45 = vld [vmem:[%s1743_s2 + $0xc8] sm:$0xff]   ;;  %v1363_v47 = vld [vmem:[%s1741_s3 + $0x118] sm:$0xff]   ;;  %v1364_v48 = vld [vmem:[%s1743_s2 + $0xd0] sm:$0xff]  }
  0x11   :  { %1183 = vmatpush3.bf16.msra.mxu1 %v1327_v15  ;;  %1156 = vmatprep.subr.bf16.mxu0 %v1328_v16  ;;  %v1362_v46 = vld [vmem:[%s1743_s2 + $0x88] sm:$0xff]   ;;  %v1365_v49 = vld [vmem:[%s1742_s1 + $0x10] ss:$20 sps:$4 sm:$0xff]   ;;  %v1370_v54 = vld [vmem:[%s1743_s2 + $0xd8] sm:$0xff]  }
  0x12   :  { %1184 = vmatprep.subr.bf16.mxu1 %v1329_v17  ;;  %v1366_v50 = vld [vmem:[%s1743_s2 + $0x90] sm:$0xff]   ;;  %v1367_v51 = vld [vmem:[%s1742_s1 + $0x38] ss:$20 sps:$4 sm:$0xff]   ;;  %v1368_v52 = vld [vmem:[%s1743_s2 + $0x40] sm:$0xff]  }
  0x13   :  { %v1369_v53 = vld [vmem:[%s1743_s2] sm:$0xff]   ;;  %v1371_v55 = vld [vmem:[%s1743_s2 + $0x98] sm:$0xff]   ;;  %v1372_v56 = vld [vmem:[%s1743_s2 + $0x48] sm:$0xff]  }
  0x14   :  { %1157 = vmatpush3.bf16.msra.mxu0 %v1330_v18  ;;  %v1373_v57 = vld [vmem:[%s1743_s2 + $0x8] sm:$0xff]   ;;  %v1374_v58 = vld [vmem:[%s1743_s2 + $0xe0] sm:$0xff]   ;;  %v1376_v60 = vld [vmem:[%s1743_s2 + $0x50] sm:$0xff]  }
  0x15   :  { %1185 = vmatpush3.bf16.msra.mxu1 %v1331_v19  ;;  %1158 = vmatprep.subr.bf16.mxu0 %v1332_v20  ;;  %v1375_v59 = vld [vmem:[%s1743_s2 + $0xa0] sm:$0xff]   ;;  %v1377_v61 = vld [vmem:[%s1743_s2 + $0x10] sm:$0xff]   ;;  %v1378_v62 = vld [vmem:[%s1743_s2 + $0xe8] sm:$0xff]  }
  0x16   :  { %1186 = vmatprep.subr.bf16.mxu1 %v1333_v21  ;;  %v1379_v63 = vld [vmem:[%s1743_s2 + $0xa8] sm:$0xff]   ;;  %v1380_v0 = vld [vmem:[%s1743_s2 + $0x58] sm:$0xff]   ;;  %v1382_v2 = vld [vmem:[%s1743_s2 + $0xf0] sm:$0xff]  }
  0x17   :  { %v1381_v1 = vld [vmem:[%s1743_s2 + $0x18] sm:$0xff]   ;;  %v1383_v3 = vld [vmem:[%s1743_s2 + $0xb0] sm:$0xff]   ;;  %v1384_v4 = vld [vmem:[%s1743_s2 + $0x60] sm:$0xff]  }
  0x18   :  { %1159 = vmatpush3.bf16.msra.mxu0 %v1334_v22  ;;  %v1385_v5 = vld [vmem:[%s1743_s2 + $0x20] sm:$0xff]   ;;  %v1386_v6 = vld [vmem:[%s1743_s2 + $0xf8] sm:$0xff]   ;;  %v1388_v8 = vld [vmem:[%s1743_s2 + $0x68] sm:$0xff]  }
  0x19   :  { %1187 = vmatpush3.bf16.msra.mxu1 %v1335_v23  ;;  %1160 = vmatprep.subr.bf16.mxu0 %v1336_v24  ;;  %v1387_v7 = vld [vmem:[%s1743_s2 + $0xb8] sm:$0xff]   ;;  %v1389_v9 = vld [vmem:[%s1743_s2 + $0x28] sm:$0xff]   ;;  %v1393_v12 = vld [vmem:[%s1743_s2 + $0x100] sm:$0xff]  }
  0x1a   :  { %1188 = vmatprep.subr.bf16.mxu1 %v1337_v25  ;;  %v1390_v10 = vld [vmem:[%s1744_s0 + $0x8] ss:$20 sps:$4 sm:$0xff]   ;;  %v1392_v11 = vld [vmem:[%s1744_s0 + $0xc] ss:$20 sps:$4 sm:$0xff]   ;;  %v1394_v13 = vld [vmem:[%s1743_s2 + $0x70] sm:$0xff]  }
  0x1b   :  { %v1395_v14 = vld [vmem:[%s1743_s2 + $0x30] sm:$0xff]   ;;  %v1396_v15 = vld [vmem:[%s1743_s2 + $0x108] sm:$0xff]   ;;  %v1397_v16 = vld [vmem:[%s1743_s2 + $0x78] sm:$0xff]  }
  0x1c   :  { %1161 = vmatpush3.bf16.msra.mxu0 %v1338_v26  ;;  %v1398_v17 = vld [vmem:[%s1743_s2 + $0x38] sm:$0xff]   ;;  %v1399_v18 = vld [vmem:[%s1744_s0 + $0x34] ss:$20 sps:$4 sm:$0xff]   ;;  %v1401_v19 = vld [vmem:[%s1744_s0 + $0x30] ss:$20 sps:$4 sm:$0xff]  }
  0x1d   :  { %1189 = vmatpush3.bf16.msra.mxu1 %v1339_v27  ;;  %1162 = vmatprep.subr.bf16.mxu0 %v1340_v28  ;;  %v1402_v20 = vld [vmem:[%s1743_s2 + $0x110] sm:$0xff]   ;;  %v1405_v22 = vld [vmem:[%s1744_s0 + $0x4] ss:$20 sps:$4 sm:$0xff]   ;;  %v1409_v25 = vld [vmem:[%s1744_s0 + $0x2c] ss:$20 sps:$4 sm:$0xff]  }
  0x1e   :  { %1190 = vmatprep.subr.bf16.mxu1 %v1341_v29  ;;  %v1403_v21 = vld [vmem:[%s1744_s0] ss:$20 sps:$4 sm:$0xff]   ;;  %v1406_v23 = vld [vmem:[%s1743_s2 + $0x118] sm:$0xff]   ;;  %v1407_v24 = vld [vmem:[%s1744_s0 + $0x10] ss:$20 sps:$4 sm:$0xff]  }
  0x1f   :  { %v1408_v26 = vld [vmem:[%s1744_s0 + $0x38] ss:$20 sps:$4 sm:$0xff]   ;;  %v1411_v27 = vld [vmem:[%s1744_s0 + $0x28] ss:$20 sps:$4 sm:$0xff]  }
  0x20   :  { %1163 = vmatpush3.bf16.msra.mxu0 %v1342_v30 }
  0x21   :  { %1191 = vmatpush3.bf16.msra.mxu1 %v1343_v31  ;;  %1238 = vmatprep.subr.bf16.mxu0 %v1352_v38 }
  0x22   :  { %1272 = vmatprep.subr.bf16.mxu1 %v1350_v36 }
  0x23   :  { %495 = vmatmul.mubr.bf16.vlgmr.msra.gmra.mrb[0].mxu0 %v1344_v32 }
  0x24   :  { %544 = vmatmul.mubr.bf16.vlgmr.msra.gmra.mrb[0].mxu1 %v1347_v34  ;;  %502 = vmatprep.mubr.bf16.mxu0 %v1353_v39 }
  0x25   :  { %1273 = vmatpush3.bf16.msra.mxu1 %v1350_v36  ;;  %551 = vmatprep.mubr.bf16.mxu1 %v1355_v40 }
  0x26   :  { %1274 = vmatprep.subr.bf16.mxu1 %v1351_v37  ;;  %1239 = vmatpush3.bf16.msra.mxu0 %v1357_v41 }
  0x27   :  { %1240 = vmatprep.subr.bf16.mxu0 %v1361_v45 }
  0x29   :  { %1275 = vmatpush3.bf16.msra.mxu1 %v1351_v37 }
  0x2a   :  { %1276 = vmatprep.subr.bf16.mxu1 %v1360_v44  ;;  %1241 = vmatpush3.bf16.msra.mxu0 %v1362_v46 }
  0x2b   :  { %503 = vmatmul.mubr.bf16.gmra.mrb[4].mxu0 %v1358_v42  ;;  %1242 = vmatprep.subr.bf16.mxu0 %v1364_v48 }
  0x2c   :  { %552 = vmatmul.mubr.bf16.gmra.mrb[4].mxu1 %v1359_v43  ;;  %962 = vmatprep.mubr.bf16.mxu0 %v1392_v11 }
  0x2d   :  { %1277 = vmatpush3.bf16.msra.mxu1 %v1360_v44  ;;  %1280 = vmatprep.mubr.msk.bf16.mxu1 %vm455_vm0, %v1365_v49 }
  0x2e   :  { %1278 = vmatprep.subr.bf16.mxu1 %v1363_v47  ;;  %1243 = vmatpush3.bf16.msra.mxu0 %v1366_v50 }
  0x2f   :  { %1244 = vmatprep.subr.bf16.mxu0 %v1370_v54 }
  0x31   :  { %1279 = vmatpush3.bf16.msra.mxu1 %v1363_v47 }
  0x32   :  { %1210 = vmatprep.subr.bf16.mxu1 %v1368_v52  ;;  %1245 = vmatpush3.bf16.msra.mxu0 %v1371_v55 }
  0x33   :  { %1246 = vmatprep.subr.bf16.mxu0 %v1374_v58 }
  0x34   :  { %1281 = vmatmul.mubr.msk.bf16.vlgmr.msra.gmra.mrb[8].mxu1 %vm455_vm0, %v1367_v51 }
  0x35   :  { %1211 = vmatpush3.bf16.msra.mxu1 %v1369_v53  ;;  %913 = vmatprep.mubr.bf16.mxu1 %v1405_v22 }
  0x36   :  { %1212 = vmatprep.subr.bf16.mxu1 %v1372_v56  ;;  %1247 = vmatpush3.bf16.msra.mxu0 %v1375_v59 }
  0x37   :  { %1248 = vmatprep.subr.bf16.mxu0 %v1378_v62 }
  0x39   :  { %1213 = vmatpush3.bf16.msra.mxu1 %v1373_v57 }
  0x3a   :  { %1214 = vmatprep.subr.bf16.mxu1 %v1376_v60  ;;  %1249 = vmatpush3.bf16.msra.mxu0 %v1379_v63 }
  0x3b   :  { %1250 = vmatprep.subr.bf16.mxu0 %v1382_v2 }
  0x3d   :  { %1215 = vmatpush3.bf16.msra.mxu1 %v1377_v61 }
  0x3e   :  { %1216 = vmatprep.subr.bf16.mxu1 %v1380_v0  ;;  %1251 = vmatpush3.bf16.msra.mxu0 %v1383_v3 }
  0x3f   :  { %1252 = vmatprep.subr.bf16.mxu0 %v1386_v6 }
  0x41   :  { %1217 = vmatpush3.bf16.msra.mxu1 %v1381_v1 }
  0x42   :  { %1218 = vmatprep.subr.bf16.mxu1 %v1384_v4  ;;  %1253 = vmatpush3.bf16.msra.mxu0 %v1387_v7 }
  0x43   :  { %1284 = vmatprep.subr.bf16.mxu0 %v1393_v12 }
  0x45   :  { %1219 = vmatpush3.bf16.msra.mxu1 %v1385_v5  ;;  %963 = vmatmul.mubr.bf16.vlgmr.msra.gmra.mrb[8].mxu0 %v1390_v10 }
  0x46   :  { %1220 = vmatprep.subr.bf16.mxu1 %v1388_v8  ;;  %1285 = vmatpush3.bf16.msra.mxu0 %v1393_v12 }
  0x47   :  { %1286 = vmatprep.subr.bf16.mxu0 %v1396_v15  ;;  %970 = vmatprep.mubr.bf16.mxu0 %v1399_v18 }
  0x49   :  { %1221 = vmatpush3.bf16.msra.mxu1 %v1389_v9 }
  0x4a   :  { %1222 = vmatprep.subr.bf16.mxu1 %v1394_v13  ;;  %1287 = vmatpush3.bf16.msra.mxu0 %v1396_v15 }
  0x4b   :  { %1288 = vmatprep.subr.bf16.mxu0 %v1402_v20 }
  0x4d   :  { %1223 = vmatpush3.bf16.msra.mxu1 %v1395_v14  ;;  %971 = vmatmul.mubr.bf16.gmra.mrb[12].mxu0 %v1401_v19 }
  0x4e   :  { %1224 = vmatprep.subr.bf16.mxu1 %v1397_v16  ;;  %1289 = vmatpush3.bf16.msra.mxu0 %v1402_v20 }
  0x4f   :  { %1290 = vmatprep.subr.bf16.mxu0 %v1406_v23  ;;  %1292 = vmatprep.mubr.msk.bf16.mxu0 %vm455_vm0, %v1407_v24 }
  0x51   :  { %1225 = vmatpush3.bf16.msra.mxu1 %v1398_v17 }
  0x52   :  { %1291 = vmatpush3.bf16.msra.mxu0 %v1406_v23  ;;  %v1147_v23 = vld [vmem:[%s1745_s4] ss:$0 sm:$0xff] }
  0x54   :  { %914 = vmatmul.mubr.bf16.vlgmr.msra.gmra.mrb[12].mxu1 %v1403_v21 }
  0x55   :  { %921 = vmatprep.mubr.bf16.mxu1 %v1409_v25  ;;  %1293 = vmatmul.mubr.msk.bf16.vlgmr.msra.gmra.mrb[16].mxu0 %vm455_vm0, %v1408_v26 }
  0x5c   :  { %922 = vmatmul.mubr.bf16.gmra.mrb[16].mxu1 %v1411_v27 }
  0xf6   :  { %v1164_v28 = vpop.f32.mrb[0].mxu0 }
  0xf7   :  { %v1192_v29 = vpop.f32.mrb[0].mxu1  ;;  %v1165_v30 = vpop.f32.mrb[1].mxu0 }
  0xf8   :  { %v1166_v31 = vadd.f32 %v1165_v30, %v1164_v28  ;;  %v1193_v32 = vpop.f32.mrb[1].mxu1  ;;  %v1167_v33 = vpop.f32.mrb[2].mxu0 }
  0xf9   :  { %v1194_v34 = vadd.f32 %v1193_v32, %v1192_v29  ;;  %v1195_v35 = vpop.f32.mrb[2].mxu1  ;;  %v1168_v36 = vpop.f32.mrb[3].mxu0 }
  0xfa   :  { %v1169_v37 = vadd.f32 %v1168_v36, %v1167_v33  ;;  %v1196_v38 = vpop.f32.mrb[3].mxu1 }
  0xfb   :  { %v1197_v39 = vadd.f32 %v1196_v38, %v1195_v35  ;;  %v546_v40 = vadd.f32 %v1194_v34, %v1166_v31 }
  0xfd   :  { %v549_v41 = vadd.f32 %v1197_v39, %v1169_v37 }
  0xfe   :  { %v1170_v42 = vpop.f32.mrb[4].mxu0 }
  0xff   :  { %v1198_v43 = vpop.f32.mrb[4].mxu1  ;;  %v1171_v44 = vpop.f32.mrb[5].mxu0 }
 0x100   :  { %v1172_v45 = vadd.f32 %v1171_v44, %v1170_v42  ;;  %v1199_v46 = vpop.f32.mrb[5].mxu1  ;;  %v1173_v47 = vpop.f32.mrb[6].mxu0 }
 0x101   :  { %v1200_v48 = vadd.f32 %v1199_v46, %v1198_v43  ;;  %v1201_v49 = vpop.f32.mrb[6].mxu1  ;;  %v1174_v50 = vpop.f32.mrb[7].mxu0 }
 0x102   :  { %v1175_v51 = vadd.f32 %v1174_v50, %v1173_v47  ;;  %v1202_v52 = vpop.f32.mrb[7].mxu1 }
 0x103   :  { %v1203_v53 = vadd.f32 %v1202_v52, %v1201_v49  ;;  %v554_v54 = vadd.f32 %v1200_v48, %v1172_v45 }
 0x105   :  { %v557_v55 = vadd.f32 %v1203_v53, %v1175_v51 }
 0x107   :  { %v1282_v56 = vpop.f32.mrb[8].mxu1 }
 0x108   :  { %v603_v57 = vadd.f32 %v1282_v56, %v554_v54  ;;  %v594_v58 = vpop.f32.mrb[9].mxu1 }
 0x109   :  { %v595_v59 = vadd.f32 %v594_v58, %v546_v40  ;;  %v1283_v60 = vpop.f32.mrb[10].mxu1 }
 0x10a   :  { %v606_v61 = vadd.f32 %v1283_v60, %v557_v55  ;;  %v597_v62 = vpop.f32.mrb[11].mxu1 }
 0x10b   :  { %v598_v63 = vadd.f32 %v597_v62, %v549_v41 }
 0x118   :  { %v1254_v0 = vpop.f32.mrb[8].mxu0 }
 0x119   :  { %v1255_v1 = vpop.f32.mrb[9].mxu0 }
 0x11a   :  { %v1256_v2 = vadd.f32 %v1255_v1, %v1254_v0  ;;  %v1257_v3 = vpop.f32.mrb[10].mxu0 }
 0x11b   :  { %v1258_v4 = vpop.f32.mrb[11].mxu0 }
 0x11c   :  { %v1259_v5 = vadd.f32 %v1258_v4, %v1257_v3 }
 0x120   :  { %v1260_v6 = vpop.f32.mrb[12].mxu0 }
 0x121   :  { %v1261_v7 = vpop.f32.mrb[13].mxu0 }
 0x122   :  { %v1262_v9 = vadd.f32 %v1261_v7, %v1260_v6  ;;  %v1263_v10 = vpop.f32.mrb[14].mxu0 }
 0x123   :  { %v1264_v12 = vpop.f32.mrb[15].mxu0 }
 0x124   :  { %v1265_v15 = vadd.f32 %v1264_v12, %v1263_v10 }
 0x127   :  { %v1226_v8 = vpop.f32.mrb[12].mxu1 }
 0x128   :  { %v1227_v11 = vpop.f32.mrb[13].mxu1  ;;  %v1294_v20 = vpop.f32.mrb[16].mxu0 }
 0x129   :  { %v1228_v13 = vadd.f32 %v1227_v11, %v1226_v8  ;;  %v1229_v14 = vpop.f32.mrb[14].mxu1  ;;  %v1013_v22 = vpop.f32.mrb[17].mxu0 }
 0x12a   :  { %v1230_v16 = vpop.f32.mrb[15].mxu1  ;;  %v1295_v26 = vpop.f32.mrb[18].mxu0 }
 0x12b   :  { %v916_v17 = vadd.f32 %v1228_v13, %v595_v59  ;;  %v1231_v18 = vadd.f32 %v1230_v16, %v1229_v14  ;;  %v1016_v29 = vpop.f32.mrb[19].mxu0 }
 0x12d   :  { %v919_v19 = vadd.f32 %v1231_v18, %v598_v63  ;;  %v965_v21 = vadd.f32 %v1256_v2, %v916_v17 }
 0x12f   :  { %v1014_v24 = vadd.f32 %v1013_v22, %v965_v21  ;;  %v1232_v25 = vpop.f32.mrb[16].mxu1  ;;  %v968_v27 = vadd.f32 %v1259_v5, %v919_v19 }
 0x130   :  { %v1233_v28 = vpop.f32.mrb[17].mxu1 }
 0x131   :  { %v1035_v30 = vadd.f32 %v1147_v23, %v1014_v24  ;;  %v1234_v31 = vadd.f32 %v1233_v28, %v1232_v25  ;;  %v1017_v32 = vadd.f32 %v1016_v29, %v968_v27  ;;  %v1235_v33 = vpop.f32.mrb[18].mxu1 }
 0x132   :  { %v1236_v34 = vpop.f32.mrb[19].mxu1 }
 0x133   :  { %v1039_v35 = vmax.f32 %v1035_v30, 0.0  ;;  %v924_v36 = vadd.f32 %v1234_v31, %v603_v57  ;;  %v1036_v37 = vadd.f32 %v1147_v23, %v1017_v32  ;;  %v1237_v38 = vadd.f32 %v1236_v34, %v1235_v33 }
 0x135   :  { %1043 = vst.msk [vmem:[%s1746_s5] sm:$0xff] %vm455_vm0, %v1039_v35  ;;  %v973_v39 = vadd.f32 %v1262_v9, %v924_v36  ;;  %v1040_v40 = vmax.f32 %v1036_v37, 0.0  ;;  %v927_v41 = vadd.f32 %v1237_v38, %v606_v61 }
 0x137   :  { %v1022_v42 = vadd.f32 %v1294_v20, %v973_v39  ;;  %1044 = vst.msk [vmem:[%s1746_s5 + $0x8] sm:$0xff] %vm455_vm0, %v1040_v40  ;;  %v976_v43 = vadd.f32 %v1265_v15, %v927_v41 }
 0x139   :  { %v1037_v44 = vadd.f32 %v1147_v23, %v1022_v42  ;;  %v1025_v45 = vadd.f32 %v1295_v26, %v976_v43 }
 0x13b   :  { %v1041_v46 = vmax.f32 %v1037_v44, 0.0  ;;  %v1038_v47 = vadd.f32 %v1147_v23, %v1025_v45 }
 0x13d   :  { %1045 = vst.msk [vmem:[%s1746_s5 + $0x10] sm:$0xff] %vm455_vm0, %v1041_v46  ;;  %v1042_v48 = vmax.f32 %v1038_v47, 0.0 }
 0x13f   :  { %1046 = vst.msk [vmem:[%s1746_s5 + $0x18] sm:$0xff] %vm455_vm0, %v1042_v48 }

// kernel: unet_forward.27
= control target key start
LH: loop header
LB: loop body
LE: loop exit
PB: predicated region body
PF: predicated region fallthrough
CT: control target
= control target key end

     0   :  { %vm385_vm0 = vcmask 261120   ;;  %s2011_s3 = inlined_call_operand.vmem [shape: bf16[288,32], index: 3, kind: input, shape index: {}]   ;;  %s2012_s1 = inlined_call_operand.vmem [shape: bf16[128,288], index: 1, kind: input, shape index: {}]   ;;  %s2013_s2 = inlined_call_operand.vmem [shape: bf16[288,32], index: 2, kind: input, shape index: {}]   ;;  %s2014_s0 = inlined_call_operand.vmem [shape: bf16[128,288], index: 0, kind: input, shape index: {}]   ;;  %s2015_s4 = inlined_call_operand.vmem [shape: f32[1,32], index: 4, kind: input, shape index: {}]   ;;  %s2016_s5 = inlined_call_operand.vmem [shape: f32[128,32], index: 5, kind: output, shape index: {}]  }
   0x1   :  { %v1462_v0 = vld [vmem:[%s2011_s3 + $0x40] sm:$0xff]   ;;  %v1465_v3 = vld [vmem:[%s2011_s3 + $0x48] sm:$0xff]   ;;  %v1469_v7 = vld [vmem:[%s2011_s3 + $0x50] sm:$0xff]  }
   0x2   :  { %v1463_v1 = vld [vmem:[%s2011_s3 + $0x80] sm:$0xff]   ;;  %1210 = vmatprep.subr.bf16.mxu0 %v1462_v0  ;;  %v1466_v4 = vld [vmem:[%s2011_s3 + $0x88] sm:$0xff]   ;;  %v1472_v10 = vld [vmem:[%s2011_s3 + $0x10] sm:$0xff]  }
   0x3   :  { %v1464_v2 = vld [vmem:[%s2011_s3] sm:$0xff]   ;;  %1358 = vmatprep.subr.bf16.mxu1 %v1463_v1  ;;  %v1467_v5 = vld [vmem:[%s2011_s3 + $0x8] sm:$0xff]   ;;  %v1474_v12 = vld [vmem:[%s2011_s3 + $0x58] sm:$0xff]  }
   0x4   :  { %1211 = vmatpush3.bf16.msra.mxu0 %v1464_v2  ;;  %1359 = vmatpush3.bf16.msra.mxu1 %v1463_v1  ;;  %v1468_v6 = vld [vmem:[%s2012_s1 + $0x8] ss:$12 sps:$4 sm:$0xff]   ;;  %v1470_v8 = vld [vmem:[%s2012_s1 + $0x20] ss:$12 sps:$4 sm:$0xff]   ;;  %v1476_v14 = vld [vmem:[%s2011_s3 + $0x18] sm:$0xff]  }
   0x5   :  { %1212 = vmatprep.subr.bf16.mxu0 %v1465_v3  ;;  %1360 = vmatprep.subr.bf16.mxu1 %v1466_v4  ;;  %v1471_v9 = vld [vmem:[%s2013_s2 + $0x40] sm:$0xff]   ;;  %v1475_v13 = vld [vmem:[%s2013_s2 + $0x48] sm:$0xff]   ;;  %v1480_v18 = vld [vmem:[%s2012_s1 + $0x50] ss:$12 sps:$4 sm:$0xff]  }
   0x6   :  { %1362 = vmatprep.mubr.msk.bf16.mxu1 %vm385_vm0, %v1468_v6  ;;  %v1473_v11 = vld [vmem:[%s2013_s2] sm:$0xff]   ;;  %v1642_v15 = vld [vmem:[%s2013_s2 + $0x8] sm:$0xff]   ;;  %v1481_v19 = vld [vmem:[%s2013_s2 + $0x50] sm:$0xff]  }
   0x7   :  { %v1478_v16 = vld [vmem:[%s2012_s1 + $0x38] ss:$12 sps:$4 sm:$0xff]   ;;  %v1665_v21 = vld [vmem:[%s2013_s2 + $0x10] sm:$0xff]   ;;  %v1484_v22 = vld [vmem:[%s2011_s3 + $0x68] sm:$0xff]  }
   0x8   :  { %1213 = vmatpush3.bf16.msra.mxu0 %v1467_v5  ;;  %1361 = vmatpush3.bf16.msra.mxu1 %v1466_v4  ;;  %v1479_v17 = vld [vmem:[%s2011_s3 + $0x60] sm:$0xff]   ;;  %v1485_v23 = vld [vmem:[%s2013_s2 + $0x58] sm:$0xff]   ;;  %v1486_v24 = vld [vmem:[%s2011_s3 + $0x28] sm:$0xff]  }
   0x9   :  { %1214 = vmatprep.subr.bf16.mxu0 %v1469_v7  ;;  %1398 = vmatprep.subr.bf16.mxu1 %v1471_v9  ;;  %v1482_v20 = vld [vmem:[%s2011_s3 + $0x20] sm:$0xff]   ;;  %v1680_v25 = vld [vmem:[%s2013_s2 + $0x18] sm:$0xff]   ;;  %v1488_v26 = vld [vmem:[%s2012_s1 + $0x68] ss:$12 sps:$4 sm:$0xff]  }
   0xa   :  { %v1489_v27 = vld [vmem:[%s2011_s3 + $0x70] sm:$0xff]   ;;  %v1490_v28 = vld [vmem:[%s2012_s1 + $0x80] ss:$12 sps:$4 sm:$0xff]   ;;  %v1494_v32 = vld [vmem:[%s2011_s3 + $0x78] sm:$0xff]  }
   0xb   :  { %1363 = vmatmul.mubr.msk.bf16.vlgmr.msra.gmra.mrb[0].mxu1 %vm385_vm0, %v1470_v8  ;;  %v1491_v29 = vld [vmem:[%s2013_s2 + $0x60] sm:$0xff]   ;;  %v1492_v30 = vld [vmem:[%s2011_s3 + $0x30] sm:$0xff]   ;;  %v1495_v33 = vld [vmem:[%s2013_s2 + $0x68] sm:$0xff]  }
   0xc   :  { %1215 = vmatpush3.bf16.msra.mxu0 %v1472_v10  ;;  %1406 = vmatpush3.bf16.msra.mxu1 %v1473_v11  ;;  %v1493_v31 = vld [vmem:[%s2013_s2 + $0x20] sm:$0xff]   ;;  %v1496_v34 = vld [vmem:[%s2011_s3 + $0x38] sm:$0xff]   ;;  %v1497_v35 = vld [vmem:[%s2013_s2 + $0x28] sm:$0xff]  }
   0xd   :  { %1216 = vmatprep.subr.bf16.mxu0 %v1474_v12  ;;  %1399 = vmatprep.subr.bf16.mxu1 %v1475_v13  ;;  %v1498_v36 = vld [vmem:[%s2012_s1] ss:$12 sps:$4 sm:$0xff]   ;;  %v1500_v37 = vld [vmem:[%s2012_s1 + $0x4] ss:$12 sps:$4 sm:$0xff]   ;;  %v1505_v42 = vld [vmem:[%s2013_s2 + $0x78] sm:$0xff]  }
   0xe   :  { %1366 = vmatprep.mubr.msk.bf16.mxu1 %vm385_vm0, %v1478_v16  ;;  %v1501_v38 = vld [vmem:[%s2012_s1 + $0x98] ss:$12 sps:$4 sm:$0xff]   ;;  %442 = vmatprep.mubr.bf16.mxu0 %v1500_v37  ;;  %v1502_v39 = vld [vmem:[%s2012_s1 + $0xb0] ss:$12 sps:$4 sm:$0xff]   ;;  %v1511_v46 = vld [vmem:[%s2014_s0 + $0x34] ss:$12 sps:$4 sm:$0xff]  }
   0xf   :  { %v1503_v40 = vld [vmem:[%s2013_s2 + $0x70] sm:$0xff]   ;;  %v1506_v43 = vld [vmem:[%s2013_s2 + $0x38] sm:$0xff]   ;;  %v1513_v48 = vld [vmem:[%s2013_s2 + $0x80] sm:$0xff]  }
  0x10   :  { %1217 = vmatpush3.bf16.msra.mxu0 %v1476_v14  ;;  %1407 = vmatpush3.bf16.msra.mxu1 %v1642_v15  ;;  %v1504_v41 = vld [vmem:[%s2013_s2 + $0x30] sm:$0xff]   ;;  %v1507_v44 = vld [vmem:[%s2012_s1 + $0x1c] ss:$12 sps:$4 sm:$0xff]   ;;  %v1512_v47 = vld [vmem:[%s2012_s1 + $0x18] ss:$12 sps:$4 sm:$0xff]  }
  0x11   :  { %1218 = vmatprep.subr.bf16.mxu0 %v1479_v17  ;;  %1400 = vmatprep.subr.bf16.mxu1 %v1481_v19  ;;  %v1509_v45 = vld [vmem:[%s2014_s0 + $0x30] ss:$12 sps:$4 sm:$0xff]   ;;  %v1514_v49 = vld [vmem:[%s2012_s1 + $0x34] ss:$12 sps:$4 sm:$0xff]   ;;  %v1516_v50 = vld [vmem:[%s2014_s0 + $0x4c] ss:$12 sps:$4 sm:$0xff]  }
  0x12   :  { %v1518_v51 = vld [vmem:[%s2012_s1 + $0x30] ss:$12 sps:$4 sm:$0xff]   ;;  %v1520_v52 = vld [vmem:[%s2012_s1 + $0x4c] ss:$12 sps:$4 sm:$0xff]   ;;  %v1519_v53 = vld [vmem:[%s2014_s0 + $0x48] ss:$12 sps:$4 sm:$0xff]  }
  0x13   :  { %1367 = vmatmul.mubr.msk.bf16.gmra.mrb[4].mxu1 %vm385_vm0, %v1480_v18  ;;  %v1522_v54 = vld [vmem:[%s2014_s0 + $0x64] ss:$12 sps:$4 sm:$0xff]   ;;  %v1532_v55 = vld [vmem:[%s2013_s2 + $0x88] sm:$0xff]   ;;  %v1535_v63 = vld [vmem:[%s2014_s0 + $0x94] ss:$12 sps:$4 sm:$0xff]  }
  0x14   :  { %1219 = vmatpush3.bf16.msra.mxu0 %v1482_v20  ;;  %1408 = vmatpush3.bf16.msra.mxu1 %v1665_v21  ;;  %v1524_v56 = vld [vmem:[%s2012_s1 + $0x48] ss:$12 sps:$4 sm:$0xff]   ;;  %v1526_v57 = vld [vmem:[%s2012_s1 + $0x64] ss:$12 sps:$4 sm:$0xff]   ;;  %v1525_v58 = vld [vmem:[%s2014_s0 + $0x60] ss:$12 sps:$4 sm:$0xff]  }
  0x15   :  { %1220 = vmatprep.subr.bf16.mxu0 %v1484_v22  ;;  %1401 = vmatprep.subr.bf16.mxu1 %v1485_v23  ;;  %v1528_v59 = vld [vmem:[%s2014_s0 + $0x7c] ss:$12 sps:$4 sm:$0xff]   ;;  %v1530_v60 = vld [vmem:[%s2012_s1 + $0x60] ss:$12 sps:$4 sm:$0xff]   ;;  %v1531_v62 = vld [vmem:[%s2014_s0 + $0x78] ss:$12 sps:$4 sm:$0xff]  }
  0x16   :  { %1370 = vmatprep.mubr.msk.bf16.mxu1 %vm385_vm0, %v1488_v26  ;;  %v1533_v61 = vld [vmem:[%s2012_s1 + $0x7c] ss:$12 sps:$4 sm:$0xff]   ;;  %v1537_v0 = vld [vmem:[%s2012_s1 + $0x78] ss:$12 sps:$4 sm:$0xff]   ;;  %v1539_v1 = vld [vmem:[%s2012_s1 + $0x94] ss:$12 sps:$4 sm:$0xff]  }
  0x17   :  { %v1538_v2 = vld [vmem:[%s2014_s0 + $0x90] ss:$12 sps:$4 sm:$0xff]   ;;  %v1541_v3 = vld [vmem:[%s2014_s0 + $0xac] ss:$12 sps:$4 sm:$0xff]   ;;  %v1544_v6 = vld [vmem:[%s2014_s0 + $0xa8] ss:$12 sps:$4 sm:$0xff]  }
  0x18   :  { %1221 = vmatpush3.bf16.msra.mxu0 %v1486_v24  ;;  %1409 = vmatpush3.bf16.msra.mxu1 %v1680_v25  ;;  %v1543_v4 = vld [vmem:[%s2012_s1 + $0x90] ss:$12 sps:$4 sm:$0xff]   ;;  %v1545_v5 = vld [vmem:[%s2012_s1 + $0xac] ss:$12 sps:$4 sm:$0xff]   ;;  %v1547_v7 = vld [vmem:[%s2014_s0 + $0x8] ss:$12 sps:$4 sm:$0xff]  }
  0x19   :  { %1222 = vmatprep.subr.bf16.mxu0 %v1489_v27  ;;  %1402 = vmatprep.subr.bf16.mxu1 %v1491_v29  ;;  %v1548_v8 = vld [vmem:[%s2012_s1 + $0xa8] ss:$12 sps:$4 sm:$0xff]   ;;  %v1549_v10 = vld [vmem:[%s2014_s0 + $0x20] ss:$12 sps:$4 sm:$0xff]   ;;  %v1554_v14 = vld [vmem:[%s2014_s0 + $0x50] ss:$12 sps:$4 sm:$0xff]  }
  0x1a   :  { %v1550_v12 = vld [vmem:[%s2014_s0] ss:$12 sps:$4 sm:$0xff]   ;;  %v1558_v16 = vld [vmem:[%s2014_s0 + $0x18] ss:$12 sps:$4 sm:$0xff]  }
  0x1b   :  { %1371 = vmatmul.mubr.msk.bf16.gmra.mrb[8].mxu1 %vm385_vm0, %v1490_v28  ;;  %v1559_v17 = vld [vmem:[%s2014_s0 + $0x80] ss:$12 sps:$4 sm:$0xff]   ;;  %v1560_v18 = vld [vmem:[%s2014_s0 + $0x98] ss:$12 sps:$4 sm:$0xff]  }
  0x1c   :  { %1223 = vmatpush3.bf16.msra.mxu0 %v1492_v30  ;;  %1410 = vmatpush3.bf16.msra.mxu1 %v1493_v31 }
  0x1d   :  { %1224 = vmatprep.subr.bf16.mxu0 %v1494_v32  ;;  %1403 = vmatprep.subr.bf16.mxu1 %v1495_v33 }
  0x1e   :  { %1374 = vmatprep.mubr.msk.bf16.mxu1 %vm385_vm0, %v1501_v38 }
  0x20   :  { %1225 = vmatpush3.bf16.msra.mxu0 %v1496_v34  ;;  %1411 = vmatpush3.bf16.msra.mxu1 %v1497_v35 }
  0x21   :  { %1284 = vmatprep.subr.bf16.mxu0 %v1471_v9  ;;  %1404 = vmatprep.subr.bf16.mxu1 %v1503_v40  ;;  %v1552_v9 = vld [vmem:[%s2014_s0 + $0x4] ss:$12 sps:$4 sm:$0xff]  }
  0x23   :  { %443 = vmatmul.mubr.bf16.vlgmr.msra.gmra.mrb[0].mxu0 %v1498_v36  ;;  %1375 = vmatmul.mubr.msk.bf16.gmra.mrb[12].mxu1 %vm385_vm0, %v1502_v39 }
  0x24   :  { %1285 = vmatpush3.bf16.msra.mxu0 %v1473_v11  ;;  %1412 = vmatpush3.bf16.msra.mxu1 %v1504_v41  ;;  %v1553_v11 = vld [vmem:[%s2014_s0 + $0x38] ss:$12 sps:$4 sm:$0xff]  }
  0x25   :  { %1286 = vmatprep.subr.bf16.mxu0 %v1475_v13  ;;  %1405 = vmatprep.subr.bf16.mxu1 %v1505_v42  ;;  %v1555_v13 = vld [vmem:[%s2014_s0 + $0x1c] ss:$12 sps:$4 sm:$0xff]  }
  0x26   :  { %450 = vmatprep.mubr.bf16.mxu0 %v1507_v44  ;;  %904 = vmatprep.mubr.bf16.mxu1 %v1511_v46 }
  0x28   :  { %1287 = vmatpush3.bf16.msra.mxu0 %v1642_v15  ;;  %1413 = vmatpush3.bf16.msra.mxu1 %v1506_v43  ;;  %v1557_v15 = vld [vmem:[%s2014_s0 + $0x68] ss:$12 sps:$4 sm:$0xff]  }
  0x29   :  { %1288 = vmatprep.subr.bf16.mxu0 %v1481_v19  ;;  %1378 = vmatprep.subr.bf16.mxu1 %v1513_v48  ;;  %v1561_v19 = vld [vmem:[%s2014_s0 + $0xb0] ss:$12 sps:$4 sm:$0xff]  }
  0x2b   :  { %451 = vmatmul.mubr.bf16.gmra.mrb[4].mxu0 %v1512_v47  ;;  %905 = vmatmul.mubr.bf16.vlgmr.msra.gmra.mrb[16].mxu1 %v1509_v45 }
  0x2c   :  { %458 = vmatprep.mubr.bf16.mxu0 %v1514_v49  ;;  %1289 = vmatpush3.bf16.msra.mxu0 %v1665_v21 }
  0x2d   :  { %1290 = vmatprep.subr.bf16.mxu0 %v1485_v23  ;;  %1379 = vmatpush3.bf16.msra.mxu1 %v1513_v48 }
  0x2e   :  { %912 = vmatprep.mubr.bf16.mxu1 %v1516_v50  ;;  %1380 = vmatprep.subr.bf16.mxu1 %v1532_v55 }
  0x30   :  { %1291 = vmatpush3.bf16.msra.mxu0 %v1680_v25 }
  0x31   :  { %1292 = vmatprep.subr.bf16.mxu0 %v1491_v29  ;;  %1381 = vmatpush3.bf16.msra.mxu1 %v1532_v55 }
  0x33   :  { %459 = vmatmul.mubr.bf16.gmra.mrb[8].mxu0 %v1518_v51  ;;  %913 = vmatmul.mubr.bf16.gmra.mrb[20].mxu1 %v1519_v53 }
  0x34   :  { %466 = vmatprep.mubr.bf16.mxu0 %v1520_v52  ;;  %1293 = vmatpush3.bf16.msra.mxu0 %v1493_v31 }
  0x35   :  { %920 = vmatprep.mubr.bf16.mxu1 %v1522_v54  ;;  %1294 = vmatprep.subr.bf16.mxu0 %v1495_v33 }
  0x38   :  { %1295 = vmatpush3.bf16.msra.mxu0 %v1497_v35 }
  0x39   :  { %1296 = vmatprep.subr.bf16.mxu0 %v1503_v40 }
  0x3b   :  { %467 = vmatmul.mubr.bf16.gmra.mrb[12].mxu0 %v1524_v56  ;;  %921 = vmatmul.mubr.bf16.gmra.mrb[24].mxu1 %v1525_v58 }
  0x3c   :  { %474 = vmatprep.mubr.bf16.mxu0 %v1526_v57  ;;  %1297 = vmatpush3.bf16.msra.mxu0 %v1504_v41 }
  0x3d   :  { %928 = vmatprep.mubr.bf16.mxu1 %v1528_v59  ;;  %1298 = vmatprep.subr.bf16.mxu0 %v1505_v42 }
  0x40   :  { %1299 = vmatpush3.bf16.msra.mxu0 %v1506_v43 }
  0x43   :  { %475 = vmatmul.mubr.bf16.gmra.mrb[16].mxu0 %v1530_v60  ;;  %929 = vmatmul.mubr.bf16.gmra.mrb[28].mxu1 %v1531_v62 }
  0x44   :  { %482 = vmatprep.mubr.bf16.mxu0 %v1533_v61  ;;  %936 = vmatprep.mubr.bf16.mxu1 %v1535_v63 }
  0x4b   :  { %483 = vmatmul.mubr.bf16.gmra.mrb[20].mxu0 %v1537_v0  ;;  %937 = vmatmul.mubr.bf16.gmra.mrb[32].mxu1 %v1538_v2 }
  0x4c   :  { %490 = vmatprep.mubr.bf16.mxu0 %v1539_v1  ;;  %944 = vmatprep.mubr.bf16.mxu1 %v1541_v3 }
  0x53   :  { %491 = vmatmul.mubr.bf16.gmra.mrb[24].mxu0 %v1543_v4  ;;  %945 = vmatmul.mubr.bf16.gmra.mrb[36].mxu1 %v1544_v6 }
  0x54   :  { %498 = vmatprep.mubr.bf16.mxu0 %v1545_v5  ;;  %1382 = vmatprep.mubr.msk.bf16.mxu1 %vm385_vm0, %v1547_v7 }
  0x5b   :  { %499 = vmatmul.mubr.bf16.gmra.mrb[28].mxu0 %v1548_v8  ;;  %1383 = vmatmul.mubr.msk.bf16.vlgmr.msra.gmra.mrb[0].mxu1 %vm385_vm0, %v1549_v10 }
  0x5c   :  { %888 = vmatprep.mubr.bf16.mxu0 %v1552_v9  ;;  %1386 = vmatprep.mubr.msk.bf16.mxu1 %vm385_vm0, %v1553_v11 }
  0x63   :  { %889 = vmatmul.mubr.bf16.vlgmr.msra.gmra.mrb[32].mxu0 %v1550_v12  ;;  %1387 = vmatmul.mubr.msk.bf16.gmra.mrb[4].mxu1 %vm385_vm0, %v1554_v14 }
  0x64   :  { %896 = vmatprep.mubr.bf16.mxu0 %v1555_v13  ;;  %1390 = vmatprep.mubr.msk.bf16.mxu1 %vm385_vm0, %v1557_v15 }
  0x6b   :  { %897 = vmatmul.mubr.bf16.gmra.mrb[36].mxu0 %v1558_v16  ;;  %1391 = vmatmul.mubr.msk.bf16.gmra.mrb[8].mxu1 %vm385_vm0, %v1559_v17 }
  0x6c   :  { %1394 = vmatprep.mubr.msk.bf16.mxu1 %vm385_vm0, %v1560_v18 }
  0x73   :  { %1395 = vmatmul.mubr.msk.bf16.gmra.mrb[12].mxu1 %vm385_vm0, %v1561_v19 }
  0xf6   :  { %v1226_v20 = vpop.f32.mrb[0].mxu0 }
  0xf7   :  { %v1227_v21 = vpop.f32.mrb[1].mxu0 }
  0xf8   :  { %v1872_v22 = vadd.f32 %v1227_v21, %v1226_v20  ;;  %v1229_v23 = vpop.f32.mrb[2].mxu0 }
  0xf9   :  { %v1230_v24 = vpop.f32.mrb[3].mxu0 }
  0xfa   :  { %v1874_v25 = vadd.f32 %v1230_v24, %v1229_v23 }
  0xfe   :  { %v1232_v26 = vpop.f32.mrb[4].mxu0  ;;  %v1312_v28 = vpop.f32.mrb[16].mxu1 }
  0xff   :  { %v1233_v27 = vpop.f32.mrb[5].mxu0  ;;  %v1313_v31 = vpop.f32.mrb[17].mxu1 }
 0x100   :  { %v1876_v29 = vadd.f32 %v1233_v27, %v1232_v26  ;;  %v1235_v30 = vpop.f32.mrb[6].mxu0  ;;  %v1314_v33 = vadd.f32 %v1313_v31, %v1312_v28  ;;  %v1315_v34 = vpop.f32.mrb[18].mxu1 }
 0x101   :  { %v1236_v32 = vpop.f32.mrb[7].mxu0  ;;  %v1316_v36 = vpop.f32.mrb[19].mxu1 }
 0x102   :  { %v1878_v35 = vadd.f32 %v1236_v32, %v1235_v30  ;;  %v1317_v37 = vadd.f32 %v1316_v36, %v1315_v34 }
 0x106   :  { %v1238_v38 = vpop.f32.mrb[8].mxu0  ;;  %v1318_v40 = vpop.f32.mrb[20].mxu1 }
 0x107   :  { %v1239_v39 = vpop.f32.mrb[9].mxu0  ;;  %v1319_v43 = vpop.f32.mrb[21].mxu1 }
 0x108   :  { %v1240_v41 = vadd.f32 %v1239_v39, %v1238_v38  ;;  %v1241_v42 = vpop.f32.mrb[10].mxu0  ;;  %v1320_v45 = vadd.f32 %v1319_v43, %v1318_v40  ;;  %v1321_v46 = vpop.f32.mrb[22].mxu1 }
 0x109   :  { %v1242_v44 = vpop.f32.mrb[11].mxu0  ;;  %v1322_v49 = vpop.f32.mrb[23].mxu1 }
 0x10a   :  { %v1243_v47 = vadd.f32 %v1242_v44, %v1241_v42  ;;  %v1880_v48 = vadd.f32 %v1314_v33, %v1240_v41  ;;  %v1323_v50 = vadd.f32 %v1322_v49, %v1321_v46 }
 0x10c   :  { %v1882_v51 = vadd.f32 %v1317_v37, %v1243_v47 }
 0x10e   :  { %v1244_v52 = vpop.f32.mrb[12].mxu0  ;;  %v1324_v54 = vpop.f32.mrb[24].mxu1 }
 0x10f   :  { %v1245_v53 = vpop.f32.mrb[13].mxu0  ;;  %v1325_v57 = vpop.f32.mrb[25].mxu1 }
 0x110   :  { %v1246_v55 = vadd.f32 %v1245_v53, %v1244_v52  ;;  %v1247_v56 = vpop.f32.mrb[14].mxu0  ;;  %v1326_v59 = vadd.f32 %v1325_v57, %v1324_v54  ;;  %v1327_v60 = vpop.f32.mrb[26].mxu1 }
 0x111   :  { %v1248_v58 = vpop.f32.mrb[15].mxu0  ;;  %v1328_v63 = vpop.f32.mrb[27].mxu1 }
 0x112   :  { %v1249_v61 = vadd.f32 %v1248_v58, %v1247_v56  ;;  %v1884_v62 = vadd.f32 %v1320_v45, %v1246_v55  ;;  %v1329_v0 = vadd.f32 %v1328_v63, %v1327_v60 }
 0x114   :  { %v1886_v1 = vadd.f32 %v1323_v50, %v1249_v61 }
 0x116   :  { %v1250_v2 = vpop.f32.mrb[16].mxu0  ;;  %v1330_v4 = vpop.f32.mrb[28].mxu1 }
 0x117   :  { %v1251_v3 = vpop.f32.mrb[17].mxu0  ;;  %v1331_v7 = vpop.f32.mrb[29].mxu1 }
 0x118   :  { %v1252_v5 = vadd.f32 %v1251_v3, %v1250_v2  ;;  %v1253_v6 = vpop.f32.mrb[18].mxu0  ;;  %v1332_v9 = vadd.f32 %v1331_v7, %v1330_v4  ;;  %v1333_v10 = vpop.f32.mrb[30].mxu1  ;;  %v1911_v3 = vld [vmem:[%s2015_s4] ss:$0 sm:$0xff] }
 0x119   :  { %v1254_v8 = vpop.f32.mrb[19].mxu0  ;;  %v1334_v13 = vpop.f32.mrb[31].mxu1 }
 0x11a   :  { %v1255_v11 = vadd.f32 %v1254_v8, %v1253_v6  ;;  %v1888_v12 = vadd.f32 %v1326_v59, %v1252_v5  ;;  %v1335_v14 = vadd.f32 %v1334_v13, %v1333_v10 }
 0x11c   :  { %v1890_v15 = vadd.f32 %v1329_v0, %v1255_v11 }
 0x11e   :  { %v1256_v16 = vpop.f32.mrb[20].mxu0  ;;  %v1336_v18 = vpop.f32.mrb[32].mxu1 }
 0x11f   :  { %v1257_v17 = vpop.f32.mrb[21].mxu0  ;;  %v1337_v21 = vpop.f32.mrb[33].mxu1 }
 0x120   :  { %v1258_v19 = vadd.f32 %v1257_v17, %v1256_v16  ;;  %v1259_v20 = vpop.f32.mrb[22].mxu0  ;;  %v1338_v24 = vadd.f32 %v1337_v21, %v1336_v18  ;;  %v1339_v26 = vpop.f32.mrb[34].mxu1 }
 0x121   :  { %v1260_v23 = vpop.f32.mrb[23].mxu0  ;;  %v1340_v30 = vpop.f32.mrb[35].mxu1 }
 0x122   :  { %v1261_v27 = vadd.f32 %v1260_v23, %v1259_v20  ;;  %v1892_v28 = vadd.f32 %v1332_v9, %v1258_v19  ;;  %v1341_v31 = vadd.f32 %v1340_v30, %v1339_v26 }
 0x124   :  { %v1894_v32 = vadd.f32 %v1335_v14, %v1261_v27 }
 0x126   :  { %v1262_v33 = vpop.f32.mrb[24].mxu0  ;;  %v1342_v36 = vpop.f32.mrb[36].mxu1 }
 0x127   :  { %v1263_v34 = vpop.f32.mrb[25].mxu0  ;;  %v1343_v39 = vpop.f32.mrb[37].mxu1 }
 0x128   :  { %v1264_v37 = vadd.f32 %v1263_v34, %v1262_v33  ;;  %v1265_v38 = vpop.f32.mrb[26].mxu0  ;;  %v1344_v41 = vadd.f32 %v1343_v39, %v1342_v36  ;;  %v1345_v42 = vpop.f32.mrb[38].mxu1 }
 0x129   :  { %v1266_v40 = vpop.f32.mrb[27].mxu0  ;;  %v1346_v45 = vpop.f32.mrb[39].mxu1 }
 0x12a   :  { %v1267_v43 = vadd.f32 %v1266_v40, %v1265_v38  ;;  %v1896_v44 = vadd.f32 %v1338_v24, %v1264_v37  ;;  %v1347_v46 = vadd.f32 %v1346_v45, %v1345_v42 }
 0x12c   :  { %v1898_v47 = vadd.f32 %v1341_v31, %v1267_v43 }
 0x12e   :  { %v1268_v49 = vpop.f32.mrb[28].mxu0  ;;  %v1900_v52 = vpop.f32.mrb[0].mxu1 }
 0x12f   :  { %v1269_v50 = vpop.f32.mrb[29].mxu0  ;;  %v987_v55 = vpop.f32.mrb[1].mxu1 }
 0x130   :  { %v1270_v53 = vadd.f32 %v1269_v50, %v1268_v49  ;;  %v1271_v54 = vpop.f32.mrb[30].mxu0  ;;  %v1902_v57 = vpop.f32.mrb[2].mxu1 }
 0x131   :  { %v1272_v56 = vpop.f32.mrb[31].mxu0  ;;  %v990_v60 = vpop.f32.mrb[3].mxu1 }
 0x132   :  { %v1273_v58 = vadd.f32 %v1272_v56, %v1271_v54  ;;  %v1904_v59 = vadd.f32 %v1344_v41, %v1270_v53 }
 0x134   :  { %v1906_v61 = vadd.f32 %v1347_v46, %v1273_v58 }
 0x136   :  { %v1300_v63 = vpop.f32.mrb[32].mxu0  ;;  %v1388_v2 = vpop.f32.mrb[4].mxu1 }
 0x137   :  { %v1301_v0 = vpop.f32.mrb[33].mxu0  ;;  %v1423_v6 = vadd.f32 %v1884_v62, %v1388_v2  ;;  %v1003_v7 = vpop.f32.mrb[5].mxu1 }
 0x138   :  { %v1302_v4 = vadd.f32 %v1301_v0, %v1300_v63  ;;  %v1303_v5 = vpop.f32.mrb[34].mxu0  ;;  %v1425_v10 = vadd.f32 %v1880_v48, %v1003_v7  ;;  %v1389_v11 = vpop.f32.mrb[6].mxu1 }
 0x139   :  { %v1304_v8 = vpop.f32.mrb[35].mxu0  ;;  %v1063_v14 = vadd.f32 %v1423_v6, %v1911_v3  ;;  %v1427_v16 = vadd.f32 %v1886_v1, %v1389_v11  ;;  %v1006_v17 = vpop.f32.mrb[7].mxu1 }
 0x13a   :  { %v1416_v9 = vadd.f32 %v1302_v4, %v1872_v22  ;;  %v1305_v13 = vadd.f32 %v1304_v8, %v1303_v5  ;;  %v1061_v19 = vadd.f32 %v1425_v10, %v1911_v3  ;;  %v1429_v62 = vadd.f32 %v1882_v51, %v1006_v17 }
 0x13b   :  { %v1079_v21 = vmax.f32 %v1063_v14, 0.0  ;;  %v1064_v23 = vadd.f32 %v1427_v16, %v1911_v3 }
 0x13c   :  { %v1417_v18 = vadd.f32 %v1416_v9, %v987_v55  ;;  %v1420_v20 = vadd.f32 %v1305_v13, %v1874_v25  ;;  %v1077_v48 = vmax.f32 %v1061_v19, 0.0  ;;  %v1062_v26 = vadd.f32 %v1429_v62, %v1911_v3 }
 0x13d   :  { %1095 = vst.msk [vmem:[%s2016_s5 + $0x30] sm:$0xff] %vm385_vm0, %v1079_v21  ;;  %v1080_v1 = vmax.f32 %v1064_v23, 0.0 }
 0x13e   :  { %v1057_v22 = vadd.f32 %v1417_v18, %v1911_v3  ;;  %v1421_v24 = vadd.f32 %v1420_v20, %v990_v60  ;;  %v1306_v27 = vpop.f32.mrb[36].mxu0  ;;  %1093 = vst.msk [vmem:[%s2016_s5 + $0x20] sm:$0xff] %vm385_vm0, %v1077_v48  ;;  %v1078_v31 = vmax.f32 %v1062_v26, 0.0  ;;  %v1392_v33 = vpop.f32.mrb[8].mxu1 }
 0x13f   :  { %v1307_v30 = vpop.f32.mrb[37].mxu0  ;;  %1096 = vst.msk [vmem:[%s2016_s5 + $0x38] sm:$0xff] %vm385_vm0, %v1080_v1  ;;  %v1431_v37 = vadd.f32 %v1892_v28, %v1392_v33  ;;  %v1019_v38 = vpop.f32.mrb[9].mxu1 }
 0x140   :  { %v1073_v25 = vmax.f32 %v1057_v22, 0.0  ;;  %v1058_v51 = vadd.f32 %v1421_v24, %v1911_v3  ;;  %v1308_v34 = vadd.f32 %v1307_v30, %v1306_v27  ;;  %v1309_v36 = vpop.f32.mrb[38].mxu0  ;;  %1094 = vst.msk [vmem:[%s2016_s5 + $0x28] sm:$0xff] %vm385_vm0, %v1078_v31  ;;  %v1433_v42 = vadd.f32 %v1888_v12, %v1019_v38  ;;  %v1393_v43 = vpop.f32.mrb[10].mxu1 }
 0x141   :  { %v1310_v39 = vpop.f32.mrb[39].mxu0  ;;  %v1067_v28 = vadd.f32 %v1431_v37, %v1911_v3  ;;  %v1435_v46 = vadd.f32 %v1894_v32, %v1393_v43  ;;  %v1022_v49 = vpop.f32.mrb[11].mxu1 }
 0x142   :  { %1089 = vst.msk [vmem:[%s2016_s5] sm:$0xff] %vm385_vm0, %v1073_v25  ;;  %v1074_v40 = vmax.f32 %v1058_v51, 0.0  ;;  %v1414_v41 = vadd.f32 %v1308_v34, %v1876_v29  ;;  %v1311_v45 = vadd.f32 %v1310_v39, %v1309_v36  ;;  %v1065_v53 = vadd.f32 %v1433_v42, %v1911_v3 }
 0x143   :  { %v1437_v12 = vadd.f32 %v1890_v15, %v1022_v49  ;;  %v1083_v54 = vmax.f32 %v1067_v28, 0.0  ;;  %v1068_v55 = vadd.f32 %v1435_v46, %v1911_v3 }
 0x144   :  { %1090 = vst.msk [vmem:[%s2016_s5 + $0x8] sm:$0xff] %vm385_vm0, %v1074_v40  ;;  %v1415_v50 = vadd.f32 %v1414_v41, %v1900_v52  ;;  %v1418_v29 = vadd.f32 %v1311_v45, %v1878_v35  ;;  %v1081_v32 = vmax.f32 %v1065_v53, 0.0 }
 0x145   :  { %v1066_v60 = vadd.f32 %v1437_v12, %v1911_v3  ;;  %1099 = vst.msk [vmem:[%s2016_s5 + $0x50] sm:$0xff] %vm385_vm0, %v1083_v54  ;;  %v1084_v52 = vmax.f32 %v1068_v55, 0.0 }
 0x146   :  { %v1059_v56 = vadd.f32 %v1415_v50, %v1911_v3  ;;  %v1419_v58 = vadd.f32 %v1418_v29, %v1902_v57  ;;  %1097 = vst.msk [vmem:[%s2016_s5 + $0x40] sm:$0xff] %vm385_vm0, %v1081_v32  ;;  %v1396_v0 = vpop.f32.mrb[12].mxu1 }
 0x147   :  { %v1082_v15 = vmax.f32 %v1066_v60, 0.0  ;;  %1100 = vst.msk [vmem:[%s2016_s5 + $0x58] sm:$0xff] %vm385_vm0, %v1084_v52  ;;  %v1439_v57 = vadd.f32 %v1904_v59, %v1396_v0  ;;  %v1035_v2 = vpop.f32.mrb[13].mxu1 }
 0x148   :  { %v1075_v63 = vmax.f32 %v1059_v56, 0.0  ;;  %v1060_v35 = vadd.f32 %v1419_v58, %v1911_v3  ;;  %v1441_v5 = vadd.f32 %v1896_v44, %v1035_v2  ;;  %v1397_v6 = vpop.f32.mrb[14].mxu1 }
 0x149   :  { %1098 = vst.msk [vmem:[%s2016_s5 + $0x48] sm:$0xff] %vm385_vm0, %v1082_v15  ;;  %v1071_v7 = vadd.f32 %v1439_v57, %v1911_v3  ;;  %v1443_v8 = vadd.f32 %v1906_v61, %v1397_v6  ;;  %v1038_v59 = vpop.f32.mrb[15].mxu1 }
 0x14a   :  { %1091 = vst.msk [vmem:[%s2016_s5 + $0x10] sm:$0xff] %vm385_vm0, %v1075_v63  ;;  %v1076_v4 = vmax.f32 %v1060_v35, 0.0  ;;  %v1069_v9 = vadd.f32 %v1441_v5, %v1911_v3  ;;  %v1445_v10 = vadd.f32 %v1898_v47, %v1038_v59 }
 0x14b   :  { %v1087_v11 = vmax.f32 %v1071_v7, 0.0  ;;  %v1072_v13 = vadd.f32 %v1443_v8, %v1911_v3 }
 0x14c   :  { %1092 = vst.msk [vmem:[%s2016_s5 + $0x18] sm:$0xff] %vm385_vm0, %v1076_v4  ;;  %v1085_v14 = vmax.f32 %v1069_v9, 0.0  ;;  %v1070_v44 = vadd.f32 %v1445_v10, %v1911_v3 }
 0x14d   :  { %1103 = vst.msk [vmem:[%s2016_s5 + $0x70] sm:$0xff] %vm385_vm0, %v1087_v11  ;;  %v1088_v61 = vmax.f32 %v1072_v13, 0.0 }
 0x14e   :  { %1101 = vst.msk [vmem:[%s2016_s5 + $0x60] sm:$0xff] %vm385_vm0, %v1085_v14  ;;  %v1086_v16 = vmax.f32 %v1070_v44, 0.0 }
 0x14f   :  { %1104 = vst.msk [vmem:[%s2016_s5 + $0x78] sm:$0xff] %vm385_vm0, %v1088_v61 }
 0x150   :  { %1102 = vst.msk [vmem:[%s2016_s5 + $0x68] sm:$0xff] %vm385_vm0, %v1086_v16 }

// kernel: unet_forward.28
= control target key start
LH: loop header
LB: loop body
LE: loop exit
PB: predicated region body
PF: predicated region fallthrough
CT: control target
= control target key end

     0   :  { %vm318_vm0 = vcmask 261120   ;;  %vm553_vm1 = vcmask 523264   ;;  %s1036_s1 = inlined_call_operand.vmem [shape: bf16[288,64], index: 1, kind: input, shape index: {}]   ;;  %s1037_s0 = inlined_call_operand.vmem [shape: bf16[128,288], index: 0, kind: input, shape index: {}]   ;;  %s1038_s2 = inlined_call_operand.vmem [shape: f32[1,64], index: 2, kind: input, shape index: {}]   ;;  %s1039_s3 = inlined_call_operand.vmem [shape: f32[128,64], index: 3, kind: output, shape index: {}]  }
   0x1   :  { %v735_v0 = vld [vmem:[%s1036_s1 + $0x40] sm:$0xff]   ;;  %v737_v2 = vld [vmem:[%s1036_s1 + $0x48] sm:$0xff]   ;;  %v739_v4 = vld [vmem:[%s1036_s1 + $0x50] sm:$0xff]  }
   0x2   :  { %v736_v1 = vld [vmem:[%s1036_s1] sm:$0xff]   ;;  %625 = vmatprep.subr.bf16.mxu0 %v735_v0  ;;  %719 = vmatprep.subr.bf16.mxu1 %v735_v0  ;;  %v738_v3 = vld [vmem:[%s1036_s1 + $0x8] sm:$0xff]   ;;  %v740_v5 = vld [vmem:[%s1036_s1 + $0x10] sm:$0xff]  }
   0x3   :  { %626 = vmatpush3.bf16.msra.mxu0 %v736_v1  ;;  %727 = vmatpush3.bf16.msra.mxu1 %v736_v1  ;;  %v741_v6 = vld [vmem:[%s1036_s1 + $0x58] sm:$0xff]   ;;  %v743_v8 = vld [vmem:[%s1036_s1 + $0x60] sm:$0xff]   ;;  %v745_v10 = vld [vmem:[%s1036_s1 + $0x68] sm:$0xff]  }
   0x4   :  { %627 = vmatprep.subr.bf16.mxu0 %v737_v2  ;;  %720 = vmatprep.subr.bf16.mxu1 %v737_v2  ;;  %v742_v7 = vld [vmem:[%s1036_s1 + $0x18] sm:$0xff]   ;;  %v744_v9 = vld [vmem:[%s1036_s1 + $0x20] sm:$0xff]   ;;  %v746_v13 = vld [vmem:[%s1036_s1 + $0x28] sm:$0xff]  }
   0x5   :  { %v753_v11 = vld [vmem:[%s1037_s0 + $0x4] ss:$12 sps:$4 sm:$0xff]   ;;  %v756_v12 = vld [vmem:[%s1037_s0 + $0x94] ss:$12 sps:$4 sm:$0xff]   ;;  %v749_v16 = vld [vmem:[%s1036_s1 + $0x78] sm:$0xff]  }
   0x6   :  { %v747_v14 = vld [vmem:[%s1036_s1 + $0x70] sm:$0xff]   ;;  %375 = vmatprep.mubr.bf16.mxu0 %v753_v11  ;;  %423 = vmatprep.mubr.bf16.mxu1 %v756_v12  ;;  %v750_v17 = vld [vmem:[%s1036_s1 + $0x38] sm:$0xff]   ;;  %v751_v18 = vld [vmem:[%s1037_s0] ss:$12 sps:$4 sm:$0xff]  }
   0x7   :  { %628 = vmatpush3.bf16.msra.mxu0 %v738_v3  ;;  %728 = vmatpush3.bf16.msra.mxu1 %v738_v3  ;;  %v748_v15 = vld [vmem:[%s1036_s1 + $0x30] sm:$0xff]   ;;  %v757_v19 = vld [vmem:[%s1036_s1 + $0x80] sm:$0xff]   ;;  %v758_v21 = vld [vmem:[%s1037_s0 + $0x1c] ss:$12 sps:$4 sm:$0xff]  }
   0x8   :  { %629 = vmatprep.subr.bf16.mxu0 %v739_v4  ;;  %721 = vmatprep.subr.bf16.mxu1 %v739_v4  ;;  %v754_v20 = vld [vmem:[%s1037_s0 + $0x90] ss:$12 sps:$4 sm:$0xff]   ;;  %v760_v22 = vld [vmem:[%s1037_s0 + $0xac] ss:$12 sps:$4 sm:$0xff]   ;;  %v763_v25 = vld [vmem:[%s1037_s0 + $0xa8] ss:$12 sps:$4 sm:$0xff]  }
   0x9   :  { %v764_v23 = vld [vmem:[%s1036_s1 + $0x88] sm:$0xff]   ;;  %v762_v24 = vld [vmem:[%s1037_s0 + $0x18] ss:$12 sps:$4 sm:$0xff]   ;;  %v765_v26 = vld [vmem:[%s1037_s0 + $0x34] ss:$12 sps:$4 sm:$0xff]  }
   0xa   :  { %v767_v27 = vld [vmem:[%s1037_s0 + $0x8] ss:$12 sps:$4 sm:$0xff]   ;;  %v768_v28 = vld [vmem:[%s1037_s0 + $0x30] ss:$12 sps:$4 sm:$0xff]   ;;  %v769_v29 = vld [vmem:[%s1037_s0 + $0x20] ss:$12 sps:$4 sm:$0xff]  }
   0xb   :  { %630 = vmatpush3.bf16.msra.mxu0 %v740_v5  ;;  %729 = vmatpush3.bf16.msra.mxu1 %v740_v5  ;;  %v770_v30 = vld [vmem:[%s1037_s0 + $0x4c] ss:$12 sps:$4 sm:$0xff]   ;;  %v773_v32 = vld [vmem:[%s1037_s0 + $0x48] ss:$12 sps:$4 sm:$0xff]   ;;  %v774_v33 = vld [vmem:[%s1037_s0 + $0x50] ss:$12 sps:$4 sm:$0xff]  }
   0xc   :  { %631 = vmatprep.subr.bf16.mxu0 %v741_v6  ;;  %722 = vmatprep.subr.bf16.mxu1 %v741_v6  ;;  %v772_v31 = vld [vmem:[%s1037_s0 + $0x38] ss:$12 sps:$4 sm:$0xff]   ;;  %v777_v35 = vld [vmem:[%s1037_s0 + $0x68] ss:$12 sps:$4 sm:$0xff]   ;;  %v778_v36 = vld [vmem:[%s1037_s0 + $0x60] ss:$12 sps:$4 sm:$0xff]  }
   0xd   :  { %v775_v34 = vld [vmem:[%s1037_s0 + $0x64] ss:$12 sps:$4 sm:$0xff]   ;;  %v779_v37 = vld [vmem:[%s1037_s0 + $0x80] ss:$12 sps:$4 sm:$0xff]   ;;  %v780_v38 = vld [vmem:[%s1037_s0 + $0x7c] ss:$12 sps:$4 sm:$0xff]  }
   0xe   :  { %v782_v39 = vld [vmem:[%s1037_s0 + $0x98] ss:$12 sps:$4 sm:$0xff]   ;;  %v784_v41 = vld [vmem:[%s1037_s0 + $0xb0] ss:$12 sps:$4 sm:$0xff]   ;;  %v950_v2 = vld [vmem:[%s1038_s2] ss:$0 sm:$0xff] }
   0xf   :  { %632 = vmatpush3.bf16.msra.mxu0 %v742_v7  ;;  %730 = vmatpush3.bf16.msra.mxu1 %v742_v7  ;;  %v783_v40 = vld [vmem:[%s1037_s0 + $0x78] ss:$12 sps:$4 sm:$0xff]  }
  0x10   :  { %633 = vmatprep.subr.bf16.mxu0 %v743_v8  ;;  %723 = vmatprep.subr.bf16.mxu1 %v743_v8 }
  0x13   :  { %634 = vmatpush3.bf16.msra.mxu0 %v744_v9  ;;  %731 = vmatpush3.bf16.msra.mxu1 %v744_v9 }
  0x14   :  { %635 = vmatprep.subr.bf16.mxu0 %v745_v10  ;;  %724 = vmatprep.subr.bf16.mxu1 %v745_v10 }
  0x17   :  { %636 = vmatpush3.bf16.msra.mxu0 %v746_v13  ;;  %732 = vmatpush3.bf16.msra.mxu1 %v746_v13 }
  0x18   :  { %637 = vmatprep.subr.bf16.mxu0 %v747_v14  ;;  %725 = vmatprep.subr.bf16.mxu1 %v747_v14 }
  0x1b   :  { %638 = vmatpush3.bf16.msra.mxu0 %v748_v15  ;;  %733 = vmatpush3.bf16.msra.mxu1 %v748_v15 }
  0x1c   :  { %639 = vmatprep.subr.bf16.mxu0 %v749_v16  ;;  %726 = vmatprep.subr.bf16.mxu1 %v749_v16 }
  0x1f   :  { %640 = vmatpush3.bf16.msra.mxu0 %v750_v17  ;;  %734 = vmatpush3.bf16.msra.mxu1 %v750_v17 }
  0x20   :  { %699 = vmatprep.subr.bf16.mxu1 %v757_v19 }
  0x22   :  { %376 = vmatmul.mubr.bf16.vlgmr.msra.gmra.mrb[0].mxu0 %v751_v18  ;;  %424 = vmatmul.mubr.bf16.vlgmr.msra.gmra.mrb[0].mxu1 %v754_v20 }
  0x23   :  { %700 = vmatpush3.bf16.msra.mxu1 %v757_v19  ;;  %383 = vmatprep.mubr.bf16.mxu0 %v758_v21 }
  0x24   :  { %431 = vmatprep.mubr.bf16.mxu1 %v760_v22  ;;  %701 = vmatprep.subr.bf16.mxu1 %v764_v23 }
  0x27   :  { %702 = vmatpush3.bf16.msra.mxu1 %v764_v23 }
  0x2a   :  { %384 = vmatmul.mubr.bf16.gmra.mrb[4].mxu0 %v762_v24  ;;  %432 = vmatmul.mubr.bf16.gmra.mrb[4].mxu1 %v763_v25 }
  0x2b   :  { %391 = vmatprep.mubr.bf16.mxu0 %v765_v26  ;;  %703 = vmatprep.mubr.msk.bf16.mxu1 %vm318_vm0, %v767_v27 }
  0x32   :  { %392 = vmatmul.mubr.bf16.gmra.mrb[8].mxu0 %v768_v28  ;;  %704 = vmatmul.mubr.msk.bf16.vlgmr.msra.gmra.mrb[8].mxu1 %vm318_vm0, %v769_v29 }
  0x33   :  { %399 = vmatprep.mubr.bf16.mxu0 %v770_v30  ;;  %707 = vmatprep.mubr.msk.bf16.mxu1 %vm318_vm0, %v772_v31 }
  0x3a   :  { %400 = vmatmul.mubr.bf16.gmra.mrb[12].mxu0 %v773_v32  ;;  %708 = vmatmul.mubr.msk.bf16.gmra.mrb[12].mxu1 %vm318_vm0, %v774_v33 }
  0x3b   :  { %407 = vmatprep.mubr.bf16.mxu0 %v775_v34  ;;  %711 = vmatprep.mubr.msk.bf16.mxu1 %vm318_vm0, %v777_v35 }
  0x42   :  { %408 = vmatmul.mubr.bf16.gmra.mrb[16].mxu0 %v778_v36  ;;  %712 = vmatmul.mubr.msk.bf16.gmra.mrb[16].mxu1 %vm318_vm0, %v779_v37 }
  0x43   :  { %415 = vmatprep.mubr.bf16.mxu0 %v780_v38  ;;  %715 = vmatprep.mubr.msk.bf16.mxu1 %vm318_vm0, %v782_v39 }
  0x4a   :  { %416 = vmatmul.mubr.bf16.gmra.mrb[20].mxu0 %v783_v40  ;;  %716 = vmatmul.mubr.msk.bf16.gmra.mrb[20].mxu1 %vm318_vm0, %v784_v41 }
  0xf5   :  { %v641_v42 = vpop.f32.mrb[0].mxu0  ;;  %v677_v43 = vpop.f32.mrb[0].mxu1 }
  0xf6   :  { %v642_v44 = vpop.f32.mrb[1].mxu0  ;;  %v678_v45 = vpop.f32.mrb[1].mxu1 }
  0xf7   :  { %v643_v46 = vadd.f32 %v642_v44, %v641_v42  ;;  %v644_v47 = vpop.f32.mrb[2].mxu0  ;;  %v939_v48 = vadd.f32 %v678_v45, %v677_v43  ;;  %v680_v49 = vpop.f32.mrb[2].mxu1 }
  0xf8   :  { %v645_v50 = vpop.f32.mrb[3].mxu0  ;;  %v681_v51 = vpop.f32.mrb[3].mxu1 }
  0xf9   :  { %v646_v52 = vadd.f32 %v645_v50, %v644_v47  ;;  %v941_v53 = vadd.f32 %v681_v51, %v680_v49  ;;  %v378_v6 = vadd.f32 %v643_v46, %v950_v2 }
  0xfb   :  { %v381_v15 = vadd.f32 %v646_v52, %v950_v2 }
  0xfd   :  { %v647_v54 = vpop.f32.mrb[4].mxu0  ;;  %v683_v55 = vpop.f32.mrb[4].mxu1 }
  0xfe   :  { %v648_v56 = vpop.f32.mrb[5].mxu0  ;;  %v684_v57 = vpop.f32.mrb[5].mxu1 }
  0xff   :  { %v649_v58 = vadd.f32 %v648_v56, %v647_v54  ;;  %v650_v59 = vpop.f32.mrb[6].mxu0  ;;  %v943_v60 = vadd.f32 %v684_v57, %v683_v55  ;;  %v686_v61 = vpop.f32.mrb[6].mxu1 }
 0x100   :  { %v651_v62 = vpop.f32.mrb[7].mxu0  ;;  %v687_v63 = vpop.f32.mrb[7].mxu1 }
 0x101   :  { %v652_v0 = vadd.f32 %v651_v62, %v650_v59  ;;  %v945_v1 = vadd.f32 %v687_v63, %v686_v61  ;;  %v386_v3 = vadd.f32 %v649_v58, %v950_v2  ;;  %v434_v63 = vadd.f32 %v943_v60, %v950_v2 }
 0x103   :  { %v389_v10 = vadd.f32 %v652_v0, %v950_v2 }
 0x105   :  { %v653_v4 = vpop.f32.mrb[8].mxu0  ;;  %v705_v5 = vpop.f32.mrb[8].mxu1 }
 0x106   :  { %v483_v7 = vadd.f32 %v705_v5, %v386_v3  ;;  %v654_v8 = vpop.f32.mrb[9].mxu0  ;;  %v474_v9 = vpop.f32.mrb[9].mxu1 }
 0x107   :  { %v655_v11 = vadd.f32 %v654_v8, %v653_v4  ;;  %v475_v12 = vadd.f32 %v474_v9, %v378_v6  ;;  %v656_v13 = vpop.f32.mrb[10].mxu0  ;;  %v706_v14 = vpop.f32.mrb[10].mxu1  ;;  %v426_v6 = vadd.f32 %v939_v48, %v950_v2 }
 0x108   :  { %v539_v16 = vmax.f32 %v483_v7, 0.0  ;;  %v486_v17 = vadd.f32 %v706_v14, %v389_v10  ;;  %v657_v18 = vpop.f32.mrb[11].mxu0  ;;  %v477_v19 = vpop.f32.mrb[11].mxu1  ;;  %v437_v10 = vadd.f32 %v945_v1, %v950_v2 }
 0x109   :  { %v537_v20 = vmax.f32 %v475_v12, 0.0  ;;  %v658_v21 = vadd.f32 %v657_v18, %v656_v13  ;;  %v478_v22 = vadd.f32 %v477_v19, %v381_v15  ;;  %v394_v27 = vadd.f32 %v655_v11, %v950_v2 }
 0x10a   :  { %556 = vst.msk [vmem:[%s1039_s3 + $0x10] sm:$0xff] %vm553_vm1, %v539_v16  ;;  %v540_v23 = vmax.f32 %v486_v17, 0.0  ;;  %v429_v15 = vadd.f32 %v941_v53, %v950_v2 }
 0x10b   :  { %554 = vst.msk [vmem:[%s1039_s3] sm:$0xff] %vm553_vm1, %v537_v20  ;;  %v538_v24 = vmax.f32 %v478_v22, 0.0  ;;  %v397_v34 = vadd.f32 %v658_v21, %v950_v2 }
 0x10c   :  { %557 = vst.msk [vmem:[%s1039_s3 + $0x18] sm:$0xff] %vm553_vm1, %v540_v23 }
 0x10d   :  { %555 = vst.msk [vmem:[%s1039_s3 + $0x8] sm:$0xff] %vm553_vm1, %v538_v24  ;;  %v659_v25 = vpop.f32.mrb[12].mxu0  ;;  %v709_v26 = vpop.f32.mrb[12].mxu1 }
 0x10e   :  { %v660_v28 = vpop.f32.mrb[13].mxu0  ;;  %v490_v29 = vpop.f32.mrb[13].mxu1 }
 0x10f   :  { %v661_v30 = vadd.f32 %v660_v28, %v659_v25  ;;  %v491_v31 = vadd.f32 %v490_v29, %v394_v27  ;;  %v662_v32 = vpop.f32.mrb[14].mxu0  ;;  %v710_v33 = vpop.f32.mrb[14].mxu1 }
 0x110   :  { %v663_v35 = vpop.f32.mrb[15].mxu0  ;;  %v493_v36 = vpop.f32.mrb[15].mxu1 }
 0x111   :  { %v402_v37 = vadd.f32 %v661_v30, %v950_v2  ;;  %v541_v38 = vmax.f32 %v491_v31, 0.0  ;;  %v664_v39 = vadd.f32 %v663_v35, %v662_v32  ;;  %v494_v40 = vadd.f32 %v493_v36, %v397_v34 }
 0x113   :  { %v499_v41 = vadd.f32 %v709_v26, %v402_v37  ;;  %558 = vst.msk [vmem:[%s1039_s3 + $0x20] sm:$0xff] %vm553_vm1, %v541_v38  ;;  %v405_v42 = vadd.f32 %v664_v39, %v950_v2  ;;  %v542_v43 = vmax.f32 %v494_v40, 0.0 }
 0x115   :  { %v543_v44 = vmax.f32 %v499_v41, 0.0  ;;  %v502_v45 = vadd.f32 %v710_v33, %v405_v42  ;;  %559 = vst.msk [vmem:[%s1039_s3 + $0x28] sm:$0xff] %vm553_vm1, %v542_v43  ;;  %v665_v46 = vpop.f32.mrb[16].mxu0  ;;  %v713_v47 = vpop.f32.mrb[16].mxu1 }
 0x116   :  { %v666_v49 = vpop.f32.mrb[17].mxu0  ;;  %v506_v50 = vpop.f32.mrb[17].mxu1 }
 0x117   :  { %560 = vst.msk [vmem:[%s1039_s3 + $0x30] sm:$0xff] %vm553_vm1, %v543_v44  ;;  %v544_v51 = vmax.f32 %v502_v45, 0.0  ;;  %v667_v52 = vadd.f32 %v666_v49, %v665_v46  ;;  %v668_v54 = vpop.f32.mrb[18].mxu0  ;;  %v714_v55 = vpop.f32.mrb[18].mxu1 }
 0x118   :  { %v669_v56 = vpop.f32.mrb[19].mxu0  ;;  %v509_v57 = vpop.f32.mrb[19].mxu1 }
 0x119   :  { %561 = vst.msk [vmem:[%s1039_s3 + $0x38] sm:$0xff] %vm553_vm1, %v544_v51  ;;  %v410_v58 = vadd.f32 %v667_v52, %v950_v2  ;;  %v670_v59 = vadd.f32 %v669_v56, %v668_v54 }
 0x11b   :  { %v507_v61 = vadd.f32 %v506_v50, %v410_v58  ;;  %v413_v62 = vadd.f32 %v670_v59, %v950_v2 }
 0x11d   :  { %v545_v0 = vmax.f32 %v507_v61, 0.0  ;;  %v510_v3 = vadd.f32 %v509_v57, %v413_v62  ;;  %v671_v4 = vpop.f32.mrb[20].mxu0  ;;  %v717_v5 = vpop.f32.mrb[20].mxu1 }
 0x11e   :  { %v531_v7 = vadd.f32 %v717_v5, %v434_v63  ;;  %v672_v8 = vpop.f32.mrb[21].mxu0  ;;  %v522_v9 = vpop.f32.mrb[21].mxu1 }
 0x11f   :  { %562 = vst.msk [vmem:[%s1039_s3 + $0x40] sm:$0xff] %vm553_vm1, %v545_v0  ;;  %v546_v11 = vmax.f32 %v510_v3, 0.0  ;;  %v673_v60 = vadd.f32 %v672_v8, %v671_v4  ;;  %v523_v12 = vadd.f32 %v522_v9, %v426_v6  ;;  %v674_v13 = vpop.f32.mrb[22].mxu0  ;;  %v718_v14 = vpop.f32.mrb[22].mxu1 }
 0x120   :  { %v551_v48 = vmax.f32 %v531_v7, 0.0  ;;  %v534_v16 = vadd.f32 %v718_v14, %v437_v10  ;;  %v675_v17 = vpop.f32.mrb[23].mxu0  ;;  %v525_v18 = vpop.f32.mrb[23].mxu1 }
 0x121   :  { %563 = vst.msk [vmem:[%s1039_s3 + $0x48] sm:$0xff] %vm553_vm1, %v546_v11  ;;  %v418_v1 = vadd.f32 %v673_v60, %v950_v2  ;;  %v549_v19 = vmax.f32 %v523_v12, 0.0  ;;  %v676_v20 = vadd.f32 %v675_v17, %v674_v13  ;;  %v526_v21 = vadd.f32 %v525_v18, %v429_v15 }
 0x122   :  { %568 = vst.msk [vmem:[%s1039_s3 + $0x70] sm:$0xff] %vm553_vm1, %v551_v48  ;;  %v552_v53 = vmax.f32 %v534_v16, 0.0 }
 0x123   :  { %v515_v22 = vadd.f32 %v713_v47, %v418_v1  ;;  %566 = vst.msk [vmem:[%s1039_s3 + $0x60] sm:$0xff] %vm553_vm1, %v549_v19  ;;  %v421_v23 = vadd.f32 %v676_v20, %v950_v2  ;;  %v550_v24 = vmax.f32 %v526_v21, 0.0 }
 0x124   :  { %569 = vst.msk [vmem:[%s1039_s3 + $0x78] sm:$0xff] %vm553_vm1, %v552_v53 }
 0x125   :  { %v547_v25 = vmax.f32 %v515_v22, 0.0  ;;  %v518_v26 = vadd.f32 %v714_v55, %v421_v23  ;;  %567 = vst.msk [vmem:[%s1039_s3 + $0x68] sm:$0xff] %vm553_vm1, %v550_v24 }
 0x127   :  { %564 = vst.msk [vmem:[%s1039_s3 + $0x50] sm:$0xff] %vm553_vm1, %v547_v25  ;;  %v548_v27 = vmax.f32 %v518_v26, 0.0 }
 0x129   :  { %565 = vst.msk [vmem:[%s1039_s3 + $0x58] sm:$0xff] %vm553_vm1, %v548_v27 }

// kernel: unet_forward.30
= control target key start
LH: loop header
LB: loop body
LE: loop exit
PB: predicated region body
PF: predicated region fallthrough
CT: control target
= control target key end

     0   :  { %s947_s12 = smov 0   ;;  %s1151_s0 = inlined_call_operand.vmem [shape: bf16[512,144], index: 0, kind: input, shape index: {}]   ;;  %s1152_s1 = inlined_call_operand.vmem [shape: bf16[144,16], index: 1, kind: input, shape index: {}]   ;;  %s1153_s2 = inlined_call_operand.vmem [shape: f32[1,16], index: 2, kind: input, shape index: {}]   ;;  %s1154_s3 = inlined_call_operand.vmem [shape: f32[512,16], index: 3, kind: output, shape index: {}]  }
   0x1 LB: > { %s763_s13 = sadd.s32 4294967295, %s924_s12   ;;  %p767_p0 = scmp.ge.s32.totalorder %s924_s12, 1  ;;  %s924_s12 = sphi %s947_s12, %s13_s12  }
   0x2   : > { %p139_p1 = scmp.lt.s32.totalorder %s924_s12, 3 }
   0x4   : > { %p140_p2 = pnand %p767_p0, %p139_p1 }
   0x5   : > { %v861_v0 = vld [vmem:[%s1152_s1] sm:$0xff] (!%p140_p2)   ;;  %v926_v1 = vmov (!%p140_p2), 0   ;;  %s768_s16 = sshll.u32 (!%p140_p2), %s763_s13, 5  ;;  %v862_v2 = vld [vmem:[%s1152_s1 + $0x8] sm:$0xff] (!%p140_p2)   ;;  %v863_v3 = vld [vmem:[%s1152_s1 + $0x10] sm:$0xff] (!%p140_p2)   ;;  %vm433_vm0 = vcmask (!%p140_p2), 130048  }
   0x6   : > { %143 = sbr.rel (%p140_p2) target bundleno = 317 (0x13d), region = 32  ;;  %482 = vmatprep.subr.bf16.mxu0 (!%p140_p2), %v926_v1  ;;  %834 = vmatprep.subr.bf16.mxu1 (!%p140_p2), %v926_v1  ;;  %p165_p3 = scmp.lt.s32.totalorder (!%p140_p2), %s768_s16, 63  ;;  %v864_v4 = vld [vmem:[%s1152_s1 + $0x18] sm:$0xff] (!%p140_p2)   ;;  %v865_v7 = vld [vmem:[%s1152_s1 + $0x20] sm:$0xff] (!%p140_p2)   ;;  %v866_v8 = vld [vmem:[%s1152_s1 + $0x28] sm:$0xff] (!%p140_p2)  }
   0x7   : > { %483 = vmatpush1.bf16.msra.mxu0 (!%p140_p2), %v861_v0  ;;  %843 = vmatpush1.bf16.msra.mxu1 (!%p140_p2), %v861_v0  ;;  %v867_v9 = vld [vmem:[%s1152_s1 + $0x30] sm:$0xff] (!%p140_p2)   ;;  %v868_v10 = vld [vmem:[%s1152_s1 + $0x38] sm:$0xff] (!%p140_p2)   ;;  %v869_v11 = vld [vmem:[%s1152_s1 + $0x40] sm:$0xff] (!%p140_p2)  }
   0x8   : > { %484 = vmatprep.subr.bf16.mxu0 (!%p140_p2), %v926_v1  ;;  %835 = vmatprep.subr.bf16.mxu1 (!%p140_p2), %v926_v1  ;;  %v1043_v42 = vld [vmem:[%s1153_s2] ss:$0 sm:$0xff] (!%p140_p2) }
   0xb   : > { %485 = vmatpush1.bf16.msra.mxu0 (!%p140_p2), %v862_v2  ;;  %844 = vmatpush1.bf16.msra.mxu1 (!%p140_p2), %v862_v2 }
   0xc   : > { %486 = vmatprep.subr.bf16.mxu0 (!%p140_p2), %v926_v1  ;;  %836 = vmatprep.subr.bf16.mxu1 (!%p140_p2), %v926_v1 }
   0xd   : > { %s1156_s16 = smov (!%p165_p3, %s768_s16), 63 }
   0xe   : > { %s833_s21 = sshll.u32 %s1156_s16, 3 }
   0xf   : > { %s972_s24 = scalar_lea.vmem %s1151_s0, %s833_s21  ;;  %487 = vmatpush1.bf16.msra.mxu0 %v863_v3  ;;  %845 = vmatpush1.bf16.msra.mxu1 %v863_v3  ;;  %s1052_s15 = scalar_lea.vmem %s1154_s3, %s833_s21 }
  0x10   : > { %v872_v5 = vld [vmem:[%s972_s24 + $0x4] ss:$8 sps:$4 sm:$0xff]   ;;  %488 = vmatprep.subr.bf16.mxu0 %v926_v1  ;;  %837 = vmatprep.subr.bf16.mxu1 %v926_v1  ;;  %v870_v12 = vld [vmem:[%s972_s24] ss:$8 sps:$4 sm:$0xff]   ;;  %v876_v14 = vld [vmem:[%s972_s24 + $0x14] ss:$8 sps:$4 sm:$0xff]  }
  0x11   : > { %v875_v6 = vld [vmem:[%s972_s24 + $0x84] ss:$8 sps:$4 sm:$0xff]   ;;  %815 = vmatprep.mubr.msk.bf16.mxu0 %vm433_vm0, %v872_v5  ;;  %v873_v13 = vld [vmem:[%s972_s24 + $0x80] ss:$8 sps:$4 sm:$0xff]   ;;  %v878_v15 = vld [vmem:[%s972_s24 + $0x94] ss:$8 sps:$4 sm:$0xff]  }
  0x12   : > { %823 = vmatprep.mubr.msk.bf16.mxu1 %vm433_vm0, %v875_v6  ;;  %v880_v16 = vld [vmem:[%s972_s24 + $0x10] ss:$8 sps:$4 sm:$0xff]   ;;  %v882_v18 = vld [vmem:[%s972_s24 + $0x24] ss:$8 sps:$4 sm:$0xff]   ;;  %v886_v20 = vld [vmem:[%s972_s24 + $0x20] ss:$8 sps:$4 sm:$0xff]  }
  0x13   : > { %489 = vmatpush1.bf16.msra.mxu0 %v864_v4  ;;  %846 = vmatpush1.bf16.msra.mxu1 %v864_v4  ;;  %v881_v17 = vld [vmem:[%s972_s24 + $0x90] ss:$8 sps:$4 sm:$0xff]   ;;  %v884_v19 = vld [vmem:[%s972_s24 + $0xa4] ss:$8 sps:$4 sm:$0xff]   ;;  %v887_v21 = vld [vmem:[%s972_s24 + $0xa0] ss:$8 sps:$4 sm:$0xff]  }
  0x14   : > { %490 = vmatprep.subr.bf16.mxu0 %v926_v1  ;;  %838 = vmatprep.subr.bf16.mxu1 %v926_v1  ;;  %v888_v22 = vld [vmem:[%s972_s24 + $0x34] ss:$8 sps:$4 sm:$0xff]   ;;  %v892_v24 = vld [vmem:[%s972_s24 + $0x30] ss:$8 sps:$4 sm:$0xff]   ;;  %v894_v26 = vld [vmem:[%s972_s24 + $0x44] ss:$8 sps:$4 sm:$0xff]  }
  0x15   : > { %v890_v23 = vld [vmem:[%s972_s24 + $0xb4] ss:$8 sps:$4 sm:$0xff]   ;;  %v893_v25 = vld [vmem:[%s972_s24 + $0xb0] ss:$8 sps:$4 sm:$0xff]   ;;  %v896_v27 = vld [vmem:[%s972_s24 + $0xc4] ss:$8 sps:$4 sm:$0xff]  }
  0x16   : > { %v898_v28 = vld [vmem:[%s972_s24 + $0x40] ss:$8 sps:$4 sm:$0xff]   ;;  %v900_v30 = vld [vmem:[%s972_s24 + $0x54] ss:$8 sps:$4 sm:$0xff]   ;;  %v904_v32 = vld [vmem:[%s972_s24 + $0x50] ss:$8 sps:$4 sm:$0xff]  }
  0x17   : > { %491 = vmatpush1.bf16.msra.mxu0 %v865_v7  ;;  %847 = vmatpush1.bf16.msra.mxu1 %v865_v7  ;;  %v899_v29 = vld [vmem:[%s972_s24 + $0xc0] ss:$8 sps:$4 sm:$0xff]   ;;  %v902_v31 = vld [vmem:[%s972_s24 + $0xd4] ss:$8 sps:$4 sm:$0xff]   ;;  %v905_v33 = vld [vmem:[%s972_s24 + $0xd0] ss:$8 sps:$4 sm:$0xff]  }
  0x18   : > { %492 = vmatprep.subr.bf16.mxu0 %v926_v1  ;;  %839 = vmatprep.subr.bf16.mxu1 %v926_v1  ;;  %v906_v34 = vld [vmem:[%s972_s24 + $0x64] ss:$8 sps:$4 sm:$0xff]   ;;  %v910_v36 = vld [vmem:[%s972_s24 + $0x60] ss:$8 sps:$4 sm:$0xff]   ;;  %v912_v38 = vld [vmem:[%s972_s24 + $0x74] ss:$8 sps:$4 sm:$0xff]  }
  0x19   : > { %v908_v35 = vld [vmem:[%s972_s24 + $0xe4] ss:$8 sps:$4 sm:$0xff]   ;;  %v911_v37 = vld [vmem:[%s972_s24 + $0xe0] ss:$8 sps:$4 sm:$0xff]   ;;  %v914_v39 = vld [vmem:[%s972_s24 + $0xf4] ss:$8 sps:$4 sm:$0xff]  }
  0x1a   : > { %v916_v40 = vld [vmem:[%s972_s24 + $0x70] ss:$8 sps:$4 sm:$0xff]  }
  0x1b   : > { %493 = vmatpush1.bf16.msra.mxu0 %v866_v8  ;;  %848 = vmatpush1.bf16.msra.mxu1 %v866_v8  ;;  %v917_v41 = vld [vmem:[%s972_s24 + $0xf0] ss:$8 sps:$4 sm:$0xff]  }
  0x1c   : > { %494 = vmatprep.subr.bf16.mxu0 %v926_v1  ;;  %840 = vmatprep.subr.bf16.mxu1 %v926_v1 }
  0x1f   : > { %495 = vmatpush1.bf16.msra.mxu0 %v867_v9  ;;  %849 = vmatpush1.bf16.msra.mxu1 %v867_v9 }
  0x20   : > { %496 = vmatprep.subr.bf16.mxu0 %v926_v1  ;;  %841 = vmatprep.subr.bf16.mxu1 %v926_v1 }
  0x23   : > { %497 = vmatpush1.bf16.msra.mxu0 %v868_v10  ;;  %850 = vmatpush1.bf16.msra.mxu1 %v868_v10 }
  0x24   : > { %498 = vmatprep.subr.bf16.mxu0 %v926_v1  ;;  %842 = vmatprep.subr.bf16.mxu1 %v926_v1 }
  0x27   : > { %499 = vmatpush1.bf16.msra.mxu0 %v869_v11  ;;  %851 = vmatpush1.bf16.msra.mxu1 %v869_v11 }
  0x2a   : > { %515 = vmatmul.mubr.bf16.vlgmr.msra.gmra.mrb[0].mxu0 %v870_v12  ;;  %579 = vmatmul.mubr.bf16.vlgmr.msra.gmra.mrb[0].mxu1 %v873_v13 }
  0x2b   : > { %816 = vmatprep.mubr.msk.bf16.mxu0 %vm433_vm0, %v876_v14  ;;  %824 = vmatprep.mubr.msk.bf16.mxu1 %vm433_vm0, %v878_v15 }
  0x32   : > { %523 = vmatmul.mubr.bf16.gmra.mrb[4].mxu0 %v880_v16  ;;  %587 = vmatmul.mubr.bf16.gmra.mrb[4].mxu1 %v881_v17 }
  0x33   : > { %817 = vmatprep.mubr.msk.bf16.mxu0 %vm433_vm0, %v882_v18  ;;  %825 = vmatprep.mubr.msk.bf16.mxu1 %vm433_vm0, %v884_v19 }
  0x3a   : > { %531 = vmatmul.mubr.bf16.gmra.mrb[8].mxu0 %v886_v20  ;;  %595 = vmatmul.mubr.bf16.gmra.mrb[8].mxu1 %v887_v21 }
  0x3b   : > { %818 = vmatprep.mubr.msk.bf16.mxu0 %vm433_vm0, %v888_v22  ;;  %826 = vmatprep.mubr.msk.bf16.mxu1 %vm433_vm0, %v890_v23 }
  0x42   : > { %539 = vmatmul.mubr.bf16.gmra.mrb[12].mxu0 %v892_v24  ;;  %603 = vmatmul.mubr.bf16.gmra.mrb[12].mxu1 %v893_v25 }
  0x43   : > { %819 = vmatprep.mubr.msk.bf16.mxu0 %vm433_vm0, %v894_v26  ;;  %827 = vmatprep.mubr.msk.bf16.mxu1 %vm433_vm0, %v896_v27 }
  0x4a   : > { %547 = vmatmul.mubr.bf16.gmra.mrb[16].mxu0 %v898_v28  ;;  %611 = vmatmul.mubr.bf16.gmra.mrb[16].mxu1 %v899_v29 }
  0x4b   : > { %820 = vmatprep.mubr.msk.bf16.mxu0 %vm433_vm0, %v900_v30  ;;  %828 = vmatprep.mubr.msk.bf16.mxu1 %vm433_vm0, %v902_v31 }
  0x52   : > { %555 = vmatmul.mubr.bf16.gmra.mrb[20].mxu0 %v904_v32  ;;  %619 = vmatmul.mubr.bf16.gmra.mrb[20].mxu1 %v905_v33 }
  0x53   : > { %821 = vmatprep.mubr.msk.bf16.mxu0 %vm433_vm0, %v906_v34  ;;  %829 = vmatprep.mubr.msk.bf16.mxu1 %vm433_vm0, %v908_v35 }
  0x5a   : > { %563 = vmatmul.mubr.bf16.gmra.mrb[24].mxu0 %v910_v36  ;;  %627 = vmatmul.mubr.bf16.gmra.mrb[24].mxu1 %v911_v37 }
  0x5b   : > { %822 = vmatprep.mubr.msk.bf16.mxu0 %vm433_vm0, %v912_v38  ;;  %830 = vmatprep.mubr.msk.bf16.mxu1 %vm433_vm0, %v914_v39 }
  0x62   : > { %571 = vmatmul.mubr.bf16.gmra.mrb[28].mxu0 %v916_v40  ;;  %635 = vmatmul.mubr.bf16.gmra.mrb[28].mxu1 %v917_v41 }
  0xfd   : > { %v516_v43 = vpop.f32.mrb[0].mxu0  ;;  %v580_v44 = vpop.f32.mrb[0].mxu1 }
  0xfe   : > { %v517_v45 = vadd.f32 %v1043_v42, %v516_v43  ;;  %v581_v46 = vadd.f32 %v1043_v42, %v580_v44  ;;  %v518_v47 = vpop.f32.mrb[1].mxu0  ;;  %v582_v48 = vpop.f32.mrb[1].mxu1 }
  0xff   : > { %v519_v49 = vpop.f32.mrb[2].mxu0  ;;  %v583_v50 = vpop.f32.mrb[2].mxu1 }
 0x100   : > { %v643_v51 = vmax.f32 %v517_v45, 0.0  ;;  %v659_v52 = vmax.f32 %v581_v46, 0.0  ;;  %v520_v53 = vadd.f32 %v1043_v42, %v519_v49  ;;  %v584_v54 = vadd.f32 %v1043_v42, %v583_v50  ;;  %v521_v55 = vpop.f32.mrb[3].mxu0  ;;  %v585_v56 = vpop.f32.mrb[3].mxu1 }
 0x102   : > { %675 = vst.msk [vmem:[%s1052_s15] sm:$0xff] %vm433_vm0, %v643_v51  ;;  %691 = vst.msk [vmem:[%s1052_s15 + $0x80] sm:$0xff] %vm433_vm0, %v659_v52  ;;  %v644_v57 = vmax.f32 %v520_v53, 0.0  ;;  %v660_v58 = vmax.f32 %v584_v54, 0.0 }
 0x104   : > { %676 = vst.msk [vmem:[%s1052_s15 + $0x8] sm:$0xff] %vm433_vm0, %v644_v57  ;;  %692 = vst.msk [vmem:[%s1052_s15 + $0x88] sm:$0xff] %vm433_vm0, %v660_v58 }
 0x105   : > { %v524_v59 = vpop.f32.mrb[4].mxu0  ;;  %v588_v60 = vpop.f32.mrb[4].mxu1 }
 0x106   : > { %v525_v61 = vadd.f32 %v1043_v42, %v524_v59  ;;  %v589_v62 = vadd.f32 %v1043_v42, %v588_v60  ;;  %v526_v63 = vpop.f32.mrb[5].mxu0  ;;  %v590_v0 = vpop.f32.mrb[5].mxu1 }
 0x107   : > { %v527_v1 = vpop.f32.mrb[6].mxu0  ;;  %v591_v2 = vpop.f32.mrb[6].mxu1 }
 0x108   : > { %v645_v3 = vmax.f32 %v525_v61, 0.0  ;;  %v661_v4 = vmax.f32 %v589_v62, 0.0  ;;  %v528_v5 = vadd.f32 %v1043_v42, %v527_v1  ;;  %v592_v6 = vadd.f32 %v1043_v42, %v591_v2  ;;  %v529_v7 = vpop.f32.mrb[7].mxu0  ;;  %v593_v8 = vpop.f32.mrb[7].mxu1 }
 0x10a   : > { %677 = vst.msk [vmem:[%s1052_s15 + $0x10] sm:$0xff] %vm433_vm0, %v645_v3  ;;  %693 = vst.msk [vmem:[%s1052_s15 + $0x90] sm:$0xff] %vm433_vm0, %v661_v4  ;;  %v646_v9 = vmax.f32 %v528_v5, 0.0  ;;  %v662_v10 = vmax.f32 %v592_v6, 0.0 }
 0x10c   : > { %678 = vst.msk [vmem:[%s1052_s15 + $0x18] sm:$0xff] %vm433_vm0, %v646_v9  ;;  %694 = vst.msk [vmem:[%s1052_s15 + $0x98] sm:$0xff] %vm433_vm0, %v662_v10 }
 0x10d   : > { %v532_v11 = vpop.f32.mrb[8].mxu0  ;;  %v596_v12 = vpop.f32.mrb[8].mxu1 }
 0x10e   : > { %v533_v13 = vadd.f32 %v1043_v42, %v532_v11  ;;  %v597_v14 = vadd.f32 %v1043_v42, %v596_v12  ;;  %v534_v15 = vpop.f32.mrb[9].mxu0  ;;  %v598_v16 = vpop.f32.mrb[9].mxu1 }
 0x10f   : > { %v535_v17 = vpop.f32.mrb[10].mxu0  ;;  %v599_v18 = vpop.f32.mrb[10].mxu1 }
 0x110   : > { %v647_v19 = vmax.f32 %v533_v13, 0.0  ;;  %v663_v20 = vmax.f32 %v597_v14, 0.0  ;;  %v536_v21 = vadd.f32 %v1043_v42, %v535_v17  ;;  %v600_v22 = vadd.f32 %v1043_v42, %v599_v18  ;;  %v537_v23 = vpop.f32.mrb[11].mxu0  ;;  %v601_v24 = vpop.f32.mrb[11].mxu1 }
 0x112   : > { %679 = vst.msk [vmem:[%s1052_s15 + $0x20] sm:$0xff] %vm433_vm0, %v647_v19  ;;  %695 = vst.msk [vmem:[%s1052_s15 + $0xa0] sm:$0xff] %vm433_vm0, %v663_v20  ;;  %v648_v25 = vmax.f32 %v536_v21, 0.0  ;;  %v664_v26 = vmax.f32 %v600_v22, 0.0 }
 0x114   : > { %680 = vst.msk [vmem:[%s1052_s15 + $0x28] sm:$0xff] %vm433_vm0, %v648_v25  ;;  %696 = vst.msk [vmem:[%s1052_s15 + $0xa8] sm:$0xff] %vm433_vm0, %v664_v26 }
 0x115   : > { %v540_v27 = vpop.f32.mrb[12].mxu0  ;;  %v604_v28 = vpop.f32.mrb[12].mxu1 }
 0x116   : > { %v541_v29 = vadd.f32 %v1043_v42, %v540_v27  ;;  %v605_v30 = vadd.f32 %v1043_v42, %v604_v28  ;;  %v542_v31 = vpop.f32.mrb[13].mxu0  ;;  %v606_v32 = vpop.f32.mrb[13].mxu1 }
 0x117   : > { %v543_v33 = vpop.f32.mrb[14].mxu0  ;;  %v607_v34 = vpop.f32.mrb[14].mxu1 }
 0x118   : > { %v649_v35 = vmax.f32 %v541_v29, 0.0  ;;  %v665_v36 = vmax.f32 %v605_v30, 0.0  ;;  %v544_v37 = vadd.f32 %v1043_v42, %v543_v33  ;;  %v608_v38 = vadd.f32 %v1043_v42, %v607_v34  ;;  %v545_v39 = vpop.f32.mrb[15].mxu0  ;;  %v609_v40 = vpop.f32.mrb[15].mxu1 }
 0x11a   : > { %681 = vst.msk [vmem:[%s1052_s15 + $0x30] sm:$0xff] %vm433_vm0, %v649_v35  ;;  %697 = vst.msk [vmem:[%s1052_s15 + $0xb0] sm:$0xff] %vm433_vm0, %v665_v36  ;;  %v650_v41 = vmax.f32 %v544_v37, 0.0  ;;  %v666_v43 = vmax.f32 %v608_v38, 0.0 }
 0x11c   : > { %682 = vst.msk [vmem:[%s1052_s15 + $0x38] sm:$0xff] %vm433_vm0, %v650_v41  ;;  %698 = vst.msk [vmem:[%s1052_s15 + $0xb8] sm:$0xff] %vm433_vm0, %v666_v43 }
 0x11d   : > { %v548_v44 = vpop.f32.mrb[16].mxu0  ;;  %v612_v45 = vpop.f32.mrb[16].mxu1 }
 0x11e   : > { %v549_v46 = vadd.f32 %v1043_v42, %v548_v44  ;;  %v613_v47 = vadd.f32 %v1043_v42, %v612_v45  ;;  %v550_v48 = vpop.f32.mrb[17].mxu0  ;;  %v614_v49 = vpop.f32.mrb[17].mxu1 }
 0x11f   : > { %v551_v50 = vpop.f32.mrb[18].mxu0  ;;  %v615_v51 = vpop.f32.mrb[18].mxu1 }
 0x120   : > { %v651_v52 = vmax.f32 %v549_v46, 0.0  ;;  %v667_v53 = vmax.f32 %v613_v47, 0.0  ;;  %v552_v54 = vadd.f32 %v1043_v42, %v551_v50  ;;  %v616_v55 = vadd.f32 %v1043_v42, %v615_v51  ;;  %v553_v56 = vpop.f32.mrb[19].mxu0  ;;  %v617_v57 = vpop.f32.mrb[19].mxu1 }
 0x122   : > { %683 = vst.msk [vmem:[%s1052_s15 + $0x40] sm:$0xff] %vm433_vm0, %v651_v52  ;;  %699 = vst.msk [vmem:[%s1052_s15 + $0xc0] sm:$0xff] %vm433_vm0, %v667_v53  ;;  %v652_v58 = vmax.f32 %v552_v54, 0.0  ;;  %v668_v59 = vmax.f32 %v616_v55, 0.0 }
 0x124   : > { %684 = vst.msk [vmem:[%s1052_s15 + $0x48] sm:$0xff] %vm433_vm0, %v652_v58  ;;  %700 = vst.msk [vmem:[%s1052_s15 + $0xc8] sm:$0xff] %vm433_vm0, %v668_v59 }
 0x125   : > { %v556_v60 = vpop.f32.mrb[20].mxu0  ;;  %v620_v61 = vpop.f32.mrb[20].mxu1 }
 0x126   : > { %v557_v62 = vadd.f32 %v1043_v42, %v556_v60  ;;  %v621_v63 = vadd.f32 %v1043_v42, %v620_v61  ;;  %v558_v0 = vpop.f32.mrb[21].mxu0  ;;  %v622_v1 = vpop.f32.mrb[21].mxu1 }
 0x127   : > { %v559_v2 = vpop.f32.mrb[22].mxu0  ;;  %v623_v3 = vpop.f32.mrb[22].mxu1 }
 0x128   : > { %v653_v4 = vmax.f32 %v557_v62, 0.0  ;;  %v669_v5 = vmax.f32 %v621_v63, 0.0  ;;  %v560_v6 = vadd.f32 %v1043_v42, %v559_v2  ;;  %v624_v7 = vadd.f32 %v1043_v42, %v623_v3  ;;  %v561_v8 = vpop.f32.mrb[23].mxu0  ;;  %v625_v9 = vpop.f32.mrb[23].mxu1 }
 0x12a   : > { %685 = vst.msk [vmem:[%s1052_s15 + $0x50] sm:$0xff] %vm433_vm0, %v653_v4  ;;  %701 = vst.msk [vmem:[%s1052_s15 + $0xd0] sm:$0xff] %vm433_vm0, %v669_v5  ;;  %v654_v10 = vmax.f32 %v560_v6, 0.0  ;;  %v670_v11 = vmax.f32 %v624_v7, 0.0 }
 0x12c   : > { %686 = vst.msk [vmem:[%s1052_s15 + $0x58] sm:$0xff] %vm433_vm0, %v654_v10  ;;  %702 = vst.msk [vmem:[%s1052_s15 + $0xd8] sm:$0xff] %vm433_vm0, %v670_v11 }
 0x12d   : > { %v564_v12 = vpop.f32.mrb[24].mxu0  ;;  %v628_v13 = vpop.f32.mrb[24].mxu1 }
 0x12e   : > { %v565_v14 = vadd.f32 %v1043_v42, %v564_v12  ;;  %v629_v15 = vadd.f32 %v1043_v42, %v628_v13  ;;  %v566_v16 = vpop.f32.mrb[25].mxu0  ;;  %v630_v17 = vpop.f32.mrb[25].mxu1 }
 0x12f   : > { %v567_v18 = vpop.f32.mrb[26].mxu0  ;;  %v631_v19 = vpop.f32.mrb[26].mxu1 }
 0x130   : > { %v655_v20 = vmax.f32 %v565_v14, 0.0  ;;  %v671_v21 = vmax.f32 %v629_v15, 0.0  ;;  %v568_v22 = vadd.f32 %v1043_v42, %v567_v18  ;;  %v632_v23 = vadd.f32 %v1043_v42, %v631_v19  ;;  %v569_v24 = vpop.f32.mrb[27].mxu0  ;;  %v633_v25 = vpop.f32.mrb[27].mxu1 }
 0x132   : > { %687 = vst.msk [vmem:[%s1052_s15 + $0x60] sm:$0xff] %vm433_vm0, %v655_v20  ;;  %703 = vst.msk [vmem:[%s1052_s15 + $0xe0] sm:$0xff] %vm433_vm0, %v671_v21  ;;  %v656_v26 = vmax.f32 %v568_v22, 0.0  ;;  %v672_v27 = vmax.f32 %v632_v23, 0.0 }
 0x134   : > { %688 = vst.msk [vmem:[%s1052_s15 + $0x68] sm:$0xff] %vm433_vm0, %v656_v26  ;;  %704 = vst.msk [vmem:[%s1052_s15 + $0xe8] sm:$0xff] %vm433_vm0, %v672_v27 }
 0x135   : > { %v572_v28 = vpop.f32.mrb[28].mxu0  ;;  %v636_v29 = vpop.f32.mrb[28].mxu1 }
 0x136   : > { %v573_v30 = vadd.f32 %v1043_v42, %v572_v28  ;;  %v637_v31 = vadd.f32 %v1043_v42, %v636_v29  ;;  %v574_v32 = vpop.f32.mrb[29].mxu0  ;;  %v638_v33 = vpop.f32.mrb[29].mxu1 }
 0x137   : > { %v575_v34 = vpop.f32.mrb[30].mxu0  ;;  %v639_v35 = vpop.f32.mrb[30].mxu1 }
 0x138   : > { %v657_v36 = vmax.f32 %v573_v30, 0.0  ;;  %v673_v37 = vmax.f32 %v637_v31, 0.0  ;;  %v576_v38 = vadd.f32 %v1043_v42, %v575_v34  ;;  %v640_v39 = vadd.f32 %v1043_v42, %v639_v35  ;;  %v577_v40 = vpop.f32.mrb[31].mxu0  ;;  %v641_v41 = vpop.f32.mrb[31].mxu1 }
 0x13a   : > { %689 = vst.msk [vmem:[%s1052_s15 + $0x70] sm:$0xff] %vm433_vm0, %v657_v36  ;;  %705 = vst.msk [vmem:[%s1052_s15 + $0xf0] sm:$0xff] %vm433_vm0, %v673_v37  ;;  %v658_v43 = vmax.f32 %v576_v38, 0.0  ;;  %v674_v44 = vmax.f32 %v640_v39, 0.0 }
 0x13c   : > { %690 = vst.msk [vmem:[%s1052_s15 + $0x78] sm:$0xff] %vm433_vm0, %v658_v43  ;;  %706 = vst.msk [vmem:[%s1052_s15 + $0xf8] sm:$0xff] %vm433_vm0, %v674_v44 }
 0x13d PF: > { %s13_s12 = sadd.s32 1, %s924_s12  }
 0x13e   : > { %p10_p4 = scmp.ge.s32.totalorder %s13_s12, 4  }
 0x140   :  { %12 = sbr.rel (!%p10_p4) target bundleno = 1 (0x1), region = 62 }

// kernel: unet_forward.31
= control target key start
LH: loop header
LB: loop body
LE: loop exit
PB: predicated region body
PF: predicated region fallthrough
CT: control target
= control target key end

     0   :  { %s1267_s12 = smov 0   ;;  %s1439_s0 = inlined_call_operand.vmem [shape: bf16[512,144], index: 0, kind: input, shape index: {}]   ;;  %s1440_s1 = inlined_call_operand.vmem [shape: bf16[144,128], index: 1, kind: input, shape index: {}]   ;;  %s1441_s2 = inlined_call_operand.vmem [shape: f32[1,128], index: 2, kind: input, shape index: {}]   ;;  %s1442_s3 = inlined_call_operand.vmem [shape: f32[512,128], index: 3, kind: output, shape index: {}]  }
   0x1 LB: > { %s923_s13 = sadd.s32 4294967295, %s1244_s12   ;;  %p927_p0 = scmp.ge.s32.totalorder %s1244_s12, 1  ;;  %s1244_s12 = sphi %s1267_s12, %s13_s12  }
   0x2   : > { %p139_p1 = scmp.lt.s32.totalorder %s1244_s12, 3 }
   0x4   : > { %p140_p2 = pnand %p927_p0, %p139_p1 }
   0x5   : > { %v1053_v0 = vld [vmem:[%s1440_s1] sm:$0xff] (!%p140_p2)   ;;  %v1246_v1 = vmov (!%p140_p2), 0   ;;  %s928_s16 = sshll.u32 (!%p140_p2), %s923_s13, 5  ;;  %v1054_v2 = vld [vmem:[%s1440_s1 + $0x8] sm:$0xff] (!%p140_p2)   ;;  %v1055_v3 = vld [vmem:[%s1440_s1 + $0x10] sm:$0xff] (!%p140_p2)   ;;  %vm433_vm0 = vcmask (!%p140_p2), 130048  }
   0x6   : > { %143 = sbr.rel (%p140_p2) target bundleno = 347 (0x15b), region = 32  ;;  %482 = vmatprep.subr.bf16.mxu0 (!%p140_p2), %v1246_v1  ;;  %1026 = vmatprep.subr.bf16.mxu1 (!%p140_p2), %v1246_v1  ;;  %p165_p3 = scmp.lt.s32.totalorder (!%p140_p2), %s928_s16, 63  ;;  %v1056_v4 = vld [vmem:[%s1440_s1 + $0x18] sm:$0xff] (!%p140_p2)   ;;  %v1057_v7 = vld [vmem:[%s1440_s1 + $0x20] sm:$0xff] (!%p140_p2)   ;;  %v1058_v8 = vld [vmem:[%s1440_s1 + $0x28] sm:$0xff] (!%p140_p2)  }
   0x7   : > { %483 = vmatpush1.bf16.msra.mxu0 (!%p140_p2), %v1053_v0  ;;  %1035 = vmatpush1.bf16.msra.mxu1 (!%p140_p2), %v1053_v0  ;;  %v1059_v9 = vld [vmem:[%s1440_s1 + $0x30] sm:$0xff] (!%p140_p2)   ;;  %v1060_v10 = vld [vmem:[%s1440_s1 + $0x38] sm:$0xff] (!%p140_p2)   ;;  %v1061_v11 = vld [vmem:[%s1440_s1 + $0x40] sm:$0xff] (!%p140_p2)  }
   0x8   : > { %484 = vmatprep.subr.bf16.mxu0 (!%p140_p2), %v1246_v1  ;;  %1027 = vmatprep.subr.bf16.mxu1 (!%p140_p2), %v1246_v1  ;;  %v1363_v42 = vld [vmem:[%s1441_s2] ss:$0 sm:$0xff] (!%p140_p2) }
   0xb   : > { %485 = vmatpush1.bf16.msra.mxu0 (!%p140_p2), %v1054_v2  ;;  %1036 = vmatpush1.bf16.msra.mxu1 (!%p140_p2), %v1054_v2 }
   0xc   : > { %486 = vmatprep.subr.bf16.mxu0 (!%p140_p2), %v1246_v1  ;;  %1028 = vmatprep.subr.bf16.mxu1 (!%p140_p2), %v1246_v1 }
   0xd   : > { %s1444_s16 = smov (!%p165_p3, %s928_s16), 63 }
   0xe   : > { %s1025_s21 = sshll.u32 %s1444_s16, 3 }
   0xf   : > { %s1292_s24 = scalar_lea.vmem %s1439_s0, %s1025_s21  ;;  %487 = vmatpush1.bf16.msra.mxu0 %v1055_v3  ;;  %1037 = vmatpush1.bf16.msra.mxu1 %v1055_v3  ;;  %s1384_s15 = scalar_lea.vmem %s1442_s3, %s1025_s21 }
  0x10   : > { %v1064_v5 = vld [vmem:[%s1292_s24 + $0x4] ss:$8 sps:$4 sm:$0xff]   ;;  %488 = vmatprep.subr.bf16.mxu0 %v1246_v1  ;;  %1029 = vmatprep.subr.bf16.mxu1 %v1246_v1  ;;  %v1062_v12 = vld [vmem:[%s1292_s24] ss:$8 sps:$4 sm:$0xff]   ;;  %v1068_v14 = vld [vmem:[%s1292_s24 + $0x14] ss:$8 sps:$4 sm:$0xff]  }
  0x11   : > { %v1067_v6 = vld [vmem:[%s1292_s24 + $0x84] ss:$8 sps:$4 sm:$0xff]   ;;  %975 = vmatprep.mubr.msk.bf16.mxu0 %vm433_vm0, %v1064_v5  ;;  %v1065_v13 = vld [vmem:[%s1292_s24 + $0x80] ss:$8 sps:$4 sm:$0xff]   ;;  %v1070_v15 = vld [vmem:[%s1292_s24 + $0x94] ss:$8 sps:$4 sm:$0xff]  }
  0x12   : > { %983 = vmatprep.mubr.msk.bf16.mxu1 %vm433_vm0, %v1067_v6  ;;  %v1072_v16 = vld [vmem:[%s1292_s24 + $0x10] ss:$8 sps:$4 sm:$0xff]   ;;  %v1074_v18 = vld [vmem:[%s1292_s24 + $0x24] ss:$8 sps:$4 sm:$0xff]   ;;  %v1078_v20 = vld [vmem:[%s1292_s24 + $0x20] ss:$8 sps:$4 sm:$0xff]  }
  0x13   : > { %489 = vmatpush1.bf16.msra.mxu0 %v1056_v4  ;;  %1038 = vmatpush1.bf16.msra.mxu1 %v1056_v4  ;;  %v1073_v17 = vld [vmem:[%s1292_s24 + $0x90] ss:$8 sps:$4 sm:$0xff]   ;;  %v1076_v19 = vld [vmem:[%s1292_s24 + $0xa4] ss:$8 sps:$4 sm:$0xff]   ;;  %v1079_v21 = vld [vmem:[%s1292_s24 + $0xa0] ss:$8 sps:$4 sm:$0xff]  }
  0x14   : > { %490 = vmatprep.subr.bf16.mxu0 %v1246_v1  ;;  %1030 = vmatprep.subr.bf16.mxu1 %v1246_v1  ;;  %v1080_v22 = vld [vmem:[%s1292_s24 + $0x34] ss:$8 sps:$4 sm:$0xff]   ;;  %v1084_v24 = vld [vmem:[%s1292_s24 + $0x30] ss:$8 sps:$4 sm:$0xff]   ;;  %v1086_v26 = vld [vmem:[%s1292_s24 + $0x44] ss:$8 sps:$4 sm:$0xff]  }
  0x15   : > { %v1082_v23 = vld [vmem:[%s1292_s24 + $0xb4] ss:$8 sps:$4 sm:$0xff]   ;;  %v1085_v25 = vld [vmem:[%s1292_s24 + $0xb0] ss:$8 sps:$4 sm:$0xff]   ;;  %v1088_v27 = vld [vmem:[%s1292_s24 + $0xc4] ss:$8 sps:$4 sm:$0xff]  }
  0x16   : > { %v1090_v28 = vld [vmem:[%s1292_s24 + $0x40] ss:$8 sps:$4 sm:$0xff]   ;;  %v1092_v30 = vld [vmem:[%s1292_s24 + $0x54] ss:$8 sps:$4 sm:$0xff]   ;;  %v1096_v32 = vld [vmem:[%s1292_s24 + $0x50] ss:$8 sps:$4 sm:$0xff]  }
  0x17   : > { %491 = vmatpush1.bf16.msra.mxu0 %v1057_v7  ;;  %1039 = vmatpush1.bf16.msra.mxu1 %v1057_v7  ;;  %v1091_v29 = vld [vmem:[%s1292_s24 + $0xc0] ss:$8 sps:$4 sm:$0xff]   ;;  %v1094_v31 = vld [vmem:[%s1292_s24 + $0xd4] ss:$8 sps:$4 sm:$0xff]   ;;  %v1097_v33 = vld [vmem:[%s1292_s24 + $0xd0] ss:$8 sps:$4 sm:$0xff]  }
  0x18   : > { %492 = vmatprep.subr.bf16.mxu0 %v1246_v1  ;;  %1031 = vmatprep.subr.bf16.mxu1 %v1246_v1  ;;  %v1098_v34 = vld [vmem:[%s1292_s24 + $0x64] ss:$8 sps:$4 sm:$0xff]   ;;  %v1102_v36 = vld [vmem:[%s1292_s24 + $0x60] ss:$8 sps:$4 sm:$0xff]   ;;  %v1104_v38 = vld [vmem:[%s1292_s24 + $0x74] ss:$8 sps:$4 sm:$0xff]  }
  0x19   : > { %v1100_v35 = vld [vmem:[%s1292_s24 + $0xe4] ss:$8 sps:$4 sm:$0xff]   ;;  %v1103_v37 = vld [vmem:[%s1292_s24 + $0xe0] ss:$8 sps:$4 sm:$0xff]   ;;  %v1106_v39 = vld [vmem:[%s1292_s24 + $0xf4] ss:$8 sps:$4 sm:$0xff]  }
  0x1a   : > { %v1108_v40 = vld [vmem:[%s1292_s24 + $0x70] ss:$8 sps:$4 sm:$0xff]  }
  0x1b   : > { %493 = vmatpush1.bf16.msra.mxu0 %v1058_v8  ;;  %1040 = vmatpush1.bf16.msra.mxu1 %v1058_v8  ;;  %v1109_v41 = vld [vmem:[%s1292_s24 + $0xf0] ss:$8 sps:$4 sm:$0xff]  }
  0x1c   : > { %494 = vmatprep.subr.bf16.mxu0 %v1246_v1  ;;  %1032 = vmatprep.subr.bf16.mxu1 %v1246_v1 }
  0x1f   : > { %495 = vmatpush1.bf16.msra.mxu0 %v1059_v9  ;;  %1041 = vmatpush1.bf16.msra.mxu1 %v1059_v9 }
  0x20   : > { %496 = vmatprep.subr.bf16.mxu0 %v1246_v1  ;;  %1033 = vmatprep.subr.bf16.mxu1 %v1246_v1 }
  0x23   : > { %497 = vmatpush1.bf16.msra.mxu0 %v1060_v10  ;;  %1042 = vmatpush1.bf16.msra.mxu1 %v1060_v10 }
  0x24   : > { %498 = vmatprep.subr.bf16.mxu0 %v1246_v1  ;;  %1034 = vmatprep.subr.bf16.mxu1 %v1246_v1 }
  0x27   : > { %499 = vmatpush1.bf16.msra.mxu0 %v1061_v11  ;;  %1043 = vmatpush1.bf16.msra.mxu1 %v1061_v11 }
  0x2a   : > { %515 = vmatmul.mubr.bf16.vlgmr.msra.gmra.mrb[0].mxu0 %v1062_v12  ;;  %579 = vmatmul.mubr.bf16.vlgmr.msra.gmra.mrb[0].mxu1 %v1065_v13 }
  0x2b   : > { %976 = vmatprep.mubr.msk.bf16.mxu0 %vm433_vm0, %v1068_v14  ;;  %984 = vmatprep.mubr.msk.bf16.mxu1 %vm433_vm0, %v1070_v15 }
  0x32   : > { %523 = vmatmul.mubr.bf16.gmra.mrb[4].mxu0 %v1072_v16  ;;  %587 = vmatmul.mubr.bf16.gmra.mrb[4].mxu1 %v1073_v17 }
  0x33   : > { %977 = vmatprep.mubr.msk.bf16.mxu0 %vm433_vm0, %v1074_v18  ;;  %985 = vmatprep.mubr.msk.bf16.mxu1 %vm433_vm0, %v1076_v19 }
  0x3a   : > { %531 = vmatmul.mubr.bf16.gmra.mrb[8].mxu0 %v1078_v20  ;;  %595 = vmatmul.mubr.bf16.gmra.mrb[8].mxu1 %v1079_v21 }
  0x3b   : > { %978 = vmatprep.mubr.msk.bf16.mxu0 %vm433_vm0, %v1080_v22  ;;  %986 = vmatprep.mubr.msk.bf16.mxu1 %vm433_vm0, %v1082_v23 }
  0x42   : > { %539 = vmatmul.mubr.bf16.gmra.mrb[12].mxu0 %v1084_v24  ;;  %603 = vmatmul.mubr.bf16.gmra.mrb[12].mxu1 %v1085_v25 }
  0x43   : > { %979 = vmatprep.mubr.msk.bf16.mxu0 %vm433_vm0, %v1086_v26  ;;  %987 = vmatprep.mubr.msk.bf16.mxu1 %vm433_vm0, %v1088_v27 }
  0x4a   : > { %547 = vmatmul.mubr.bf16.gmra.mrb[16].mxu0 %v1090_v28  ;;  %611 = vmatmul.mubr.bf16.gmra.mrb[16].mxu1 %v1091_v29 }
  0x4b   : > { %980 = vmatprep.mubr.msk.bf16.mxu0 %vm433_vm0, %v1092_v30  ;;  %988 = vmatprep.mubr.msk.bf16.mxu1 %vm433_vm0, %v1094_v31 }
  0x52   : > { %555 = vmatmul.mubr.bf16.gmra.mrb[20].mxu0 %v1096_v32  ;;  %619 = vmatmul.mubr.bf16.gmra.mrb[20].mxu1 %v1097_v33 }
  0x53   : > { %981 = vmatprep.mubr.msk.bf16.mxu0 %vm433_vm0, %v1098_v34  ;;  %989 = vmatprep.mubr.msk.bf16.mxu1 %vm433_vm0, %v1100_v35 }
  0x5a   : > { %563 = vmatmul.mubr.bf16.gmra.mrb[24].mxu0 %v1102_v36  ;;  %627 = vmatmul.mubr.bf16.gmra.mrb[24].mxu1 %v1103_v37 }
  0x5b   : > { %982 = vmatprep.mubr.msk.bf16.mxu0 %vm433_vm0, %v1104_v38  ;;  %990 = vmatprep.mubr.msk.bf16.mxu1 %vm433_vm0, %v1106_v39 }
  0x62   : > { %571 = vmatmul.mubr.bf16.gmra.mrb[28].mxu0 %v1108_v40  ;;  %635 = vmatmul.mubr.bf16.gmra.mrb[28].mxu1 %v1109_v41 }
  0xfd   : > { %v516_v43 = vpop.f32.mrb[0].mxu0  ;;  %v580_v44 = vpop.f32.mrb[0].mxu1 }
  0xfe   : > { %v517_v45 = vadd.f32 %v1363_v42, %v516_v43  ;;  %v581_v46 = vadd.f32 %v1363_v42, %v580_v44  ;;  %v518_v47 = vpop.f32.mrb[1].mxu0  ;;  %v582_v48 = vpop.f32.mrb[1].mxu1 }
  0xff   : > { %v519_v49 = vpop.f32.mrb[2].mxu0  ;;  %v583_v50 = vpop.f32.mrb[2].mxu1 }
 0x100   : > { %v991_v51 = vmul.f32 -1.442695, %v517_v45  ;;  %v1007_v52 = vmul.f32 -1.442695, %v581_v46  ;;  %v520_v53 = vadd.f32 %v1363_v42, %v519_v49  ;;  %v584_v54 = vadd.f32 %v1363_v42, %v583_v50  ;;  %v521_v55 = vpop.f32.mrb[3].mxu0  ;;  %v585_v56 = vpop.f32.mrb[3].mxu1 }
 0x102   : > { %1110 = vpow2.f32 %v991_v51  ;;  %v992_v57 = vmul.f32 -1.442695, %v520_v53  ;;  %v1008_v58 = vmul.f32 -1.442695, %v584_v54 }
 0x103   : > { %1112 = vpow2.f32 %v1007_v52 }
 0x104   : > { %1114 = vpow2.f32 %v992_v57 }
 0x105   : > { %1116 = vpow2.f32 %v1008_v58  ;;  %v524_v59 = vpop.f32.mrb[4].mxu0  ;;  %v588_v60 = vpop.f32.mrb[4].mxu1 }
 0x106   : > { %v525_v61 = vadd.f32 %v1363_v42, %v524_v59  ;;  %v589_v62 = vadd.f32 %v1363_v42, %v588_v60  ;;  %v526_v63 = vpop.f32.mrb[5].mxu0  ;;  %v590_v0 = vpop.f32.mrb[5].mxu1 }
 0x107   : > { %v527_v1 = vpop.f32.mrb[6].mxu0  ;;  %v591_v2 = vpop.f32.mrb[6].mxu1 }
 0x108   : > { %v993_v3 = vmul.f32 -1.442695, %v525_v61  ;;  %v1009_v4 = vmul.f32 -1.442695, %v589_v62  ;;  %v528_v5 = vadd.f32 %v1363_v42, %v527_v1  ;;  %v592_v6 = vadd.f32 %v1363_v42, %v591_v2  ;;  %v529_v7 = vpop.f32.mrb[7].mxu0  ;;  %v593_v8 = vpop.f32.mrb[7].mxu1 }
 0x10a   : > { %1118 = vpow2.f32 %v993_v3  ;;  %v994_v9 = vmul.f32 -1.442695, %v528_v5  ;;  %v1010_v10 = vmul.f32 -1.442695, %v592_v6 }
 0x10b   : > { %1120 = vpow2.f32 %v1009_v4 }
 0x10c   : > { %v1111_v11 = vpop.eup %1110  ;;  %1122 = vpow2.f32 %v994_v9 }
 0x10d   : > { %v1113_v12 = vpop.eup %1112  ;;  %v739_v13 = vadd.f32 1.0, %v1111_v11  ;;  %1124 = vpow2.f32 %v1010_v10  ;;  %v532_v14 = vpop.f32.mrb[8].mxu0 }
 0x10e   : > { %v596_v15 = vpop.f32.mrb[8].mxu1  ;;  %v1115_v16 = vpop.eup %1114  ;;  %v755_v17 = vadd.f32 1.0, %v1113_v12  ;;  %v533_v18 = vadd.f32 %v1363_v42, %v532_v14 }
 0x10f   : > { %v597_v19 = vadd.f32 %v1363_v42, %v596_v15  ;;  %v534_v20 = vpop.f32.mrb[9].mxu0  ;;  %v598_v21 = vpop.f32.mrb[9].mxu1  ;;  %1126 = vrcp.f32 %v739_v13  ;;  %v740_v23 = vadd.f32 1.0, %v1115_v16 }
 0x110   : > { %v1117_v22 = vpop.eup %1116  ;;  %v535_v24 = vpop.f32.mrb[10].mxu0  ;;  %1128 = vrcp.f32 %v755_v17  ;;  %v995_v27 = vmul.f32 -1.442695, %v533_v18 }
 0x111   : > { %v599_v25 = vpop.f32.mrb[10].mxu1  ;;  %v756_v26 = vadd.f32 1.0, %v1117_v22  ;;  %v1011_v28 = vmul.f32 -1.442695, %v597_v19  ;;  %v537_v29 = vpop.f32.mrb[11].mxu0  ;;  %1130 = vrcp.f32 %v740_v23  ;;  %v536_v30 = vadd.f32 %v1363_v42, %v535_v24 }
 0x112   : > { %v600_v31 = vadd.f32 %v1363_v42, %v599_v25  ;;  %v601_v32 = vpop.f32.mrb[11].mxu1 }
 0x113   : > { %1132 = vrcp.f32 %v756_v26  ;;  %v996_v33 = vmul.f32 -1.442695, %v536_v30 }
 0x114   : > { %1134 = vpow2.f32 %v995_v27  ;;  %v1012_v34 = vmul.f32 -1.442695, %v600_v31  ;;  %v1119_v35 = vpop.eup %1118 }
 0x115   : > { %1136 = vpow2.f32 %v1011_v28  ;;  %v1121_v36 = vpop.eup %1120  ;;  %v741_v37 = vadd.f32 1.0, %v1119_v35  ;;  %v540_v38 = vpop.f32.mrb[12].mxu0 }
 0x116   : > { %1138 = vpow2.f32 %v996_v33  ;;  %v604_v39 = vpop.f32.mrb[12].mxu1  ;;  %v1123_v40 = vpop.eup %1122  ;;  %v757_v41 = vadd.f32 1.0, %v1121_v36  ;;  %v541_v43 = vadd.f32 %v1363_v42, %v540_v38 }
 0x117   : > { %1140 = vpow2.f32 %v1012_v34  ;;  %v605_v44 = vadd.f32 %v1363_v42, %v604_v39  ;;  %v542_v45 = vpop.f32.mrb[13].mxu0  ;;  %v606_v46 = vpop.f32.mrb[13].mxu1  ;;  %v742_v48 = vadd.f32 1.0, %v1123_v40 }
 0x118   : > { %v1125_v47 = vpop.eup %1124  ;;  %1142 = vrcp.f32 %v741_v37  ;;  %v543_v49 = vpop.f32.mrb[14].mxu0  ;;  %v997_v52 = vmul.f32 -1.442695, %v541_v43 }
 0x119   : > { %v607_v50 = vpop.f32.mrb[14].mxu1  ;;  %1144 = vrcp.f32 %v757_v41  ;;  %v758_v51 = vadd.f32 1.0, %v1125_v47  ;;  %v1013_v53 = vmul.f32 -1.442695, %v605_v44  ;;  %v545_v54 = vpop.f32.mrb[15].mxu0  ;;  %v544_v56 = vadd.f32 %v1363_v42, %v543_v49 }
 0x11a   : > { %v1127_v55 = vpop.eup %1126  ;;  %1146 = vrcp.f32 %v742_v48  ;;  %v608_v57 = vadd.f32 %v1363_v42, %v607_v50  ;;  %v609_v58 = vpop.f32.mrb[15].mxu1 }
 0x11b   : > { %v1129_v59 = vpop.eup %1128  ;;  %835 = vst [vmem:[%s1384_s15] sm:$0xff] %v1127_v55  ;;  %1148 = vrcp.f32 %v758_v51  ;;  %v998_v61 = vmul.f32 -1.442695, %v544_v56 }
 0x11c   : > { %v1131_v60 = vpop.eup %1130  ;;  %851 = vst [vmem:[%s1384_s15 + $0x80] sm:$0xff] %v1129_v59  ;;  %1150 = vpow2.f32 %v997_v52  ;;  %v1014_v62 = vmul.f32 -1.442695, %v608_v57 }
 0x11d   : > { %v1133_v63 = vpop.eup %1132  ;;  %836 = vst [vmem:[%s1384_s15 + $0x8] sm:$0xff] %v1131_v60  ;;  %1152 = vpow2.f32 %v1013_v53  ;;  %v548_v1 = vpop.f32.mrb[16].mxu0 }
 0x11e   : > { %v1135_v0 = vpop.eup %1134  ;;  %852 = vst [vmem:[%s1384_s15 + $0x88] sm:$0xff] %v1133_v63  ;;  %1154 = vpow2.f32 %v998_v61  ;;  %v612_v2 = vpop.f32.mrb[16].mxu1  ;;  %v549_v5 = vadd.f32 %v1363_v42, %v548_v1 }
 0x11f   : > { %v1137_v3 = vpop.eup %1136  ;;  %v743_v4 = vadd.f32 1.0, %v1135_v0  ;;  %1156 = vpow2.f32 %v1014_v62  ;;  %v613_v6 = vadd.f32 %v1363_v42, %v612_v2  ;;  %v550_v7 = vpop.f32.mrb[17].mxu0 }
 0x120   : > { %v614_v8 = vpop.f32.mrb[17].mxu1  ;;  %v1139_v9 = vpop.eup %1138  ;;  %v759_v10 = vadd.f32 1.0, %v1137_v3  ;;  %v999_v15 = vmul.f32 -1.442695, %v549_v5 }
 0x121   : > { %v551_v11 = vpop.f32.mrb[18].mxu0  ;;  %v615_v12 = vpop.f32.mrb[18].mxu1  ;;  %1158 = vrcp.f32 %v743_v4  ;;  %v744_v14 = vadd.f32 1.0, %v1139_v9  ;;  %v1015_v16 = vmul.f32 -1.442695, %v613_v6 }
 0x122   : > { %v1141_v13 = vpop.eup %1140  ;;  %v553_v17 = vpop.f32.mrb[19].mxu0  ;;  %1160 = vrcp.f32 %v759_v10  ;;  %v552_v20 = vadd.f32 %v1363_v42, %v551_v11  ;;  %v616_v21 = vadd.f32 %v1363_v42, %v615_v12 }
 0x123   : > { %v1143_v18 = vpop.eup %1142  ;;  %v760_v19 = vadd.f32 1.0, %v1141_v13  ;;  %v617_v22 = vpop.f32.mrb[19].mxu1  ;;  %1162 = vrcp.f32 %v744_v14 }
 0x124   : > { %v1145_v23 = vpop.eup %1144  ;;  %837 = vst [vmem:[%s1384_s15 + $0x10] sm:$0xff] %v1143_v18  ;;  %v1000_v25 = vmul.f32 -1.442695, %v552_v20  ;;  %v1016_v26 = vmul.f32 -1.442695, %v616_v21 }
 0x125   : > { %v1147_v24 = vpop.eup %1146  ;;  %853 = vst [vmem:[%s1384_s15 + $0x90] sm:$0xff] %v1145_v23  ;;  %1164 = vrcp.f32 %v760_v19  ;;  %v556_v29 = vpop.f32.mrb[20].mxu0 }
 0x126   : > { %v1149_v27 = vpop.eup %1148  ;;  %838 = vst [vmem:[%s1384_s15 + $0x18] sm:$0xff] %v1147_v24  ;;  %1166 = vpow2.f32 %v999_v15  ;;  %v620_v30 = vpop.f32.mrb[20].mxu1  ;;  %v557_v33 = vadd.f32 %v1363_v42, %v556_v29 }
 0x127   : > { %v1151_v28 = vpop.eup %1150  ;;  %854 = vst [vmem:[%s1384_s15 + $0x98] sm:$0xff] %v1149_v27  ;;  %1168 = vpow2.f32 %v1015_v16  ;;  %v621_v34 = vadd.f32 %v1363_v42, %v620_v30  ;;  %v558_v35 = vpop.f32.mrb[21].mxu0 }
 0x128   : > { %v1153_v31 = vpop.eup %1152  ;;  %v745_v32 = vadd.f32 1.0, %v1151_v28  ;;  %1170 = vpow2.f32 %v1000_v25  ;;  %v622_v36 = vpop.f32.mrb[21].mxu1  ;;  %v1001_v44 = vmul.f32 -1.442695, %v557_v33 }
 0x129   : > { %v1155_v37 = vpop.eup %1154  ;;  %v761_v38 = vadd.f32 1.0, %v1153_v31  ;;  %1172 = vpow2.f32 %v1016_v26  ;;  %v559_v39 = vpop.f32.mrb[22].mxu0  ;;  %v1017_v45 = vmul.f32 -1.442695, %v621_v34 }
 0x12a   : > { %v623_v40 = vpop.f32.mrb[22].mxu1  ;;  %v1157_v41 = vpop.eup %1156  ;;  %1174 = vrcp.f32 %v745_v32  ;;  %v746_v43 = vadd.f32 1.0, %v1155_v37  ;;  %v560_v48 = vadd.f32 %v1363_v42, %v559_v39 }
 0x12b   : > { %v561_v46 = vpop.f32.mrb[23].mxu0  ;;  %1176 = vrcp.f32 %v761_v38  ;;  %v762_v47 = vadd.f32 1.0, %v1157_v41  ;;  %v624_v49 = vadd.f32 %v1363_v42, %v623_v40  ;;  %v625_v50 = vpop.f32.mrb[23].mxu1 }
 0x12c   : > { %v1159_v51 = vpop.eup %1158  ;;  %1178 = vrcp.f32 %v746_v43  ;;  %v1002_v53 = vmul.f32 -1.442695, %v560_v48 }
 0x12d   : > { %v1161_v52 = vpop.eup %1160  ;;  %839 = vst [vmem:[%s1384_s15 + $0x20] sm:$0xff] %v1159_v51  ;;  %1180 = vrcp.f32 %v762_v47  ;;  %v1018_v54 = vmul.f32 -1.442695, %v624_v49  ;;  %v564_v57 = vpop.f32.mrb[24].mxu0 }
 0x12e   : > { %v1163_v55 = vpop.eup %1162  ;;  %855 = vst [vmem:[%s1384_s15 + $0xa0] sm:$0xff] %v1161_v52  ;;  %1182 = vpow2.f32 %v1001_v44  ;;  %v628_v58 = vpop.f32.mrb[24].mxu1  ;;  %v565_v60 = vadd.f32 %v1363_v42, %v564_v57 }
 0x12f   : > { %v1165_v56 = vpop.eup %1164  ;;  %840 = vst [vmem:[%s1384_s15 + $0x28] sm:$0xff] %v1163_v55  ;;  %1184 = vpow2.f32 %v1017_v45  ;;  %v629_v61 = vadd.f32 %v1363_v42, %v628_v58  ;;  %v566_v62 = vpop.f32.mrb[25].mxu0 }
 0x130   : > { %v1167_v59 = vpop.eup %1166  ;;  %856 = vst [vmem:[%s1384_s15 + $0xa8] sm:$0xff] %v1165_v56  ;;  %1186 = vpow2.f32 %v1002_v53  ;;  %v630_v63 = vpop.f32.mrb[25].mxu1  ;;  %v1003_v10 = vmul.f32 -1.442695, %v565_v60 }
 0x131   : > { %v1169_v0 = vpop.eup %1168  ;;  %v747_v1 = vadd.f32 1.0, %v1167_v59  ;;  %1188 = vpow2.f32 %v1018_v54  ;;  %v567_v2 = vpop.f32.mrb[26].mxu0  ;;  %v1019_v15 = vmul.f32 -1.442695, %v629_v61 }
 0x132   : > { %v631_v3 = vpop.f32.mrb[26].mxu1  ;;  %v1171_v4 = vpop.eup %1170  ;;  %v763_v5 = vadd.f32 1.0, %v1169_v0  ;;  %v568_v6 = vadd.f32 %v1363_v42, %v567_v2 }
 0x133   : > { %v569_v7 = vpop.f32.mrb[27].mxu0  ;;  %v1173_v8 = vpop.eup %1172  ;;  %1190 = vrcp.f32 %v747_v1  ;;  %v748_v9 = vadd.f32 1.0, %v1171_v4  ;;  %v632_v11 = vadd.f32 %v1363_v42, %v631_v3 }
 0x134   : > { %v633_v12 = vpop.f32.mrb[27].mxu1  ;;  %v1175_v13 = vpop.eup %1174  ;;  %1192 = vrcp.f32 %v763_v5  ;;  %v764_v14 = vadd.f32 1.0, %v1173_v8  ;;  %v1004_v17 = vmul.f32 -1.442695, %v568_v6 }
 0x135   : > { %v1177_v16 = vpop.eup %1176  ;;  %841 = vst [vmem:[%s1384_s15 + $0x30] sm:$0xff] %v1175_v13  ;;  %1194 = vrcp.f32 %v748_v9  ;;  %v1020_v19 = vmul.f32 -1.442695, %v632_v11  ;;  %v572_v21 = vpop.f32.mrb[28].mxu0 }
 0x136   : > { %v1179_v18 = vpop.eup %1178  ;;  %857 = vst [vmem:[%s1384_s15 + $0xb0] sm:$0xff] %v1177_v16  ;;  %1196 = vrcp.f32 %v764_v14  ;;  %v636_v22 = vpop.f32.mrb[28].mxu1  ;;  %v573_v24 = vadd.f32 %v1363_v42, %v572_v21 }
 0x137   : > { %v1181_v20 = vpop.eup %1180  ;;  %842 = vst [vmem:[%s1384_s15 + $0x38] sm:$0xff] %v1179_v18  ;;  %1198 = vpow2.f32 %v1003_v10  ;;  %v637_v25 = vadd.f32 %v1363_v42, %v636_v22  ;;  %v574_v26 = vpop.f32.mrb[29].mxu0 }
 0x138   : > { %v1183_v23 = vpop.eup %1182  ;;  %858 = vst [vmem:[%s1384_s15 + $0xb8] sm:$0xff] %v1181_v20  ;;  %1200 = vpow2.f32 %v1019_v15  ;;  %v638_v27 = vpop.f32.mrb[29].mxu1  ;;  %v1005_v34 = vmul.f32 -1.442695, %v573_v24 }
 0x139   : > { %v1185_v28 = vpop.eup %1184  ;;  %v749_v29 = vadd.f32 1.0, %v1183_v23  ;;  %1202 = vpow2.f32 %v1004_v17  ;;  %v575_v30 = vpop.f32.mrb[30].mxu0  ;;  %v1021_v43 = vmul.f32 -1.442695, %v637_v25 }
 0x13a   : > { %v639_v31 = vpop.f32.mrb[30].mxu1  ;;  %v1187_v32 = vpop.eup %1186  ;;  %v765_v33 = vadd.f32 1.0, %v1185_v28  ;;  %1204 = vpow2.f32 %v1020_v19  ;;  %v576_v38 = vadd.f32 %v1363_v42, %v575_v30 }
 0x13b   : > { %v577_v35 = vpop.f32.mrb[31].mxu0  ;;  %v1189_v36 = vpop.eup %1188  ;;  %1206 = vrcp.f32 %v749_v29  ;;  %v750_v37 = vadd.f32 1.0, %v1187_v32  ;;  %v640_v39 = vadd.f32 %v1363_v42, %v639_v31 }
 0x13c   : > { %v641_v40 = vpop.f32.mrb[31].mxu1  ;;  %1208 = vrcp.f32 %v765_v33  ;;  %v766_v41 = vadd.f32 1.0, %v1189_v36  ;;  %v1006_v45 = vmul.f32 -1.442695, %v576_v38 }
 0x13d   : > { %v1191_v44 = vpop.eup %1190  ;;  %1210 = vrcp.f32 %v750_v37  ;;  %v1022_v47 = vmul.f32 -1.442695, %v640_v39 }
 0x13e   : > { %v1193_v46 = vpop.eup %1192  ;;  %843 = vst [vmem:[%s1384_s15 + $0x40] sm:$0xff] %v1191_v44  ;;  %1212 = vrcp.f32 %v766_v41 }
 0x13f   : > { %v1195_v48 = vpop.eup %1194  ;;  %859 = vst [vmem:[%s1384_s15 + $0xc0] sm:$0xff] %v1193_v46  ;;  %1214 = vpow2.f32 %v1005_v34 }
 0x140   : > { %v1197_v49 = vpop.eup %1196  ;;  %844 = vst [vmem:[%s1384_s15 + $0x48] sm:$0xff] %v1195_v48  ;;  %1216 = vpow2.f32 %v1021_v43 }
 0x141   : > { %v1199_v42 = vpop.eup %1198  ;;  %860 = vst [vmem:[%s1384_s15 + $0xc8] sm:$0xff] %v1197_v49  ;;  %1218 = vpow2.f32 %v1006_v45 }
 0x142   : > { %v1201_v50 = vpop.eup %1200  ;;  %v751_v51 = vadd.f32 1.0, %v1199_v42  ;;  %1220 = vpow2.f32 %v1022_v47 }
 0x143   : > { %v1203_v52 = vpop.eup %1202  ;;  %v767_v53 = vadd.f32 1.0, %v1201_v50 }
 0x144   : > { %v1205_v54 = vpop.eup %1204  ;;  %1222 = vrcp.f32 %v751_v51  ;;  %v752_v55 = vadd.f32 1.0, %v1203_v52 }
 0x145   : > { %v1207_v56 = vpop.eup %1206  ;;  %1224 = vrcp.f32 %v767_v53  ;;  %v768_v57 = vadd.f32 1.0, %v1205_v54 }
 0x146   : > { %v1209_v58 = vpop.eup %1208  ;;  %845 = vst [vmem:[%s1384_s15 + $0x50] sm:$0xff] %v1207_v56  ;;  %1226 = vrcp.f32 %v752_v55 }
 0x147   : > { %v1211_v59 = vpop.eup %1210  ;;  %861 = vst [vmem:[%s1384_s15 + $0xd0] sm:$0xff] %v1209_v58  ;;  %1228 = vrcp.f32 %v768_v57 }
 0x148   : > { %v1213_v60 = vpop.eup %1212  ;;  %846 = vst [vmem:[%s1384_s15 + $0x58] sm:$0xff] %v1211_v59 }
 0x149   : > { %v1215_v61 = vpop.eup %1214  ;;  %862 = vst [vmem:[%s1384_s15 + $0xd8] sm:$0xff] %v1213_v60 }
 0x14a   : > { %v1217_v62 = vpop.eup %1216  ;;  %v753_v63 = vadd.f32 1.0, %v1215_v61 }
 0x14b   : > { %v1219_v0 = vpop.eup %1218  ;;  %v769_v1 = vadd.f32 1.0, %v1217_v62 }
 0x14c   : > { %v1221_v2 = vpop.eup %1220  ;;  %1230 = vrcp.f32 %v753_v63  ;;  %v754_v3 = vadd.f32 1.0, %v1219_v0 }
 0x14d   : > { %1232 = vrcp.f32 %v769_v1  ;;  %v770_v4 = vadd.f32 1.0, %v1221_v2 }
 0x14e   : > { %v1223_v5 = vpop.eup %1222  ;;  %1234 = vrcp.f32 %v754_v3 }
 0x14f   : > { %v1225_v6 = vpop.eup %1224  ;;  %847 = vst [vmem:[%s1384_s15 + $0x60] sm:$0xff] %v1223_v5  ;;  %1236 = vrcp.f32 %v770_v4 }
 0x150   : > { %v1227_v7 = vpop.eup %1226  ;;  %863 = vst [vmem:[%s1384_s15 + $0xe0] sm:$0xff] %v1225_v6 }
 0x151   : > { %v1229_v8 = vpop.eup %1228  ;;  %848 = vst [vmem:[%s1384_s15 + $0x68] sm:$0xff] %v1227_v7 }
 0x152   : > { %864 = vst [vmem:[%s1384_s15 + $0xe8] sm:$0xff] %v1229_v8 }
 0x156   : > { %v1231_v9 = vpop.eup %1230 }
 0x157   : > { %v1233_v10 = vpop.eup %1232  ;;  %849 = vst [vmem:[%s1384_s15 + $0x70] sm:$0xff] %v1231_v9 }
 0x158   : > { %v1235_v11 = vpop.eup %1234  ;;  %865 = vst [vmem:[%s1384_s15 + $0xf0] sm:$0xff] %v1233_v10 }
 0x159   : > { %v1237_v12 = vpop.eup %1236  ;;  %850 = vst [vmem:[%s1384_s15 + $0x78] sm:$0xff] %v1235_v11 }
 0x15a   : > { %866 = vst [vmem:[%s1384_s15 + $0xf8] sm:$0xff] %v1237_v12 }
 0x15b PF: > { %s13_s12 = sadd.s32 1, %s1244_s12  }
 0x15c   : > { %p10_p4 = scmp.ge.s32.totalorder %s13_s12, 4  }
 0x15e   :  { %12 = sbr.rel (!%p10_p4) target bundleno = 1 (0x1), region = 62 }

// kernel: unet_forward.29
= control target key start
LH: loop header
LB: loop body
LE: loop exit
PB: predicated region body
PF: predicated region fallthrough
CT: control target
= control target key end

     0   :  { %s1637_s18 = smov 0   ;;  %s1919_s0 = inlined_call_operand.vmem [shape: bf16[512,144], index: 0, kind: input, shape index: {}]   ;;  %s1920_s1 = inlined_call_operand.vmem [shape: bf16[512,144], index: 1, kind: input, shape index: {}]   ;;  %s1921_s2 = inlined_call_operand.vmem [shape: bf16[144,16], index: 2, kind: input, shape index: {}]   ;;  %s1922_s3 = inlined_call_operand.vmem [shape: bf16[144,16], index: 3, kind: input, shape index: {}]   ;;  %s1923_s4 = inlined_call_operand.vmem [shape: f32[1,16], index: 4, kind: input, shape index: {}]   ;;  %s1924_s5 = inlined_call_operand.vmem [shape: f32[512,16], index: 5, kind: output, shape index: {}]  }
   0x1 LB: > { %s1343_s19 = sadd.s32 4294967295, %s1604_s18   ;;  %p1347_p0 = scmp.ge.s32.totalorder %s1604_s18, 1  ;;  %s1604_s18 = sphi %s1637_s18, %s15_s18  }
   0x2   : > { %p201_p1 = scmp.lt.s32.totalorder %s1604_s18, 3 }
   0x4   : > { %p202_p2 = pnand %p1347_p0, %p201_p1 }
   0x5   : > { %v1484_v0 = vld [vmem:[%s1922_s3] sm:$0xff] (!%p202_p2)   ;;  %v1606_v1 = vmov (!%p202_p2), 0   ;;  %v1486_v3 = vld [vmem:[%s1922_s3 + $0x8] sm:$0xff] (!%p202_p2)   ;;  %s1348_s26 = sshll.u32 (!%p202_p2), %s1343_s19, 5  ;;  %v1488_v5 = vld [vmem:[%s1922_s3 + $0x10] sm:$0xff] (!%p202_p2)   ;;  %vm555_vm0 = vcmask (!%p202_p2), 130048  }
   0x6   : > { %205 = sbr.rel (%p202_p2) target bundleno = 383 (0x17f), region = 40  ;;  %604 = vmatprep.subr.bf16.mxu0 (!%p202_p2), %v1606_v1  ;;  %1011 = vmatprep.subr.bf16.mxu1 (!%p202_p2), %v1606_v1  ;;  %v1485_v2 = vld [vmem:[%s1921_s2] sm:$0xff] (!%p202_p2)   ;;  %v1487_v4 = vld [vmem:[%s1921_s2 + $0x8] sm:$0xff] (!%p202_p2)   ;;  %p237_p3 = scmp.lt.s32.totalorder (!%p202_p2), %s1348_s26, 63  ;;  %v1489_v6 = vld [vmem:[%s1921_s2 + $0x10] sm:$0xff] (!%p202_p2)  }
   0x7   : > { %605 = vmatpush1.bf16.msra.mxu0 (!%p202_p2), %v1484_v0  ;;  %1012 = vmatpush1.bf16.msra.mxu1 (!%p202_p2), %v1485_v2  ;;  %v1490_v7 = vld [vmem:[%s1922_s3 + $0x18] sm:$0xff] (!%p202_p2)   ;;  %v1492_v9 = vld [vmem:[%s1922_s3 + $0x20] sm:$0xff] (!%p202_p2)   ;;  %v1494_v11 = vld [vmem:[%s1922_s3 + $0x28] sm:$0xff] (!%p202_p2)  }
   0x8   : > { %606 = vmatprep.subr.bf16.mxu0 (!%p202_p2), %v1606_v1  ;;  %1013 = vmatprep.subr.bf16.mxu1 (!%p202_p2), %v1606_v1  ;;  %v1491_v8 = vld [vmem:[%s1921_s2 + $0x18] sm:$0xff] (!%p202_p2)   ;;  %v1493_v10 = vld [vmem:[%s1921_s2 + $0x20] sm:$0xff] (!%p202_p2)   ;;  %v1495_v12 = vld [vmem:[%s1921_s2 + $0x28] sm:$0xff] (!%p202_p2)  }
   0x9   : > { %v1496_v15 = vld [vmem:[%s1922_s3 + $0x30] sm:$0xff] (!%p202_p2)   ;;  %v1498_v17 = vld [vmem:[%s1922_s3 + $0x38] sm:$0xff] (!%p202_p2)   ;;  %v1500_v19 = vld [vmem:[%s1922_s3 + $0x40] sm:$0xff] (!%p202_p2)  }
   0xa   : > { %v1497_v16 = vld [vmem:[%s1921_s2 + $0x30] sm:$0xff] (!%p202_p2)   ;;  %v1499_v18 = vld [vmem:[%s1921_s2 + $0x38] sm:$0xff] (!%p202_p2)   ;;  %v1501_v20 = vld [vmem:[%s1921_s2 + $0x40] sm:$0xff] (!%p202_p2)  }
   0xb   : > { %607 = vmatpush1.bf16.msra.mxu0 (!%p202_p2), %v1486_v3  ;;  %1014 = vmatpush1.bf16.msra.mxu1 (!%p202_p2), %v1487_v4 }
   0xc   : > { %608 = vmatprep.subr.bf16.mxu0 (!%p202_p2), %v1606_v1  ;;  %1015 = vmatprep.subr.bf16.mxu1 (!%p202_p2), %v1606_v1 }
   0xd   : > { %s1926_s26 = smov (!%p237_p3, %s1348_s26), 63 }
   0xe   : > { %s1669_s12 = sshll.u32 %s1926_s26, 3 }
   0xf   : > { %609 = vmatpush1.bf16.msra.mxu0 %v1488_v5  ;;  %1016 = vmatpush1.bf16.msra.mxu1 %v1489_v6  ;;  %s1681_s20 = scalar_lea.vmem %s1920_s1, %s1669_s12  ;;  %s1690_s25 = scalar_lea.vmem %s1919_s0, %s1669_s12 }
  0x10   : > { %610 = vmatprep.subr.bf16.mxu0 %v1606_v1  ;;  %1017 = vmatprep.subr.bf16.mxu1 %v1606_v1  ;;  %v1504_v13 = vld [vmem:[%s1681_s20 + $0x4] ss:$8 sps:$4 sm:$0xff]   ;;  %v1502_v21 = vld [vmem:[%s1681_s20] ss:$8 sps:$4 sm:$0xff]   ;;  %v1508_v23 = vld [vmem:[%s1681_s20 + $0x14] ss:$8 sps:$4 sm:$0xff]   ;;  %s1819_s21 = scalar_lea.vmem %s1924_s5, %s1669_s12 }
  0x11   : > { %v1507_v14 = vld [vmem:[%s1690_s25 + $0x4] ss:$8 sps:$4 sm:$0xff]   ;;  %1397 = vmatprep.mubr.msk.bf16.mxu0 %vm555_vm0, %v1504_v13  ;;  %v1505_v22 = vld [vmem:[%s1690_s25] ss:$8 sps:$4 sm:$0xff]   ;;  %v1510_v24 = vld [vmem:[%s1690_s25 + $0x14] ss:$8 sps:$4 sm:$0xff]  }
  0x12   : > { %1454 = vmatprep.mubr.msk.bf16.mxu1 %vm555_vm0, %v1507_v14  ;;  %v1512_v25 = vld [vmem:[%s1681_s20 + $0x10] ss:$8 sps:$4 sm:$0xff]   ;;  %v1514_v27 = vld [vmem:[%s1681_s20 + $0x24] ss:$8 sps:$4 sm:$0xff]   ;;  %v1518_v29 = vld [vmem:[%s1681_s20 + $0x20] ss:$8 sps:$4 sm:$0xff]  }
  0x13   : > { %611 = vmatpush1.bf16.msra.mxu0 %v1490_v7  ;;  %1018 = vmatpush1.bf16.msra.mxu1 %v1491_v8  ;;  %v1513_v26 = vld [vmem:[%s1690_s25 + $0x10] ss:$8 sps:$4 sm:$0xff]   ;;  %v1516_v28 = vld [vmem:[%s1690_s25 + $0x24] ss:$8 sps:$4 sm:$0xff]   ;;  %v1519_v30 = vld [vmem:[%s1690_s25 + $0x20] ss:$8 sps:$4 sm:$0xff]  }
  0x14   : > { %612 = vmatprep.subr.bf16.mxu0 %v1606_v1  ;;  %1019 = vmatprep.subr.bf16.mxu1 %v1606_v1  ;;  %v1520_v31 = vld [vmem:[%s1681_s20 + $0x34] ss:$8 sps:$4 sm:$0xff]   ;;  %v1524_v33 = vld [vmem:[%s1681_s20 + $0x30] ss:$8 sps:$4 sm:$0xff]   ;;  %v1526_v35 = vld [vmem:[%s1681_s20 + $0x44] ss:$8 sps:$4 sm:$0xff]  }
  0x15   : > { %v1522_v32 = vld [vmem:[%s1690_s25 + $0x34] ss:$8 sps:$4 sm:$0xff]   ;;  %v1525_v34 = vld [vmem:[%s1690_s25 + $0x30] ss:$8 sps:$4 sm:$0xff]   ;;  %v1528_v36 = vld [vmem:[%s1690_s25 + $0x44] ss:$8 sps:$4 sm:$0xff]  }
  0x16   : > { %v1530_v37 = vld [vmem:[%s1681_s20 + $0x40] ss:$8 sps:$4 sm:$0xff]   ;;  %v1532_v39 = vld [vmem:[%s1681_s20 + $0x54] ss:$8 sps:$4 sm:$0xff]   ;;  %v1536_v41 = vld [vmem:[%s1681_s20 + $0x50] ss:$8 sps:$4 sm:$0xff]  }
  0x17   : > { %613 = vmatpush1.bf16.msra.mxu0 %v1492_v9  ;;  %1020 = vmatpush1.bf16.msra.mxu1 %v1493_v10  ;;  %v1531_v38 = vld [vmem:[%s1690_s25 + $0x40] ss:$8 sps:$4 sm:$0xff]   ;;  %v1534_v40 = vld [vmem:[%s1690_s25 + $0x54] ss:$8 sps:$4 sm:$0xff]   ;;  %v1537_v42 = vld [vmem:[%s1690_s25 + $0x50] ss:$8 sps:$4 sm:$0xff]  }
  0x18   : > { %614 = vmatprep.subr.bf16.mxu0 %v1606_v1  ;;  %1021 = vmatprep.subr.bf16.mxu1 %v1606_v1  ;;  %v1538_v43 = vld [vmem:[%s1681_s20 + $0x64] ss:$8 sps:$4 sm:$0xff]   ;;  %v1542_v45 = vld [vmem:[%s1681_s20 + $0x60] ss:$8 sps:$4 sm:$0xff]   ;;  %v1544_v47 = vld [vmem:[%s1681_s20 + $0x74] ss:$8 sps:$4 sm:$0xff]  }
  0x19   : > { %v1540_v44 = vld [vmem:[%s1690_s25 + $0x64] ss:$8 sps:$4 sm:$0xff]   ;;  %v1543_v46 = vld [vmem:[%s1690_s25 + $0x60] ss:$8 sps:$4 sm:$0xff]   ;;  %v1546_v48 = vld [vmem:[%s1690_s25 + $0x74] ss:$8 sps:$4 sm:$0xff]  }
  0x1a   : > { %v1548_v49 = vld [vmem:[%s1681_s20 + $0x70] ss:$8 sps:$4 sm:$0xff]   ;;  %v1550_v51 = vld [vmem:[%s1681_s20 + $0x84] ss:$8 sps:$4 sm:$0xff]   ;;  %v1554_v53 = vld [vmem:[%s1681_s20 + $0x80] ss:$8 sps:$4 sm:$0xff]  }
  0x1b   : > { %615 = vmatpush1.bf16.msra.mxu0 %v1494_v11  ;;  %1022 = vmatpush1.bf16.msra.mxu1 %v1495_v12  ;;  %v1549_v50 = vld [vmem:[%s1690_s25 + $0x70] ss:$8 sps:$4 sm:$0xff]   ;;  %v1552_v52 = vld [vmem:[%s1690_s25 + $0x84] ss:$8 sps:$4 sm:$0xff]   ;;  %v1555_v54 = vld [vmem:[%s1690_s25 + $0x80] ss:$8 sps:$4 sm:$0xff]  }
  0x1c   : > { %616 = vmatprep.subr.bf16.mxu0 %v1606_v1  ;;  %1023 = vmatprep.subr.bf16.mxu1 %v1606_v1  ;;  %v1556_v55 = vld [vmem:[%s1681_s20 + $0x94] ss:$8 sps:$4 sm:$0xff]   ;;  %v1560_v57 = vld [vmem:[%s1681_s20 + $0x90] ss:$8 sps:$4 sm:$0xff]   ;;  %v1562_v59 = vld [vmem:[%s1681_s20 + $0xa4] ss:$8 sps:$4 sm:$0xff]  }
  0x1d   : > { %v1558_v56 = vld [vmem:[%s1690_s25 + $0x94] ss:$8 sps:$4 sm:$0xff]   ;;  %v1561_v58 = vld [vmem:[%s1690_s25 + $0x90] ss:$8 sps:$4 sm:$0xff]   ;;  %v1564_v60 = vld [vmem:[%s1690_s25 + $0xa4] ss:$8 sps:$4 sm:$0xff]  }
  0x1e   : > { %v1566_v61 = vld [vmem:[%s1681_s20 + $0xa0] ss:$8 sps:$4 sm:$0xff]   ;;  %v1568_v63 = vld [vmem:[%s1681_s20 + $0xb4] ss:$8 sps:$4 sm:$0xff]   ;;  %v1573_v2 = vld [vmem:[%s1690_s25 + $0xb0] ss:$8 sps:$4 sm:$0xff]  }
  0x1f   : > { %617 = vmatpush1.bf16.msra.mxu0 %v1496_v15  ;;  %1024 = vmatpush1.bf16.msra.mxu1 %v1497_v16  ;;  %v1567_v62 = vld [vmem:[%s1690_s25 + $0xa0] ss:$8 sps:$4 sm:$0xff]   ;;  %v1570_v0 = vld [vmem:[%s1690_s25 + $0xb4] ss:$8 sps:$4 sm:$0xff]   ;;  %v1574_v3 = vld [vmem:[%s1681_s20 + $0xc4] ss:$8 sps:$4 sm:$0xff]  }
  0x20   : > { %618 = vmatprep.subr.bf16.mxu0 %v1606_v1  ;;  %1025 = vmatprep.subr.bf16.mxu1 %v1606_v1  ;;  %v1576_v4 = vld [vmem:[%s1690_s25 + $0xc4] ss:$8 sps:$4 sm:$0xff]   ;;  %v1578_v5 = vld [vmem:[%s1681_s20 + $0xc0] ss:$8 sps:$4 sm:$0xff]   ;;  %v1580_v7 = vld [vmem:[%s1681_s20 + $0xd4] ss:$8 sps:$4 sm:$0xff]  }
  0x21   : > { %v1579_v6 = vld [vmem:[%s1690_s25 + $0xc0] ss:$8 sps:$4 sm:$0xff]   ;;  %v1582_v8 = vld [vmem:[%s1690_s25 + $0xd4] ss:$8 sps:$4 sm:$0xff]   ;;  %v1584_v9 = vld [vmem:[%s1681_s20 + $0xd0] ss:$8 sps:$4 sm:$0xff]  }
  0x22   : > { %v1585_v10 = vld [vmem:[%s1690_s25 + $0xd0] ss:$8 sps:$4 sm:$0xff]   ;;  %v1586_v11 = vld [vmem:[%s1681_s20 + $0xe4] ss:$8 sps:$4 sm:$0xff]   ;;  %v1590_v13 = vld [vmem:[%s1681_s20 + $0xe0] ss:$8 sps:$4 sm:$0xff]  }
  0x23   : > { %619 = vmatpush1.bf16.msra.mxu0 %v1498_v17  ;;  %1026 = vmatpush1.bf16.msra.mxu1 %v1499_v18  ;;  %v1588_v12 = vld [vmem:[%s1690_s25 + $0xe4] ss:$8 sps:$4 sm:$0xff]   ;;  %v1591_v14 = vld [vmem:[%s1690_s25 + $0xe0] ss:$8 sps:$4 sm:$0xff]   ;;  %v1592_v15 = vld [vmem:[%s1681_s20 + $0xf4] ss:$8 sps:$4 sm:$0xff]  }
  0x24   : > { %620 = vmatprep.subr.bf16.mxu0 %v1606_v1  ;;  %1027 = vmatprep.subr.bf16.mxu1 %v1606_v1  ;;  %v1572_v1 = vld [vmem:[%s1681_s20 + $0xb0] ss:$8 sps:$4 sm:$0xff]   ;;  %v1594_v16 = vld [vmem:[%s1690_s25 + $0xf4] ss:$8 sps:$4 sm:$0xff]  }
  0x25   : > { %v1596_v17 = vld [vmem:[%s1681_s20 + $0xf0] ss:$8 sps:$4 sm:$0xff]  }
  0x26   : > { %v1597_v18 = vld [vmem:[%s1690_s25 + $0xf0] ss:$8 sps:$4 sm:$0xff]  }
  0x27   : > { %621 = vmatpush1.bf16.msra.mxu0 %v1500_v19  ;;  %1028 = vmatpush1.bf16.msra.mxu1 %v1501_v20 }
  0x2a   : > { %637 = vmatmul.mubr.bf16.vlgmr.msra.gmra.mrb[0].mxu0 %v1502_v21  ;;  %1044 = vmatmul.mubr.bf16.vlgmr.msra.gmra.mrb[0].mxu1 %v1505_v22  ;;  %v1812_v21 = vld [vmem:[%s1923_s4] ss:$0 sm:$0xff] }
  0x2b   : > { %1398 = vmatprep.mubr.msk.bf16.mxu0 %vm555_vm0, %v1508_v23  ;;  %1455 = vmatprep.mubr.msk.bf16.mxu1 %vm555_vm0, %v1510_v24 }
  0x32   : > { %645 = vmatmul.mubr.bf16.gmra.mrb[4].mxu0 %v1512_v25  ;;  %1052 = vmatmul.mubr.bf16.gmra.mrb[4].mxu1 %v1513_v26 }
  0x33   : > { %1399 = vmatprep.mubr.msk.bf16.mxu0 %vm555_vm0, %v1514_v27  ;;  %1456 = vmatprep.mubr.msk.bf16.mxu1 %vm555_vm0, %v1516_v28 }
  0x3a   : > { %653 = vmatmul.mubr.bf16.gmra.mrb[8].mxu0 %v1518_v29  ;;  %1060 = vmatmul.mubr.bf16.gmra.mrb[8].mxu1 %v1519_v30 }
  0x3b   : > { %1400 = vmatprep.mubr.msk.bf16.mxu0 %vm555_vm0, %v1520_v31  ;;  %1457 = vmatprep.mubr.msk.bf16.mxu1 %vm555_vm0, %v1522_v32 }
  0x42   : > { %661 = vmatmul.mubr.bf16.gmra.mrb[12].mxu0 %v1524_v33  ;;  %1068 = vmatmul.mubr.bf16.gmra.mrb[12].mxu1 %v1525_v34 }
  0x43   : > { %1401 = vmatprep.mubr.msk.bf16.mxu0 %vm555_vm0, %v1526_v35  ;;  %1458 = vmatprep.mubr.msk.bf16.mxu1 %vm555_vm0, %v1528_v36 }
  0x4a   : > { %669 = vmatmul.mubr.bf16.gmra.mrb[16].mxu0 %v1530_v37  ;;  %1076 = vmatmul.mubr.bf16.gmra.mrb[16].mxu1 %v1531_v38 }
  0x4b   : > { %1402 = vmatprep.mubr.msk.bf16.mxu0 %vm555_vm0, %v1532_v39  ;;  %1459 = vmatprep.mubr.msk.bf16.mxu1 %vm555_vm0, %v1534_v40 }
  0x52   : > { %677 = vmatmul.mubr.bf16.gmra.mrb[20].mxu0 %v1536_v41  ;;  %1084 = vmatmul.mubr.bf16.gmra.mrb[20].mxu1 %v1537_v42 }
  0x53   : > { %1403 = vmatprep.mubr.msk.bf16.mxu0 %vm555_vm0, %v1538_v43  ;;  %1460 = vmatprep.mubr.msk.bf16.mxu1 %vm555_vm0, %v1540_v44 }
  0x5a   : > { %685 = vmatmul.mubr.bf16.gmra.mrb[24].mxu0 %v1542_v45  ;;  %1092 = vmatmul.mubr.bf16.gmra.mrb[24].mxu1 %v1543_v46 }
  0x5b   : > { %1404 = vmatprep.mubr.msk.bf16.mxu0 %vm555_vm0, %v1544_v47  ;;  %1461 = vmatprep.mubr.msk.bf16.mxu1 %vm555_vm0, %v1546_v48 }
  0x62   : > { %693 = vmatmul.mubr.bf16.gmra.mrb[28].mxu0 %v1548_v49  ;;  %1100 = vmatmul.mubr.bf16.gmra.mrb[28].mxu1 %v1549_v50 }
  0x63   : > { %1405 = vmatprep.mubr.msk.bf16.mxu0 %vm555_vm0, %v1550_v51  ;;  %1462 = vmatprep.mubr.msk.bf16.mxu1 %vm555_vm0, %v1552_v52 }
  0x6a   : > { %701 = vmatmul.mubr.bf16.gmra.mrb[32].mxu0 %v1554_v53  ;;  %1108 = vmatmul.mubr.bf16.gmra.mrb[32].mxu1 %v1555_v54 }
  0x6b   : > { %1406 = vmatprep.mubr.msk.bf16.mxu0 %vm555_vm0, %v1556_v55  ;;  %1463 = vmatprep.mubr.msk.bf16.mxu1 %vm555_vm0, %v1558_v56 }
  0x72   : > { %709 = vmatmul.mubr.bf16.gmra.mrb[36].mxu0 %v1560_v57  ;;  %1116 = vmatmul.mubr.bf16.gmra.mrb[36].mxu1 %v1561_v58 }
  0x73   : > { %1407 = vmatprep.mubr.msk.bf16.mxu0 %vm555_vm0, %v1562_v59  ;;  %1464 = vmatprep.mubr.msk.bf16.mxu1 %vm555_vm0, %v1564_v60 }
  0x7a   : > { %717 = vmatmul.mubr.bf16.gmra.mrb[40].mxu0 %v1566_v61  ;;  %1124 = vmatmul.mubr.bf16.gmra.mrb[40].mxu1 %v1567_v62 }
  0x7b   : > { %1408 = vmatprep.mubr.msk.bf16.mxu0 %vm555_vm0, %v1568_v63  ;;  %1465 = vmatprep.mubr.msk.bf16.mxu1 %vm555_vm0, %v1570_v0 }
  0x82   : > { %725 = vmatmul.mubr.bf16.gmra.mrb[44].mxu0 %v1572_v1  ;;  %1132 = vmatmul.mubr.bf16.gmra.mrb[44].mxu1 %v1573_v2 }
  0x83   : > { %1409 = vmatprep.mubr.msk.bf16.mxu0 %vm555_vm0, %v1574_v3  ;;  %1466 = vmatprep.mubr.msk.bf16.mxu1 %vm555_vm0, %v1576_v4 }
  0x8a   : > { %733 = vmatmul.mubr.bf16.gmra.mrb[48].mxu0 %v1578_v5  ;;  %1140 = vmatmul.mubr.bf16.gmra.mrb[48].mxu1 %v1579_v6 }
  0x8b   : > { %1410 = vmatprep.mubr.msk.bf16.mxu0 %vm555_vm0, %v1580_v7  ;;  %1467 = vmatprep.mubr.msk.bf16.mxu1 %vm555_vm0, %v1582_v8 }
  0x92   : > { %741 = vmatmul.mubr.bf16.gmra.mrb[52].mxu0 %v1584_v9  ;;  %1148 = vmatmul.mubr.bf16.gmra.mrb[52].mxu1 %v1585_v10 }
  0x93   : > { %1411 = vmatprep.mubr.msk.bf16.mxu0 %vm555_vm0, %v1586_v11  ;;  %1468 = vmatprep.mubr.msk.bf16.mxu1 %vm555_vm0, %v1588_v12 }
  0x9a   : > { %749 = vmatmul.mubr.bf16.gmra.mrb[56].mxu0 %v1590_v13  ;;  %1156 = vmatmul.mubr.bf16.gmra.mrb[56].mxu1 %v1591_v14 }
  0x9b   : > { %1412 = vmatprep.mubr.msk.bf16.mxu0 %vm555_vm0, %v1592_v15  ;;  %1469 = vmatprep.mubr.msk.bf16.mxu1 %vm555_vm0, %v1594_v16 }
  0xa2   : > { %757 = vmatmul.mubr.bf16.gmra.mrb[60].mxu0 %v1596_v17  ;;  %1164 = vmatmul.mubr.bf16.gmra.mrb[60].mxu1 %v1597_v18 }
  0xfd   : > { %v638_v19 = vpop.f32.mrb[0].mxu0  ;;  %v1045_v20 = vpop.f32.mrb[0].mxu1 }
  0xfe   : > { %v640_v22 = vpop.f32.mrb[1].mxu0  ;;  %v1046_v23 = vadd.f32 %v1045_v20, %v638_v19  ;;  %v1047_v24 = vpop.f32.mrb[1].mxu1 }
  0xff   : > { %v641_v25 = vpop.f32.mrb[2].mxu0  ;;  %v1048_v26 = vpop.f32.mrb[2].mxu1 }
 0x100   : > { %v643_v27 = vpop.f32.mrb[3].mxu0  ;;  %v1179_v28 = vadd.f32 %v1812_v21, %v1046_v23  ;;  %v1049_v29 = vadd.f32 %v1048_v26, %v641_v25  ;;  %v1050_v30 = vpop.f32.mrb[3].mxu1 }
 0x102   : > { %v1211_v31 = vmax.f32 %v1179_v28, 0.0  ;;  %v1180_v32 = vadd.f32 %v1812_v21, %v1049_v29 }
 0x104   : > { %1243 = vst.msk [vmem:[%s1819_s21] sm:$0xff] %vm555_vm0, %v1211_v31  ;;  %v1212_v33 = vmax.f32 %v1180_v32, 0.0 }
 0x105   : > { %v646_v34 = vpop.f32.mrb[4].mxu0  ;;  %v1053_v35 = vpop.f32.mrb[4].mxu1 }
 0x106   : > { %v648_v36 = vpop.f32.mrb[5].mxu0  ;;  %1244 = vst.msk [vmem:[%s1819_s21 + $0x8] sm:$0xff] %vm555_vm0, %v1212_v33  ;;  %v1054_v37 = vadd.f32 %v1053_v35, %v646_v34  ;;  %v1055_v38 = vpop.f32.mrb[5].mxu1 }
 0x107   : > { %v649_v39 = vpop.f32.mrb[6].mxu0  ;;  %v1056_v40 = vpop.f32.mrb[6].mxu1 }
 0x108   : > { %v651_v41 = vpop.f32.mrb[7].mxu0  ;;  %v1181_v42 = vadd.f32 %v1812_v21, %v1054_v37  ;;  %v1057_v43 = vadd.f32 %v1056_v40, %v649_v39  ;;  %v1058_v44 = vpop.f32.mrb[7].mxu1 }
 0x10a   : > { %v1213_v45 = vmax.f32 %v1181_v42, 0.0  ;;  %v1182_v46 = vadd.f32 %v1812_v21, %v1057_v43 }
 0x10c   : > { %1245 = vst.msk [vmem:[%s1819_s21 + $0x10] sm:$0xff] %vm555_vm0, %v1213_v45  ;;  %v1214_v47 = vmax.f32 %v1182_v46, 0.0 }
 0x10d   : > { %v654_v48 = vpop.f32.mrb[8].mxu0  ;;  %v1061_v49 = vpop.f32.mrb[8].mxu1 }
 0x10e   : > { %v656_v50 = vpop.f32.mrb[9].mxu0  ;;  %1246 = vst.msk [vmem:[%s1819_s21 + $0x18] sm:$0xff] %vm555_vm0, %v1214_v47  ;;  %v1062_v51 = vadd.f32 %v1061_v49, %v654_v48  ;;  %v1063_v52 = vpop.f32.mrb[9].mxu1 }
 0x10f   : > { %v657_v53 = vpop.f32.mrb[10].mxu0  ;;  %v1064_v54 = vpop.f32.mrb[10].mxu1 }
 0x110   : > { %v659_v55 = vpop.f32.mrb[11].mxu0  ;;  %v1183_v56 = vadd.f32 %v1812_v21, %v1062_v51  ;;  %v1065_v57 = vadd.f32 %v1064_v54, %v657_v53  ;;  %v1066_v58 = vpop.f32.mrb[11].mxu1 }
 0x112   : > { %v1215_v59 = vmax.f32 %v1183_v56, 0.0  ;;  %v1184_v60 = vadd.f32 %v1812_v21, %v1065_v57 }
 0x114   : > { %1247 = vst.msk [vmem:[%s1819_s21 + $0x20] sm:$0xff] %vm555_vm0, %v1215_v59  ;;  %v1216_v61 = vmax.f32 %v1184_v60, 0.0 }
 0x115   : > { %v662_v62 = vpop.f32.mrb[12].mxu0  ;;  %v1069_v63 = vpop.f32.mrb[12].mxu1 }
 0x116   : > { %v664_v0 = vpop.f32.mrb[13].mxu0  ;;  %1248 = vst.msk [vmem:[%s1819_s21 + $0x28] sm:$0xff] %vm555_vm0, %v1216_v61  ;;  %v1070_v1 = vadd.f32 %v1069_v63, %v662_v62  ;;  %v1071_v2 = vpop.f32.mrb[13].mxu1 }
 0x117   : > { %v665_v3 = vpop.f32.mrb[14].mxu0  ;;  %v1072_v4 = vpop.f32.mrb[14].mxu1 }
 0x118   : > { %v667_v5 = vpop.f32.mrb[15].mxu0  ;;  %v1185_v6 = vadd.f32 %v1812_v21, %v1070_v1  ;;  %v1073_v7 = vadd.f32 %v1072_v4, %v665_v3  ;;  %v1074_v8 = vpop.f32.mrb[15].mxu1 }
 0x11a   : > { %v1217_v9 = vmax.f32 %v1185_v6, 0.0  ;;  %v1186_v10 = vadd.f32 %v1812_v21, %v1073_v7 }
 0x11c   : > { %1249 = vst.msk [vmem:[%s1819_s21 + $0x30] sm:$0xff] %vm555_vm0, %v1217_v9  ;;  %v1218_v11 = vmax.f32 %v1186_v10, 0.0 }
 0x11d   : > { %v670_v12 = vpop.f32.mrb[16].mxu0  ;;  %v1077_v13 = vpop.f32.mrb[16].mxu1 }
 0x11e   : > { %v672_v14 = vpop.f32.mrb[17].mxu0  ;;  %1250 = vst.msk [vmem:[%s1819_s21 + $0x38] sm:$0xff] %vm555_vm0, %v1218_v11  ;;  %v1078_v15 = vadd.f32 %v1077_v13, %v670_v12  ;;  %v1079_v16 = vpop.f32.mrb[17].mxu1 }
 0x11f   : > { %v673_v17 = vpop.f32.mrb[18].mxu0  ;;  %v1080_v18 = vpop.f32.mrb[18].mxu1 }
 0x120   : > { %v675_v19 = vpop.f32.mrb[19].mxu0  ;;  %v1187_v20 = vadd.f32 %v1812_v21, %v1078_v15  ;;  %v1081_v22 = vadd.f32 %v1080_v18, %v673_v17  ;;  %v1082_v23 = vpop.f32.mrb[19].mxu1 }
 0x122   : > { %v1219_v24 = vmax.f32 %v1187_v20, 0.0  ;;  %v1188_v25 = vadd.f32 %v1812_v21, %v1081_v22 }
 0x124   : > { %1251 = vst.msk [vmem:[%s1819_s21 + $0x40] sm:$0xff] %vm555_vm0, %v1219_v24  ;;  %v1220_v26 = vmax.f32 %v1188_v25, 0.0 }
 0x125   : > { %v678_v27 = vpop.f32.mrb[20].mxu0  ;;  %v1085_v28 = vpop.f32.mrb[20].mxu1 }
 0x126   : > { %v680_v29 = vpop.f32.mrb[21].mxu0  ;;  %1252 = vst.msk [vmem:[%s1819_s21 + $0x48] sm:$0xff] %vm555_vm0, %v1220_v26  ;;  %v1086_v30 = vadd.f32 %v1085_v28, %v678_v27  ;;  %v1087_v31 = vpop.f32.mrb[21].mxu1 }
 0x127   : > { %v681_v32 = vpop.f32.mrb[22].mxu0  ;;  %v1088_v33 = vpop.f32.mrb[22].mxu1 }
 0x128   : > { %v683_v34 = vpop.f32.mrb[23].mxu0  ;;  %v1189_v35 = vadd.f32 %v1812_v21, %v1086_v30  ;;  %v1089_v36 = vadd.f32 %v1088_v33, %v681_v32  ;;  %v1090_v37 = vpop.f32.mrb[23].mxu1 }
 0x12a   : > { %v1221_v38 = vmax.f32 %v1189_v35, 0.0  ;;  %v1190_v39 = vadd.f32 %v1812_v21, %v1089_v36 }
 0x12c   : > { %1253 = vst.msk [vmem:[%s1819_s21 + $0x50] sm:$0xff] %vm555_vm0, %v1221_v38  ;;  %v1222_v40 = vmax.f32 %v1190_v39, 0.0 }
 0x12d   : > { %v686_v41 = vpop.f32.mrb[24].mxu0  ;;  %v1093_v42 = vpop.f32.mrb[24].mxu1 }
 0x12e   : > { %v688_v43 = vpop.f32.mrb[25].mxu0  ;;  %1254 = vst.msk [vmem:[%s1819_s21 + $0x58] sm:$0xff] %vm555_vm0, %v1222_v40  ;;  %v1094_v44 = vadd.f32 %v1093_v42, %v686_v41  ;;  %v1095_v45 = vpop.f32.mrb[25].mxu1 }
 0x12f   : > { %v689_v46 = vpop.f32.mrb[26].mxu0  ;;  %v1096_v47 = vpop.f32.mrb[26].mxu1 }
 0x130   : > { %v691_v48 = vpop.f32.mrb[27].mxu0  ;;  %v1191_v49 = vadd.f32 %v1812_v21, %v1094_v44  ;;  %v1097_v50 = vadd.f32 %v1096_v47, %v689_v46  ;;  %v1098_v51 = vpop.f32.mrb[27].mxu1 }
 0x132   : > { %v1223_v52 = vmax.f32 %v1191_v49, 0.0  ;;  %v1192_v53 = vadd.f32 %v1812_v21, %v1097_v50 }
 0x134   : > { %1255 = vst.msk [vmem:[%s1819_s21 + $0x60] sm:$0xff] %vm555_vm0, %v1223_v52  ;;  %v1224_v54 = vmax.f32 %v1192_v53, 0.0 }
 0x135   : > { %v694_v55 = vpop.f32.mrb[28].mxu0  ;;  %v1101_v56 = vpop.f32.mrb[28].mxu1 }
 0x136   : > { %v696_v57 = vpop.f32.mrb[29].mxu0  ;;  %1256 = vst.msk [vmem:[%s1819_s21 + $0x68] sm:$0xff] %vm555_vm0, %v1224_v54  ;;  %v1102_v58 = vadd.f32 %v1101_v56, %v694_v55  ;;  %v1103_v59 = vpop.f32.mrb[29].mxu1 }
 0x137   : > { %v697_v60 = vpop.f32.mrb[30].mxu0  ;;  %v1104_v61 = vpop.f32.mrb[30].mxu1 }
 0x138   : > { %v699_v62 = vpop.f32.mrb[31].mxu0  ;;  %v1193_v63 = vadd.f32 %v1812_v21, %v1102_v58  ;;  %v1105_v0 = vadd.f32 %v1104_v61, %v697_v60  ;;  %v1106_v1 = vpop.f32.mrb[31].mxu1 }
 0x13a   : > { %v1225_v2 = vmax.f32 %v1193_v63, 0.0  ;;  %v1194_v3 = vadd.f32 %v1812_v21, %v1105_v0 }
 0x13c   : > { %1257 = vst.msk [vmem:[%s1819_s21 + $0x70] sm:$0xff] %vm555_vm0, %v1225_v2  ;;  %v1226_v4 = vmax.f32 %v1194_v3, 0.0 }
 0x13d   : > { %v702_v5 = vpop.f32.mrb[32].mxu0  ;;  %v1109_v6 = vpop.f32.mrb[32].mxu1 }
 0x13e   : > { %v704_v7 = vpop.f32.mrb[33].mxu0  ;;  %1258 = vst.msk [vmem:[%s1819_s21 + $0x78] sm:$0xff] %vm555_vm0, %v1226_v4  ;;  %v1110_v8 = vadd.f32 %v1109_v6, %v702_v5  ;;  %v1111_v9 = vpop.f32.mrb[33].mxu1 }
 0x13f   : > { %v705_v10 = vpop.f32.mrb[34].mxu0  ;;  %v1112_v11 = vpop.f32.mrb[34].mxu1 }
 0x140   : > { %v707_v12 = vpop.f32.mrb[35].mxu0  ;;  %v1195_v13 = vadd.f32 %v1812_v21, %v1110_v8  ;;  %v1113_v14 = vadd.f32 %v1112_v11, %v705_v10  ;;  %v1114_v15 = vpop.f32.mrb[35].mxu1 }
 0x142   : > { %v1227_v16 = vmax.f32 %v1195_v13, 0.0  ;;  %v1196_v17 = vadd.f32 %v1812_v21, %v1113_v14 }
 0x144   : > { %1259 = vst.msk [vmem:[%s1819_s21 + $0x80] sm:$0xff] %vm555_vm0, %v1227_v16  ;;  %v1228_v18 = vmax.f32 %v1196_v17, 0.0 }
 0x145   : > { %v710_v19 = vpop.f32.mrb[36].mxu0  ;;  %v1117_v20 = vpop.f32.mrb[36].mxu1 }
 0x146   : > { %v712_v22 = vpop.f32.mrb[37].mxu0  ;;  %1260 = vst.msk [vmem:[%s1819_s21 + $0x88] sm:$0xff] %vm555_vm0, %v1228_v18  ;;  %v1118_v23 = vadd.f32 %v1117_v20, %v710_v19  ;;  %v1119_v24 = vpop.f32.mrb[37].mxu1 }
 0x147   : > { %v713_v25 = vpop.f32.mrb[38].mxu0  ;;  %v1120_v26 = vpop.f32.mrb[38].mxu1 }
 0x148   : > { %v715_v27 = vpop.f32.mrb[39].mxu0  ;;  %v1197_v28 = vadd.f32 %v1812_v21, %v1118_v23  ;;  %v1121_v29 = vadd.f32 %v1120_v26, %v713_v25  ;;  %v1122_v30 = vpop.f32.mrb[39].mxu1 }
 0x14a   : > { %v1229_v31 = vmax.f32 %v1197_v28, 0.0  ;;  %v1198_v32 = vadd.f32 %v1812_v21, %v1121_v29 }
 0x14c   : > { %1261 = vst.msk [vmem:[%s1819_s21 + $0x90] sm:$0xff] %vm555_vm0, %v1229_v31  ;;  %v1230_v33 = vmax.f32 %v1198_v32, 0.0 }
 0x14d   : > { %v718_v34 = vpop.f32.mrb[40].mxu0  ;;  %v1125_v35 = vpop.f32.mrb[40].mxu1 }
 0x14e   : > { %v720_v36 = vpop.f32.mrb[41].mxu0  ;;  %1262 = vst.msk [vmem:[%s1819_s21 + $0x98] sm:$0xff] %vm555_vm0, %v1230_v33  ;;  %v1126_v37 = vadd.f32 %v1125_v35, %v718_v34  ;;  %v1127_v38 = vpop.f32.mrb[41].mxu1 }
 0x14f   : > { %v721_v39 = vpop.f32.mrb[42].mxu0  ;;  %v1128_v40 = vpop.f32.mrb[42].mxu1 }
 0x150   : > { %v723_v41 = vpop.f32.mrb[43].mxu0  ;;  %v1199_v42 = vadd.f32 %v1812_v21, %v1126_v37  ;;  %v1129_v43 = vadd.f32 %v1128_v40, %v721_v39  ;;  %v1130_v44 = vpop.f32.mrb[43].mxu1 }
 0x152   : > { %v1231_v45 = vmax.f32 %v1199_v42, 0.0  ;;  %v1200_v46 = vadd.f32 %v1812_v21, %v1129_v43 }
 0x154   : > { %1263 = vst.msk [vmem:[%s1819_s21 + $0xa0] sm:$0xff] %vm555_vm0, %v1231_v45  ;;  %v1232_v47 = vmax.f32 %v1200_v46, 0.0 }
 0x155   : > { %v726_v48 = vpop.f32.mrb[44].mxu0  ;;  %v1133_v49 = vpop.f32.mrb[44].mxu1 }
 0x156   : > { %v728_v50 = vpop.f32.mrb[45].mxu0  ;;  %1264 = vst.msk [vmem:[%s1819_s21 + $0xa8] sm:$0xff] %vm555_vm0, %v1232_v47  ;;  %v1134_v51 = vadd.f32 %v1133_v49, %v726_v48  ;;  %v1135_v52 = vpop.f32.mrb[45].mxu1 }
 0x157   : > { %v729_v53 = vpop.f32.mrb[46].mxu0  ;;  %v1136_v54 = vpop.f32.mrb[46].mxu1 }
 0x158   : > { %v731_v55 = vpop.f32.mrb[47].mxu0  ;;  %v1201_v56 = vadd.f32 %v1812_v21, %v1134_v51  ;;  %v1137_v57 = vadd.f32 %v1136_v54, %v729_v53  ;;  %v1138_v58 = vpop.f32.mrb[47].mxu1 }
 0x15a   : > { %v1233_v59 = vmax.f32 %v1201_v56, 0.0  ;;  %v1202_v60 = vadd.f32 %v1812_v21, %v1137_v57 }
 0x15c   : > { %1265 = vst.msk [vmem:[%s1819_s21 + $0xb0] sm:$0xff] %vm555_vm0, %v1233_v59  ;;  %v1234_v61 = vmax.f32 %v1202_v60, 0.0 }
 0x15d   : > { %v734_v62 = vpop.f32.mrb[48].mxu0  ;;  %v1141_v63 = vpop.f32.mrb[48].mxu1 }
 0x15e   : > { %v736_v0 = vpop.f32.mrb[49].mxu0  ;;  %1266 = vst.msk [vmem:[%s1819_s21 + $0xb8] sm:$0xff] %vm555_vm0, %v1234_v61  ;;  %v1142_v1 = vadd.f32 %v1141_v63, %v734_v62  ;;  %v1143_v2 = vpop.f32.mrb[49].mxu1 }
 0x15f   : > { %v737_v3 = vpop.f32.mrb[50].mxu0  ;;  %v1144_v4 = vpop.f32.mrb[50].mxu1 }
 0x160   : > { %v739_v5 = vpop.f32.mrb[51].mxu0  ;;  %v1203_v6 = vadd.f32 %v1812_v21, %v1142_v1  ;;  %v1145_v7 = vadd.f32 %v1144_v4, %v737_v3  ;;  %v1146_v8 = vpop.f32.mrb[51].mxu1 }
 0x162   : > { %v1235_v9 = vmax.f32 %v1203_v6, 0.0  ;;  %v1204_v10 = vadd.f32 %v1812_v21, %v1145_v7 }
 0x164   : > { %1267 = vst.msk [vmem:[%s1819_s21 + $0xc0] sm:$0xff] %vm555_vm0, %v1235_v9  ;;  %v1236_v11 = vmax.f32 %v1204_v10, 0.0 }
 0x165   : > { %v742_v12 = vpop.f32.mrb[52].mxu0  ;;  %v1149_v13 = vpop.f32.mrb[52].mxu1 }
 0x166   : > { %v744_v14 = vpop.f32.mrb[53].mxu0  ;;  %1268 = vst.msk [vmem:[%s1819_s21 + $0xc8] sm:$0xff] %vm555_vm0, %v1236_v11  ;;  %v1150_v15 = vadd.f32 %v1149_v13, %v742_v12  ;;  %v1151_v16 = vpop.f32.mrb[53].mxu1 }
 0x167   : > { %v745_v17 = vpop.f32.mrb[54].mxu0  ;;  %v1152_v18 = vpop.f32.mrb[54].mxu1 }
 0x168   : > { %v747_v19 = vpop.f32.mrb[55].mxu0  ;;  %v1205_v20 = vadd.f32 %v1812_v21, %v1150_v15  ;;  %v1153_v22 = vadd.f32 %v1152_v18, %v745_v17  ;;  %v1154_v23 = vpop.f32.mrb[55].mxu1 }
 0x16a   : > { %v1237_v24 = vmax.f32 %v1205_v20, 0.0  ;;  %v1206_v25 = vadd.f32 %v1812_v21, %v1153_v22 }
 0x16c   : > { %1269 = vst.msk [vmem:[%s1819_s21 + $0xd0] sm:$0xff] %vm555_vm0, %v1237_v24  ;;  %v1238_v26 = vmax.f32 %v1206_v25, 0.0 }
 0x16d   : > { %v750_v27 = vpop.f32.mrb[56].mxu0  ;;  %v1157_v28 = vpop.f32.mrb[56].mxu1 }
 0x16e   : > { %v752_v29 = vpop.f32.mrb[57].mxu0  ;;  %1270 = vst.msk [vmem:[%s1819_s21 + $0xd8] sm:$0xff] %vm555_vm0, %v1238_v26  ;;  %v1158_v30 = vadd.f32 %v1157_v28, %v750_v27  ;;  %v1159_v31 = vpop.f32.mrb[57].mxu1 }
 0x16f   : > { %v753_v32 = vpop.f32.mrb[58].mxu0  ;;  %v1160_v33 = vpop.f32.mrb[58].mxu1 }
 0x170   : > { %v755_v34 = vpop.f32.mrb[59].mxu0  ;;  %v1207_v35 = vadd.f32 %v1812_v21, %v1158_v30  ;;  %v1161_v36 = vadd.f32 %v1160_v33, %v753_v32  ;;  %v1162_v37 = vpop.f32.mrb[59].mxu1 }
 0x172   : > { %v1239_v38 = vmax.f32 %v1207_v35, 0.0  ;;  %v1208_v39 = vadd.f32 %v1812_v21, %v1161_v36 }
 0x174   : > { %1271 = vst.msk [vmem:[%s1819_s21 + $0xe0] sm:$0xff] %vm555_vm0, %v1239_v38  ;;  %v1240_v40 = vmax.f32 %v1208_v39, 0.0 }
 0x175   : > { %v758_v41 = vpop.f32.mrb[60].mxu0  ;;  %v1165_v42 = vpop.f32.mrb[60].mxu1 }
 0x176   : > { %v760_v43 = vpop.f32.mrb[61].mxu0  ;;  %1272 = vst.msk [vmem:[%s1819_s21 + $0xe8] sm:$0xff] %vm555_vm0, %v1240_v40  ;;  %v1166_v44 = vadd.f32 %v1165_v42, %v758_v41  ;;  %v1167_v45 = vpop.f32.mrb[61].mxu1 }
 0x177   : > { %v761_v46 = vpop.f32.mrb[62].mxu0  ;;  %v1168_v47 = vpop.f32.mrb[62].mxu1 }
 0x178   : > { %v763_v48 = vpop.f32.mrb[63].mxu0  ;;  %v1209_v49 = vadd.f32 %v1812_v21, %v1166_v44  ;;  %v1169_v50 = vadd.f32 %v1168_v47, %v761_v46  ;;  %v1170_v51 = vpop.f32.mrb[63].mxu1 }
 0x17a   : > { %v1241_v52 = vmax.f32 %v1209_v49, 0.0  ;;  %v1210_v53 = vadd.f32 %v1812_v21, %v1169_v50 }
 0x17c   : > { %1273 = vst.msk [vmem:[%s1819_s21 + $0xf0] sm:$0xff] %vm555_vm0, %v1241_v52  ;;  %v1242_v54 = vmax.f32 %v1210_v53, 0.0 }
 0x17e   : > { %1274 = vst.msk [vmem:[%s1819_s21 + $0xf8] sm:$0xff] %vm555_vm0, %v1242_v54 }
 0x17f PF: > { %s15_s18 = sadd.s32 1, %s1604_s18  }
 0x180   : > { %p12_p4 = scmp.ge.s32.totalorder %s15_s18, 4  }
 0x182   :  { %14 = sbr.rel (!%p12_p4) target bundleno = 1 (0x1), region = 73 }

// kernel: unet_forward.21
= control target key start
LH: loop header
LB: loop body
LE: loop exit
PB: predicated region body
PF: predicated region fallthrough
CT: control target
= control target key end

     0   :  { %v393_v1 = vmov 0.0   ;;  %vm394_vm0 = vmmov 0   ;;  %vm245_vm1 = vcmask 523264   ;;  %s497_s1 = inlined_call_operand.vmem [shape: bf16[256,64], index: 1, kind: input, shape index: {}]   ;;  %s498_s0 = inlined_call_operand.vmem [shape: bf16[8,256], index: 0, kind: input, shape index: {}]   ;;  %s499_s3 = inlined_call_operand.vmem [shape: bf16[64,128], index: 3, kind: input, shape index: {}]   ;;  %s500_s2 = inlined_call_operand.vmem [shape: f32[1,64], index: 2, kind: input, shape index: {}]   ;;  %s501_s4 = inlined_call_operand.vmem [shape: f32[1,128], index: 4, kind: input, shape index: {}]   ;;  %s502_s5 = inlined_call_operand.vmem [shape: f32[8,128], index: 5, kind: output, shape index: {}]  }
   0x1   :  { %v367_v0 = vld [vmem:[%s497_s1 + $0x40] sm:$0xff]   ;;  %353 = vmatprep.subr.bf16.mxu1 %v393_v1  ;;  %v369_v3 = vld [vmem:[%s497_s1 + $0x48] sm:$0xff]   ;;  %v371_v5 = vld [vmem:[%s497_s1 + $0x50] sm:$0xff]   ;;  %361 = vmatprep.mubr.msk.bf16.mxu1 %vm394_vm0, %v393_v1 }
   0x2   :  { %v368_v2 = vld [vmem:[%s497_s1] sm:$0xff]   ;;  %326 = vmatprep.subr.bf16.mxu0 %v367_v0  ;;  %v370_v4 = vld [vmem:[%s497_s1 + $0x8] sm:$0xff]   ;;  %v372_v6 = vld [vmem:[%s497_s1 + $0x10] sm:$0xff]  }
   0x3   :  { %327 = vmatpush3.bf16.msra.mxu0 %v368_v2  ;;  %v373_v7 = vld [vmem:[%s497_s1 + $0x58] sm:$0xff]   ;;  %v375_v9 = vld [vmem:[%s497_s1 + $0x60] sm:$0xff]   ;;  %v377_v11 = vld [vmem:[%s497_s1 + $0x68] sm:$0xff]  }
   0x4   :  { %328 = vmatprep.subr.bf16.mxu0 %v369_v3  ;;  %v374_v8 = vld [vmem:[%s497_s1 + $0x18] sm:$0xff]   ;;  %v376_v10 = vld [vmem:[%s497_s1 + $0x20] sm:$0xff]   ;;  %v378_v15 = vld [vmem:[%s497_s1 + $0x28] sm:$0xff]  }
   0x5   :  { %v21_v12 = vld [vmem:[%s498_s0] sm:$0xff]  ;;  %v379_v16 = vld [vmem:[%s497_s1 + $0x70] sm:$0xff]   ;;  %v386_v17 = vld [vmem:[%s499_s3 + $0x8] sm:$0xff]  }
   0x6   :  { %v302_v13 = vcombine.high %v21_v12, %v21_v12  ;;  %v385_v14 = vld [vmem:[%s499_s3] sm:$0xff]   ;;  %v380_v18 = vld [vmem:[%s497_s1 + $0x30] sm:$0xff]   ;;  %v381_v19 = vld [vmem:[%s497_s1 + $0x78] sm:$0xff]   ;;  %v301_v21 = vcombine.low %v21_v12, %v21_v12 }
   0x7   :  { %329 = vmatpush3.bf16.msra.mxu0 %v370_v4  ;;  %354 = vmatpush3.bf16.msra.mxu1 %v385_v14  ;;  %v382_v20 = vld [vmem:[%s497_s1 + $0x38] sm:$0xff]   ;;  %v387_v22 = vld [vmem:[%s499_s3 + $0x10] sm:$0xff]   ;;  %v300_v25 = vld [vmem:[%s500_s2] ss:$0 sm:$0xff] }
   0x8   :  { %330 = vmatprep.subr.bf16.mxu0 %v371_v5  ;;  %196 = vmatprep.mubr.bf16.mxu0 %v302_v13  ;;  %v388_v23 = vld [vmem:[%s499_s3 + $0x18] sm:$0xff]   ;;  %v319_v33 = vld [vmem:[%s501_s4] ss:$0 sm:$0xff] }
   0x9   :  { %355 = vmatprep.subr.bf16.mxu1 %v393_v1 }
   0xb   :  { %331 = vmatpush3.bf16.msra.mxu0 %v372_v6  ;;  %356 = vmatpush3.bf16.msra.mxu1 %v386_v17 }
   0xc   :  { %332 = vmatprep.subr.bf16.mxu0 %v373_v7  ;;  %357 = vmatprep.subr.bf16.mxu1 %v393_v1 }
   0xf   :  { %333 = vmatpush3.bf16.msra.mxu0 %v374_v8  ;;  %358 = vmatpush3.bf16.msra.mxu1 %v387_v22 }
  0x10   :  { %334 = vmatprep.subr.bf16.mxu0 %v375_v9  ;;  %359 = vmatprep.subr.bf16.mxu1 %v393_v1 }
  0x13   :  { %335 = vmatpush3.bf16.msra.mxu0 %v376_v10  ;;  %360 = vmatpush3.bf16.msra.mxu1 %v388_v23 }
  0x14   :  { %336 = vmatprep.subr.bf16.mxu0 %v377_v11 }
  0x17   :  { %337 = vmatpush3.bf16.msra.mxu0 %v378_v15 }
  0x18   :  { %338 = vmatprep.subr.bf16.mxu0 %v379_v16 }
  0x1b   :  { %339 = vmatpush3.bf16.msra.mxu0 %v380_v18 }
  0x1c   :  { %340 = vmatprep.subr.bf16.mxu0 %v381_v19 }
  0x1f   :  { %341 = vmatpush3.bf16.msra.mxu0 %v382_v20 }
  0x22   :  { %197 = vmatmul.mubr.bf16.vlgmr.msra.gmra.mrb[0].mxu0 %v301_v21 }
  0xf5   :  { %v342_v24 = vpop.f32.mrb[0].mxu0 }
  0xf6   :  { %v343_v26 = vpop.f32.mrb[1].mxu0 }
  0xf7   :  { %v344_v27 = vadd.f32 %v343_v26, %v342_v24  ;;  %v345_v28 = vpop.f32.mrb[2].mxu0 }
  0xf8   :  { %v346_v29 = vpop.f32.mrb[3].mxu0 }
  0xf9   :  { %v199_v30 = vadd.f32 %v344_v27, %v300_v25 }
  0xfb   :  { %v204_v31 = vmax.f32 %v199_v30, 0.0 }
  0xfd   :  { %v205_v32 = vpack.c.bf16 %v204_v31, %v204_v31 }
  0xff   :  { %362 = vmatmul.mubr.msk.bf16.vlgmr.msra.gmra.mrb[0].mxu1 %vm245_vm1, %v205_v32 }
 0x1d2   :  { %v283_v34 = vpop.f32.mrb[0].mxu1 }
 0x1d3   :  { %v284_v35 = vadd.f32 %v319_v33, %v283_v34  ;;  %v363_v36 = vpop.f32.mrb[1].mxu1 }
 0x1d4   :  { %v286_v37 = vpop.f32.mrb[2].mxu1 }
 0x1d5   :  { %v325_v38 = vmul.f32 -1.442695, %v284_v35  ;;  %v364_v39 = vpop.f32.mrb[3].mxu1 }
 0x1d7   :  { %389 = vpow2.f32 %v325_v38 }
 0x1e1   :  { %v390_v40 = vpop.eup %389 }
 0x1e2   :  { %v292_v41 = vadd.f32 1.0, %v390_v40 }
 0x1e4   :  { %391 = vrcp.f32 %v292_v41 }
 0x1ee   :  { %v392_v42 = vpop.eup %391 }
 0x1ef   :  { %295 = vst [vmem:[%s502_s5] sm:$0xff] %v392_v42 }

</bundles_post_ra>
